<compile_context>
chip_gen: v7x
topology: tpu7x:2x2x1
jax: 0.10.0
libtpu: 0.0.40
codegen_flags: <defaults>
</compile_context>

<pallas_src>
import functools

import jax
import jax.numpy as jnp
from jax.experimental import pallas as pl
from jax.experimental.pallas import tpu as pltpu

LRELU_ALPHA = 0.2
BN_EPS = 1e-5          # nn.BatchNorm2d default eps
ROW_TARGET = 256       # max patch rows per matmul chunk (bounds acc pressure)


# ---------------------------------------------------------------------------
# helpers
# ---------------------------------------------------------------------------
def _round_up(x, m):
    return (x + m - 1) // m * m


def _vmem_limit_bytes():
    """Generation-aware scoped-VMEM budget (conservative fallback)."""
    try:
        info = pltpu.get_tpu_info()
        cap = int(getattr(info, "vmem_capacity_bytes", 64 * 1024 * 1024))
        return min((cap * 3) // 4, 96 * 1024 * 1024)
    except Exception:
        return 48 * 1024 * 1024


def _leaky(v):
    return jnp.where(v >= 0.0, v, LRELU_ALPHA * v)


def _chunk_sizes(hout, wp):
    """Static output-row chunk sizes so hc * wp <= ROW_TARGET."""
    hc_max = max(1, min(hout, ROW_TARGET // wp))
    chunks, rem = [], hout
    while rem > 0:
        c = min(hc_max, rem)
        chunks.append(c)
        rem -= c
    return tuple(chunks)


# ---------------------------------------------------------------------------
# Fused kernel: [BN affine + LeakyReLU prologue]  ->  3x3 conv (one folded
# matmul with K = pad(9*cin) per row chunk)  ->  [+bias] [LeakyReLU epilogue]
# and optional per-batch partial BN statistics of the raw conv output.
# ---------------------------------------------------------------------------
def _conv_kernel(x_ref, w_ref, b_ref, sc_ref, sh_ref, *rest,
                 stride, h_in, w_in, hout, wout, wp, cin_s, cout_s, k_p,
                 chunks, prologue_act, epilogue_act, emit_stats):
    if emit_stats:
        o_ref, sum_ref, ssq_ref, pad_s = rest
    else:
        o_ref, pad_s = rest
        sum_ref = ssq_ref = None

    # ---- prologue: normalize + activate the producer's raw output ----------
    x = x_ref[0].astype(jnp.float32)                      # (h_in, w_in, cin_s)
    z = x * sc_ref[...] + sh_ref[...]                     # (1, cin_s) broadcast
    if prologue_act:
        z = _leaky(z)
    z = z.astype(jnp.bfloat16)

    # ---- build zero-padded (and phase-split for stride 2) input in VMEM ----
    pad_s[...] = jnp.zeros(pad_s.shape, pad_s.dtype)
    if stride == 1:
        pad_s[pl.ds(1, h_in), pl.ds(1, w_in), :] = z
    else:
        h2, w2 = h_in // 2, w_in // 2
        zr = z.reshape(h2, 2, w_in, cin_s)                # split rows by parity
        z_even_r = zr[:, 0, :, :]
        z_odd_r = zr[:, 1, :, :]

        def _split_cols(v):
            vc = v.reshape(h2, w2, 2, cin_s)              # split cols by parity
            return vc[:, :, 0, :], vc[:, :, 1, :]

        z_ee, z_eo = _split_cols(z_even_r)
        z_oe, z_oo = _split_cols(z_odd_r)
        # phase(a, b)[i, j] == x_pad[2i + a, 2j + b]
        pad_s[0, 0, pl.ds(1, h2), pl.ds(1, w2), :] = z_oo
        pad_s[0, 1, pl.ds(1, h2), pl.ds(0, w2), :] = z_oe
        pad_s[1, 0, pl.ds(0, h2), pl.ds(1, w2), :] = z_eo
        pad_s[1, 1, pl.ds(0, h2), pl.ds(0, w2), :] = z_ee

    if emit_stats:
        s0 = jnp.zeros((cout_s,), jnp.float32)
        s1 = jnp.zeros((cout_s,), jnp.float32)

    # ---- folded 3x3 conv: one (rows, k_p) x (k_p, cout_s) matmul per chunk --
    r0 = 0
    for hc in chunks:
        taps = []
        for kh in range(3):
            for kw in range(3):
                if stride == 1:
                    sl = pad_s[pl.ds(r0 + kh, hc), pl.ds(kw, wp), :]
                else:
                    a, b, dh, dw = kh % 2, kw % 2, kh // 2, kw // 2
                    sl = pad_s[a, b, pl.ds(r0 + dh, hc), pl.ds(dw, wp), :]
                taps.append(sl)                           # (hc, wp, cin_s) bf16
        if k_p > 9 * cin_s:                               # pad K to 128-multiple
            taps.append(jnp.zeros((hc, wp, k_p - 9 * cin_s), jnp.bfloat16))
        patch = jnp.concatenate(taps, axis=-1).reshape(hc * wp, k_p)
        acc = jnp.dot(patch, w_ref[...], preferred_element_type=jnp.float32)
        acc = acc + b_ref[...]                            # zeros when no bias

        y = acc.reshape(hc, wp, cout_s)[:, :wout, :]      # drop width padding
        if emit_stats:
            s0 = s0 + jnp.sum(y, axis=(0, 1))
            s1 = s1 + jnp.sum(y * y, axis=(0, 1))
        if epilogue_act:
            y = _leaky(y)
        o_ref[0, pl.ds(r0, hc), :, :] = y.astype(o_ref.dtype)
        r0 += hc

    if emit_stats:
        sum_ref[...] = s0.reshape(1, 1, cout_s)
        ssq_ref[...] = s1.reshape(1, 1, cout_s)


def conv_layer(x, w, b, sc, sh, *, stride, hout, wout, cout_s, k_p,
               prologue_act, epilogue_act, emit_stats, out_dtype):
    n, h_in, w_in, cin_s = x.shape
    wp = _round_up(wout, 8)                 # tile-exact patch / reshape width
    chunks = _chunk_sizes(hout, wp)

    if stride == 1:
        pad_scratch = pltpu.VMEM((hout + 2, wp + 2, cin_s), jnp.bfloat16)
    else:
        pad_scratch = pltpu.VMEM((2, 2, hout + 1, wp + 1, cin_s), jnp.bfloat16)

    in_specs = [
        pl.BlockSpec((1, h_in, w_in, cin_s), lambda i: (i, 0, 0, 0)),
        pl.BlockSpec(w.shape, lambda i: (0, 0)),
        pl.BlockSpec(b.shape, lambda i: (0, 0)),
        pl.BlockSpec(sc.shape, lambda i: (0, 0)),
        pl.BlockSpec(sh.shape, lambda i: (0, 0)),
    ]
    out_shapes = [jax.ShapeDtypeStruct((n, hout, wout, cout_s), out_dtype)]
    out_specs = [pl.BlockSpec((1, hout, wout, cout_s), lambda i: (i, 0, 0, 0))]
    if emit_stats:
        out_shapes += [jax.ShapeDtypeStruct((n, 1, cout_s), jnp.float32)] * 2
        out_specs += [pl.BlockSpec((1, 1, cout_s), lambda i: (i, 0, 0))] * 2

    kernel = functools.partial(
        _conv_kernel, stride=stride, h_in=h_in, w_in=w_in, hout=hout,
        wout=wout, wp=wp, cin_s=cin_s, cout_s=cout_s, k_p=k_p, chunks=chunks,
        prologue_act=prologue_act, epilogue_act=epilogue_act,
        emit_stats=emit_stats)

    return pl.pallas_call(
        kernel,
        out_shape=tuple(out_shapes),
        grid=(n,),
        in_specs=in_specs,
        out_specs=tuple(out_specs),
        scratch_shapes=[pad_scratch],
        compiler_params=pltpu.CompilerParams(
            dimension_semantics=("parallel",),
            vmem_limit_bytes=_vmem_limit_bytes()),
    )(x, w, b, sc, sh)


# ---------------------------------------------------------------------------
# Parameters: construction mirrors NLayerDiscriminator.__init__ (BatchNorm2d
# norm layer => no conv bias on BN layers), then a one-time relayout.
# ---------------------------------------------------------------------------
def init_params(key, input_nc, ndf=8, n_layers=3):
    cfg = [(input_nc, ndf, 1, True, False, True)]          # conv + LeakyReLU
    nf_mult = 1
    for nl in range(1, n_layers):
        nf_prev, nf_mult = nf_mult, min(2 ** nl, 8)
        cfg.append((ndf * nf_prev, ndf * nf_mult, 2, False, True, True))
    cfg.append((ndf * nf_mult, ndf * 2, 1, False, True, True))
    cfg.append((ndf * 2, 1, 1, True, False, False))         # final 1-ch conv

    params = []
    for cin, cout, stride, ub, ubn, ua in cfg:
        key, k1, k2 = jax.random.split(key, 3)
        w = jax.random.normal(k1, (cout, cin, 3, 3), jnp.float32) * 0.05
        b = (jax.random.normal(k2, (cout,), jnp.float32) * 0.05
             if ub else jnp.zeros((cout,), jnp.float32))
        params.append(dict(w=w, b=b,
                           gamma=jnp.ones((cout,), jnp.float32),
                           beta=jnp.zeros((cout,), jnp.float32),
                           stride=stride, use_bias=ub, use_bn=ubn, use_act=ua))
    return params


def prepare_params(raw_params):
    """One-time weight relayout to (pad(9*cin, 128), pad(cout, 8)) bf16."""
    prepared = []
    for p in raw_params:
        cout, cin = p["w"].shape[:2]
        cin_s = _round_up(cin, 8)
        cout_s = _round_up(cout, 8)
        k_p = _round_up(9 * cin_s, 128)
        wt = jnp.transpose(p["w"], (2, 3, 1, 0))            # (3,3,Cin,Cout)
        wt = jnp.pad(wt, ((0, 0), (0, 0), (0, cin_s - cin), (0, cout_s - cout)))
        wt = wt.reshape(9 * cin_s, cout_s)
        wt = jnp.pad(wt, ((0, k_p - 9 * cin_s), (0, 0)))
        prepared.append(dict(
            w=wt.astype(jnp.bfloat16),
            b=jnp.pad(p["b"], (0, cout_s - cout)).reshape(1, cout_s)
              .astype(jnp.float32),
            gamma=jnp.pad(p["gamma"], (0, cout_s - cout)).astype(jnp.float32),
            beta=jnp.pad(p["beta"], (0, cout_s - cout)).astype(jnp.float32),
            stride=p["stride"], use_bias=p["use_bias"],
            use_bn=p["use_bn"], use_act=p["use_act"],
            cin=cin, cout=cout, cin_s=cin_s, cout_s=cout_s, k_p=k_p))
    return prepared


# ---------------------------------------------------------------------------
# Forward pass (NCHW in / NCHW out, like the PyTorch module)
# ---------------------------------------------------------------------------
def nlayer_discriminator_forward(x_nchw, params):
    x = jnp.transpose(x_nchw, (0, 2, 3, 1))                 # NCHW -> NHWC
    n, h, w, c = x.shape
    x = jnp.pad(x, ((0, 0), (0, 0), (0, 0), (0, params[0]["cin_s"] - c)))
    x = x.astype(jnp.bfloat16)

    # prologue of the first conv kernel: identity
    sc = jnp.ones((1, params[0]["cin_s"]), jnp.float32)
    sh = jnp.zeros((1, params[0]["cin_s"]), jnp.float32)
    prologue_act = False

    num_layers = len(params)
    for li, p in enumerate(params):
        _, h, w, _ = x.shape
        stride = p["stride"]
        if stride == 1:
            hout, wout = h, w
        else:
            assert h % 2 == 0 and w % 2 == 0
            hout, wout = h // 2, w // 2

        is_last = li == num_layers - 1
        out_dtype = jnp.float32 if is_last else jnp.bfloat16
        res = conv_layer(
            x, p["w"], p["b"], sc, sh,
            stride=stride, hout=hout, wout=wout,
            cout_s=p["cout_s"], k_p=p["k_p"],
            prologue_act=prologue_act,
            epilogue_act=(p["use_act"] and not p["use_bn"]),
            emit_stats=p["use_bn"],
            out_dtype=out_dtype)

        y = res[0]                                          # (N, Hout, Wout, Cs)
        if p["use_bn"]:
            # exact train-mode batch statistics (biased variance, like PyTorch)
            cnt = float(n * hout * wout)
            s0 = jnp.sum(res[1], axis=(0, 1))               # (Cs,) f32
            s1 = jnp.sum(res[2], axis=(0, 1))
            mean = s0 / cnt
            var = jnp.maximum(s1 / cnt - mean * mean, 0.0)
            scale = p["gamma"] * jax.lax.rsqrt(var + BN_EPS)
            shift = p["beta"] - mean * scale
            sc = scale.reshape(1, p["cout_s"])
            sh = shift.reshape(1, p["cout_s"])
            prologue_act = p["use_act"]                     # deferred LeakyReLU
        else:
            sc = jnp.ones((1, p["cout_s"]), jnp.float32)
            sh = jnp.zeros((1, p["cout_s"]), jnp.float32)
            prologue_act = False
        x = y

    out = x[..., :1]                                        # real Cout = 1
    return jnp.transpose(out, (0, 3, 1, 2))                 # NHWC -> NCHW


if __name__ == "__main__":
    key = jax.random.PRNGKey(0)
    k_x, k_p = jax.random.split(key)

    # Small synthetic shapes: batch=2, input_nc=4, spatial=16x16, ndf=8.
    x = jax.random.normal(k_x, (2, 4, 16, 16), jnp.float32)
    raw = init_params(k_p, input_nc=4, ndf=8, n_layers=3)
    params = prepare_params(raw)

    fwd = jax.jit(lambda inp: nlayer_discriminator_forward(inp, params))
    out = jax.block_until_ready(fwd(x))

    # Expected PatchGAN map: (N, 1, H/4, W/4) = (2, 1, 4, 4)
    assert out.shape == (2, 1, 4, 4), out.shape
    assert bool(jnp.all(jnp.isfinite(out)))
    print("KERNEL_OK")
</pallas_src>

<mosaic_0001>
module attributes {stable_mosaic.version = 11 : i64} {
  func.func @_conv_kernel(%arg0: i32, %arg1: memref<1x16x16x8xbf16, #tpu.memory_space<vmem>>, %arg2: memref<128x8xbf16, #tpu.memory_space<vmem>>, %arg3: memref<1x8xf32, #tpu.memory_space<vmem>>, %arg4: memref<1x8xf32, #tpu.memory_space<vmem>>, %arg5: memref<1x8xf32, #tpu.memory_space<vmem>>, %arg6: memref<1x16x16x8xbf16, #tpu.memory_space<vmem>>, %arg7: memref<18x18x8xbf16, #tpu.memory_space<vmem>>) attributes {dimension_semantics = [#tpu.dimension_semantics<parallel>], iteration_bounds = array<i64: 2>, scalar_prefetch = 0 : i64, scratch_operands = 1 : i64, tpu.core_type = #tpu.core_type<tc>, window_params = [{transform_indices = @transform_0, window_bounds = array<i64: 1, 16, 16, 8>}, {pipeline_mode = #tpu.pipeline_mode<synchronous>, transform_indices = @transform_1, window_bounds = array<i64: 128, 8>}, {pipeline_mode = #tpu.pipeline_mode<synchronous>, transform_indices = @transform_2, window_bounds = array<i64: 1, 8>}, {pipeline_mode = #tpu.pipeline_mode<synchronous>, transform_indices = @transform_3, window_bounds = array<i64: 1, 8>}, {pipeline_mode = #tpu.pipeline_mode<synchronous>, transform_indices = @transform_4, window_bounds = array<i64: 1, 8>}, {transform_indices = @transform_5, window_bounds = array<i64: 1, 16, 16, 8>}]} {
    %c0 = arith.constant 0 : index
    %c0_0 = arith.constant 0 : index
    %c0_1 = arith.constant 0 : index
    %c0_2 = arith.constant 0 : index
    %0 = vector.load %arg1[%c0, %c0_0, %c0_1, %c0_2] : memref<1x16x16x8xbf16, #tpu.memory_space<vmem>>, vector<1x16x16x8xbf16>
    %1 = vector.shape_cast %0 : vector<1x16x16x8xbf16> to vector<16x16x8xbf16>
    %2 = arith.extf %1 : vector<16x16x8xbf16> to vector<16x16x8xf32>
    %c0_3 = arith.constant 0 : index
    %c0_4 = arith.constant 0 : index
    %3 = vector.load %arg4[%c0_3, %c0_4] : memref<1x8xf32, #tpu.memory_space<vmem>>, vector<1x8xf32>
    %4 = vector.shape_cast %3 : vector<1x8xf32> to vector<1x1x8xf32>
    %5 = vector.broadcast %4 : vector<1x1x8xf32> to vector<16x16x8xf32>
    %6 = arith.mulf %2, %5 : vector<16x16x8xf32>
    %c0_5 = arith.constant 0 : index
    %c0_6 = arith.constant 0 : index
    %7 = vector.load %arg5[%c0_5, %c0_6] : memref<1x8xf32, #tpu.memory_space<vmem>>, vector<1x8xf32>
    %8 = vector.shape_cast %7 : vector<1x8xf32> to vector<1x1x8xf32>
    %9 = vector.broadcast %8 : vector<1x1x8xf32> to vector<16x16x8xf32>
    %10 = arith.addf %6, %9 : vector<16x16x8xf32>
    %11 = arith.truncf %10 : vector<16x16x8xf32> to vector<16x16x8xbf16>
    %cst = arith.constant 0.000000e+00 : bf16
    %12 = vector.broadcast %cst : bf16 to vector<18x18x8xbf16>
    %c0_7 = arith.constant 0 : index
    %c0_8 = arith.constant 0 : index
    %c0_9 = arith.constant 0 : index
    %13 = vector.load %arg7[%c0_7, %c0_8, %c0_9] : memref<18x18x8xbf16, #tpu.memory_space<vmem>>, vector<18x18x8xbf16>
    tpu.vector_store %arg7[%c0_7, %c0_8, %c0_9], %12 {strides = array<i32>} : memref<18x18x8xbf16, #tpu.memory_space<vmem>>, vector<18x18x8xbf16>,
    %c1 = arith.constant 1 : index
    %c1_10 = arith.constant 1 : index
    %c0_11 = arith.constant 0 : index
    %14 = vector.load %arg7[%c1, %c1_10, %c0_11] : memref<18x18x8xbf16, #tpu.memory_space<vmem>>, vector<16x16x8xbf16>
    tpu.vector_store %arg7[%c1, %c1_10, %c0_11], %11 {strides = array<i32>} : memref<18x18x8xbf16, #tpu.memory_space<vmem>>, vector<16x16x8xbf16>,
    %c0_12 = arith.constant 0 : index
    %c0_13 = arith.constant 0 : index
    %c0_14 = arith.constant 0 : index
    %15 = vector.load %arg7[%c0_12, %c0_13, %c0_14] : memref<18x18x8xbf16, #tpu.memory_space<vmem>>, vector<16x16x8xbf16>
    %c0_15 = arith.constant 0 : index
    %c1_16 = arith.constant 1 : index
    %c0_17 = arith.constant 0 : index
    %16 = vector.load %arg7[%c0_15, %c1_16, %c0_17] : memref<18x18x8xbf16, #tpu.memory_space<vmem>>, vector<16x16x8xbf16>
    %c0_18 = arith.constant 0 : index
    %c2 = arith.constant 2 : index
    %c0_19 = arith.constant 0 : index
    %17 = vector.load %arg7[%c0_18, %c2, %c0_19] : memref<18x18x8xbf16, #tpu.memory_space<vmem>>, vector<16x16x8xbf16>
    %c1_20 = arith.constant 1 : index
    %c0_21 = arith.constant 0 : index
    %c0_22 = arith.constant 0 : index
    %18 = vector.load %arg7[%c1_20, %c0_21, %c0_22] : memref<18x18x8xbf16, #tpu.memory_space<vmem>>, vector<16x16x8xbf16>
    %c1_23 = arith.constant 1 : index
    %c1_24 = arith.constant 1 : index
    %c0_25 = arith.constant 0 : index
    %19 = vector.load %arg7[%c1_23, %c1_24, %c0_25] : memref<18x18x8xbf16, #tpu.memory_space<vmem>>, vector<16x16x8xbf16>
    %c1_26 = arith.constant 1 : index
    %c2_27 = arith.constant 2 : index
    %c0_28 = arith.constant 0 : index
    %20 = vector.load %arg7[%c1_26, %c2_27, %c0_28] : memref<18x18x8xbf16, #tpu.memory_space<vmem>>, vector<16x16x8xbf16>
    %c2_29 = arith.constant 2 : index
    %c0_30 = arith.constant 0 : index
    %c0_31 = arith.constant 0 : index
    %21 = vector.load %arg7[%c2_29, %c0_30, %c0_31] : memref<18x18x8xbf16, #tpu.memory_space<vmem>>, vector<16x16x8xbf16>
    %c2_32 = arith.constant 2 : index
    %c1_33 = arith.constant 1 : index
    %c0_34 = arith.constant 0 : index
    %22 = vector.load %arg7[%c2_32, %c1_33, %c0_34] : memref<18x18x8xbf16, #tpu.memory_space<vmem>>, vector<16x16x8xbf16>
    %c2_35 = arith.constant 2 : index
    %c2_36 = arith.constant 2 : index
    %c0_37 = arith.constant 0 : index
    %23 = vector.load %arg7[%c2_35, %c2_36, %c0_37] : memref<18x18x8xbf16, #tpu.memory_space<vmem>>, vector<16x16x8xbf16>
    %cst_38 = arith.constant 0.000000e+00 : bf16
    %24 = vector.broadcast %cst_38 : bf16 to vector<16x16x56xbf16>
    %25 = tpu.concatenate %15, %16, %17, %18, %19, %20, %21, %22, %23, %24 in 2 : vector<16x16x8xbf16>, vector<16x16x8xbf16>, vector<16x16x8xbf16>, vector<16x16x8xbf16>, vector<16x16x8xbf16>, vector<16x16x8xbf16>, vector<16x16x8xbf16>, vector<16x16x8xbf16>, vector<16x16x8xbf16>, vector<16x16x56xbf16> -> vector<16x16x128xbf16>
    %26 = vector.shape_cast %25 : vector<16x16x128xbf16> to vector<256x128xbf16>
    %c0_39 = arith.constant 0 : index
    %c0_40 = arith.constant 0 : index
    %27 = vector.load %arg2[%c0_39, %c0_40] : memref<128x8xbf16, #tpu.memory_space<vmem>>, vector<128x8xbf16>
    %cst_41 = arith.constant dense<0.000000e+00> : vector<256x8xf32>
    %28 = tpu.matmul %26, %27, %cst_41 {dimension_numbers = #tpu.dot_dimension_numbers<[1], [0], [0], [1], [0, 0, 1, 1], [], []>} : vector<256x128xbf16>, vector<128x8xbf16>, vector<256x8xf32> -> vector<256x8xf32>
    %c0_42 = arith.constant 0 : index
    %c0_43 = arith.constant 0 : index
    %29 = vector.load %arg3[%c0_42, %c0_43] : memref<1x8xf32, #tpu.memory_space<vmem>>, vector<1x8xf32>
    %30 = vector.broadcast %29 : vector<1x8xf32> to vector<256x8xf32>
    %31 = arith.addf %28, %30 : vector<256x8xf32>
    %32 = vector.shape_cast %31 : vector<256x8xf32> to vector<16x16x8xf32>
    %cst_44 = arith.constant 0.000000e+00 : f32
    %33 = vector.broadcast %cst_44 : f32 to vector<16x16x8xf32>
    %34 = arith.cmpf oge, %32, %33 : vector<16x16x8xf32>
    %cst_45 = arith.constant 2.000000e-01 : f32
    %35 = vector.broadcast %cst_45 : f32 to vector<16x16x8xf32>
    %36 = arith.mulf %35, %32 : vector<16x16x8xf32>
    %37 = arith.select %34, %32, %36 : vector<16x16x8xi1>, vector<16x16x8xf32>
    %38 = arith.truncf %37 : vector<16x16x8xf32> to vector<16x16x8xbf16>
    %c0_46 = arith.constant 0 : index
    %c0_47 = arith.constant 0 : index
    %c0_48 = arith.constant 0 : index
    %c0_49 = arith.constant 0 : index
    %39 = vector.load %arg6[%c0_46, %c0_47, %c0_48, %c0_49] : memref<1x16x16x8xbf16, #tpu.memory_space<vmem>>, vector<1x16x16x8xbf16>
    %40 = vector.shape_cast %39 : vector<1x16x16x8xbf16> to vector<16x16x8xbf16>
    %41 = vector.shape_cast %38 : vector<16x16x8xbf16> to vector<1x16x16x8xbf16>
    tpu.vector_store %arg6[%c0_46, %c0_47, %c0_48, %c0_49], %41 {strides = array<i32>} : memref<1x16x16x8xbf16, #tpu.memory_space<vmem>>, vector<1x16x16x8xbf16>,
    return
  }
  func.func @transform_0(%arg0: i32) -> (i32, i32, i32, i32) {
    %c0_i32 = arith.constant 0 : i32
    %c0_i32_0 = arith.constant 0 : i32
    %c0_i32_1 = arith.constant 0 : i32
    %c0_i32_2 = arith.constant 0 : i32
    return %arg0, %c0_i32, %c0_i32_0, %c0_i32_1 : i32, i32, i32, i32
  }
  func.func @transform_1(%arg0: i32) -> (i32, i32) {
    %c0_i32 = arith.constant 0 : i32
    %c0_i32_0 = arith.constant 0 : i32
    %c0_i32_1 = arith.constant 0 : i32
    return %c0_i32, %c0_i32_0 : i32, i32
  }
  func.func @transform_2(%arg0: i32) -> (i32, i32) {
    %c0_i32 = arith.constant 0 : i32
    %c0_i32_0 = arith.constant 0 : i32
    %c0_i32_1 = arith.constant 0 : i32
    return %c0_i32, %c0_i32_0 : i32, i32
  }
  func.func @transform_3(%arg0: i32) -> (i32, i32) {
    %c0_i32 = arith.constant 0 : i32
    %c0_i32_0 = arith.constant 0 : i32
    %c0_i32_1 = arith.constant 0 : i32
    return %c0_i32, %c0_i32_0 : i32, i32
  }
  func.func @transform_4(%arg0: i32) -> (i32, i32) {
    %c0_i32 = arith.constant 0 : i32
    %c0_i32_0 = arith.constant 0 : i32
    %c0_i32_1 = arith.constant 0 : i32
    return %c0_i32, %c0_i32_0 : i32, i32
  }
  func.func @transform_5(%arg0: i32) -> (i32, i32, i32, i32) {
    %c0_i32 = arith.constant 0 : i32
    %c0_i32_0 = arith.constant 0 : i32
    %c0_i32_1 = arith.constant 0 : i32
    %c0_i32_2 = arith.constant 0 : i32
    return %arg0, %c0_i32, %c0_i32_0, %c0_i32_1 : i32, i32, i32, i32
  }
}

module attributes {stable_mosaic.version = 11 : i64} {
  func.func @_conv_kernel(%arg0: i32, %arg1: memref<1x16x16x8xbf16, #tpu.memory_space<vmem>>, %arg2: memref<128x16xbf16, #tpu.memory_space<vmem>>, %arg3: memref<1x16xf32, #tpu.memory_space<vmem>>, %arg4: memref<1x8xf32, #tpu.memory_space<vmem>>, %arg5: memref<1x8xf32, #tpu.memory_space<vmem>>, %arg6: memref<1x8x8x16xbf16, #tpu.memory_space<vmem>>, %arg7: memref<1x1x16xf32, #tpu.memory_space<vmem>>, %arg8: memref<1x1x16xf32, #tpu.memory_space<vmem>>, %arg9: memref<2x2x9x9x8xbf16, #tpu.memory_space<vmem>>) attributes {dimension_semantics = [#tpu.dimension_semantics<parallel>], iteration_bounds = array<i64: 2>, scalar_prefetch = 0 : i64, scratch_operands = 1 : i64, tpu.core_type = #tpu.core_type<tc>, window_params = [{transform_indices = @transform_0, window_bounds = array<i64: 1, 16, 16, 8>}, {pipeline_mode = #tpu.pipeline_mode<synchronous>, transform_indices = @transform_1, window_bounds = array<i64: 128, 16>}, {pipeline_mode = #tpu.pipeline_mode<synchronous>, transform_indices = @transform_2, window_bounds = array<i64: 1, 16>}, {pipeline_mode = #tpu.pipeline_mode<synchronous>, transform_indices = @transform_3, window_bounds = array<i64: 1, 8>}, {pipeline_mode = #tpu.pipeline_mode<synchronous>, transform_indices = @transform_4, window_bounds = array<i64: 1, 8>}, {transform_indices = @transform_5, window_bounds = array<i64: 1, 8, 8, 16>}, {transform_indices = @transform_6, window_bounds = array<i64: 1, 1, 16>}, {transform_indices = @transform_7, window_bounds = array<i64: 1, 1, 16>}]} {
    %c0 = arith.constant 0 : index
    %c0_0 = arith.constant 0 : index
    %c0_1 = arith.constant 0 : index
    %c0_2 = arith.constant 0 : index
    %0 = vector.load %arg1[%c0, %c0_0, %c0_1, %c0_2] : memref<1x16x16x8xbf16, #tpu.memory_space<vmem>>, vector<1x16x16x8xbf16>
    %1 = vector.shape_cast %0 : vector<1x16x16x8xbf16> to vector<16x16x8xbf16>
    %2 = arith.extf %1 : vector<16x16x8xbf16> to vector<16x16x8xf32>
    %c0_3 = arith.constant 0 : index
    %c0_4 = arith.constant 0 : index
    %3 = vector.load %arg4[%c0_3, %c0_4] : memref<1x8xf32, #tpu.memory_space<vmem>>, vector<1x8xf32>
    %4 = vector.shape_cast %3 : vector<1x8xf32> to vector<1x1x8xf32>
    %5 = vector.broadcast %4 : vector<1x1x8xf32> to vector<16x16x8xf32>
    %6 = arith.mulf %2, %5 : vector<16x16x8xf32>
    %c0_5 = arith.constant 0 : index
    %c0_6 = arith.constant 0 : index
    %7 = vector.load %arg5[%c0_5, %c0_6] : memref<1x8xf32, #tpu.memory_space<vmem>>, vector<1x8xf32>
    %8 = vector.shape_cast %7 : vector<1x8xf32> to vector<1x1x8xf32>
    %9 = vector.broadcast %8 : vector<1x1x8xf32> to vector<16x16x8xf32>
    %10 = arith.addf %6, %9 : vector<16x16x8xf32>
    %11 = arith.truncf %10 : vector<16x16x8xf32> to vector<16x16x8xbf16>
    %cst = arith.constant 0.000000e+00 : bf16
    %12 = vector.broadcast %cst : bf16 to vector<2x2x9x9x8xbf16>
    %c0_7 = arith.constant 0 : index
    %c0_8 = arith.constant 0 : index
    %c0_9 = arith.constant 0 : index
    %c0_10 = arith.constant 0 : index
    %c0_11 = arith.constant 0 : index
    %13 = vector.load %arg9[%c0_7, %c0_8, %c0_9, %c0_10, %c0_11] : memref<2x2x9x9x8xbf16, #tpu.memory_space<vmem>>, vector<2x2x9x9x8xbf16>
    tpu.vector_store %arg9[%c0_7, %c0_8, %c0_9, %c0_10, %c0_11], %12 {strides = array<i32>} : memref<2x2x9x9x8xbf16, #tpu.memory_space<vmem>>, vector<2x2x9x9x8xbf16>,
    %14 = vector.shape_cast %11 : vector<16x16x8xbf16> to vector<8x2x16x8xbf16>
    %15 = vector.extract_strided_slice %14 {offsets = [0, 0, 0, 0], sizes = [8, 1, 16, 8], strides = [1, 1, 1, 1]} : vector<8x2x16x8xbf16> to vector<8x1x16x8xbf16>
    %16 = vector.shape_cast %15 : vector<8x1x16x8xbf16> to vector<8x16x8xbf16>
    %17 = vector.extract_strided_slice %14 {offsets = [0, 1, 0, 0], sizes = [8, 1, 16, 8], strides = [1, 1, 1, 1]} : vector<8x2x16x8xbf16> to vector<8x1x16x8xbf16>
    %18 = vector.shape_cast %17 : vector<8x1x16x8xbf16> to vector<8x16x8xbf16>
    %19 = vector.shape_cast %16 : vector<8x16x8xbf16> to vector<8x8x2x8xbf16>
    %20 = vector.extract_strided_slice %19 {offsets = [0, 0, 0, 0], sizes = [8, 8, 1, 8], strides = [1, 1, 1, 1]} : vector<8x8x2x8xbf16> to vector<8x8x1x8xbf16>
    %21 = vector.shape_cast %20 : vector<8x8x1x8xbf16> to vector<8x8x8xbf16>
    %22 = vector.extract_strided_slice %19 {offsets = [0, 0, 1, 0], sizes = [8, 8, 1, 8], strides = [1, 1, 1, 1]} : vector<8x8x2x8xbf16> to vector<8x8x1x8xbf16>
    %23 = vector.shape_cast %22 : vector<8x8x1x8xbf16> to vector<8x8x8xbf16>
    %24 = vector.shape_cast %18 : vector<8x16x8xbf16> to vector<8x8x2x8xbf16>
    %25 = vector.extract_strided_slice %24 {offsets = [0, 0, 0, 0], sizes = [8, 8, 1, 8], strides = [1, 1, 1, 1]} : vector<8x8x2x8xbf16> to vector<8x8x1x8xbf16>
    %26 = vector.shape_cast %25 : vector<8x8x1x8xbf16> to vector<8x8x8xbf16>
    %27 = vector.extract_strided_slice %24 {offsets = [0, 0, 1, 0], sizes = [8, 8, 1, 8], strides = [1, 1, 1, 1]} : vector<8x8x2x8xbf16> to vector<8x8x1x8xbf16>
    %28 = vector.shape_cast %27 : vector<8x8x1x8xbf16> to vector<8x8x8xbf16>
    %c0_12 = arith.constant 0 : index
    %c0_13 = arith.constant 0 : index
    %c1 = arith.constant 1 : index
    %c1_14 = arith.constant 1 : index
    %c0_15 = arith.constant 0 : index
    %29 = vector.load %arg9[%c0_12, %c0_13, %c1, %c1_14, %c0_15] : memref<2x2x9x9x8xbf16, #tpu.memory_space<vmem>>, vector<1x1x8x8x8xbf16>
    %30 = vector.shape_cast %29 : vector<1x1x8x8x8xbf16> to vector<8x8x8xbf16>
    %31 = vector.shape_cast %28 : vector<8x8x8xbf16> to vector<1x1x8x8x8xbf16>
    tpu.vector_store %arg9[%c0_12, %c0_13, %c1, %c1_14, %c0_15], %31 {strides = array<i32>} : memref<2x2x9x9x8xbf16, #tpu.memory_space<vmem>>, vector<1x1x8x8x8xbf16>,
    %c0_16 = arith.constant 0 : index
    %c1_17 = arith.constant 1 : index
    %c1_18 = arith.constant 1 : index
    %c0_19 = arith.constant 0 : index
    %c0_20 = arith.constant 0 : index
    %32 = vector.load %arg9[%c0_16, %c1_17, %c1_18, %c0_19, %c0_20] : memref<2x2x9x9x8xbf16, #tpu.memory_space<vmem>>, vector<1x1x8x8x8xbf16>
    %33 = vector.shape_cast %32 : vector<1x1x8x8x8xbf16> to vector<8x8x8xbf16>
    %34 = vector.shape_cast %26 : vector<8x8x8xbf16> to vector<1x1x8x8x8xbf16>
    tpu.vector_store %arg9[%c0_16, %c1_17, %c1_18, %c0_19, %c0_20], %34 {strides = array<i32>} : memref<2x2x9x9x8xbf16, #tpu.memory_space<vmem>>, vector<1x1x8x8x8xbf16>,
    %c1_21 = arith.constant 1 : index
    %c0_22 = arith.constant 0 : index
    %c0_23 = arith.constant 0 : index
    %c1_24 = arith.constant 1 : index
    %c0_25 = arith.constant 0 : index
    %35 = vector.load %arg9[%c1_21, %c0_22, %c0_23, %c1_24, %c0_25] : memref<2x2x9x9x8xbf16, #tpu.memory_space<vmem>>, vector<1x1x8x8x8xbf16>
    %36 = vector.shape_cast %35 : vector<1x1x8x8x8xbf16> to vector<8x8x8xbf16>
    %37 = vector.shape_cast %23 : vector<8x8x8xbf16> to vector<1x1x8x8x8xbf16>
    tpu.vector_store %arg9[%c1_21, %c0_22, %c0_23, %c1_24, %c0_25], %37 {strides = array<i32>} : memref<2x2x9x9x8xbf16, #tpu.memory_space<vmem>>, vector<1x1x8x8x8xbf16>,
    %c1_26 = arith.constant 1 : index
    %c1_27 = arith.constant 1 : index
    %c0_28 = arith.constant 0 : index
    %c0_29 = arith.constant 0 : index
    %c0_30 = arith.constant 0 : index
    %38 = vector.load %arg9[%c1_26, %c1_27, %c0_28, %c0_29, %c0_30] : memref<2x2x9x9x8xbf16, #tpu.memory_space<vmem>>, vector<1x1x8x8x8xbf16>
    %39 = vector.shape_cast %38 : vector<1x1x8x8x8xbf16> to vector<8x8x8xbf16>
    %40 = vector.shape_cast %21 : vector<8x8x8xbf16> to vector<1x1x8x8x8xbf16>
    tpu.vector_store %arg9[%c1_26, %c1_27, %c0_28, %c0_29, %c0_30], %40 {strides = array<i32>} : memref<2x2x9x9x8xbf16, #tpu.memory_space<vmem>>, vector<1x1x8x8x8xbf16>,
    %cst_31 = arith.constant 0.000000e+00 : f32
    %41 = vector.broadcast %cst_31 : f32 to vector<16xf32>
    %cst_32 = arith.constant 0.000000e+00 : f32
    %42 = vector.broadcast %cst_32 : f32 to vector<16xf32>
    %c0_33 = arith.constant 0 : index
    %c0_34 = arith.constant 0 : index
    %c0_35 = arith.constant 0 : index
    %c0_36 = arith.constant 0 : index
    %c0_37 = arith.constant 0 : index
    %43 = vector.load %arg9[%c0_33, %c0_34, %c0_35, %c0_36, %c0_37] : memref<2x2x9x9x8xbf16, #tpu.memory_space<vmem>>, vector<1x1x8x8x8xbf16>
    %44 = vector.shape_cast %43 : vector<1x1x8x8x8xbf16> to vector<8x8x8xbf16>
    %c0_38 = arith.constant 0 : index
    %c1_39 = arith.constant 1 : index
    %c0_40 = arith.constant 0 : index
    %c0_41 = arith.constant 0 : index
    %c0_42 = arith.constant 0 : index
    %45 = vector.load %arg9[%c0_38, %c1_39, %c0_40, %c0_41, %c0_42] : memref<2x2x9x9x8xbf16, #tpu.memory_space<vmem>>, vector<1x1x8x8x8xbf16>
    %46 = vector.shape_cast %45 : vector<1x1x8x8x8xbf16> to vector<8x8x8xbf16>
    %c0_43 = arith.constant 0 : index
    %c0_44 = arith.constant 0 : index
    %c0_45 = arith.constant 0 : index
    %c1_46 = arith.constant 1 : index
    %c0_47 = arith.constant 0 : index
    %47 = vector.load %arg9[%c0_43, %c0_44, %c0_45, %c1_46, %c0_47] : memref<2x2x9x9x8xbf16, #tpu.memory_space<vmem>>, vector<1x1x8x8x8xbf16>
    %48 = vector.shape_cast %47 : vector<1x1x8x8x8xbf16> to vector<8x8x8xbf16>
    %c1_48 = arith.constant 1 : index
    %c0_49 = arith.constant 0 : index
    %c0_50 = arith.constant 0 : index
    %c0_51 = arith.constant 0 : index
    %c0_52 = arith.constant 0 : index
    %49 = vector.load %arg9[%c1_48, %c0_49, %c0_50, %c0_51, %c0_52] : memref<2x2x9x9x8xbf16, #tpu.memory_space<vmem>>, vector<1x1x8x8x8xbf16>
    %50 = vector.shape_cast %49 : vector<1x1x8x8x8xbf16> to vector<8x8x8xbf16>
    %c1_53 = arith.constant 1 : index
    %c1_54 = arith.constant 1 : index
    %c0_55 = arith.constant 0 : index
    %c0_56 = arith.constant 0 : index
    %c0_57 = arith.constant 0 : index
    %51 = vector.load %arg9[%c1_53, %c1_54, %c0_55, %c0_56, %c0_57] : memref<2x2x9x9x8xbf16, #tpu.memory_space<vmem>>, vector<1x1x8x8x8xbf16>
    %52 = vector.shape_cast %51 : vector<1x1x8x8x8xbf16> to vector<8x8x8xbf16>
    %c1_58 = arith.constant 1 : index
    %c0_59 = arith.constant 0 : index
    %c0_60 = arith.constant 0 : index
    %c1_61 = arith.constant 1 : index
    %c0_62 = arith.constant 0 : index
    %53 = vector.load %arg9[%c1_58, %c0_59, %c0_60, %c1_61, %c0_62] : memref<2x2x9x9x8xbf16, #tpu.memory_space<vmem>>, vector<1x1x8x8x8xbf16>
    %54 = vector.shape_cast %53 : vector<1x1x8x8x8xbf16> to vector<8x8x8xbf16>
    %c0_63 = arith.constant 0 : index
    %c0_64 = arith.constant 0 : index
    %c1_65 = arith.constant 1 : index
    %c0_66 = arith.constant 0 : index
    %c0_67 = arith.constant 0 : index
    %55 = vector.load %arg9[%c0_63, %c0_64, %c1_65, %c0_66, %c0_67] : memref<2x2x9x9x8xbf16, #tpu.memory_space<vmem>>, vector<1x1x8x8x8xbf16>
    %56 = vector.shape_cast %55 : vector<1x1x8x8x8xbf16> to vector<8x8x8xbf16>
    %c0_68 = arith.constant 0 : index
    %c1_69 = arith.constant 1 : index
    %c1_70 = arith.constant 1 : index
    %c0_71 = arith.constant 0 : index
    %c0_72 = arith.constant 0 : index
    %57 = vector.load %arg9[%c0_68, %c1_69, %c1_70, %c0_71, %c0_72] : memref<2x2x9x9x8xbf16, #tpu.memory_space<vmem>>, vector<1x1x8x8x8xbf16>
    %58 = vector.shape_cast %57 : vector<1x1x8x8x8xbf16> to vector<8x8x8xbf16>
    %c0_73 = arith.constant 0 : index
    %c0_74 = arith.constant 0 : index
    %c1_75 = arith.constant 1 : index
    %c1_76 = arith.constant 1 : index
    %c0_77 = arith.constant 0 : index
    %59 = vector.load %arg9[%c0_73, %c0_74, %c1_75, %c1_76, %c0_77] : memref<2x2x9x9x8xbf16, #tpu.memory_space<vmem>>, vector<1x1x8x8x8xbf16>
    %60 = vector.shape_cast %59 : vector<1x1x8x8x8xbf16> to vector<8x8x8xbf16>
    %cst_78 = arith.constant 0.000000e+00 : bf16
    %61 = vector.broadcast %cst_78 : bf16 to vector<8x8x56xbf16>
    %62 = tpu.concatenate %44, %46, %48, %50, %52, %54, %56, %58, %60, %61 in 2 : vector<8x8x8xbf16>, vector<8x8x8xbf16>, vector<8x8x8xbf16>, vector<8x8x8xbf16>, vector<8x8x8xbf16>, vector<8x8x8xbf16>, vector<8x8x8xbf16>, vector<8x8x8xbf16>, vector<8x8x8xbf16>, vector<8x8x56xbf16> -> vector<8x8x128xbf16>
    %63 = vector.shape_cast %62 : vector<8x8x128xbf16> to vector<64x128xbf16>
    %c0_79 = arith.constant 0 : index
    %c0_80 = arith.constant 0 : index
    %64 = vector.load %arg2[%c0_79, %c0_80] : memref<128x16xbf16, #tpu.memory_space<vmem>>, vector<128x16xbf16>
    %cst_81 = arith.constant dense<0.000000e+00> : vector<64x16xf32>
    %65 = tpu.matmul %63, %64, %cst_81 {dimension_numbers = #tpu.dot_dimension_numbers<[1], [0], [0], [1], [0, 0, 1, 1], [], []>} : vector<64x128xbf16>, vector<128x16xbf16>, vector<64x16xf32> -> vector<64x16xf32>
    %c0_82 = arith.constant 0 : index
    %c0_83 = arith.constant 0 : index
    %66 = vector.load %arg3[%c0_82, %c0_83] : memref<1x16xf32, #tpu.memory_space<vmem>>, vector<1x16xf32>
    %67 = vector.broadcast %66 : vector<1x16xf32> to vector<64x16xf32>
    %68 = arith.addf %65, %67 : vector<64x16xf32>
    %69 = vector.shape_cast %68 : vector<64x16xf32> to vector<8x8x16xf32>
    %cst_84 = arith.constant dense<0.000000e+00> : vector<16xf32>
    %70 = vector.multi_reduction <add>, %69, %cst_84 [0, 1] : vector<8x8x16xf32> to vector<16xf32>
    %71 = arith.addf %41, %70 : vector<16xf32>
    %72 = arith.mulf %69, %69 : vector<8x8x16xf32>
    %cst_85 = arith.constant dense<0.000000e+00> : vector<16xf32>
    %73 = vector.multi_reduction <add>, %72, %cst_85 [0, 1] : vector<8x8x16xf32> to vector<16xf32>
    %74 = arith.addf %42, %73 : vector<16xf32>
    %75 = arith.truncf %69 : vector<8x8x16xf32> to vector<8x8x16xbf16>
    %c0_86 = arith.constant 0 : index
    %c0_87 = arith.constant 0 : index
    %c0_88 = arith.constant 0 : index
    %c0_89 = arith.constant 0 : index
    %76 = vector.load %arg6[%c0_86, %c0_87, %c0_88, %c0_89] : memref<1x8x8x16xbf16, #tpu.memory_space<vmem>>, vector<1x8x8x16xbf16>
    %77 = vector.shape_cast %76 : vector<1x8x8x16xbf16> to vector<8x8x16xbf16>
    %78 = vector.shape_cast %75 : vector<8x8x16xbf16> to vector<1x8x8x16xbf16>
    tpu.vector_store %arg6[%c0_86, %c0_87, %c0_88, %c0_89], %78 {strides = array<i32>} : memref<1x8x8x16xbf16, #tpu.memory_space<vmem>>, vector<1x8x8x16xbf16>,
    %79 = vector.shape_cast %71 : vector<16xf32> to vector<1x1x16xf32>
    %c0_90 = arith.constant 0 : index
    %c0_91 = arith.constant 0 : index
    %c0_92 = arith.constant 0 : index
    %80 = vector.load %arg7[%c0_90, %c0_91, %c0_92] : memref<1x1x16xf32, #tpu.memory_space<vmem>>, vector<1x1x16xf32>
    tpu.vector_store %arg7[%c0_90, %c0_91, %c0_92], %79 {strides = array<i32>} : memref<1x1x16xf32, #tpu.memory_space<vmem>>, vector<1x1x16xf32>,
    %81 = vector.shape_cast %74 : vector<16xf32> to vector<1x1x16xf32>
    %c0_93 = arith.constant 0 : index
    %c0_94 = arith.constant 0 : index
    %c0_95 = arith.constant 0 : index
    %82 = vector.load %arg8[%c0_93, %c0_94, %c0_95] : memref<1x1x16xf32, #tpu.memory_space<vmem>>, vector<1x1x16xf32>
    tpu.vector_store %arg8[%c0_93, %c0_94, %c0_95], %81 {strides = array<i32>} : memref<1x1x16xf32, #tpu.memory_space<vmem>>, vector<1x1x16xf32>,
    return
  }
  func.func @transform_0(%arg0: i32) -> (i32, i32, i32, i32) {
    %c0_i32 = arith.constant 0 : i32
    %c0_i32_0 = arith.constant 0 : i32
    %c0_i32_1 = arith.constant 0 : i32
    %c0_i32_2 = arith.constant 0 : i32
    return %arg0, %c0_i32, %c0_i32_0, %c0_i32_1 : i32, i32, i32, i32
  }
  func.func @transform_1(%arg0: i32) -> (i32, i32) {
    %c0_i32 = arith.constant 0 : i32
    %c0_i32_0 = arith.constant 0 : i32
    %c0_i32_1 = arith.constant 0 : i32
    return %c0_i32, %c0_i32_0 : i32, i32
  }
  func.func @transform_2(%arg0: i32) -> (i32, i32) {
    %c0_i32 = arith.constant 0 : i32
    %c0_i32_0 = arith.constant 0 : i32
    %c0_i32_1 = arith.constant 0 : i32
    return %c0_i32, %c0_i32_0 : i32, i32
  }
  func.func @transform_3(%arg0: i32) -> (i32, i32) {
    %c0_i32 = arith.constant 0 : i32
    %c0_i32_0 = arith.constant 0 : i32
    %c0_i32_1 = arith.constant 0 : i32
    return %c0_i32, %c0_i32_0 : i32, i32
  }
  func.func @transform_4(%arg0: i32) -> (i32, i32) {
    %c0_i32 = arith.constant 0 : i32
    %c0_i32_0 = arith.constant 0 : i32
    %c0_i32_1 = arith.constant 0 : i32
    return %c0_i32, %c0_i32_0 : i32, i32
  }
  func.func @transform_5(%arg0: i32) -> (i32, i32, i32, i32) {
    %c0_i32 = arith.constant 0 : i32
    %c0_i32_0 = arith.constant 0 : i32
    %c0_i32_1 = arith.constant 0 : i32
    %c0_i32_2 = arith.constant 0 : i32
    return %arg0, %c0_i32, %c0_i32_0, %c0_i32_1 : i32, i32, i32, i32
  }
  func.func @transform_6(%arg0: i32) -> (i32, i32, i32) {
    %c0_i32 = arith.constant 0 : i32
    %c0_i32_0 = arith.constant 0 : i32
    %c0_i32_1 = arith.constant 0 : i32
    return %arg0, %c0_i32, %c0_i32_0 : i32, i32, i32
  }
  func.func @transform_7(%arg0: i32) -> (i32, i32, i32) {
    %c0_i32 = arith.constant 0 : i32
    %c0_i32_0 = arith.constant 0 : i32
    %c0_i32_1 = arith.constant 0 : i32
    return %arg0, %c0_i32, %c0_i32_0 : i32, i32, i32
  }
}

module attributes {stable_mosaic.version = 11 : i64} {
  func.func @_conv_kernel(%arg0: i32, %arg1: memref<1x8x8x16xbf16, #tpu.memory_space<vmem>>, %arg2: memref<256x32xbf16, #tpu.memory_space<vmem>>, %arg3: memref<1x32xf32, #tpu.memory_space<vmem>>, %arg4: memref<1x16xf32, #tpu.memory_space<vmem>>, %arg5: memref<1x16xf32, #tpu.memory_space<vmem>>, %arg6: memref<1x4x4x32xbf16, #tpu.memory_space<vmem>>, %arg7: memref<1x1x32xf32, #tpu.memory_space<vmem>>, %arg8: memref<1x1x32xf32, #tpu.memory_space<vmem>>, %arg9: memref<2x2x5x9x16xbf16, #tpu.memory_space<vmem>>) attributes {dimension_semantics = [#tpu.dimension_semantics<parallel>], iteration_bounds = array<i64: 2>, scalar_prefetch = 0 : i64, scratch_operands = 1 : i64, tpu.core_type = #tpu.core_type<tc>, window_params = [{transform_indices = @transform_0, window_bounds = array<i64: 1, 8, 8, 16>}, {pipeline_mode = #tpu.pipeline_mode<synchronous>, transform_indices = @transform_1, window_bounds = array<i64: 256, 32>}, {pipeline_mode = #tpu.pipeline_mode<synchronous>, transform_indices = @transform_2, window_bounds = array<i64: 1, 32>}, {pipeline_mode = #tpu.pipeline_mode<synchronous>, transform_indices = @transform_3, window_bounds = array<i64: 1, 16>}, {pipeline_mode = #tpu.pipeline_mode<synchronous>, transform_indices = @transform_4, window_bounds = array<i64: 1, 16>}, {transform_indices = @transform_5, window_bounds = array<i64: 1, 4, 4, 32>}, {transform_indices = @transform_6, window_bounds = array<i64: 1, 1, 32>}, {transform_indices = @transform_7, window_bounds = array<i64: 1, 1, 32>}]} {
    %c0 = arith.constant 0 : index
    %c0_0 = arith.constant 0 : index
    %c0_1 = arith.constant 0 : index
    %c0_2 = arith.constant 0 : index
    %0 = vector.load %arg1[%c0, %c0_0, %c0_1, %c0_2] : memref<1x8x8x16xbf16, #tpu.memory_space<vmem>>, vector<1x8x8x16xbf16>
    %1 = vector.shape_cast %0 : vector<1x8x8x16xbf16> to vector<8x8x16xbf16>
    %2 = arith.extf %1 : vector<8x8x16xbf16> to vector<8x8x16xf32>
    %c0_3 = arith.constant 0 : index
    %c0_4 = arith.constant 0 : index
    %3 = vector.load %arg4[%c0_3, %c0_4] : memref<1x16xf32, #tpu.memory_space<vmem>>, vector<1x16xf32>
    %4 = vector.shape_cast %3 : vector<1x16xf32> to vector<1x1x16xf32>
    %5 = vector.broadcast %4 : vector<1x1x16xf32> to vector<8x8x16xf32>
    %6 = arith.mulf %2, %5 : vector<8x8x16xf32>
    %c0_5 = arith.constant 0 : index
    %c0_6 = arith.constant 0 : index
    %7 = vector.load %arg5[%c0_5, %c0_6] : memref<1x16xf32, #tpu.memory_space<vmem>>, vector<1x16xf32>
    %8 = vector.shape_cast %7 : vector<1x16xf32> to vector<1x1x16xf32>
    %9 = vector.broadcast %8 : vector<1x1x16xf32> to vector<8x8x16xf32>
    %10 = arith.addf %6, %9 : vector<8x8x16xf32>
    %cst = arith.constant 0.000000e+00 : f32
    %11 = vector.broadcast %cst : f32 to vector<8x8x16xf32>
    %12 = arith.cmpf oge, %10, %11 : vector<8x8x16xf32>
    %cst_7 = arith.constant 2.000000e-01 : f32
    %13 = vector.broadcast %cst_7 : f32 to vector<8x8x16xf32>
    %14 = arith.mulf %13, %10 : vector<8x8x16xf32>
    %15 = arith.select %12, %10, %14 : vector<8x8x16xi1>, vector<8x8x16xf32>
    %16 = arith.truncf %15 : vector<8x8x16xf32> to vector<8x8x16xbf16>
    %cst_8 = arith.constant 0.000000e+00 : bf16
    %17 = vector.broadcast %cst_8 : bf16 to vector<2x2x5x9x16xbf16>
    %c0_9 = arith.constant 0 : index
    %c0_10 = arith.constant 0 : index
    %c0_11 = arith.constant 0 : index
    %c0_12 = arith.constant 0 : index
    %c0_13 = arith.constant 0 : index
    %18 = vector.load %arg9[%c0_9, %c0_10, %c0_11, %c0_12, %c0_13] : memref<2x2x5x9x16xbf16, #tpu.memory_space<vmem>>, vector<2x2x5x9x16xbf16>
    tpu.vector_store %arg9[%c0_9, %c0_10, %c0_11, %c0_12, %c0_13], %17 {strides = array<i32>} : memref<2x2x5x9x16xbf16, #tpu.memory_space<vmem>>, vector<2x2x5x9x16xbf16>,
    %19 = vector.shape_cast %16 : vector<8x8x16xbf16> to vector<4x2x8x16xbf16>
    %20 = vector.extract_strided_slice %19 {offsets = [0, 0, 0, 0], sizes = [4, 1, 8, 16], strides = [1, 1, 1, 1]} : vector<4x2x8x16xbf16> to vector<4x1x8x16xbf16>
    %21 = vector.shape_cast %20 : vector<4x1x8x16xbf16> to vector<4x8x16xbf16>
    %22 = vector.extract_strided_slice %19 {offsets = [0, 1, 0, 0], sizes = [4, 1, 8, 16], strides = [1, 1, 1, 1]} : vector<4x2x8x16xbf16> to vector<4x1x8x16xbf16>
    %23 = vector.shape_cast %22 : vector<4x1x8x16xbf16> to vector<4x8x16xbf16>
    %24 = vector.shape_cast %21 : vector<4x8x16xbf16> to vector<4x4x2x16xbf16>
    %25 = vector.extract_strided_slice %24 {offsets = [0, 0, 0, 0], sizes = [4, 4, 1, 16], strides = [1, 1, 1, 1]} : vector<4x4x2x16xbf16> to vector<4x4x1x16xbf16>
    %26 = vector.shape_cast %25 : vector<4x4x1x16xbf16> to vector<4x4x16xbf16>
    %27 = vector.extract_strided_slice %24 {offsets = [0, 0, 1, 0], sizes = [4, 4, 1, 16], strides = [1, 1, 1, 1]} : vector<4x4x2x16xbf16> to vector<4x4x1x16xbf16>
    %28 = vector.shape_cast %27 : vector<4x4x1x16xbf16> to vector<4x4x16xbf16>
    %29 = vector.shape_cast %23 : vector<4x8x16xbf16> to vector<4x4x2x16xbf16>
    %30 = vector.extract_strided_slice %29 {offsets = [0, 0, 0, 0], sizes = [4, 4, 1, 16], strides = [1, 1, 1, 1]} : vector<4x4x2x16xbf16> to vector<4x4x1x16xbf16>
    %31 = vector.shape_cast %30 : vector<4x4x1x16xbf16> to vector<4x4x16xbf16>
    %32 = vector.extract_strided_slice %29 {offsets = [0, 0, 1, 0], sizes = [4, 4, 1, 16], strides = [1, 1, 1, 1]} : vector<4x4x2x16xbf16> to vector<4x4x1x16xbf16>
    %33 = vector.shape_cast %32 : vector<4x4x1x16xbf16> to vector<4x4x16xbf16>
    %c0_14 = arith.constant 0 : index
    %c0_15 = arith.constant 0 : index
    %c1 = arith.constant 1 : index
    %c1_16 = arith.constant 1 : index
    %c0_17 = arith.constant 0 : index
    %34 = vector.load %arg9[%c0_14, %c0_15, %c1, %c1_16, %c0_17] : memref<2x2x5x9x16xbf16, #tpu.memory_space<vmem>>, vector<1x1x4x4x16xbf16>
    %35 = vector.shape_cast %34 : vector<1x1x4x4x16xbf16> to vector<4x4x16xbf16>
    %36 = vector.shape_cast %33 : vector<4x4x16xbf16> to vector<1x1x4x4x16xbf16>
    tpu.vector_store %arg9[%c0_14, %c0_15, %c1, %c1_16, %c0_17], %36 {strides = array<i32>} : memref<2x2x5x9x16xbf16, #tpu.memory_space<vmem>>, vector<1x1x4x4x16xbf16>,
    %c0_18 = arith.constant 0 : index
    %c1_19 = arith.constant 1 : index
    %c1_20 = arith.constant 1 : index
    %c0_21 = arith.constant 0 : index
    %c0_22 = arith.constant 0 : index
    %37 = vector.load %arg9[%c0_18, %c1_19, %c1_20, %c0_21, %c0_22] : memref<2x2x5x9x16xbf16, #tpu.memory_space<vmem>>, vector<1x1x4x4x16xbf16>
    %38 = vector.shape_cast %37 : vector<1x1x4x4x16xbf16> to vector<4x4x16xbf16>
    %39 = vector.shape_cast %31 : vector<4x4x16xbf16> to vector<1x1x4x4x16xbf16>
    tpu.vector_store %arg9[%c0_18, %c1_19, %c1_20, %c0_21, %c0_22], %39 {strides = array<i32>} : memref<2x2x5x9x16xbf16, #tpu.memory_space<vmem>>, vector<1x1x4x4x16xbf16>,
    %c1_23 = arith.constant 1 : index
    %c0_24 = arith.constant 0 : index
    %c0_25 = arith.constant 0 : index
    %c1_26 = arith.constant 1 : index
    %c0_27 = arith.constant 0 : index
    %40 = vector.load %arg9[%c1_23, %c0_24, %c0_25, %c1_26, %c0_27] : memref<2x2x5x9x16xbf16, #tpu.memory_space<vmem>>, vector<1x1x4x4x16xbf16>
    %41 = vector.shape_cast %40 : vector<1x1x4x4x16xbf16> to vector<4x4x16xbf16>
    %42 = vector.shape_cast %28 : vector<4x4x16xbf16> to vector<1x1x4x4x16xbf16>
    tpu.vector_store %arg9[%c1_23, %c0_24, %c0_25, %c1_26, %c0_27], %42 {strides = array<i32>} : memref<2x2x5x9x16xbf16, #tpu.memory_space<vmem>>, vector<1x1x4x4x16xbf16>,
    %c1_28 = arith.constant 1 : index
    %c1_29 = arith.constant 1 : index
    %c0_30 = arith.constant 0 : index
    %c0_31 = arith.constant 0 : index
    %c0_32 = arith.constant 0 : index
    %43 = vector.load %arg9[%c1_28, %c1_29, %c0_30, %c0_31, %c0_32] : memref<2x2x5x9x16xbf16, #tpu.memory_space<vmem>>, vector<1x1x4x4x16xbf16>
    %44 = vector.shape_cast %43 : vector<1x1x4x4x16xbf16> to vector<4x4x16xbf16>
    %45 = vector.shape_cast %26 : vector<4x4x16xbf16> to vector<1x1x4x4x16xbf16>
    tpu.vector_store %arg9[%c1_28, %c1_29, %c0_30, %c0_31, %c0_32], %45 {strides = array<i32>} : memref<2x2x5x9x16xbf16, #tpu.memory_space<vmem>>, vector<1x1x4x4x16xbf16>,
    %cst_33 = arith.constant 0.000000e+00 : f32
    %46 = vector.broadcast %cst_33 : f32 to vector<32xf32>
    %cst_34 = arith.constant 0.000000e+00 : f32
    %47 = vector.broadcast %cst_34 : f32 to vector<32xf32>
    %c0_35 = arith.constant 0 : index
    %c0_36 = arith.constant 0 : index
    %c0_37 = arith.constant 0 : index
    %c0_38 = arith.constant 0 : index
    %c0_39 = arith.constant 0 : index
    %48 = vector.load %arg9[%c0_35, %c0_36, %c0_37, %c0_38, %c0_39] : memref<2x2x5x9x16xbf16, #tpu.memory_space<vmem>>, vector<1x1x4x8x16xbf16>
    %49 = vector.shape_cast %48 : vector<1x1x4x8x16xbf16> to vector<4x8x16xbf16>
    %c0_40 = arith.constant 0 : index
    %c1_41 = arith.constant 1 : index
    %c0_42 = arith.constant 0 : index
    %c0_43 = arith.constant 0 : index
    %c0_44 = arith.constant 0 : index
    %50 = vector.load %arg9[%c0_40, %c1_41, %c0_42, %c0_43, %c0_44] : memref<2x2x5x9x16xbf16, #tpu.memory_space<vmem>>, vector<1x1x4x8x16xbf16>
    %51 = vector.shape_cast %50 : vector<1x1x4x8x16xbf16> to vector<4x8x16xbf16>
    %c0_45 = arith.constant 0 : index
    %c0_46 = arith.constant 0 : index
    %c0_47 = arith.constant 0 : index
    %c1_48 = arith.constant 1 : index
    %c0_49 = arith.constant 0 : index
    %52 = vector.load %arg9[%c0_45, %c0_46, %c0_47, %c1_48, %c0_49] : memref<2x2x5x9x16xbf16, #tpu.memory_space<vmem>>, vector<1x1x4x8x16xbf16>
    %53 = vector.shape_cast %52 : vector<1x1x4x8x16xbf16> to vector<4x8x16xbf16>
    %c1_50 = arith.constant 1 : index
    %c0_51 = arith.constant 0 : index
    %c0_52 = arith.constant 0 : index
    %c0_53 = arith.constant 0 : index
    %c0_54 = arith.constant 0 : index
    %54 = vector.load %arg9[%c1_50, %c0_51, %c0_52, %c0_53, %c0_54] : memref<2x2x5x9x16xbf16, #tpu.memory_space<vmem>>, vector<1x1x4x8x16xbf16>
    %55 = vector.shape_cast %54 : vector<1x1x4x8x16xbf16> to vector<4x8x16xbf16>
    %c1_55 = arith.constant 1 : index
    %c1_56 = arith.constant 1 : index
    %c0_57 = arith.constant 0 : index
    %c0_58 = arith.constant 0 : index
    %c0_59 = arith.constant 0 : index
    %56 = vector.load %arg9[%c1_55, %c1_56, %c0_57, %c0_58, %c0_59] : memref<2x2x5x9x16xbf16, #tpu.memory_space<vmem>>, vector<1x1x4x8x16xbf16>
    %57 = vector.shape_cast %56 : vector<1x1x4x8x16xbf16> to vector<4x8x16xbf16>
    %c1_60 = arith.constant 1 : index
    %c0_61 = arith.constant 0 : index
    %c0_62 = arith.constant 0 : index
    %c1_63 = arith.constant 1 : index
    %c0_64 = arith.constant 0 : index
    %58 = vector.load %arg9[%c1_60, %c0_61, %c0_62, %c1_63, %c0_64] : memref<2x2x5x9x16xbf16, #tpu.memory_space<vmem>>, vector<1x1x4x8x16xbf16>
    %59 = vector.shape_cast %58 : vector<1x1x4x8x16xbf16> to vector<4x8x16xbf16>
    %c0_65 = arith.constant 0 : index
    %c0_66 = arith.constant 0 : index
    %c1_67 = arith.constant 1 : index
    %c0_68 = arith.constant 0 : index
    %c0_69 = arith.constant 0 : index
    %60 = vector.load %arg9[%c0_65, %c0_66, %c1_67, %c0_68, %c0_69] : memref<2x2x5x9x16xbf16, #tpu.memory_space<vmem>>, vector<1x1x4x8x16xbf16>
    %61 = vector.shape_cast %60 : vector<1x1x4x8x16xbf16> to vector<4x8x16xbf16>
    %c0_70 = arith.constant 0 : index
    %c1_71 = arith.constant 1 : index
    %c1_72 = arith.constant 1 : index
    %c0_73 = arith.constant 0 : index
    %c0_74 = arith.constant 0 : index
    %62 = vector.load %arg9[%c0_70, %c1_71, %c1_72, %c0_73, %c0_74] : memref<2x2x5x9x16xbf16, #tpu.memory_space<vmem>>, vector<1x1x4x8x16xbf16>
    %63 = vector.shape_cast %62 : vector<1x1x4x8x16xbf16> to vector<4x8x16xbf16>
    %c0_75 = arith.constant 0 : index
    %c0_76 = arith.constant 0 : index
    %c1_77 = arith.constant 1 : index
    %c1_78 = arith.constant 1 : index
    %c0_79 = arith.constant 0 : index
    %64 = vector.load %arg9[%c0_75, %c0_76, %c1_77, %c1_78, %c0_79] : memref<2x2x5x9x16xbf16, #tpu.memory_space<vmem>>, vector<1x1x4x8x16xbf16>
    %65 = vector.shape_cast %64 : vector<1x1x4x8x16xbf16> to vector<4x8x16xbf16>
    %cst_80 = arith.constant 0.000000e+00 : bf16
    %66 = vector.broadcast %cst_80 : bf16 to vector<4x8x112xbf16>
    %67 = tpu.concatenate %49, %51, %53, %55, %57, %59, %61, %63, %65, %66 in 2 : vector<4x8x16xbf16>, vector<4x8x16xbf16>, vector<4x8x16xbf16>, vector<4x8x16xbf16>, vector<4x8x16xbf16>, vector<4x8x16xbf16>, vector<4x8x16xbf16>, vector<4x8x16xbf16>, vector<4x8x16xbf16>, vector<4x8x112xbf16> -> vector<4x8x256xbf16>
    %68 = vector.shape_cast %67 : vector<4x8x256xbf16> to vector<32x256xbf16>
    %c0_81 = arith.constant 0 : index
    %c0_82 = arith.constant 0 : index
    %69 = vector.load %arg2[%c0_81, %c0_82] : memref<256x32xbf16, #tpu.memory_space<vmem>>, vector<256x32xbf16>
    %cst_83 = arith.constant dense<0.000000e+00> : vector<32x32xf32>
    %70 = tpu.matmul %68, %69, %cst_83 {dimension_numbers = #tpu.dot_dimension_numbers<[1], [0], [0], [1], [0, 0, 1, 1], [], []>} : vector<32x256xbf16>, vector<256x32xbf16>, vector<32x32xf32> -> vector<32x32xf32>
    %c0_84 = arith.constant 0 : index
    %c0_85 = arith.constant 0 : index
    %71 = vector.load %arg3[%c0_84, %c0_85] : memref<1x32xf32, #tpu.memory_space<vmem>>, vector<1x32xf32>
    %72 = vector.broadcast %71 : vector<1x32xf32> to vector<32x32xf32>
    %73 = arith.addf %70, %72 : vector<32x32xf32>
    %74 = vector.shape_cast %73 : vector<32x32xf32> to vector<4x8x32xf32>
    %75 = vector.extract_strided_slice %74 {offsets = [0, 0, 0], sizes = [4, 4, 32], strides = [1, 1, 1]} : vector<4x8x32xf32> to vector<4x4x32xf32>
    %cst_86 = arith.constant dense<0.000000e+00> : vector<32xf32>
    %76 = vector.multi_reduction <add>, %75, %cst_86 [0, 1] : vector<4x4x32xf32> to vector<32xf32>
    %77 = arith.addf %46, %76 : vector<32xf32>
    %78 = arith.mulf %75, %75 : vector<4x4x32xf32>
    %cst_87 = arith.constant dense<0.000000e+00> : vector<32xf32>
    %79 = vector.multi_reduction <add>, %78, %cst_87 [0, 1] : vector<4x4x32xf32> to vector<32xf32>
    %80 = arith.addf %47, %79 : vector<32xf32>
    %81 = arith.truncf %75 : vector<4x4x32xf32> to vector<4x4x32xbf16>
    %c0_88 = arith.constant 0 : index
    %c0_89 = arith.constant 0 : index
    %c0_90 = arith.constant 0 : index
    %c0_91 = arith.constant 0 : index
    %82 = vector.load %arg6[%c0_88, %c0_89, %c0_90, %c0_91] : memref<1x4x4x32xbf16, #tpu.memory_space<vmem>>, vector<1x4x4x32xbf16>
    %83 = vector.shape_cast %82 : vector<1x4x4x32xbf16> to vector<4x4x32xbf16>
    %84 = vector.shape_cast %81 : vector<4x4x32xbf16> to vector<1x4x4x32xbf16>
    tpu.vector_store %arg6[%c0_88, %c0_89, %c0_90, %c0_91], %84 {strides = array<i32>} : memref<1x4x4x32xbf16, #tpu.memory_space<vmem>>, vector<1x4x4x32xbf16>,
    %85 = vector.shape_cast %77 : vector<32xf32> to vector<1x1x32xf32>
    %c0_92 = arith.constant 0 : index
    %c0_93 = arith.constant 0 : index
    %c0_94 = arith.constant 0 : index
    %86 = vector.load %arg7[%c0_92, %c0_93, %c0_94] : memref<1x1x32xf32, #tpu.memory_space<vmem>>, vector<1x1x32xf32>
    tpu.vector_store %arg7[%c0_92, %c0_93, %c0_94], %85 {strides = array<i32>} : memref<1x1x32xf32, #tpu.memory_space<vmem>>, vector<1x1x32xf32>,
    %87 = vector.shape_cast %80 : vector<32xf32> to vector<1x1x32xf32>
    %c0_95 = arith.constant 0 : index
    %c0_96 = arith.constant 0 : index
    %c0_97 = arith.constant 0 : index
    %88 = vector.load %arg8[%c0_95, %c0_96, %c0_97] : memref<1x1x32xf32, #tpu.memory_space<vmem>>, vector<1x1x32xf32>
    tpu.vector_store %arg8[%c0_95, %c0_96, %c0_97], %87 {strides = array<i32>} : memref<1x1x32xf32, #tpu.memory_space<vmem>>, vector<1x1x32xf32>,
    return
  }
  func.func @transform_0(%arg0: i32) -> (i32, i32, i32, i32) {
    %c0_i32 = arith.constant 0 : i32
    %c0_i32_0 = arith.constant 0 : i32
    %c0_i32_1 = arith.constant 0 : i32
    %c0_i32_2 = arith.constant 0 : i32
    return %arg0, %c0_i32, %c0_i32_0, %c0_i32_1 : i32, i32, i32, i32
  }
  func.func @transform_1(%arg0: i32) -> (i32, i32) {
    %c0_i32 = arith.constant 0 : i32
    %c0_i32_0 = arith.constant 0 : i32
    %c0_i32_1 = arith.constant 0 : i32
    return %c0_i32, %c0_i32_0 : i32, i32
  }
  func.func @transform_2(%arg0: i32) -> (i32, i32) {
    %c0_i32 = arith.constant 0 : i32
    %c0_i32_0 = arith.constant 0 : i32
    %c0_i32_1 = arith.constant 0 : i32
    return %c0_i32, %c0_i32_0 : i32, i32
  }
  func.func @transform_3(%arg0: i32) -> (i32, i32) {
    %c0_i32 = arith.constant 0 : i32
    %c0_i32_0 = arith.constant 0 : i32
    %c0_i32_1 = arith.constant 0 : i32
    return %c0_i32, %c0_i32_0 : i32, i32
  }
  func.func @transform_4(%arg0: i32) -> (i32, i32) {
    %c0_i32 = arith.constant 0 : i32
    %c0_i32_0 = arith.constant 0 : i32
    %c0_i32_1 = arith.constant 0 : i32
    return %c0_i32, %c0_i32_0 : i32, i32
  }
  func.func @transform_5(%arg0: i32) -> (i32, i32, i32, i32) {
    %c0_i32 = arith.constant 0 : i32
    %c0_i32_0 = arith.constant 0 : i32
    %c0_i32_1 = arith.constant 0 : i32
    %c0_i32_2 = arith.constant 0 : i32
    return %arg0, %c0_i32, %c0_i32_0, %c0_i32_1 : i32, i32, i32, i32
  }
  func.func @transform_6(%arg0: i32) -> (i32, i32, i32) {
    %c0_i32 = arith.constant 0 : i32
    %c0_i32_0 = arith.constant 0 : i32
    %c0_i32_1 = arith.constant 0 : i32
    return %arg0, %c0_i32, %c0_i32_0 : i32, i32, i32
  }
  func.func @transform_7(%arg0: i32) -> (i32, i32, i32) {
    %c0_i32 = arith.constant 0 : i32
    %c0_i32_0 = arith.constant 0 : i32
    %c0_i32_1 = arith.constant 0 : i32
    return %arg0, %c0_i32, %c0_i32_0 : i32, i32, i32
  }
}

module attributes {stable_mosaic.version = 11 : i64} {
  func.func @_conv_kernel(%arg0: i32, %arg1: memref<1x4x4x32xbf16, #tpu.memory_space<vmem>>, %arg2: memref<384x16xbf16, #tpu.memory_space<vmem>>, %arg3: memref<1x16xf32, #tpu.memory_space<vmem>>, %arg4: memref<1x32xf32, #tpu.memory_space<vmem>>, %arg5: memref<1x32xf32, #tpu.memory_space<vmem>>, %arg6: memref<1x4x4x16xbf16, #tpu.memory_space<vmem>>, %arg7: memref<1x1x16xf32, #tpu.memory_space<vmem>>, %arg8: memref<1x1x16xf32, #tpu.memory_space<vmem>>, %arg9: memref<6x10x32xbf16, #tpu.memory_space<vmem>>) attributes {dimension_semantics = [#tpu.dimension_semantics<parallel>], iteration_bounds = array<i64: 2>, scalar_prefetch = 0 : i64, scratch_operands = 1 : i64, tpu.core_type = #tpu.core_type<tc>, window_params = [{transform_indices = @transform_0, window_bounds = array<i64: 1, 4, 4, 32>}, {pipeline_mode = #tpu.pipeline_mode<synchronous>, transform_indices = @transform_1, window_bounds = array<i64: 384, 16>}, {pipeline_mode = #tpu.pipeline_mode<synchronous>, transform_indices = @transform_2, window_bounds = array<i64: 1, 16>}, {pipeline_mode = #tpu.pipeline_mode<synchronous>, transform_indices = @transform_3, window_bounds = array<i64: 1, 32>}, {pipeline_mode = #tpu.pipeline_mode<synchronous>, transform_indices = @transform_4, window_bounds = array<i64: 1, 32>}, {transform_indices = @transform_5, window_bounds = array<i64: 1, 4, 4, 16>}, {transform_indices = @transform_6, window_bounds = array<i64: 1, 1, 16>}, {transform_indices = @transform_7, window_bounds = array<i64: 1, 1, 16>}]} {
    %c0 = arith.constant 0 : index
    %c0_0 = arith.constant 0 : index
    %c0_1 = arith.constant 0 : index
    %c0_2 = arith.constant 0 : index
    %0 = vector.load %arg1[%c0, %c0_0, %c0_1, %c0_2] : memref<1x4x4x32xbf16, #tpu.memory_space<vmem>>, vector<1x4x4x32xbf16>
    %1 = vector.shape_cast %0 : vector<1x4x4x32xbf16> to vector<4x4x32xbf16>
    %2 = arith.extf %1 : vector<4x4x32xbf16> to vector<4x4x32xf32>
    %c0_3 = arith.constant 0 : index
    %c0_4 = arith.constant 0 : index
    %3 = vector.load %arg4[%c0_3, %c0_4] : memref<1x32xf32, #tpu.memory_space<vmem>>, vector<1x32xf32>
    %4 = vector.shape_cast %3 : vector<1x32xf32> to vector<1x1x32xf32>
    %5 = vector.broadcast %4 : vector<1x1x32xf32> to vector<4x4x32xf32>
    %6 = arith.mulf %2, %5 : vector<4x4x32xf32>
    %c0_5 = arith.constant 0 : index
    %c0_6 = arith.constant 0 : index
    %7 = vector.load %arg5[%c0_5, %c0_6] : memref<1x32xf32, #tpu.memory_space<vmem>>, vector<1x32xf32>
    %8 = vector.shape_cast %7 : vector<1x32xf32> to vector<1x1x32xf32>
    %9 = vector.broadcast %8 : vector<1x1x32xf32> to vector<4x4x32xf32>
    %10 = arith.addf %6, %9 : vector<4x4x32xf32>
    %cst = arith.constant 0.000000e+00 : f32
    %11 = vector.broadcast %cst : f32 to vector<4x4x32xf32>
    %12 = arith.cmpf oge, %10, %11 : vector<4x4x32xf32>
    %cst_7 = arith.constant 2.000000e-01 : f32
    %13 = vector.broadcast %cst_7 : f32 to vector<4x4x32xf32>
    %14 = arith.mulf %13, %10 : vector<4x4x32xf32>
    %15 = arith.select %12, %10, %14 : vector<4x4x32xi1>, vector<4x4x32xf32>
    %16 = arith.truncf %15 : vector<4x4x32xf32> to vector<4x4x32xbf16>
    %cst_8 = arith.constant 0.000000e+00 : bf16
    %17 = vector.broadcast %cst_8 : bf16 to vector<6x10x32xbf16>
    %c0_9 = arith.constant 0 : index
    %c0_10 = arith.constant 0 : index
    %c0_11 = arith.constant 0 : index
    %18 = vector.load %arg9[%c0_9, %c0_10, %c0_11] : memref<6x10x32xbf16, #tpu.memory_space<vmem>>, vector<6x10x32xbf16>
    tpu.vector_store %arg9[%c0_9, %c0_10, %c0_11], %17 {strides = array<i32>} : memref<6x10x32xbf16, #tpu.memory_space<vmem>>, vector<6x10x32xbf16>,
    %c1 = arith.constant 1 : index
    %c1_12 = arith.constant 1 : index
    %c0_13 = arith.constant 0 : index
    %19 = vector.load %arg9[%c1, %c1_12, %c0_13] : memref<6x10x32xbf16, #tpu.memory_space<vmem>>, vector<4x4x32xbf16>
    tpu.vector_store %arg9[%c1, %c1_12, %c0_13], %16 {strides = array<i32>} : memref<6x10x32xbf16, #tpu.memory_space<vmem>>, vector<4x4x32xbf16>,
    %cst_14 = arith.constant 0.000000e+00 : f32
    %20 = vector.broadcast %cst_14 : f32 to vector<16xf32>
    %cst_15 = arith.constant 0.000000e+00 : f32
    %21 = vector.broadcast %cst_15 : f32 to vector<16xf32>
    %c0_16 = arith.constant 0 : index
    %c0_17 = arith.constant 0 : index
    %c0_18 = arith.constant 0 : index
    %22 = vector.load %arg9[%c0_16, %c0_17, %c0_18] : memref<6x10x32xbf16, #tpu.memory_space<vmem>>, vector<4x8x32xbf16>
    %c0_19 = arith.constant 0 : index
    %c1_20 = arith.constant 1 : index
    %c0_21 = arith.constant 0 : index
    %23 = vector.load %arg9[%c0_19, %c1_20, %c0_21] : memref<6x10x32xbf16, #tpu.memory_space<vmem>>, vector<4x8x32xbf16>
    %c0_22 = arith.constant 0 : index
    %c2 = arith.constant 2 : index
    %c0_23 = arith.constant 0 : index
    %24 = vector.load %arg9[%c0_22, %c2, %c0_23] : memref<6x10x32xbf16, #tpu.memory_space<vmem>>, vector<4x8x32xbf16>
    %c1_24 = arith.constant 1 : index
    %c0_25 = arith.constant 0 : index
    %c0_26 = arith.constant 0 : index
    %25 = vector.load %arg9[%c1_24, %c0_25, %c0_26] : memref<6x10x32xbf16, #tpu.memory_space<vmem>>, vector<4x8x32xbf16>
    %c1_27 = arith.constant 1 : index
    %c1_28 = arith.constant 1 : index
    %c0_29 = arith.constant 0 : index
    %26 = vector.load %arg9[%c1_27, %c1_28, %c0_29] : memref<6x10x32xbf16, #tpu.memory_space<vmem>>, vector<4x8x32xbf16>
    %c1_30 = arith.constant 1 : index
    %c2_31 = arith.constant 2 : index
    %c0_32 = arith.constant 0 : index
    %27 = vector.load %arg9[%c1_30, %c2_31, %c0_32] : memref<6x10x32xbf16, #tpu.memory_space<vmem>>, vector<4x8x32xbf16>
    %c2_33 = arith.constant 2 : index
    %c0_34 = arith.constant 0 : index
    %c0_35 = arith.constant 0 : index
    %28 = vector.load %arg9[%c2_33, %c0_34, %c0_35] : memref<6x10x32xbf16, #tpu.memory_space<vmem>>, vector<4x8x32xbf16>
    %c2_36 = arith.constant 2 : index
    %c1_37 = arith.constant 1 : index
    %c0_38 = arith.constant 0 : index
    %29 = vector.load %arg9[%c2_36, %c1_37, %c0_38] : memref<6x10x32xbf16, #tpu.memory_space<vmem>>, vector<4x8x32xbf16>
    %c2_39 = arith.constant 2 : index
    %c2_40 = arith.constant 2 : index
    %c0_41 = arith.constant 0 : index
    %30 = vector.load %arg9[%c2_39, %c2_40, %c0_41] : memref<6x10x32xbf16, #tpu.memory_space<vmem>>, vector<4x8x32xbf16>
    %cst_42 = arith.constant 0.000000e+00 : bf16
    %31 = vector.broadcast %cst_42 : bf16 to vector<4x8x96xbf16>
    %32 = tpu.concatenate %22, %23, %24, %25, %26, %27, %28, %29, %30, %31 in 2 : vector<4x8x32xbf16>, vector<4x8x32xbf16>, vector<4x8x32xbf16>, vector<4x8x32xbf16>, vector<4x8x32xbf16>, vector<4x8x32xbf16>, vector<4x8x32xbf16>, vector<4x8x32xbf16>, vector<4x8x32xbf16>, vector<4x8x96xbf16> -> vector<4x8x384xbf16>
    %33 = vector.shape_cast %32 : vector<4x8x384xbf16> to vector<32x384xbf16>
    %c0_43 = arith.constant 0 : index
    %c0_44 = arith.constant 0 : index
    %34 = vector.load %arg2[%c0_43, %c0_44] : memref<384x16xbf16, #tpu.memory_space<vmem>>, vector<384x16xbf16>
    %cst_45 = arith.constant dense<0.000000e+00> : vector<32x16xf32>
    %35 = tpu.matmul %33, %34, %cst_45 {dimension_numbers = #tpu.dot_dimension_numbers<[1], [0], [0], [1], [0, 0, 1, 1], [], []>} : vector<32x384xbf16>, vector<384x16xbf16>, vector<32x16xf32> -> vector<32x16xf32>
    %c0_46 = arith.constant 0 : index
    %c0_47 = arith.constant 0 : index
    %36 = vector.load %arg3[%c0_46, %c0_47] : memref<1x16xf32, #tpu.memory_space<vmem>>, vector<1x16xf32>
    %37 = vector.broadcast %36 : vector<1x16xf32> to vector<32x16xf32>
    %38 = arith.addf %35, %37 : vector<32x16xf32>
    %39 = vector.shape_cast %38 : vector<32x16xf32> to vector<4x8x16xf32>
    %40 = vector.extract_strided_slice %39 {offsets = [0, 0, 0], sizes = [4, 4, 16], strides = [1, 1, 1]} : vector<4x8x16xf32> to vector<4x4x16xf32>
    %cst_48 = arith.constant dense<0.000000e+00> : vector<16xf32>
    %41 = vector.multi_reduction <add>, %40, %cst_48 [0, 1] : vector<4x4x16xf32> to vector<16xf32>
    %42 = arith.addf %20, %41 : vector<16xf32>
    %43 = arith.mulf %40, %40 : vector<4x4x16xf32>
    %cst_49 = arith.constant dense<0.000000e+00> : vector<16xf32>
    %44 = vector.multi_reduction <add>, %43, %cst_49 [0, 1] : vector<4x4x16xf32> to vector<16xf32>
    %45 = arith.addf %21, %44 : vector<16xf32>
    %46 = arith.truncf %40 : vector<4x4x16xf32> to vector<4x4x16xbf16>
    %c0_50 = arith.constant 0 : index
    %c0_51 = arith.constant 0 : index
    %c0_52 = arith.constant 0 : index
    %c0_53 = arith.constant 0 : index
    %47 = vector.load %arg6[%c0_50, %c0_51, %c0_52, %c0_53] : memref<1x4x4x16xbf16, #tpu.memory_space<vmem>>, vector<1x4x4x16xbf16>
    %48 = vector.shape_cast %47 : vector<1x4x4x16xbf16> to vector<4x4x16xbf16>
    %49 = vector.shape_cast %46 : vector<4x4x16xbf16> to vector<1x4x4x16xbf16>
    tpu.vector_store %arg6[%c0_50, %c0_51, %c0_52, %c0_53], %49 {strides = array<i32>} : memref<1x4x4x16xbf16, #tpu.memory_space<vmem>>, vector<1x4x4x16xbf16>,
    %50 = vector.shape_cast %42 : vector<16xf32> to vector<1x1x16xf32>
    %c0_54 = arith.constant 0 : index
    %c0_55 = arith.constant 0 : index
    %c0_56 = arith.constant 0 : index
    %51 = vector.load %arg7[%c0_54, %c0_55, %c0_56] : memref<1x1x16xf32, #tpu.memory_space<vmem>>, vector<1x1x16xf32>
    tpu.vector_store %arg7[%c0_54, %c0_55, %c0_56], %50 {strides = array<i32>} : memref<1x1x16xf32, #tpu.memory_space<vmem>>, vector<1x1x16xf32>,
    %52 = vector.shape_cast %45 : vector<16xf32> to vector<1x1x16xf32>
    %c0_57 = arith.constant 0 : index
    %c0_58 = arith.constant 0 : index
    %c0_59 = arith.constant 0 : index
    %53 = vector.load %arg8[%c0_57, %c0_58, %c0_59] : memref<1x1x16xf32, #tpu.memory_space<vmem>>, vector<1x1x16xf32>
    tpu.vector_store %arg8[%c0_57, %c0_58, %c0_59], %52 {strides = array<i32>} : memref<1x1x16xf32, #tpu.memory_space<vmem>>, vector<1x1x16xf32>,
    return
  }
  func.func @transform_0(%arg0: i32) -> (i32, i32, i32, i32) {
    %c0_i32 = arith.constant 0 : i32
    %c0_i32_0 = arith.constant 0 : i32
    %c0_i32_1 = arith.constant 0 : i32
    %c0_i32_2 = arith.constant 0 : i32
    return %arg0, %c0_i32, %c0_i32_0, %c0_i32_1 : i32, i32, i32, i32
  }
  func.func @transform_1(%arg0: i32) -> (i32, i32) {
    %c0_i32 = arith.constant 0 : i32
    %c0_i32_0 = arith.constant 0 : i32
    %c0_i32_1 = arith.constant 0 : i32
    return %c0_i32, %c0_i32_0 : i32, i32
  }
  func.func @transform_2(%arg0: i32) -> (i32, i32) {
    %c0_i32 = arith.constant 0 : i32
    %c0_i32_0 = arith.constant 0 : i32
    %c0_i32_1 = arith.constant 0 : i32
    return %c0_i32, %c0_i32_0 : i32, i32
  }
  func.func @transform_3(%arg0: i32) -> (i32, i32) {
    %c0_i32 = arith.constant 0 : i32
    %c0_i32_0 = arith.constant 0 : i32
    %c0_i32_1 = arith.constant 0 : i32
    return %c0_i32, %c0_i32_0 : i32, i32
  }
  func.func @transform_4(%arg0: i32) -> (i32, i32) {
    %c0_i32 = arith.constant 0 : i32
    %c0_i32_0 = arith.constant 0 : i32
    %c0_i32_1 = arith.constant 0 : i32
    return %c0_i32, %c0_i32_0 : i32, i32
  }
  func.func @transform_5(%arg0: i32) -> (i32, i32, i32, i32) {
    %c0_i32 = arith.constant 0 : i32
    %c0_i32_0 = arith.constant 0 : i32
    %c0_i32_1 = arith.constant 0 : i32
    %c0_i32_2 = arith.constant 0 : i32
    return %arg0, %c0_i32, %c0_i32_0, %c0_i32_1 : i32, i32, i32, i32
  }
  func.func @transform_6(%arg0: i32) -> (i32, i32, i32) {
    %c0_i32 = arith.constant 0 : i32
    %c0_i32_0 = arith.constant 0 : i32
    %c0_i32_1 = arith.constant 0 : i32
    return %arg0, %c0_i32, %c0_i32_0 : i32, i32, i32
  }
  func.func @transform_7(%arg0: i32) -> (i32, i32, i32) {
    %c0_i32 = arith.constant 0 : i32
    %c0_i32_0 = arith.constant 0 : i32
    %c0_i32_1 = arith.constant 0 : i32
    return %arg0, %c0_i32, %c0_i32_0 : i32, i32, i32
  }
}

module attributes {stable_mosaic.version = 11 : i64} {
  func.func @_conv_kernel(%arg0: i32, %arg1: memref<1x4x4x16xbf16, #tpu.memory_space<vmem>>, %arg2: memref<256x8xbf16, #tpu.memory_space<vmem>>, %arg3: memref<1x8xf32, #tpu.memory_space<vmem>>, %arg4: memref<1x16xf32, #tpu.memory_space<vmem>>, %arg5: memref<1x16xf32, #tpu.memory_space<vmem>>, %arg6: memref<1x4x4x8xf32, #tpu.memory_space<vmem>>, %arg7: memref<6x10x16xbf16, #tpu.memory_space<vmem>>) attributes {dimension_semantics = [#tpu.dimension_semantics<parallel>], iteration_bounds = array<i64: 2>, scalar_prefetch = 0 : i64, scratch_operands = 1 : i64, tpu.core_type = #tpu.core_type<tc>, window_params = [{transform_indices = @transform_0, window_bounds = array<i64: 1, 4, 4, 16>}, {pipeline_mode = #tpu.pipeline_mode<synchronous>, transform_indices = @transform_1, window_bounds = array<i64: 256, 8>}, {pipeline_mode = #tpu.pipeline_mode<synchronous>, transform_indices = @transform_2, window_bounds = array<i64: 1, 8>}, {pipeline_mode = #tpu.pipeline_mode<synchronous>, transform_indices = @transform_3, window_bounds = array<i64: 1, 16>}, {pipeline_mode = #tpu.pipeline_mode<synchronous>, transform_indices = @transform_4, window_bounds = array<i64: 1, 16>}, {transform_indices = @transform_5, window_bounds = array<i64: 1, 4, 4, 8>}]} {
    %c0 = arith.constant 0 : index
    %c0_0 = arith.constant 0 : index
    %c0_1 = arith.constant 0 : index
    %c0_2 = arith.constant 0 : index
    %0 = vector.load %arg1[%c0, %c0_0, %c0_1, %c0_2] : memref<1x4x4x16xbf16, #tpu.memory_space<vmem>>, vector<1x4x4x16xbf16>
    %1 = vector.shape_cast %0 : vector<1x4x4x16xbf16> to vector<4x4x16xbf16>
    %2 = arith.extf %1 : vector<4x4x16xbf16> to vector<4x4x16xf32>
    %c0_3 = arith.constant 0 : index
    %c0_4 = arith.constant 0 : index
    %3 = vector.load %arg4[%c0_3, %c0_4] : memref<1x16xf32, #tpu.memory_space<vmem>>, vector<1x16xf32>
    %4 = vector.shape_cast %3 : vector<1x16xf32> to vector<1x1x16xf32>
    %5 = vector.broadcast %4 : vector<1x1x16xf32> to vector<4x4x16xf32>
    %6 = arith.mulf %2, %5 : vector<4x4x16xf32>
    %c0_5 = arith.constant 0 : index
    %c0_6 = arith.constant 0 : index
    %7 = vector.load %arg5[%c0_5, %c0_6] : memref<1x16xf32, #tpu.memory_space<vmem>>, vector<1x16xf32>
    %8 = vector.shape_cast %7 : vector<1x16xf32> to vector<1x1x16xf32>
    %9 = vector.broadcast %8 : vector<1x1x16xf32> to vector<4x4x16xf32>
    %10 = arith.addf %6, %9 : vector<4x4x16xf32>
    %cst = arith.constant 0.000000e+00 : f32
    %11 = vector.broadcast %cst : f32 to vector<4x4x16xf32>
    %12 = arith.cmpf oge, %10, %11 : vector<4x4x16xf32>
    %cst_7 = arith.constant 2.000000e-01 : f32
    %13 = vector.broadcast %cst_7 : f32 to vector<4x4x16xf32>
    %14 = arith.mulf %13, %10 : vector<4x4x16xf32>
    %15 = arith.select %12, %10, %14 : vector<4x4x16xi1>, vector<4x4x16xf32>
    %16 = arith.truncf %15 : vector<4x4x16xf32> to vector<4x4x16xbf16>
    %cst_8 = arith.constant 0.000000e+00 : bf16
    %17 = vector.broadcast %cst_8 : bf16 to vector<6x10x16xbf16>
    %c0_9 = arith.constant 0 : index
    %c0_10 = arith.constant 0 : index
    %c0_11 = arith.constant 0 : index
    %18 = vector.load %arg7[%c0_9, %c0_10, %c0_11] : memref<6x10x16xbf16, #tpu.memory_space<vmem>>, vector<6x10x16xbf16>
    tpu.vector_store %arg7[%c0_9, %c0_10, %c0_11], %17 {strides = array<i32>} : memref<6x10x16xbf16, #tpu.memory_space<vmem>>, vector<6x10x16xbf16>,
    %c1 = arith.constant 1 : index
    %c1_12 = arith.constant 1 : index
    %c0_13 = arith.constant 0 : index
    %19 = vector.load %arg7[%c1, %c1_12, %c0_13] : memref<6x10x16xbf16, #tpu.memory_space<vmem>>, vector<4x4x16xbf16>
    tpu.vector_store %arg7[%c1, %c1_12, %c0_13], %16 {strides = array<i32>} : memref<6x10x16xbf16, #tpu.memory_space<vmem>>, vector<4x4x16xbf16>,
    %c0_14 = arith.constant 0 : index
    %c0_15 = arith.constant 0 : index
    %c0_16 = arith.constant 0 : index
    %20 = vector.load %arg7[%c0_14, %c0_15, %c0_16] : memref<6x10x16xbf16, #tpu.memory_space<vmem>>, vector<4x8x16xbf16>
    %c0_17 = arith.constant 0 : index
    %c1_18 = arith.constant 1 : index
    %c0_19 = arith.constant 0 : index
    %21 = vector.load %arg7[%c0_17, %c1_18, %c0_19] : memref<6x10x16xbf16, #tpu.memory_space<vmem>>, vector<4x8x16xbf16>
    %c0_20 = arith.constant 0 : index
    %c2 = arith.constant 2 : index
    %c0_21 = arith.constant 0 : index
    %22 = vector.load %arg7[%c0_20, %c2, %c0_21] : memref<6x10x16xbf16, #tpu.memory_space<vmem>>, vector<4x8x16xbf16>
    %c1_22 = arith.constant 1 : index
    %c0_23 = arith.constant 0 : index
    %c0_24 = arith.constant 0 : index
    %23 = vector.load %arg7[%c1_22, %c0_23, %c0_24] : memref<6x10x16xbf16, #tpu.memory_space<vmem>>, vector<4x8x16xbf16>
    %c1_25 = arith.constant 1 : index
    %c1_26 = arith.constant 1 : index
    %c0_27 = arith.constant 0 : index
    %24 = vector.load %arg7[%c1_25, %c1_26, %c0_27] : memref<6x10x16xbf16, #tpu.memory_space<vmem>>, vector<4x8x16xbf16>
    %c1_28 = arith.constant 1 : index
    %c2_29 = arith.constant 2 : index
    %c0_30 = arith.constant 0 : index
    %25 = vector.load %arg7[%c1_28, %c2_29, %c0_30] : memref<6x10x16xbf16, #tpu.memory_space<vmem>>, vector<4x8x16xbf16>
    %c2_31 = arith.constant 2 : index
    %c0_32 = arith.constant 0 : index
    %c0_33 = arith.constant 0 : index
    %26 = vector.load %arg7[%c2_31, %c0_32, %c0_33] : memref<6x10x16xbf16, #tpu.memory_space<vmem>>, vector<4x8x16xbf16>
    %c2_34 = arith.constant 2 : index
    %c1_35 = arith.constant 1 : index
    %c0_36 = arith.constant 0 : index
    %27 = vector.load %arg7[%c2_34, %c1_35, %c0_36] : memref<6x10x16xbf16, #tpu.memory_space<vmem>>, vector<4x8x16xbf16>
    %c2_37 = arith.constant 2 : index
    %c2_38 = arith.constant 2 : index
    %c0_39 = arith.constant 0 : index
    %28 = vector.load %arg7[%c2_37, %c2_38, %c0_39] : memref<6x10x16xbf16, #tpu.memory_space<vmem>>, vector<4x8x16xbf16>
    %cst_40 = arith.constant 0.000000e+00 : bf16
    %29 = vector.broadcast %cst_40 : bf16 to vector<4x8x112xbf16>
    %30 = tpu.concatenate %20, %21, %22, %23, %24, %25, %26, %27, %28, %29 in 2 : vector<4x8x16xbf16>, vector<4x8x16xbf16>, vector<4x8x16xbf16>, vector<4x8x16xbf16>, vector<4x8x16xbf16>, vector<4x8x16xbf16>, vector<4x8x16xbf16>, vector<4x8x16xbf16>, vector<4x8x16xbf16>, vector<4x8x112xbf16> -> vector<4x8x256xbf16>
    %31 = vector.shape_cast %30 : vector<4x8x256xbf16> to vector<32x256xbf16>
    %c0_41 = arith.constant 0 : index
    %c0_42 = arith.constant 0 : index
    %32 = vector.load %arg2[%c0_41, %c0_42] : memref<256x8xbf16, #tpu.memory_space<vmem>>, vector<256x8xbf16>
    %cst_43 = arith.constant dense<0.000000e+00> : vector<32x8xf32>
    %33 = tpu.matmul %31, %32, %cst_43 {dimension_numbers = #tpu.dot_dimension_numbers<[1], [0], [0], [1], [0, 0, 1, 1], [], []>} : vector<32x256xbf16>, vector<256x8xbf16>, vector<32x8xf32> -> vector<32x8xf32>
    %c0_44 = arith.constant 0 : index
    %c0_45 = arith.constant 0 : index
    %34 = vector.load %arg3[%c0_44, %c0_45] : memref<1x8xf32, #tpu.memory_space<vmem>>, vector<1x8xf32>
    %35 = vector.broadcast %34 : vector<1x8xf32> to vector<32x8xf32>
    %36 = arith.addf %33, %35 : vector<32x8xf32>
    %37 = vector.shape_cast %36 : vector<32x8xf32> to vector<4x8x8xf32>
    %38 = vector.extract_strided_slice %37 {offsets = [0, 0, 0], sizes = [4, 4, 8], strides = [1, 1, 1]} : vector<4x8x8xf32> to vector<4x4x8xf32>
    %c0_46 = arith.constant 0 : index
    %c0_47 = arith.constant 0 : index
    %c0_48 = arith.constant 0 : index
    %c0_49 = arith.constant 0 : index
    %39 = vector.load %arg6[%c0_46, %c0_47, %c0_48, %c0_49] : memref<1x4x4x8xf32, #tpu.memory_space<vmem>>, vector<1x4x4x8xf32>
    %40 = vector.shape_cast %39 : vector<1x4x4x8xf32> to vector<4x4x8xf32>
    %41 = vector.shape_cast %38 : vector<4x4x8xf32> to vector<1x4x4x8xf32>
    tpu.vector_store %arg6[%c0_46, %c0_47, %c0_48, %c0_49], %41 {strides = array<i32>} : memref<1x4x4x8xf32, #tpu.memory_space<vmem>>, vector<1x4x4x8xf32>,
    return
  }
  func.func @transform_0(%arg0: i32) -> (i32, i32, i32, i32) {
    %c0_i32 = arith.constant 0 : i32
    %c0_i32_0 = arith.constant 0 : i32
    %c0_i32_1 = arith.constant 0 : i32
    %c0_i32_2 = arith.constant 0 : i32
    return %arg0, %c0_i32, %c0_i32_0, %c0_i32_1 : i32, i32, i32, i32
  }
  func.func @transform_1(%arg0: i32) -> (i32, i32) {
    %c0_i32 = arith.constant 0 : i32
    %c0_i32_0 = arith.constant 0 : i32
    %c0_i32_1 = arith.constant 0 : i32
    return %c0_i32, %c0_i32_0 : i32, i32
  }
  func.func @transform_2(%arg0: i32) -> (i32, i32) {
    %c0_i32 = arith.constant 0 : i32
    %c0_i32_0 = arith.constant 0 : i32
    %c0_i32_1 = arith.constant 0 : i32
    return %c0_i32, %c0_i32_0 : i32, i32
  }
  func.func @transform_3(%arg0: i32) -> (i32, i32) {
    %c0_i32 = arith.constant 0 : i32
    %c0_i32_0 = arith.constant 0 : i32
    %c0_i32_1 = arith.constant 0 : i32
    return %c0_i32, %c0_i32_0 : i32, i32
  }
  func.func @transform_4(%arg0: i32) -> (i32, i32) {
    %c0_i32 = arith.constant 0 : i32
    %c0_i32_0 = arith.constant 0 : i32
    %c0_i32_1 = arith.constant 0 : i32
    return %c0_i32, %c0_i32_0 : i32, i32
  }
  func.func @transform_5(%arg0: i32) -> (i32, i32, i32, i32) {
    %c0_i32 = arith.constant 0 : i32
    %c0_i32_0 = arith.constant 0 : i32
    %c0_i32_1 = arith.constant 0 : i32
    %c0_i32_2 = arith.constant 0 : i32
    return %arg0, %c0_i32, %c0_i32_0, %c0_i32_1 : i32, i32, i32, i32
  }
}

</mosaic_0001>

<bundles_post_ra>
// kernel: _lambda_.8
= control target key start
LH: loop header
LB: loop body
LE: loop exit
PB: predicated region body
PF: predicated region fallthrough
CT: control target
= control target key end

     0   :  { %s1517_s24 = smov 0   ;;  %s1807_s0 = inlined_call_operand.vmem [shape: bf16[2,4,4,32], index: 0, kind: input, shape index: {}]   ;;  %s1808_s1 = inlined_call_operand.vmem [shape: bf16[384,16], index: 1, kind: input, shape index: {}]   ;;  %s1809_s2 = inlined_call_operand.vmem [shape: f32[1,16], index: 2, kind: input, shape index: {}]   ;;  %s1810_s3 = inlined_call_operand.vmem [shape: f32[1,32], index: 3, kind: input, shape index: {}]   ;;  %s1811_s4 = inlined_call_operand.vmem [shape: f32[1,32], index: 4, kind: input, shape index: {}]   ;;  %s1812_s5 = inlined_call_operand.vmem [shape: bf16[2,4,4,16], index: 5, kind: output, shape index: {0}]   ;;  %s1813_s6 = inlined_call_operand.vmem [shape: f32[2,1,16], index: 6, kind: output, shape index: {1}]   ;;  %s1814_s7 = inlined_call_operand.vmem [shape: f32[2,1,16], index: 7, kind: output, shape index: {2}]  }
   0x1 LB: > { %s1253_s25 = sadd.s32 4294967295, %s1471_s24   ;;  %p1257_p0 = scmp.ge.s32.totalorder %s1471_s24, 1  ;;  %s1471_s24 = sphi %s1517_s24, %s18_s24  }
   0x2   : > { %p242_p1 = scmp.lt.s32.totalorder %s1471_s24, 3 }
   0x4   : > { %p243_p2 = pnand %p1257_p0, %p242_p1 }
   0x5   : > { %vm343_vm0 = vcmask (!%p243_p2), 257024   ;;  %vm345_vm1 = vcmask (!%p243_p2), 253952   ;;  %v1473_v0 = vmov (!%p243_p2), 0   ;;  %p280_p3 = scmp.lt.s32.totalorder (!%p243_p2), %s1253_s25, 1  ;;  %v1262_v1 = vld [vmem:[%s1810_s3] ss:$0 sm:$0xff] (!%p243_p2) }
   0x6   : > { %246 = sbr.rel (%p243_p2) target bundleno = 442 (0x1ba), region = 40  ;;  %355 = vst.msk [vmem:[#allocation2 + $0x28] sm:$0xf] (!%p243_p2), %vm343_vm0, %v1473_v0  ;;  %344 = vst.msk [vmem:[#allocation2] sm:$0xf] (!%p243_p2), %vm343_vm0, %v1473_v0  ;;  %s1474_s11 = smov (!%p243_p2), 64  }
   0x7   : > { %356 = vst.msk [vmem:[#allocation2 + $0x2c] sm:$0x1] (!%p243_p2), %vm345_vm1, %v1473_v0  ;;  %346 = vst.msk [vmem:[#allocation2 + $0x4] sm:$0x1] (!%p243_p2), %vm345_vm1, %v1473_v0  ;;  %v1263_v7 = vld [vmem:[%s1811_s4] ss:$0 sm:$0xff] (!%p243_p2) }
   0x8   : > { %347 = vst.msk [vmem:[#allocation2 + $0x8] sm:$0xf] (!%p243_p2), %vm343_vm0, %v1473_v0  ;;  %349 = vst.msk [vmem:[#allocation2 + $0x10] sm:$0xf] (!%p243_p2), %vm343_vm0, %v1473_v0  ;;  %vm402_vm5 = vcmask (!%p243_p2), 256000   ;;  %s1475_s12 = smov (!%p243_p2), 32  }
   0x9   : > { %348 = vst.msk [vmem:[#allocation2 + $0xc] sm:$0x1] (!%p243_p2), %vm345_vm1, %v1473_v0  ;;  %350 = vst.msk [vmem:[#allocation2 + $0x14] sm:$0x1] (!%p243_p2), %vm345_vm1, %v1473_v0  ;;  %vm403_vm6 = vsmask.f32 (!%p243_p2), 2306 }
   0xa   : > { %351 = vst.msk [vmem:[#allocation2 + $0x18] sm:$0xf] (!%p243_p2), %vm343_vm0, %v1473_v0  ;;  %353 = vst.msk [vmem:[#allocation2 + $0x20] sm:$0xf] (!%p243_p2), %vm343_vm0, %v1473_v0  ;;  %v1438_v54 = vld [vmem:[%s1808_s1 + $0x40] sm:$0xff] (!%p243_p2)   ;;  %s1476_s21 = smov (!%p243_p2), 96  }
   0xb   : > { %352 = vst.msk [vmem:[#allocation2 + $0x1c] sm:$0x1] (!%p243_p2), %vm345_vm1, %v1473_v0  ;;  %354 = vst.msk [vmem:[#allocation2 + $0x24] sm:$0x1] (!%p243_p2), %vm345_vm1, %v1473_v0  ;;  %v1439_v57 = vld [vmem:[%s1808_s1] sm:$0xff] (!%p243_p2)   ;;  %1339 = vmatprep.subr.bf16.mxu0 (!%p243_p2), %v1438_v54  ;;  %vm702_vm9 = vcmask (!%p243_p2), 261120  }
   0xc   : > { %vm1551_vm8 = vmand (!%p243_p2), %vm402_vm5, %vm403_vm6  ;;  %1340 = vmatpush3.bf16.msra.mxu0 (!%p243_p2), %v1439_v57  ;;  %v1453_v51 = vld [vmem:[%s1808_s1 + $0xa0] sm:$0xff] (!%p243_p2)   ;;  %vm715_vm10 = vcmask (!%p243_p2), 523264   ;;  %vm724_vm11 = vcmask (!%p243_p2), 785408   ;;  %vm1103_vm12 = vcmask (!%p243_p2), 125952   ;;  %vm1140_vm13 = vcmask (!%p243_p2), 123904  }
   0xd   : > { %s1818_s25 = smov (!%p280_p3, %s1253_s25), 1  ;;  %v1536_v5 = vld [vmem:[#allocation2 + $0x28] sm:$0xf]  ;;  %v1543_v11 = vld [vmem:[#allocation2] sm:$0xf]  ;;  %vm1145_vm14 = vcmask 122880  }
   0xe   : > { %s1333_s26 = sshll.u32 %s1818_s25, 3  ;;  %v1291_v10 = vcombine.low %v1536_v5, %v1536_v5  ;;  %v421_v12 = vld [vmem:[#allocation2 + $0x4] sm:$0x1]  ;;  %v425_v13 = vld [vmem:[#allocation2] sm:$0xe]  ;;  %s292_s10 = scalar_lea.vmem %s1813_s6, %s1818_s25 }
   0xf   : > { %s284_s8 = scalar_lea.vmem %s1807_s0, %s1333_s26  ;;  %v1268_v14 = vcombine.low %v1543_v11, %v421_v12  ;;  %v1272_v15 = vcombine.low %v425_v13, %v421_v12  ;;  %v408_v48 = vld [vmem:[#allocation2 + $0x10] sm:$0x7]  ;;  %v405_v49 = vld [vmem:[#allocation2 + $0x8] sm:$0x7]  ;;  %s295_s15 = scalar_lea.vmem %s1814_s7, %s1818_s25 }
  0x10   : > { %v299_v2 = vld [vmem:[%s284_s8 + $0x4] sm:$0x3]  ;;  %v298_v3 = vld [vmem:[%s284_s8 + $0x2] sm:$0x3]  ;;  %v297_v4 = vld [vmem:[%s284_s8] sm:$0x3]  ;;  %636 = vrot.lane.b32.xlu1 %v1291_v10, %s1474_s11 }
  0x11   : > { %v303_v6 = vunpack.c.l.bf16 %v299_v2  ;;  %v302_v8 = vunpack.c.l.bf16 %v298_v3  ;;  %v301_v9 = vunpack.c.l.bf16 %v297_v4  ;;  %v475_v19 = vshrl.u32 %v1268_v14, 16  ;;  %v300_v25 = vld [vmem:[%s284_s8 + $0x6] sm:$0x3]  ;;  %v411_v42 = vld [vmem:[#allocation2 + $0x18] sm:$0x7]  ;;  %v1440_v2 = vld [vmem:[%s1808_s1 + $0x48] sm:$0xff]   ;;  %s1778_s8 = scalar_lea.vmem %s1812_s5, %s1333_s26 }
  0x12   : > { %v477_v20 = vshll.u32 %v1268_v14, 16  ;;  %v522_v21 = vrot.slane %v1272_v15, 1  ;;  %v304_v28 = vunpack.c.l.bf16 %v300_v25  ;;  %v1441_v3 = vld [vmem:[%s1808_s1 + $0x80] sm:$0xff]   ;;  %1341 = vmatprep.subr.bf16.mxu0 %v1440_v2  ;;  %v1444_v10 = vld [vmem:[%s1808_s1 + $0x88] sm:$0xff]   ;;  %v1445_v12 = vld [vmem:[%s1808_s1 + $0x10] sm:$0xff]  }
  0x13   : > { %v314_v16 = vmul.f32 %v1262_v1, %v303_v6  ;;  %v313_v17 = vmul.f32 %v1262_v1, %v302_v8  ;;  %v312_v18 = vmul.f32 %v1262_v1, %v301_v9  ;;  %v414_v4 = vld [vmem:[#allocation2 + $0x20] sm:$0x7]  ;;  %v1442_v6 = vld [vmem:[%s1808_s1 + $0x8] sm:$0xff]   ;;  %1377 = vmatprep.subr.bf16.mxu1 %v1441_v3  ;;  %v1443_v9 = vld [vmem:[%s1808_s1 + $0x50] sm:$0xff]  }
  0x14   : > { %v479_v26 = vrot.slane %v477_v20, 1  ;;  %526 = vrot.lane.b32.xlu0 %v522_v21, %s1474_s11  ;;  %v315_v33 = vmul.f32 %v1262_v1, %v304_v28  ;;  %1342 = vmatpush3.bf16.msra.mxu0 %v1442_v6  ;;  %v422_v15 = vld [vmem:[#allocation2 + $0xc] sm:$0x1]  ;;  %v423_v2 = vld [vmem:[#allocation2 + $0x14] sm:$0x1] }
  0x15   : > { %v325_v22 = vadd.f32 %v1263_v7, %v314_v16  ;;  %v324_v23 = vadd.f32 %v1263_v7, %v313_v17  ;;  %v323_v24 = vadd.f32 %v1263_v7, %v312_v18  ;;  %1378 = vmatpush3.bf16.msra.mxu1 %v1441_v3  ;;  %1343 = vmatprep.subr.bf16.mxu0 %v1443_v9  ;;  %v1455_v6 = vld [vmem:[%s1808_s1 + $0x70] sm:$0xff]  }
  0x16   : > { %v480_v31 = vor.u32 %v479_v26, %v475_v19  ;;  %v326_v39 = vadd.f32 %v1263_v7, %v315_v33  ;;  %1379 = vmatprep.subr.bf16.mxu1 %v1444_v10  ;;  %v1594_v26 = vld [vmem:[#allocation2 + $0x14] sm:$0x1] }
  0x17   : > { %vm329_vm2 = vcmp.ge.f32.partialorder %v325_v22, 0.0  ;;  %v333_v27 = vmul.f32 0.2, %v325_v22  ;;  %vm328_vm3 = vcmp.ge.f32.partialorder %v324_v23, 0.0  ;;  %v332_v29 = vmul.f32 0.2, %v324_v23 }
  0x18   : > { %vm327_vm4 = vcmp.ge.f32.partialorder %v323_v24, 0.0  ;;  %v331_v30 = vmul.f32 0.2, %v323_v24  ;;  %502 = vrot.lane.b32.xlu1 %v480_v31, %s1475_s12  ;;  %vm330_vm7 = vcmp.ge.f32.partialorder %v326_v39, 0.0  ;;  %v334_v50 = vmul.f32 0.2, %v326_v39  ;;  %1344 = vmatpush3.bf16.msra.mxu0 %v1445_v12 }
  0x19   : > { %v337_v32 = vsel %vm329_vm2, %v325_v22, %v333_v27  ;;  %v336_v35 = vsel %vm328_vm3, %v324_v23, %v332_v29  ;;  %1380 = vmatpush3.bf16.msra.mxu1 %v1444_v10  ;;  %v433_v22 = vld [vmem:[#allocation2 + $0xc] sm:$0x1]  ;;  %v436_v29 = vld [vmem:[#allocation2 + $0x24] sm:$0x1]  ;;  %v1446_v31 = vld [vmem:[%s1808_s1 + $0x58] sm:$0xff]  }
  0x1a   : > { %v1337_v34 = vpack.c.bf16 %v337_v32, %v337_v32  ;;  %v335_v36 = vsel %vm327_vm4, %v323_v24, %v331_v30  ;;  %v1336_v37 = vpack.c.bf16 %v336_v35, %v336_v35  ;;  %v338_v56 = vsel %vm330_vm7, %v326_v39, %v334_v50  ;;  %v1447_v33 = vld [vmem:[%s1808_s1 + $0x90] sm:$0xff]   ;;  %v1611_v35 = vld [vmem:[#allocation2 + $0x1c] sm:$0x1]  ;;  %1345 = vmatprep.subr.bf16.mxu0 %v1446_v31  ;;  %v1636_v50 = vld [vmem:[#allocation2 + $0x2c] sm:$0x1] }
  0x1b   : > { %v1335_v38 = vpack.c.bf16 %v335_v36, %v335_v36  ;;  %v1338_v60 = vpack.c.bf16 %v338_v56, %v338_v56  ;;  %v1613_v36 = vld [vmem:[#allocation2 + $0x1c] sm:$0x1]  ;;  %1381 = vmatprep.subr.bf16.mxu1 %v1447_v33  ;;  %v448_v31 = vld [vmem:[#allocation2 + $0x24] sm:$0x1] }
  0x1c   : > { %v384_v40 = vshrl.u32 %v1337_v34, 16  ;;  %v387_v41 = vshll.u32 %v1337_v34, 16  ;;  %v377_v43 = vshrl.u32 %v1336_v37, 16  ;;  %v380_v44 = vshll.u32 %v1336_v37, 16  ;;  %v1448_v34 = vld [vmem:[%s1808_s1 + $0x18] sm:$0xff]   ;;  %v1449_v37 = vld [vmem:[%s1808_s1 + $0x60] sm:$0xff]  }
  0x1d   : > { %v370_v45 = vshrl.u32 %v1335_v38, 16  ;;  %v373_v46 = vshll.u32 %v1335_v38, 16  ;;  %v391_v0 = vshrl.u32 %v1338_v60, 16  ;;  %v394_v1 = vshll.u32 %v1338_v60, 16  ;;  %v1450_v38 = vld [vmem:[%s1808_s1 + $0x98] sm:$0xff]   ;;  %1346 = vmatpush3.bf16.msra.mxu0 %v1448_v34  ;;  %1382 = vmatpush3.bf16.msra.mxu1 %v1447_v33 }
  0x1e   : > { %v386_v47 = vrot.slane %v384_v40, 7  ;;  %v379_v52 = vrot.slane %v377_v43, 7  ;;  %1347 = vmatprep.subr.bf16.mxu0 %v1449_v37  ;;  %1383 = vmatprep.subr.bf16.mxu1 %v1450_v38  ;;  %v435_v56 = vld [vmem:[#allocation2 + $0x1c] sm:$0x1] }
  0x1f   : > { %v372_v53 = vrot.slane %v370_v45, 7  ;;  %v393_v7 = vrot.slane %v391_v0, 7  ;;  %v1658_v0 = vcombine.low %v1536_v5, %v1636_v50  ;;  %v1456_v5 = vld [vmem:[%s1808_s1 + $0xa8] sm:$0xff]  }
  0x20   : > { %v389_v55 = vor.u32 %v387_v41, %v386_v47  ;;  %v382_v58 = vor.u32 %v380_v44, %v379_v52  ;;  %v1451_v47 = vld [vmem:[%s1808_s1 + $0x20] sm:$0xff]  }
  0x21   : > { %v375_v59 = vor.u32 %v373_v46, %v372_v53  ;;  %v396_v8 = vor.u32 %v394_v1, %v393_v7  ;;  %v1644_v53 = vld [vmem:[#allocation2 + $0x14] sm:$0x1]  ;;  %1348 = vmatpush3.bf16.msra.mxu0 %v1451_v47  ;;  %1384 = vmatpush3.bf16.msra.mxu1 %v1450_v38 }
  0x22   : > { %v412_v61 = vsel %vm1551_vm8, %v389_v55, %v411_v42  ;;  %v409_v62 = vsel %vm1551_vm8, %v382_v58, %v408_v48  ;;  %1385 = vmatprep.subr.bf16.mxu1 %v1453_v51 }
  0x23   : > { %413 = vst [vmem:[#allocation2 + $0x18] sm:$0x7] %v412_v61  ;;  %v406_v63 = vsel %vm1551_vm8, %v375_v59, %v405_v49  ;;  %410 = vst [vmem:[#allocation2 + $0x10] sm:$0x7] %v409_v62  ;;  %v415_v13 = vsel %vm1551_vm8, %v396_v8, %v414_v4  ;;  %v1452_v49 = vld [vmem:[%s1808_s1 + $0x68] sm:$0xff]  }
  0x24   : > { %407 = vst [vmem:[#allocation2 + $0x8] sm:$0x7] %v406_v63  ;;  %416 = vst [vmem:[#allocation2 + $0x20] sm:$0x7] %v415_v13  ;;  %v453_v59 = vld [vmem:[#allocation2 + $0x28] sm:$0xe]  ;;  %1349 = vmatprep.subr.bf16.mxu0 %v1452_v49 }
  0x25   : > { %v1454_v63 = vld [vmem:[%s1808_s1 + $0x28] sm:$0xff]   ;;  %1386 = vmatpush3.bf16.msra.mxu1 %v1453_v51 }
  0x26   : > { %1350 = vmatpush3.bf16.msra.mxu0 %v1454_v63  ;;  %1387 = vmatprep.subr.bf16.mxu1 %v1456_v5 }
  0x27   : > { %1351 = vmatprep.subr.bf16.mxu0 %v1455_v6 }
  0x29   : > { %1388 = vmatpush3.bf16.msra.mxu1 %v1456_v5 }
  0x2a   : > { %v443_v14 = vld [vmem:[#allocation2 + $0x18] sm:$0xf]  ;;  %v1587_v17 = vld [vmem:[#allocation2 + $0x10] sm:$0xf] }
  0x2b   : > { %v1289_v16 = vcombine.low %v443_v14, %v443_v14  ;;  %v430_v18 = vld [vmem:[#allocation2 + $0x10] sm:$0xf]  ;;  %v429_v19 = vld [vmem:[#allocation2 + $0x8] sm:$0xf]  ;;  %v1288_v20 = vcombine.low %v1587_v17, %v1587_v17  ;;  %v1622_v39 = vld [vmem:[#allocation2 + $0x20] sm:$0xf]  ;;  %v1642_v52 = vcombine.low %v443_v14, %v1611_v35  ;;  %v1681_v14 = vcombine.low %v1587_v17, %v1644_v53 }
  0x2c   : > { %v426_v21 = vld [vmem:[#allocation2 + $0x8] sm:$0xe]  ;;  %v1277_v23 = vcombine.low %v430_v18, %v430_v18  ;;  %v1592_v25 = vcombine.low %v429_v19, %v433_v22  ;;  %v1276_v27 = vcombine.low %v429_v19, %v429_v19  ;;  %v1600_v30 = vcombine.low %v430_v18, %v1594_v26  ;;  %v440_v42 = vld [vmem:[#allocation2 + $0x20] sm:$0xe]  ;;  %v428_v46 = vld [vmem:[#allocation2 + $0x18] sm:$0xe] }
  0x2d   : > { %632 = vrot.lane.b32.xlu1 %v1289_v16, %s1474_s11  ;;  %v1273_v24 = vcombine.low %v426_v21, %v422_v15  ;;  %630 = vrot.lane.b32.xlu0 %v1288_v20, %s1474_s11  ;;  %v1597_v28 = vld [vmem:[#allocation2 + $0x8] sm:$0xf]  ;;  %v1290_v43 = vcombine.low %v1622_v39, %v1622_v39  ;;  %v1287_v45 = vcombine.low %v440_v42, %v436_v29  ;;  %v438_v48 = vld [vmem:[#allocation2 + $0x10] sm:$0xe]  ;;  %v439_v57 = vld [vmem:[#allocation2 + $0x18] sm:$0xe] }
  0x2e   : > { %v437_v32 = vld [vmem:[#allocation2 + $0x8] sm:$0xe]  ;;  %v1625_v41 = vcombine.low %v1597_v28, %v422_v15  ;;  %v1275_v55 = vcombine.low %v428_v46, %v1613_v36  ;;  %v1285_v61 = vcombine.low %v438_v48, %v1594_v26  ;;  %v1651_v62 = vld [vmem:[#allocation2 + $0x20] sm:$0xf]  ;;  %v1660_v1 = vld [vmem:[#allocation2 + $0x18] sm:$0xf]  ;;  %v1286_v16 = vcombine.low %v439_v57, %v435_v56 }
  0x2f   : > { %v523_v40 = vrot.slane %v1273_v24, 1  ;;  %v1284_v44 = vcombine.low %v437_v32, %v433_v22  ;;  %v609_v54 = vrot.slane %v1287_v45, 1  ;;  %v1663_v3 = vcombine.low %v1651_v62, %v436_v29  ;;  %v1665_v4 = vld [vmem:[#allocation2 + $0x18] sm:$0xf]  ;;  %v427_v7 = vld [vmem:[#allocation2 + $0x10] sm:$0xe] }
  0x30   : > { %v484_v58 = vshll.u32 %v1625_v41, 16  ;;  %v1671_v8 = vcombine.low %v1665_v4, %v435_v56  ;;  %v525_v9 = vrot.slane %v1275_v55, 1  ;;  %v482_v10 = vshrl.u32 %v1625_v41, 16  ;;  %v1457_v18 = vld [vmem:[%s1808_s1 + $0x30] sm:$0xff]   ;;  %v1458_v17 = vld [vmem:[%s1808_s1 + $0x78] sm:$0xff]  }
  0x31   : > { %548 = vrot.lane.b32.xlu1 %v1277_v23, %s1476_s21  ;;  %546 = vrot.lane.b32.xlu0 %v1276_v27, %s1476_s21  ;;  %v606_v60 = vrot.slane %v1284_v44, 1  ;;  %v660_v13 = vshll.u32 %v1642_v52, 16  ;;  %v607_v15 = vrot.slane %v1285_v61, 1  ;;  %v674_v19 = vshll.u32 %v1658_v0, 16  ;;  %v1689_v21 = vld [vmem:[#allocation2 + $0x10] sm:$0xf] }
  0x32   : > { %v486_v12 = vrot.slane %v484_v58, 1  ;;  %v1299_v20 = vcombine.low %v453_v59, %v1636_v50  ;;  %v1271_v22 = vcombine.low %v1660_v1, %v1613_v36  ;;  %v1274_v23 = vcombine.low %v427_v7, %v423_v2  ;;  %v1459_v26 = vld [vmem:[%s1808_s1 + $0xb0] sm:$0xff]   ;;  %v451_v29 = vld [vmem:[#allocation2 + $0x18] sm:$0xe]  ;;  %v452_v36 = vld [vmem:[#allocation2 + $0x20] sm:$0xe]  ;;  %1352 = vmatpush3.bf16.msra.mxu0 %v1457_v18 }
  0x33   : > { %v658_v24 = vshrl.u32 %v1642_v52, 16  ;;  %v450_v27 = vld [vmem:[#allocation2 + $0x10] sm:$0xe]  ;;  %v662_v33 = vrot.slane %v660_v13, 1  ;;  %v1297_v37 = vcombine.low %v451_v29, %v1611_v35  ;;  %v608_v38 = vrot.slane %v1286_v16, 1  ;;  %v1460_v42 = vld [vmem:[%s1808_s1 + $0x38] sm:$0xff]   ;;  %1353 = vmatprep.subr.bf16.mxu0 %v1458_v17  ;;  %1389 = vmatprep.subr.bf16.mxu1 %v1459_v26 }
  0x34   : > { %v487_v32 = vor.u32 %v486_v12, %v482_v10  ;;  %v1296_v34 = vcombine.low %v450_v27, %v1644_v53  ;;  %v653_v41 = vshll.u32 %v1681_v14, 16  ;;  %v672_v44 = vshrl.u32 %v1658_v0, 16  ;;  %v1461_v50 = vld [vmem:[%s1808_s1 + $0xb8] sm:$0xff]   ;;  %1390 = vmatpush3.bf16.msra.mxu1 %v1459_v26 }
  0x35   : > { %528 = vrot.lane.b32.xlu1 %v523_v40, %s1474_s11  ;;  %634 = vrot.lane.b32.xlu0 %v1290_v43, %s1474_s11  ;;  %v1270_v40 = vcombine.low %v1689_v21, %v423_v2  ;;  %v1298_v43 = vcombine.low %v452_v36, %v448_v31  ;;  %v701_v45 = vrot.slane %v1299_v20, 1  ;;  %v699_v46 = vrot.slane %v1297_v37, 1 }
  0x36   : > { %v698_v35 = vrot.slane %v1296_v34, 1  ;;  %v1294_v47 = vcombine.low %v1622_v39, %v448_v31  ;;  %v524_v48 = vrot.slane %v1274_v23, 1  ;;  %v676_v49 = vrot.slane %v674_v19, 1  ;;  %1354 = vmatpush3.bf16.msra.mxu0 %v1460_v42  ;;  %1391 = vmatprep.subr.bf16.mxu1 %v1461_v50 }
  0x37   : > { %v700_v51 = vrot.slane %v1298_v43, 1  ;;  %v663_v52 = vor.u32 %v662_v33, %v658_v24  ;;  %v498_v53 = vshll.u32 %v1271_v22, 16  ;;  %v765_v55 = vsel %vm702_vm9, %v699_v46, 0 }
  0x38   : > { %v651_v39 = vshrl.u32 %v1681_v14, 16  ;;  %v655_v56 = vrot.slane %v653_v41, 1  ;;  %v491_v57 = vshll.u32 %v1270_v40, 16  ;;  %v677_v61 = vor.u32 %v676_v49, %v672_v44  ;;  %1392 = vmatpush3.bf16.msra.mxu1 %v1461_v50 }
  0x39   : > { %616 = vrot.lane.b32.xlu1 %v609_v54, %s1475_s12  ;;  %610 = vrot.lane.b32.xlu0 %v606_v60, %s1475_s12  ;;  %v763_v54 = vsel %vm702_vm9, %v698_v35, 0  ;;  %v767_v59 = vsel %vm702_vm9, %v700_v51, 0  ;;  %v769_v60 = vsel %vm702_vm9, %v701_v45, 0  ;;  %v489_v63 = vshrl.u32 %v1270_v40, 16 }
  0x3a   : > { %v1303_v58 = vcombine.low %v763_v54, %v765_v55  ;;  %v496_v0 = vshrl.u32 %v1271_v22, 16  ;;  %v500_v2 = vrot.slane %v498_v53, 1  ;;  %v656_v6 = vor.u32 %v655_v56, %v651_v39 }
  0x3b   : > { %v493_v7 = vrot.slane %v491_v57, 1  ;;  %v667_v5 = vshll.u32 %v1294_v47, 16  ;;  %v665_v13 = vshrl.u32 %v1294_v47, 16  ;;  %v1278_v18 = vcombine.low %v1665_v4, %v1665_v4 }
  0x3c   : > { %1393 = vmatprep.mubr.bf16.mxu1 %v1303_v58  ;;  %v501_v10 = vor.u32 %v500_v2, %v496_v0  ;;  %v576_v33 = vshll.u32 %v1600_v30, 16  ;;  %v567_v4 = vshrl.u32 %v1592_v25, 16  ;;  %v590_v42 = vshll.u32 %v1663_v3, 16 }
  0x3d   : > { %532 = vrot.lane.b32.xlu1 %v525_v9, %s1474_s11  ;;  %612 = vrot.lane.b32.xlu0 %v607_v15, %s1475_s12  ;;  %v1306_v9 = vcombine.low %v767_v59, %v769_v60  ;;  %v494_v12 = vor.u32 %v493_v7, %v489_v63  ;;  %v669_v14 = vrot.slane %v667_v5, 1  ;;  %v1279_v15 = vcombine.low %v1651_v62, %v1651_v62 }
  0x3e   : > { %v578_v40 = vrot.slane %v576_v33, 1  ;;  %v583_v44 = vshll.u32 %v1671_v8, 16  ;;  %v592_v49 = vrot.slane %v590_v42, 1 }
  0x3f   : > { %1394 = vmatmul.mubr.bf16.vlgmr.msra.gmra.mrb[0].mxu1 %v1306_v9  ;;  %v670_v16 = vor.u32 %v669_v14, %v665_v13 }
  0x41   : > { %504 = vrot.lane.b32.xlu1 %v487_v32, %s1475_s12  ;;  %614 = vrot.lane.b32.xlu0 %v608_v38, %s1475_s12  ;;  %v569_v32 = vshll.u32 %v1592_v25, 16  ;;  %v574_v38 = vshrl.u32 %v1600_v30, 16  ;;  %v581_v25 = vshrl.u32 %v1671_v8, 16 }
  0x43   : > { %v571_v36 = vrot.slane %v569_v32, 1  ;;  %v579_v35 = vor.u32 %v578_v40, %v574_v38 }
  0x45   : > { %680 = vrot.lane.b32.xlu1 %v663_v52, %s1476_s21  ;;  %530 = vrot.lane.b32.xlu0 %v524_v48, %s1474_s11  ;;  %v572_v45 = vor.u32 %v571_v36, %v567_v4  ;;  %v588_v48 = vshrl.u32 %v1663_v3, 16  ;;  %v585_v52 = vrot.slane %v583_v44, 1 }
  0x47   : > { %v593_v55 = vor.u32 %v592_v49, %v588_v48  ;;  %v586_v58 = vor.u32 %v585_v52, %v581_v25 }
  0x49   : > { %684 = vrot.lane.b32.xlu1 %v677_v61, %s1476_s21  ;;  %678 = vrot.lane.b32.xlu0 %v656_v6, %s1476_s21 }
  0x4d   : > { %508 = vrot.lane.b32.xlu1 %v501_v10, %s1475_s12  ;;  %506 = vrot.lane.b32.xlu0 %v494_v12, %s1475_s12 }
  0x51   : > { %552 = vrot.lane.b32.xlu1 %v1279_v15, %s1476_s21  ;;  %682 = vrot.lane.b32.xlu0 %v670_v16, %s1476_s21 }
  0x55   : > { %550 = vrot.lane.b32.xlu0 %v1278_v18, %s1476_s21 }
  0x82   : > { %v637_v19 = vpop.permute.xlu1 %636 }
  0x86   : > { %v527_v17 = vpop.permute.xlu0 %526 }
  0x8a   : > { %v503_v20 = vpop.permute.xlu1 %502 }
  0x8b   : > { %v705_v54 = vsel %vm702_vm9, %v1543_v11, %v503_v20 }
  0x8c   : > { %v717_v57 = vsel %vm715_vm10, %v705_v54, %v527_v17 }
  0x9f   : > { %v633_v22 = vpop.permute.xlu1 %632  ;;  %v631_v23 = vpop.permute.xlu0 %630 }
  0xa3   : > { %v549_v24 = vpop.permute.xlu1 %548  ;;  %v547_v26 = vpop.permute.xlu0 %546 }
  0xa4   : > { %v726_v61 = vsel %vm724_vm11, %v717_v57, %v547_v26 }
  0xa7   : > { %v529_v62 = vpop.permute.xlu1 %528  ;;  %v635_v27 = vpop.permute.xlu0 %634 }
  0xab   : > { %v617_v29 = vpop.permute.xlu1 %616  ;;  %v611_v31 = vpop.permute.xlu0 %610 }
  0xac   : > { %v735_v50 = vsel %vm702_vm9, %v572_v45, %v611_v31  ;;  %v744_v6 = vsel %vm702_vm9, %v593_v55, %v617_v29  ;;  %v1300_v31 = vld [vmem:[%s1809_s2] ss:$0 sm:$0xff] }
  0xad   : > { %v746_v3 = vsel %vm715_vm10, %v735_v50, %v631_v23  ;;  %v752_v5 = vsel %vm715_vm10, %v744_v6, %v637_v19 }
  0xaf   : > { %v533_v34 = vpop.permute.xlu1 %532  ;;  %v613_v37 = vpop.permute.xlu0 %612 }
  0xb0   : > { %v738_v51 = vsel %vm702_vm9, %v579_v35, %v613_v37 }
  0xb1   : > { %v748_v8 = vsel %vm715_vm10, %v738_v51, %v633_v22 }
  0xb3   : > { %v505_v41 = vpop.permute.xlu1 %504  ;;  %v615_v43 = vpop.permute.xlu0 %614 }
  0xb4   : > { %v708_v46 = vsel %vm702_vm9, %v1597_v28, %v505_v41  ;;  %v741_v7 = vsel %vm702_vm9, %v586_v58, %v615_v43 }
  0xb5   : > { %v719_v53 = vsel %vm715_vm10, %v708_v46, %v529_v62  ;;  %v750_v9 = vsel %vm715_vm10, %v741_v7, %v635_v27 }
  0xb6   : > { %v728_v56 = vsel %vm724_vm11, %v719_v53, %v549_v24 }
  0xb7   : > { %v681_v47 = vpop.permute.xlu1 %680  ;;  %v531_v30 = vpop.permute.xlu0 %530  ;;  %v1301_v63 = vcombine.low %v726_v61, %v728_v56 }
  0xb8   : > { %v756_v60 = vsel %vm724_vm11, %v748_v8, %v681_v47 }
  0xbb   : > { %v685_v28 = vpop.permute.xlu1 %684  ;;  %v679_v39 = vpop.permute.xlu0 %678 }
  0xbc   : > { %v754_v59 = vsel %vm724_vm11, %v746_v3, %v679_v39  ;;  %v760_v12 = vsel %vm724_vm11, %v752_v5, %v685_v28 }
  0xbd   : > { %v1302_v11 = vcombine.low %v754_v59, %v756_v60 }
  0xbf   : > { %v507_v0 = vpop.permute.xlu0 %506  ;;  %1037 = vmatprep.mubr.bf16.mxu0 %v1302_v11  ;;  %v509_v2 = vpop.permute.xlu1 %508 }
  0xc0   : > { %1038 = vmatmul.mubr.bf16.vlgmr.msra.gmra.mrb[0].mxu0 %v1301_v63  ;;  %v711_v13 = vsel %vm702_vm9, %v1689_v21, %v507_v0  ;;  %v714_v14 = vsel %vm702_vm9, %v1660_v1, %v509_v2 }
  0xc1   : > { %v723_v20 = vsel %vm715_vm10, %v714_v14, %v533_v34  ;;  %v721_v17 = vsel %vm715_vm10, %v711_v13, %v531_v30 }
  0xc3   : > { %v683_v10 = vpop.permute.xlu0 %682  ;;  %v553_v18 = vpop.permute.xlu1 %552 }
  0xc4   : > { %v758_v15 = vsel %vm724_vm11, %v750_v9, %v683_v10  ;;  %v732_v22 = vsel %vm724_vm11, %v723_v20, %v553_v18 }
  0xc5   : > { %v1305_v16 = vcombine.low %v758_v15, %v760_v12 }
  0xc7   : > { %v551_v19 = vpop.permute.xlu0 %550  ;;  %1045 = vmatprep.mubr.bf16.mxu0 %v1305_v16 }
  0xc8   : > { %v730_v23 = vsel %vm724_vm11, %v721_v17, %v551_v19 }
  0xc9   : > { %v1304_v24 = vcombine.low %v730_v23, %v732_v22 }
  0xcb   : > { %1046 = vmatmul.mubr.bf16.gmra.mrb[4].mxu0 %v1304_v24 }
 0x112   : > { %v1395_v21 = vpop.f32.mrb[0].mxu1 }
 0x113   : > { %v1088_v26 = vpop.f32.mrb[1].mxu1 }
 0x114   : > { %v1396_v1 = vpop.f32.mrb[2].mxu1 }
 0x115   : > { %v1091_v62 = vpop.f32.mrb[3].mxu1 }
 0x193   : > { %v1355_v27 = vpop.f32.mrb[0].mxu0 }
 0x194   : > { %v1356_v29 = vpop.f32.mrb[1].mxu0 }
 0x195   : > { %v1357_v32 = vadd.f32 %v1356_v29, %v1355_v27  ;;  %v1358_v33 = vpop.f32.mrb[2].mxu0 }
 0x196   : > { %v1359_v34 = vpop.f32.mrb[3].mxu0 }
 0x197   : > { %v1360_v37 = vadd.f32 %v1359_v34, %v1358_v33  ;;  %v1040_v4 = vadd.f32 %v1357_v32, %v1300_v31 }
 0x199   : > { %v1089_v36 = vadd.f32 %v1088_v26, %v1040_v4  ;;  %v1043_v38 = vadd.f32 %v1360_v37, %v1300_v31 }
 0x19b   : > { %v1118_v40 = vmul.f32 %v1089_v36, %v1089_v36  ;;  %v1136_v41 = vpack.c.bf16 %v1089_v36, %v1089_v36  ;;  %v1092_v42 = vadd.f32 %v1091_v62, %v1043_v38  ;;  %v1104_v43 = vsel %vm1103_vm12, %v1089_v36, 0.0 }
 0x19d   : > { %1141 = vst.msk [vmem:[%s1778_s8] sm:$0x3] %vm1140_vm13, %v1136_v41  ;;  %v1105_v44 = vsel %vm1103_vm12, %v1092_v42, 0.0  ;;  %v1119_v45 = vmul.f32 %v1092_v42, %v1092_v42  ;;  %v1137_v35 = vpack.c.bf16 %v1092_v42, %v1092_v42  ;;  %v1122_v48 = vsel %vm1103_vm12, %v1118_v40, 0.0 }
 0x19e   : > { %v1106_v46 = vadd.f32 %v1105_v44, %v1104_v43  ;;  %v1361_v47 = vpop.f32.mrb[4].mxu0 }
 0x19f   : > { %v1123_v25 = vsel %vm1103_vm12, %v1119_v45, 0.0  ;;  %1142 = vst.msk [vmem:[%s1778_s8 + $0x2] sm:$0x3] %vm1140_vm13, %v1137_v35  ;;  %v1362_v49 = vpop.f32.mrb[5].mxu0 }
 0x1a0   : > { %v1124_v30 = vadd.f32 %v1123_v25, %v1122_v48  ;;  %v1363_v50 = vadd.f32 %v1362_v49, %v1361_v47  ;;  %v1364_v51 = vpop.f32.mrb[6].mxu0 }
 0x1a1   : > { %v1365_v52 = vpop.f32.mrb[7].mxu0 }
 0x1a2   : > { %v1048_v53 = vadd.f32 %v1363_v50, %v1300_v31  ;;  %v1366_v54 = vadd.f32 %v1365_v52, %v1364_v51 }
 0x1a4   : > { %v1097_v28 = vadd.f32 %v1395_v21, %v1048_v53  ;;  %v1051_v55 = vadd.f32 %v1366_v54, %v1300_v31 }
 0x1a6   : > { %v1107_v39 = vsel %vm1103_vm12, %v1097_v28, 0.0  ;;  %v1120_v3 = vmul.f32 %v1097_v28, %v1097_v28  ;;  %v1138_v8 = vpack.c.bf16 %v1097_v28, %v1097_v28  ;;  %v1100_v56 = vadd.f32 %v1396_v1, %v1051_v55 }
 0x1a7   : > { %v1108_v57 = vadd.f32 %v1107_v39, %v1106_v46 }
 0x1a8   : > { %v1125_v58 = vsel %vm1103_vm12, %v1120_v3, 0.0  ;;  %1143 = vst.msk [vmem:[%s1778_s8 + $0x4] sm:$0x3] %vm1140_vm13, %v1138_v8  ;;  %v1109_v59 = vsel %vm1103_vm12, %v1100_v56, 0.0  ;;  %v1121_v60 = vmul.f32 %v1100_v56, %v1100_v56  ;;  %v1139_v61 = vpack.c.bf16 %v1100_v56, %v1100_v56 }
 0x1a9   : > { %v1126_v11 = vadd.f32 %v1125_v58, %v1124_v30  ;;  %v1110_v63 = vadd.f32 %v1109_v59, %v1108_v57 }
 0x1aa   : > { %v1127_v0 = vsel %vm1103_vm12, %v1121_v60, 0.0  ;;  %1144 = vst.msk [vmem:[%s1778_s8 + $0x6] sm:$0x3] %vm1140_vm13, %v1139_v61 }
 0x1ab   : > { %v1111_v2 = vrot.slane %v1110_v63, 4  ;;  %v1128_v6 = vadd.f32 %v1127_v0, %v1126_v11 }
 0x1ad   : > { %v1112_v7 = vadd.f32 %v1111_v2, %v1110_v63  ;;  %v1129_v5 = vrot.slane %v1128_v6, 4 }
 0x1af   : > { %v1113_v9 = vrot.slane %v1112_v7, 2  ;;  %v1130_v10 = vadd.f32 %v1129_v5, %v1128_v6 }
 0x1b1   : > { %v1114_v12 = vadd.f32 %v1113_v9, %v1112_v7  ;;  %v1131_v13 = vrot.slane %v1130_v10, 2 }
 0x1b3   : > { %v1115_v14 = vrot.slane %v1114_v12, 1  ;;  %v1132_v15 = vadd.f32 %v1131_v13, %v1130_v10 }
 0x1b5   : > { %v1116_v16 = vadd.f32 %v1115_v14, %v1114_v12  ;;  %v1133_v18 = vrot.slane %v1132_v15, 1 }
 0x1b7   : > { %v1134_v20 = vadd.f32 %v1133_v18, %v1132_v15  ;;  %1146 = vst.msk [vmem:[%s292_s10] sm:$0x1] %vm1145_vm14, %v1116_v16 }
 0x1b9   : > { %1147 = vst.msk [vmem:[%s295_s15] sm:$0x1] %vm1145_vm14, %v1134_v20 }
 0x1ba PF: > { %s18_s24 = sadd.s32 1, %s1471_s24  }
 0x1bb   : > { %p15_p4 = scmp.ge.s32.totalorder %s18_s24, 4  }
 0x1bd   :  { %17 = sbr.rel (!%p15_p4) target bundleno = 1 (0x1), region = 96 }

// kernel: _lambda_.7
= control target key start
LH: loop header
LB: loop body
LE: loop exit
PB: predicated region body
PF: predicated region fallthrough
CT: control target
= control target key end

     0   :  { %s2258_s24 = smov 0   ;;  %s2850_s0 = inlined_call_operand.vmem [shape: bf16[2,8,8,16], index: 0, kind: input, shape index: {}]   ;;  %s2851_s1 = inlined_call_operand.vmem [shape: bf16[256,32], index: 1, kind: input, shape index: {}]   ;;  %s2852_s2 = inlined_call_operand.vmem [shape: f32[1,32], index: 2, kind: input, shape index: {}]   ;;  %s2853_s3 = inlined_call_operand.vmem [shape: f32[1,16], index: 3, kind: input, shape index: {}]   ;;  %s2854_s4 = inlined_call_operand.vmem [shape: f32[1,16], index: 4, kind: input, shape index: {}]   ;;  %s2855_s5 = inlined_call_operand.vmem [shape: bf16[2,4,4,32], index: 5, kind: output, shape index: {0}]   ;;  %s2856_s6 = inlined_call_operand.vmem [shape: f32[2,1,32], index: 6, kind: output, shape index: {1}]   ;;  %s2857_s7 = inlined_call_operand.vmem [shape: f32[2,1,32], index: 7, kind: output, shape index: {2}]  }
   0x1 LB: > { %s2002_s25 = sadd.s32 4294967295, %s2206_s24   ;;  %p2006_p0 = scmp.ge.s32.totalorder %s2206_s24, 1  ;;  %s2206_s24 = sphi %s2258_s24, %s18_s24  }
   0x2   : > { %p242_p1 = scmp.lt.s32.totalorder %s2206_s24, 3 }
   0x4   : > { %p243_p2 = pnand %p2006_p0, %p242_p1 }
   0x5   : > { %vm375_vm0 = vcmask (!%p243_p2), 125952   ;;  %vm377_vm1 = vcmask (!%p243_p2), 122880   ;;  %vm378_vm2 = vsmask.f32 (!%p243_p2), 256  ;;  %v2208_v0 = vmov (!%p243_p2), 0   ;;  %p2292_p3 = scmp.lt.s32.totalorder (!%p243_p2), %s2002_s25, 1 }
   0x6   : > { %246 = sbr.rel (%p243_p2) target bundleno = 500 (0x1f4), region = 40  ;;  %399 = vst.msk [vmem:[#allocation2 + $0x28] sm:$0xf] (!%p243_p2), %vm375_vm0, %v2208_v0  ;;  %376 = vst.msk [vmem:[#allocation2] sm:$0xf] (!%p243_p2), %vm375_vm0, %v2208_v0  ;;  %v466_v26 = vlaneseq (!%p243_p2)  ;;  %s2209_s28 = smov (!%p243_p2), 16  }
   0x7   : > { %383 = vst.msk [vmem:[#allocation2 + $0x8] sm:$0xf] (!%p243_p2), %vm375_vm0, %v2208_v0  ;;  %387 = vst.msk [vmem:[#allocation2 + $0x10] sm:$0xf] (!%p243_p2), %vm375_vm0, %v2208_v0  ;;  %v380_v2 = vld [vmem:[#allocation2 + $0x4] sm:$0x1] (!%p243_p2) }
   0x8   : > { %391 = vst.msk [vmem:[#allocation2 + $0x18] sm:$0xf] (!%p243_p2), %vm375_vm0, %v2208_v0  ;;  %395 = vst.msk [vmem:[#allocation2 + $0x20] sm:$0xf] (!%p243_p2), %vm375_vm0, %v2208_v0  ;;  %v400_v3 = vld [vmem:[#allocation2 + $0x2c] sm:$0x1] (!%p243_p2) }
   0x9   : > { %403 = vst.msk [vmem:[#allocation2 + $0x30] sm:$0xf] (!%p243_p2), %vm375_vm0, %v2208_v0  ;;  %407 = vst.msk [vmem:[#allocation2 + $0x38] sm:$0xf] (!%p243_p2), %vm375_vm0, %v2208_v0  ;;  %v404_v6 = vld [vmem:[#allocation2 + $0x34] sm:$0x1] (!%p243_p2) }
   0xa   : > { %411 = vst.msk [vmem:[#allocation2 + $0x40] sm:$0xf] (!%p243_p2), %vm375_vm0, %v2208_v0  ;;  %415 = vst.msk [vmem:[#allocation2 + $0x48] sm:$0xf] (!%p243_p2), %vm375_vm0, %v2208_v0  ;;  %v408_v7 = vld [vmem:[#allocation2 + $0x3c] sm:$0x1] (!%p243_p2) }
   0xb   : > { %419 = vst.msk [vmem:[#allocation2 + $0x50] sm:$0xf] (!%p243_p2), %vm375_vm0, %v2208_v0  ;;  %423 = vst.msk [vmem:[#allocation2 + $0x58] sm:$0xf] (!%p243_p2), %vm375_vm0, %v2208_v0  ;;  %v412_v10 = vld [vmem:[#allocation2 + $0x44] sm:$0x1] (!%p243_p2) }
   0xc   : > { %427 = vst.msk [vmem:[#allocation2 + $0x60] sm:$0xf] (!%p243_p2), %vm375_vm0, %v2208_v0  ;;  %431 = vst.msk [vmem:[#allocation2 + $0x68] sm:$0xf] (!%p243_p2), %vm375_vm0, %v2208_v0  ;;  %v416_v11 = vld [vmem:[#allocation2 + $0x4c] sm:$0x1] (!%p243_p2) }
   0xd   : > { %439 = vst.msk [vmem:[#allocation2 + $0x78] sm:$0xf] %vm375_vm0, %v2208_v0  ;;  %443 = vst.msk [vmem:[#allocation2 + $0x80] sm:$0xf] %vm375_vm0, %v2208_v0  ;;  %v436_v14 = vld [vmem:[#allocation2 + $0x74] sm:$0x1] }
   0xe   : > { %447 = vst.msk [vmem:[#allocation2 + $0x88] sm:$0xf] %vm375_vm0, %v2208_v0  ;;  %451 = vst.msk [vmem:[#allocation2 + $0x90] sm:$0xf] %vm375_vm0, %v2208_v0  ;;  %v440_v15 = vld [vmem:[#allocation2 + $0x7c] sm:$0x1] }
   0xf   : > { %vm2286_vm3 = vmand %vm377_vm1, %vm378_vm2  ;;  %v444_v18 = vld [vmem:[#allocation2 + $0x84] sm:$0x1]  ;;  %v448_v19 = vld [vmem:[#allocation2 + $0x8c] sm:$0x1]  ;;  %s2864_s25 = smov (!%p2292_p3, %s2002_s25), 1  ;;  %v467_v35 = vshrl.u32 %v466_v26, 7 }
  0x10   : > { %v381_v4 = vsel %vm2286_vm3, 0, %v380_v2  ;;  %v401_v5 = vsel %vm2286_vm3, 0, %v400_v3  ;;  %v405_v8 = vsel %vm2286_vm3, 0, %v404_v6  ;;  %v409_v9 = vsel %vm2286_vm3, 0, %v408_v7  ;;  %v452_v22 = vld [vmem:[#allocation2 + $0x94] sm:$0x1]  ;;  %s295_s21 = scalar_lea.vmem %s2857_s7, %s2864_s25 }
  0x11   : > { %382 = vst [vmem:[#allocation2 + $0x4] sm:$0x1] %v381_v4  ;;  %402 = vst [vmem:[#allocation2 + $0x2c] sm:$0x1] %v401_v5  ;;  %v413_v12 = vsel %vm2286_vm3, 0, %v412_v10  ;;  %v417_v13 = vsel %vm2286_vm3, 0, %v416_v11 }
  0x12   : > { %406 = vst [vmem:[#allocation2 + $0x34] sm:$0x1] %v405_v8  ;;  %410 = vst [vmem:[#allocation2 + $0x3c] sm:$0x1] %v409_v9  ;;  %v437_v16 = vsel %vm2286_vm3, 0, %v436_v14  ;;  %v441_v17 = vsel %vm2286_vm3, 0, %v440_v15 }
  0x13   : > { %414 = vst [vmem:[#allocation2 + $0x44] sm:$0x1] %v413_v12  ;;  %418 = vst [vmem:[#allocation2 + $0x4c] sm:$0x1] %v417_v13  ;;  %v445_v20 = vsel %vm2286_vm3, 0, %v444_v18  ;;  %v449_v21 = vsel %vm2286_vm3, 0, %v448_v19 }
  0x14   : > { %438 = vst [vmem:[#allocation2 + $0x74] sm:$0x1] %v437_v16  ;;  %442 = vst [vmem:[#allocation2 + $0x7c] sm:$0x1] %v441_v17  ;;  %v456_v23 = vld [vmem:[#allocation2 + $0x9c] sm:$0x1] }
  0x15   : > { %446 = vst [vmem:[#allocation2 + $0x84] sm:$0x1] %v445_v20  ;;  %450 = vst [vmem:[#allocation2 + $0x8c] sm:$0x1] %v449_v21  ;;  %v453_v24 = vsel %vm2286_vm3, 0, %v452_v22  ;;  %v457_v25 = vsel %vm2286_vm3, 0, %v456_v23 }
  0x16   : > { %v2151_v27 = vld [vmem:[#allocation2 + $0x28] ss:$0 sps:$4 sm:$0xff]   ;;  %454 = vst [vmem:[#allocation2 + $0x94] sm:$0x1] %v453_v24  ;;  %458 = vst [vmem:[#allocation2 + $0x9c] sm:$0x1] %v457_v25 }
  0x17   : > { %v1287_v28 = vld [vmem:[#allocation2] sm:$0xf]  ;;  %s2068_s27 = sshll.u32 %s2864_s25, 5  ;;  %1336 = vrot.lane.b32.xlu0 %v2151_v27, %s2209_s28  ;;  %v2210_v31 = vmov 1966171168   ;;  %s2212_s13 = smov 32  }
  0x18   : > { %v1296_v29 = vld [vmem:[#allocation2 + $0x4] sm:$0x1]  ;;  %s284_s8 = scalar_lea.vmem %s2850_s0, %s2068_s27  ;;  %v2334_v30 = vld [vmem:[%s2853_s3] ss:$0 sm:$0xff]  ;;  %v464_v32 = vunpack.c.l.s4 %v2210_v31  ;;  %v2211_v36 = vmov 1935823168  }
  0x19   : > { %v2017_v33 = vcombine.low %v1287_v28, %v1296_v29  ;;  %v2086_v34 = vld [vmem:[%s284_s8 + $0x8] sm:$0xff]   ;;  %v660_v37 = vunpack.c.l.s4 %v2211_v36  ;;  %v2071_v38 = vld [vmem:[%s284_s8] sm:$0xff]   ;;  %v2336_v39 = vld [vmem:[%s284_s8 + $0x10] sm:$0xff]   ;;  %vm950_vm9 = vcmask 1041409   ;;  %vm900_vm10 = vcmask 1042434   ;;  %s2213_s14 = smov 64  }
  0x1a   : > { %v2076_v40 = vunpack.c.l.bf16 %v2086_v34  ;;  %v465_v41 = vunpack.c.0.s8 %v464_v32  ;;  %v2073_v42 = vunpack.c.h.bf16 %v2071_v38  ;;  %v2081_v43 = vunpack.c.h.bf16 %v2336_v39  ;;  %v2342_v46 = vld [vmem:[%s2854_s4] ss:$0 sm:$0xff]  ;;  %v2344_v49 = vld [vmem:[%s284_s8 + $0x18] sm:$0xff]   ;;  %s2214_s23 = smov 112   ;;  %s2215_s11 = smov 48  }
  0x1b   : > { %v1365_v44 = vshrl.u32 %v2017_v33, 16  ;;  %v1367_v45 = vshll.u32 %v2017_v33, 16  ;;  %v661_v47 = vunpack.c.0.s8 %v660_v37  ;;  %v2072_v48 = vunpack.c.l.bf16 %v2071_v38  ;;  %v424_v10 = vld [vmem:[#allocation2 + $0x5c] sm:$0x1]  ;;  %s2216_s18 = smov 96   ;;  %s2217_s10 = smov 80  }
  0x1c   : > { %v322_v50 = vmul.f32 %v2076_v40, %v2334_v30  ;;  %v321_v51 = vmul.f32 %v2073_v42, %v2334_v30  ;;  %v325_v52 = vmul.f32 %v2081_v43, %v2334_v30  ;;  %v2349_v54 = vsub.s32 %v465_v41, %v467_v35 }
  0x1d   : > { %v1369_v53 = vrot.slane %v1367_v45, 1  ;;  %v320_v55 = vmul.f32 %v2072_v48, %v2334_v30  ;;  %v2077_v56 = vunpack.c.h.bf16 %v2086_v34  ;;  %v2084_v60 = vunpack.c.l.bf16 %v2344_v49 }
  0x1e   : > { %v337_v57 = vadd.f32 %v2342_v46, %v322_v50  ;;  %v336_v58 = vadd.f32 %v2342_v46, %v321_v51  ;;  %v340_v59 = vadd.f32 %v2342_v46, %v325_v52  ;;  %v2356_v62 = vsub.s32 %v661_v47, %v467_v35 }
  0x1f   : > { %v1370_v61 = vor.u32 %v1369_v53, %v1365_v44  ;;  %v335_v63 = vadd.f32 %v2342_v46, %v320_v55  ;;  %v323_v0 = vmul.f32 %v2077_v56, %v2334_v30  ;;  %v326_v9 = vmul.f32 %v2084_v60, %v2334_v30 }
  0x20   : > { %vm345_vm4 = vcmp.ge.f32.partialorder %v337_v57, 0.0  ;;  %v353_v2 = vmul.f32 0.2, %v337_v57  ;;  %vm344_vm5 = vcmp.ge.f32.partialorder %v336_v58, 0.0  ;;  %v352_v3 = vmul.f32 0.2, %v336_v58 }
  0x21   : > { %1392 = vrot.lane.b32.xlu1 %v1370_v61, %s2212_s13  ;;  %vm348_vm6 = vcmp.ge.f32.partialorder %v340_v59, 0.0  ;;  %v356_v4 = vmul.f32 0.2, %v340_v59  ;;  %vm343_vm7 = vcmp.ge.f32.partialorder %v335_v63, 0.0  ;;  %v351_v5 = vmul.f32 0.2, %v335_v63 }
  0x22   : > { %v361_v6 = vsel %vm345_vm4, %v337_v57, %v353_v2  ;;  %v360_v7 = vsel %vm344_vm5, %v336_v58, %v352_v3  ;;  %v338_v8 = vadd.f32 %v2342_v46, %v323_v0  ;;  %v2085_v20 = vunpack.c.h.bf16 %v2344_v49 }
  0x23   : > { %v369_v11 = vpack.c.bf16 %v361_v6, %v361_v6  ;;  %v368_v12 = vpack.c.bf16 %v360_v7, %v360_v7  ;;  %v364_v13 = vsel %vm348_vm6, %v340_v59, %v356_v4  ;;  %v359_v14 = vsel %vm343_vm7, %v335_v63, %v351_v5 }
  0x24   : > { %v372_v15 = vpack.c.bf16 %v364_v13, %v364_v13  ;;  %v367_v16 = vpack.c.bf16 %v359_v14, %v359_v14  ;;  %vm346_vm8 = vcmp.ge.f32.partialorder %v338_v8, 0.0  ;;  %v354_v17 = vmul.f32 0.2, %v338_v8 }
  0x25   : > { %v493_v18 = vrot.slane %v369_v11, %v2349_v54  ;;  %v569_v19 = vrot.slane %v368_v12, %v2349_v54  ;;  %v425_v21 = vsel %vm2286_vm3, 0, %v424_v10  ;;  %v2375_v25 = vadd.f32 %v2342_v46, %v326_v9 }
  0x26   : > { %v617_v22 = vrot.slane %v372_v15, %v2349_v54  ;;  %v2370_v23 = vrot.slane %v367_v16, %v2349_v54  ;;  %v2372_v24 = vsel %vm346_vm8, %v338_v8, %v354_v17  ;;  %426 = vst [vmem:[#allocation2 + $0x5c] sm:$0x1] %v425_v21  ;;  %vm903_vm11 = vcmask 1043459  }
  0x27   : > { %v494_v26 = vcombine.high %v493_v18, %v493_v18  ;;  %v501_v27 = vrot.slane %v493_v18, %v2349_v54  ;;  %v570_v28 = vcombine.high %v569_v19, %v569_v19  ;;  %v577_v29 = vrot.slane %v569_v19, %v2349_v54 }
  0x28   : > { %v618_v31 = vcombine.high %v617_v22, %v617_v22  ;;  %v625_v32 = vrot.slane %v617_v22, %v2349_v54  ;;  %v470_v33 = vcombine.high %v2370_v23, %v2370_v23  ;;  %v2384_v34 = vrot.slane %v2370_v23, %v2349_v54 }
  0x29   : > { %v508_v35 = vrot.slane %v494_v26, %v2349_v54  ;;  %v509_v36 = vcombine.high %v501_v27, %v501_v27  ;;  %v1039_v37 = vrot.slane %v501_v27, %v2356_v62  ;;  %v584_v38 = vrot.slane %v570_v28, %v2349_v54 }
  0x2a   : > { %v585_v40 = vcombine.high %v577_v29, %v577_v29  ;;  %v665_v41 = vrot.slane %v577_v29, %v2356_v62  ;;  %v632_v42 = vrot.slane %v618_v31, %v2349_v54  ;;  %v633_v43 = vcombine.high %v625_v32, %v625_v32 }
  0x2b   : > { %v510_v44 = vcombine.high %v508_v35, %v508_v35  ;;  %v2392_v45 = vrot.slane %v1039_v37, %v2356_v62  ;;  %v1053_v47 = vrot.slane %v508_v35, %v2356_v62  ;;  %v1067_v48 = vrot.slane %v509_v36, %v2356_v62 }
  0x2c   : > { %v586_v50 = vcombine.high %v584_v38, %v584_v38  ;;  %v2397_v51 = vrot.slane %v665_v41, %v2356_v62  ;;  %v679_v52 = vrot.slane %v584_v38, %v2356_v62  ;;  %v693_v53 = vrot.slane %v585_v40, %v2356_v62 }
  0x2d   : > { %vm972_vm12 = vcmask 123904   ;;  %v1060_v55 = vrot.slane %v1053_v47, %v2356_v62  ;;  %v1074_v56 = vrot.slane %v1067_v48, %v2356_v62  ;;  %v1081_v57 = vrot.slane %v510_v44, %v2356_v62 }
  0x2e   : > { %v1205_v58 = vunpack.c.l.b16 %v2392_v45  ;;  %v686_v59 = vrot.slane %v679_v52, %v2356_v62  ;;  %v700_v60 = vrot.slane %v693_v53, %v2356_v62  ;;  %v707_v61 = vrot.slane %v586_v50, %v2356_v62 }
  0x2f   : > { %v883_v63 = vunpack.c.l.b16 %v2397_v51  ;;  %v1088_v0 = vrot.slane %v1081_v57, %v2356_v62  ;;  %v1206_v2 = vunpack.c.l.b16 %v1060_v55  ;;  %v2410_v3 = vunpack.c.l.b16 %v1074_v56 }
  0x30   : > { %v634_v4 = vcombine.high %v632_v42, %v632_v42  ;;  %v714_v5 = vrot.slane %v707_v61, %v2356_v62  ;;  %v884_v6 = vunpack.c.l.b16 %v686_v59  ;;  %v2413_v7 = vunpack.c.l.b16 %v700_v60 }
  0x31   : > { %v777_v8 = vrot.slane %v625_v32, %v2356_v62  ;;  %v2416_v9 = vunpack.c.l.b16 %v1088_v0  ;;  %v2418_v10 = vrot.slane %v1206_v2, 7  ;;  %v1225_v11 = vrot.slane %v2410_v3, 6 }
  0x32   : > { %v791_v12 = vrot.slane %v632_v42, %v2356_v62  ;;  %v2422_v13 = vunpack.c.l.b16 %v714_v5  ;;  %v2424_v14 = vrot.slane %v884_v6, 7  ;;  %v902_v15 = vrot.slane %v2413_v7, 6 }
  0x33   : > { %v2428_v16 = vrot.slane %v777_v8, %v2356_v62  ;;  %v1227_v17 = vrot.slane %v2416_v9, 5  ;;  %v1265_v18 = vsel %vm950_vm9, %v2418_v10, %v1205_v58  ;;  %v805_v21 = vrot.slane %v633_v43, %v2356_v62 }
  0x34   : > { %v798_v19 = vrot.slane %v791_v12, %v2356_v62  ;;  %v1266_v22 = vsel %vm900_vm10, %v1225_v11, %v1265_v18  ;;  %v905_v26 = vrot.slane %v2422_v13, 5  ;;  %v951_v27 = vsel %vm950_vm9, %v2424_v14, %v883_v63 }
  0x35   : > { %v819_v28 = vrot.slane %v634_v4, %v2356_v62  ;;  %v1267_v29 = vsel %vm903_vm11, %v1227_v17, %v1266_v22  ;;  %v952_v31 = vsel %vm900_vm10, %v902_v15, %v951_v27  ;;  %v812_v32 = vrot.slane %v805_v21, %v2356_v62 }
  0x36   : > { %v891_v35 = vunpack.c.l.b16 %v2428_v16  ;;  %v1275_v36 = vpack.c.b16 %v1267_v29, %v1267_v29  ;;  %v953_v37 = vsel %vm903_vm11, %v905_v26, %v952_v31  ;;  %v892_v40 = vunpack.c.l.b16 %v798_v19 }
  0x37   : > { %v826_v38 = vrot.slane %v819_v28, %v2356_v62  ;;  %v963_v41 = vpack.c.b16 %v953_v37, %v953_v37  ;;  %v2458_v42 = vunpack.c.l.b16 %v812_v32  ;;  %v484_v43 = vrot.slane %v470_v33, %v2349_v54 }
  0x38   : > { %v485_v44 = vcombine.high %v2384_v34, %v2384_v34  ;;  %1284 = vst.msk [vmem:[#allocation2 + $0x80] sm:$0x3] %vm972_vm12, %v1275_v36  ;;  %v2469_v48 = vrot.slane %v892_v40, 7  ;;  %v983_v50 = vrot.slane %v2384_v34, %v2356_v62  ;;  %v370_v52 = vpack.c.bf16 %v2372_v24, %v2372_v24 }
  0x39   : > { %v2467_v47 = vunpack.c.l.b16 %v826_v38  ;;  %973 = vst.msk [vmem:[#allocation2 + $0x30] sm:$0x3] %vm972_vm12, %v963_v41  ;;  %v916_v23 = vrot.slane %v2458_v42, 6  ;;  %v486_v33 = vcombine.high %v484_v43, %v484_v43  ;;  %v997_v53 = vrot.slane %v484_v43, %v2356_v62 }
  0x3a   : > { %v1011_v55 = vrot.slane %v485_v44, %v2356_v62  ;;  %v957_v57 = vsel %vm950_vm9, %v2469_v48, %v891_v35  ;;  %v2485_v34 = vrot.slane %v983_v50, %v2356_v62  ;;  %v593_v24 = vrot.slane %v370_v52, %v2349_v54 }
  0x3b   : > { %v918_v56 = vrot.slane %v2467_v47, 5  ;;  %v958_v59 = vsel %vm900_vm10, %v916_v23, %v957_v57  ;;  %v1004_v60 = vrot.slane %v997_v53, %v2356_v62  ;;  %v1025_v0 = vrot.slane %v486_v33, %v2356_v62  ;;  %v388_v53 = vld [vmem:[#allocation2 + $0x14] sm:$0x1] }
  0x3c   : > { %v1018_v61 = vrot.slane %v1011_v55, %v2356_v62  ;;  %vm906_vm13 = vcmask 1044484   ;;  %v1201_v4 = vunpack.c.l.b16 %v2485_v34  ;;  %v594_v5 = vcombine.high %v593_v24, %v593_v24  ;;  %v2183_v34 = vld [vmem:[%s2851_s1 + $0x40] sm:$0xff]  }
  0x3d   : > { %v959_v2 = vsel %vm903_vm11, %v918_v56, %v958_v59  ;;  %v601_v6 = vrot.slane %v593_v24, %v2349_v54  ;;  %v1032_v12 = vrot.slane %v1025_v0, %v2356_v62  ;;  %v1202_v18 = vunpack.c.l.b16 %v1004_v60  ;;  %2089 = vmatprep.subr.bf16.mxu0 %v2183_v34  ;;  %2117 = vmatprep.subr.bf16.mxu1 %v2183_v34 }
  0x3e   : > { %v965_v8 = vpack.c.b16 %v959_v2, %v959_v2  ;;  %v2500_v19 = vunpack.c.l.b16 %v1018_v61  ;;  %v608_v21 = vrot.slane %v594_v5, %v2349_v54  ;;  %vm349_vm14 = vcmp.ge.f32.partialorder %v2375_v25, 0.0  ;;  %v420_v2 = vld [vmem:[#allocation2 + $0x54] sm:$0x1] }
  0x3f   : > { %v609_v22 = vcombine.high %v601_v6, %v601_v6  ;;  %v721_v27 = vrot.slane %v601_v6, %v2356_v62  ;;  %v2153_v28 = vld [vmem:[#allocation2 + $0x80] ss:$0 sps:$4 sm:$0xff]   ;;  %v2506_v29 = vunpack.c.l.b16 %v1032_v12  ;;  %v1217_v31 = vrot.slane %v1202_v18, 7 }
  0x40   : > { %975 = vst.msk [vmem:[#allocation2 + $0x40] sm:$0x3] %vm972_vm12, %v965_v8  ;;  %v1219_v32 = vrot.slane %v2500_v19, 6  ;;  %v1224_v36 = vsel %vm900_vm10, %v2418_v10, %v1205_v58  ;;  %v2154_v37 = vld [vmem:[#allocation2 + $0x30] ss:$0 sps:$4 sm:$0xff]   ;;  %v610_v38 = vcombine.high %v608_v21, %v608_v21  ;;  %v735_v41 = vrot.slane %v608_v21, %v2356_v62  ;;  %1434 = vrot.lane.b32.xlu1 %v2153_v28, %s2213_s14 }
  0x41   : > { %v728_v40 = vrot.slane %v721_v27, %v2356_v62  ;;  %v749_v43 = vrot.slane %v609_v22, %v2356_v62  ;;  %v1221_v44 = vrot.slane %v2506_v29, 5  ;;  %v1262_v45 = vsel %vm950_vm9, %v1217_v31, %v1201_v4  ;;  %1338 = vrot.lane.b32.xlu0 %v2154_v37, %s2209_s28  ;;  %v1253_v8 = vld [vmem:[#allocation2 + $0x58] sm:$0x7] }
  0x42   : > { %v357_v50 = vmul.f32 0.2, %v2375_v25  ;;  %vm935_vm15 = vcmask 124928   ;;  %v1263_v58 = vsel %vm900_vm10, %v1219_v32, %v1262_v45  ;;  %v742_v10 = vrot.slane %v735_v41, %v2356_v62 }
  0x43   : > { %v756_v52 = vrot.slane %v749_v43, %v2356_v62  ;;  %v763_v33 = vrot.slane %v610_v38, %v2356_v62  ;;  %v1264_v55 = vsel %vm903_vm11, %v1221_v44, %v1263_v58  ;;  %v887_v57 = vunpack.c.l.b16 %v728_v40 }
  0x44   : > { %v365_v24 = vsel %vm349_vm14, %v2375_v25, %v357_v50  ;;  %vm936_vm0 = vsmask.f32 2306  ;;  %v1274_v59 = vpack.c.b16 %v1264_v55, %v1264_v55  ;;  %v888_v61 = vunpack.c.l.b16 %v742_v10 }
  0x45   : > { %v770_v60 = vrot.slane %v763_v33, %v2356_v62  ;;  %v889_v0 = vunpack.c.l.b16 %v756_v52  ;;  %v373_v5 = vpack.c.bf16 %v365_v24, %v365_v24  ;;  %v1226_v6 = vsel %vm903_vm11, %v1225_v11, %v1224_v36  ;;  %vm2543_vm1 = vmand %vm935_vm15, %vm936_vm0  ;;  %v432_v24 = vld [vmem:[#allocation2 + $0x6c] sm:$0x1] }
  0x46   : > { %v2080_v12 = vunpack.c.l.bf16 %v2336_v39  ;;  %v389_v18 = vsel %vm2286_vm3, 0, %v388_v53  ;;  %1283 = vst.msk [vmem:[#allocation2 + $0x78] sm:$0x3] %vm972_vm12, %v1274_v59  ;;  %v908_v21 = vrot.slane %v888_v61, 7  ;;  %v1228_v3 = vsel %vm906_vm13, %v1227_v17, %v1226_v6  ;;  %v1250_v61 = vld [vmem:[#allocation2 + $0x50] sm:$0x7] }
  0x47   : > { %v2155_v19 = vld [vmem:[#allocation2 + $0x40] ss:$0 sps:$4 sm:$0xff]   ;;  %v890_v25 = vunpack.c.l.b16 %v770_v60  ;;  %v910_v22 = vrot.slane %v889_v0, 6  ;;  %390 = vst [vmem:[#allocation2 + $0x14] sm:$0x1] %v389_v18  ;;  %v541_v39 = vrot.slane %v373_v5, %v2349_v54  ;;  %v1242_v11 = vpack.c.b16 %v1228_v3, %v1228_v3 }
  0x48   : > { %v324_v28 = vmul.f32 %v2080_v12, %v2334_v30  ;;  %v421_v36 = vsel %vm2286_vm3, 0, %v420_v2  ;;  %1342 = vrot.lane.b32.xlu1 %v2155_v19, %s2209_s28  ;;  %v954_v38 = vsel %vm950_vm9, %v908_v21, %v887_v57  ;;  %v909_v40 = vsel %vm900_vm10, %v908_v21, %v887_v57  ;;  %v941_v57 = vld [vmem:[#allocation2 + $0x10] sm:$0x7]  ;;  %v384_v12 = vld [vmem:[#allocation2 + $0xc] sm:$0x1] }
  0x49   : > { %v912_v37 = vrot.slane %v890_v25, 5  ;;  %422 = vst [vmem:[#allocation2 + $0x54] sm:$0x1] %v421_v36  ;;  %v1218_v9 = vsel %vm900_vm10, %v1217_v31, %v1201_v4  ;;  %v955_v17 = vsel %vm900_vm10, %v910_v22, %v954_v38  ;;  %v542_v41 = vcombine.high %v541_v39, %v541_v39  ;;  %v2184_v4 = vld [vmem:[%s2851_s1] sm:$0xff]  }
  0x4a   : > { %v549_v43 = vrot.slane %v541_v39, %v2349_v54  ;;  %v1254_v45 = vsel %vm2543_vm1, %v1242_v11, %v1253_v8  ;;  %v339_v58 = vadd.f32 %v2342_v46, %v324_v28  ;;  %v911_v10 = vsel %vm903_vm11, %v910_v22, %v909_v40  ;;  %2090 = vmatpush3.bf16.msra.mxu0 %v2184_v4 }
  0x4b   : > { %v956_v50 = vsel %vm903_vm11, %v912_v37, %v955_v17  ;;  %1255 = vst [vmem:[#allocation2 + $0x58] sm:$0x7] %v1254_v45  ;;  %v1220_v52 = vsel %vm903_vm11, %v1219_v32, %v1218_v9  ;;  %v556_v33 = vrot.slane %v542_v41, %v2349_v54  ;;  %v913_v32 = vsel %vm906_vm13, %v912_v37, %v911_v10 }
  0x4c   : > { %v964_v31 = vpack.c.b16 %v956_v50, %v956_v50  ;;  %v557_v53 = vcombine.high %v549_v43, %v549_v43  ;;  %v1151_v55 = vrot.slane %v549_v43, %v2356_v62  ;;  %vm347_vm2 = vcmp.ge.f32.partialorder %v339_v58, 0.0  ;;  %2125 = vmatpush3.bf16.msra.mxu1 %v2184_v4  ;;  %v396_v43 = vld [vmem:[#allocation2 + $0x24] sm:$0x1] }
  0x4d   : > { %v355_v59 = vmul.f32 0.2, %v339_v58  ;;  %v1222_v60 = vsel %vm906_vm13, %v1221_v44, %v1220_v52  ;;  %v2156_v0 = vld [vmem:[#allocation2 + $0x78] ss:$0 sps:$4 sm:$0xff]   ;;  %v558_v2 = vcombine.high %v556_v33, %v556_v33  ;;  %v1165_v6 = vrot.slane %v556_v33, %v2356_v62  ;;  %v938_v52 = vld [vmem:[#allocation2 + $0x8] sm:$0x7] }
  0x4e   : > { %974 = vst.msk [vmem:[#allocation2 + $0x38] sm:$0x3] %vm972_vm12, %v964_v31  ;;  %v1158_v5 = vrot.slane %v1151_v55, %v2356_v62  ;;  %v1179_v8 = vrot.slane %v557_v53, %v2356_v62  ;;  %v927_v19 = vpack.c.b16 %v913_v32, %v913_v32  ;;  %v1241_v29 = vpack.c.b16 %v1222_v60, %v1222_v60  ;;  %v2186_v53 = vld [vmem:[%s2851_s1 + $0x8] sm:$0xff]  }
  0x4f   : > { %v363_v18 = vsel %vm347_vm2, %v339_v58, %v355_v59  ;;  %v433_v44 = vsel %vm2286_vm3, 0, %v432_v24  ;;  %1432 = vrot.lane.b32.xlu0 %v2156_v0, %s2213_s14  ;;  %v1172_v25 = vrot.slane %v1165_v6, %v2356_v62  ;;  %v1193_v22 = vrot.slane %v558_v2, %v2356_v62  ;;  %v2160_v24 = vld [vmem:[#allocation2 + $0x30] ss:$0 sps:$4 sm:$0xff]  }
  0x50   : > { %v1186_v21 = vrot.slane %v1179_v8, %v2356_v62  ;;  %v1213_v3 = vunpack.c.l.b16 %v1158_v5  ;;  %434 = vst [vmem:[#allocation2 + $0x6c] sm:$0x1] %v433_v44  ;;  %v371_v39 = vpack.c.bf16 %v363_v18, %v363_v18  ;;  %v942_v11 = vsel %vm2543_vm1, %v927_v19, %v941_v57  ;;  %v428_v8 = vld [vmem:[#allocation2 + $0x64] sm:$0x1] }
  0x51   : > { %v1251_v28 = vsel %vm2543_vm1, %v1241_v29, %v1250_v61  ;;  %v385_v36 = vsel %vm2286_vm3, 0, %v384_v12  ;;  %v1200_v37 = vrot.slane %v1193_v22, %v2356_v62  ;;  %v1214_v38 = vunpack.c.l.b16 %v1172_v25  ;;  %943 = vst [vmem:[#allocation2 + $0x10] sm:$0x7] %v942_v11  ;;  %v1259_v25 = vld [vmem:[#allocation2 + $0x68] sm:$0x7] }
  0x52   : > { %v1215_v40 = vunpack.c.l.b16 %v1186_v21  ;;  %1252 = vst [vmem:[#allocation2 + $0x50] sm:$0x7] %v1251_v28  ;;  %386 = vst [vmem:[#allocation2 + $0xc] sm:$0x1] %v385_v36  ;;  %v901_v9 = vsel %vm900_vm10, %v2424_v14, %v883_v63  ;;  %v517_v17 = vrot.slane %v371_v39, %v2349_v54  ;;  %v327_v7 = vmul.f32 %v2085_v20, %v2334_v30 }
  0x53   : > { %v904_v41 = vsel %vm903_vm11, %v902_v15, %v901_v9  ;;  %v1216_v45 = vunpack.c.l.b16 %v1200_v37  ;;  %v1235_v50 = vrot.slane %v1214_v38, 7  ;;  %v397_v13 = vsel %vm2286_vm3, 0, %v396_v43 }
  0x54   : > { %v1237_v58 = vrot.slane %v1215_v40, 6  ;;  %v907_v10 = vsel %vm906_vm13, %v905_v26, %v904_v41  ;;  %v518_v51 = vcombine.high %v517_v17, %v517_v17  ;;  %v525_v4 = vrot.slane %v517_v17, %v2349_v54  ;;  %v2185_v26 = vld [vmem:[%s2851_s1 + $0x48] sm:$0xff]   ;;  %398 = vst [vmem:[#allocation2 + $0x24] sm:$0x1] %v397_v13  ;;  %v2650_v40 = vld [vmem:[#allocation2 + $0x58] sm:$0xf] }
  0x55   : > { %v2157_v34 = vld [vmem:[#allocation2 + $0x38] ss:$0 sps:$4 sm:$0xff]   ;;  %v926_v63 = vpack.c.b16 %v907_v10, %v907_v10  ;;  %v1239_v15 = vrot.slane %v1216_v45, 5  ;;  %v1271_v31 = vsel %vm950_vm9, %v1235_v50, %v1213_v3  ;;  %v1236_v33 = vsel %vm900_vm10, %v1235_v50, %v1213_v3  ;;  %2091 = vmatprep.subr.bf16.mxu0 %v2185_v26  ;;  %2118 = vmatprep.subr.bf16.mxu1 %v2185_v26 }
  0x56   : > { %v2158_v14 = vld [vmem:[#allocation2 + $0x38] ss:$0 sps:$4 sm:$0xff]   ;;  %1522 = vrot.lane.b32.xlu1 %v2157_v34, %s2214_s23  ;;  %v1272_v30 = vsel %vm900_vm10, %v1237_v58, %v1271_v31  ;;  %v532_v49 = vrot.slane %v518_v51, %v2349_v54  ;;  %v533_v20 = vcombine.high %v525_v4, %v525_v4  ;;  %v1095_v55 = vrot.slane %v525_v4, %v2356_v62  ;;  %v1256_v31 = vld [vmem:[#allocation2 + $0x60] sm:$0x7] }
  0x57   : > { %1340 = vrot.lane.b32.xlu0 %v2158_v14, %s2209_s28  ;;  %v1273_v57 = vsel %vm903_vm11, %v1239_v15, %v1272_v30  ;;  %v1238_v59 = vsel %vm903_vm11, %v1237_v58, %v1236_v33  ;;  %v939_v32 = vsel %vm2543_vm1, %v926_v63, %v938_v52  ;;  %v342_v60 = vadd.f32 %v2342_v46, %v327_v7  ;;  %v392_v46 = vld [vmem:[#allocation2 + $0x1c] sm:$0x1]  ;;  %v944_v33 = vld [vmem:[#allocation2 + $0x18] sm:$0x7] }
  0x58   : > { %v1277_v61 = vpack.c.b16 %v1273_v57, %v1273_v57  ;;  %v534_v0 = vcombine.high %v532_v49, %v532_v49  ;;  %v1102_v2 = vrot.slane %v1095_v55, %v2356_v62  ;;  %v1109_v5 = vrot.slane %v532_v49, %v2356_v62  ;;  %940 = vst [vmem:[#allocation2 + $0x8] sm:$0x7] %v939_v32  ;;  %v1313_v13 = vld [vmem:[#allocation2 + $0x10] sm:$0xf]  ;;  %v2189_v49 = vld [vmem:[%s2851_s1 + $0x58] sm:$0xff]  }
  0x59   : > { %v1123_v6 = vrot.slane %v533_v20, %v2356_v62  ;;  %2092 = vmatpush3.bf16.msra.mxu0 %v2186_v53  ;;  %v1240_v44 = vsel %vm906_vm13, %v1239_v15, %v1238_v59  ;;  %vm350_vm4 = vcmp.ge.f32.partialorder %v342_v60, 0.0  ;;  %v358_v21 = vmul.f32 0.2, %v342_v60  ;;  %2126 = vmatpush3.bf16.msra.mxu1 %v2186_v53  ;;  %v2190_v57 = vld [vmem:[%s2851_s1 + $0x18] sm:$0xff]  }
  0x5a   : > { %1286 = vst.msk [vmem:[#allocation2 + $0x90] sm:$0x3] %vm972_vm12, %v1277_v61  ;;  %v1116_v12 = vrot.slane %v1109_v5, %v2356_v62  ;;  %v1137_v18 = vrot.slane %v534_v0, %v2356_v62  ;;  %v1209_v19 = vunpack.c.l.b16 %v1102_v2  ;;  %v1244_v39 = vpack.c.b16 %v1240_v44, %v1240_v44  ;;  %v2191_v0 = vld [vmem:[%s2851_s1 + $0x60] sm:$0xff]  }
  0x5b   : > { %1520 = vrot.lane.b32.xlu0 %v2160_v24, %s2214_s23  ;;  %v1130_v29 = vrot.slane %v1123_v6, %v2356_v62  ;;  %v429_v11 = vsel %vm2286_vm3, 0, %v428_v8  ;;  %v366_v36 = vsel %vm350_vm4, %v342_v60, %v358_v21  ;;  %v393_v37 = vsel %vm2286_vm3, 0, %v392_v46  ;;  %v2192_v5 = vld [vmem:[%s2851_s1 + $0x20] sm:$0xff]  }
  0x5c   : > { %v1144_v22 = vrot.slane %v1137_v18, %v2356_v62  ;;  %v1210_v3 = vunpack.c.l.b16 %v1116_v12  ;;  %430 = vst [vmem:[#allocation2 + $0x64] sm:$0x1] %v429_v11  ;;  %v915_v38 = vsel %vm900_vm10, %v2469_v48, %v891_v35  ;;  %v1260_v41 = vsel %vm2543_vm1, %v1244_v39, %v1259_v25  ;;  %394 = vst [vmem:[#allocation2 + $0x1c] sm:$0x1] %v393_v37  ;;  %v2187_v35 = vld [vmem:[%s2851_s1 + $0x50] sm:$0xff]  }
  0x5d   : > { %v1211_v28 = vunpack.c.l.b16 %v1130_v29  ;;  %v374_v43 = vpack.c.bf16 %v366_v36, %v366_v36  ;;  %1261 = vst [vmem:[#allocation2 + $0x68] sm:$0x7] %v1260_v41  ;;  %v917_v1 = vsel %vm903_vm11, %v916_v23, %v915_v38  ;;  %v2188_v48 = vld [vmem:[%s2851_s1 + $0x10] sm:$0xff]   ;;  %v2022_v10 = vcombine.low %v2650_v40, %v2650_v40  ;;  %2093 = vmatprep.subr.bf16.mxu0 %v2187_v35  ;;  %v1320_v37 = vld [vmem:[#allocation2 + $0xc] sm:$0x1] }
  0x5e   : > { %v1212_v9 = vunpack.c.l.b16 %v1144_v22  ;;  %v1229_v17 = vrot.slane %v1210_v3, 7  ;;  %v919_v4 = vsel %vm906_vm13, %v918_v56, %v917_v1  ;;  %2119 = vmatprep.subr.bf16.mxu1 %v2187_v35  ;;  %2094 = vmatpush3.bf16.msra.mxu0 %v2188_v48  ;;  %v1300_v12 = vld [vmem:[#allocation2 + $0x50] sm:$0xf]  ;;  %v1321_v22 = vld [vmem:[#allocation2 + $0x14] sm:$0x1]  ;;  %vm1568_vm3 = vcmask 130048  }
  0x5f   : > { %v1231_v45 = vrot.slane %v1211_v28, 6  ;;  %v641_v42 = vrot.slane %v374_v43, %v2349_v54  ;;  %v928_v53 = vpack.c.b16 %v919_v4, %v919_v4  ;;  %2127 = vmatpush3.bf16.msra.mxu1 %v2188_v48  ;;  %2095 = vmatprep.subr.bf16.mxu0 %v2189_v49  ;;  %v1308_v3 = vld [vmem:[#allocation2 + $0x54] sm:$0x1]  ;;  %v2021_v39 = vcombine.low %v1300_v12, %v1300_v12  ;;  %v1312_v36 = vld [vmem:[#allocation2 + $0x8] sm:$0xf] }
  0x60   : > { %v1233_v50 = vrot.slane %v1212_v9, 5  ;;  %v1268_v16 = vsel %vm950_vm9, %v1229_v17, %v1209_v19  ;;  %v1230_v23 = vsel %vm900_vm10, %v1229_v17, %v1209_v19  ;;  %2120 = vmatprep.subr.bf16.mxu1 %v2189_v49  ;;  %v1309_v38 = vld [vmem:[#allocation2 + $0x5c] sm:$0x1]  ;;  %v2712_v17 = vld [vmem:[#allocation2 + $0x8] sm:$0xf]  ;;  %v2042_v43 = vcombine.low %v1313_v13, %v1321_v22 }
  0x61   : > { %v2159_v58 = vld [vmem:[#allocation2 + $0x90] ss:$0 sps:$4 sm:$0xff]   ;;  %v1269_v52 = vsel %vm900_vm10, %v1231_v45, %v1268_v16  ;;  %v1232_v51 = vsel %vm903_vm11, %v1231_v45, %v1230_v23  ;;  %v642_v7 = vcombine.high %v641_v42, %v641_v42  ;;  %v649_v14 = vrot.slane %v641_v42, %v2349_v54  ;;  %v1297_v41 = vld [vmem:[#allocation2 + $0xc] sm:$0x1]  ;;  %v1298_v16 = vld [vmem:[#allocation2 + $0x14] sm:$0x1] }
  0x62   : > { %v1270_v34 = vsel %vm903_vm11, %v1233_v50, %v1269_v52  ;;  %1438 = vrot.lane.b32.xlu1 %v2159_v58, %s2213_s14  ;;  %v1234_v15 = vsel %vm906_vm13, %v1233_v50, %v1232_v51  ;;  %v945_v55 = vsel %vm2543_vm1, %v928_v53, %v944_v33  ;;  %2096 = vmatpush3.bf16.msra.mxu0 %v2190_v57  ;;  %v947_v50 = vld [vmem:[#allocation2 + $0x20] sm:$0x7]  ;;  %v2720_v52 = vld [vmem:[#allocation2 + $0x10] sm:$0xf]  ;;  %v2193_v23 = vld [vmem:[%s2851_s1 + $0x68] sm:$0xff]   ;;  %vm1581_vm5 = vcmask 261120  }
  0x63   : > { %v1276_v63 = vpack.c.b16 %v1270_v34, %v1270_v34  ;;  %v1243_v26 = vpack.c.b16 %v1234_v15, %v1234_v15  ;;  %v656_v47 = vrot.slane %v642_v7, %v2349_v54  ;;  %v657_v56 = vcombine.high %v649_v14, %v649_v14  ;;  %946 = vst [vmem:[#allocation2 + $0x18] sm:$0x7] %v945_v55  ;;  %v2194_v34 = vld [vmem:[%s2851_s1 + $0x28] sm:$0xff]   ;;  %v2195_v53 = vld [vmem:[%s2851_s1 + $0x70] sm:$0xff]   ;;  %v1322_v55 = vld [vmem:[#allocation2 + $0x1c] sm:$0x1] }
  0x64   : > { %v833_v30 = vrot.slane %v649_v14, %v2356_v62  ;;  %v2034_v54 = vcombine.low %v1313_v13, %v1313_v13  ;;  %v2691_v59 = vld [vmem:[#allocation2 + $0x68] sm:$0xf]  ;;  %2097 = vmatprep.subr.bf16.mxu0 %v2191_v0  ;;  %2128 = vmatpush3.bf16.msra.mxu1 %v2190_v57  ;;  %v2714_v45 = vcombine.low %v1300_v12, %v1308_v3  ;;  %v1311_v22 = vld [vmem:[#allocation2 + $0x6c] sm:$0x1]  ;;  %vm1590_vm6 = vcmask 392192  }
  0x65   : > { %1285 = vst.msk [vmem:[#allocation2 + $0x88] sm:$0x3] %vm972_vm12, %v1276_v63  ;;  %v1257_v20 = vsel %vm2543_vm1, %v1243_v26, %v1256_v31  ;;  %v658_v24 = vcombine.high %v656_v47, %v656_v47  ;;  %v847_v60 = vrot.slane %v656_v47, %v2356_v62  ;;  %v861_v61 = vrot.slane %v657_v56, %v2356_v62 }
  0x66   : > { %1414 = vrot.lane.b32.xlu1 %v2022_v10, %s2215_s11  ;;  %1258 = vst [vmem:[#allocation2 + $0x60] sm:$0x7] %v1257_v20  ;;  %v840_v32 = vrot.slane %v833_v30, %v2356_v62  ;;  %v2024_v18 = vcombine.low %v2691_v59, %v2691_v59  ;;  %2121 = vmatprep.subr.bf16.mxu1 %v2191_v0  ;;  %v1455_v26 = vshll.u32 %v2714_v45, 16  ;;  %v1550_v47 = vshll.u32 %v2042_v43, 16  ;;  %v2196_v20 = vld [vmem:[%s2851_s1 + $0x30] sm:$0xff]  }
  0x67   : > { %v875_v2 = vrot.slane %v658_v24, %v2356_v62  ;;  %v854_v6 = vrot.slane %v847_v60, %v2356_v62  ;;  %v868_v8 = vrot.slane %v861_v61, %v2356_v62  ;;  %2098 = vmatpush3.bf16.msra.mxu0 %v2192_v5  ;;  %v2033_v48 = vcombine.low %v1312_v36, %v1312_v36 }
  0x68   : > { %v895_v29 = vunpack.c.l.b16 %v840_v32  ;;  %2129 = vmatpush3.bf16.msra.mxu1 %v2192_v5  ;;  %v2041_v58 = vcombine.low %v1312_v36, %v1320_v37  ;;  %v2730_v51 = vcombine.low %v2650_v40, %v1309_v38  ;;  %v2733_v7 = vcombine.low %v2712_v17, %v1297_v41  ;;  %2099 = vmatprep.subr.bf16.mxu0 %v2193_v23  ;;  %v1310_v40 = vld [vmem:[#allocation2 + $0x64] sm:$0x1] }
  0x69   : > { %v882_v19 = vrot.slane %v875_v2, %v2356_v62  ;;  %v896_v44 = vunpack.c.l.b16 %v854_v6  ;;  %v897_v25 = vunpack.c.l.b16 %v868_v8  ;;  %2122 = vmatprep.subr.bf16.mxu1 %v2193_v23  ;;  %v2739_v33 = vcombine.low %v2720_v52, %v1298_v16  ;;  %v1299_v2 = vld [vmem:[#allocation2 + $0x1c] sm:$0x1]  ;;  %v1323_v6 = vld [vmem:[#allocation2 + $0x24] sm:$0x1] }
  0x6a   : > { %1502 = vrot.lane.b32.xlu1 %v2034_v54, %s2216_s18  ;;  %v1543_v27 = vshll.u32 %v2041_v58, 16  ;;  %v1374_v56 = vshll.u32 %v2733_v7, 16  ;;  %v1314_v30 = vld [vmem:[#allocation2 + $0x18] sm:$0xf]  ;;  %v1462_v49 = vshll.u32 %v2730_v51, 16  ;;  %v1541_v57 = vshrl.u32 %v2041_v58, 16 }
  0x6b   : > { %v898_v21 = vunpack.c.l.b16 %v882_v19  ;;  %v920_v11 = vrot.slane %v896_v44, 7  ;;  %v922_v28 = vrot.slane %v897_v25, 6  ;;  %2100 = vmatpush3.bf16.msra.mxu0 %v2194_v34  ;;  %v1548_v24 = vshrl.u32 %v2042_v43, 16  ;;  %v2755_v0 = vld [vmem:[#allocation2 + $0x18] sm:$0xf] }
  0x6c   : > { %v2163_v46 = vld [vmem:[#allocation2 + $0x88] ss:$0 sps:$4 sm:$0xff]   ;;  %2130 = vmatpush3.bf16.msra.mxu1 %v2194_v34  ;;  %2101 = vmatprep.subr.bf16.mxu0 %v2195_v53  ;;  %v1545_v54 = vrot.slane %v1543_v27, 1  ;;  %v1552_v32 = vrot.slane %v1550_v47, 1  ;;  %v1453_v61 = vshrl.u32 %v2714_v45, 16  ;;  %v1381_v5 = vshll.u32 %v2739_v33, 16 }
  0x6d   : > { %1436 = vrot.lane.b32.xlu0 %v2163_v46, %s2213_s14  ;;  %v924_v62 = vrot.slane %v898_v21, 5  ;;  %v921_v9 = vsel %vm900_vm10, %v920_v11, %v895_v29  ;;  %v960_v35 = vsel %vm950_vm9, %v920_v11, %v895_v29  ;;  %v1302_v63 = vld [vmem:[#allocation2 + $0x60] sm:$0xf]  ;;  %2123 = vmatprep.subr.bf16.mxu1 %v2195_v53  ;;  %v2035_v8 = vcombine.low %v1314_v30, %v1314_v30  ;;  %v2198_v21 = vld [vmem:[%s2851_s1 + $0x38] sm:$0xff]   ;;  %s292_s14 = scalar_lea.vmem %s2856_s6, %s2864_s25 }
  0x6e   : > { %1418 = vrot.lane.b32.xlu1 %v2024_v18, %s2215_s11  ;;  %v923_v1 = vsel %vm903_vm11, %v922_v28, %v921_v9  ;;  %v961_v42 = vsel %vm900_vm10, %v922_v28, %v960_v35  ;;  %v2023_v13 = vcombine.low %v1302_v63, %v1302_v63  ;;  %v2752_v60 = vcombine.low %v1302_v63, %v1310_v40  ;;  %v2197_v18 = vld [vmem:[%s2851_s1 + $0x78] sm:$0xff]  }
  0x6f   : > { %v925_v10 = vsel %vm906_vm13, %v924_v62, %v923_v1  ;;  %v962_v14 = vsel %vm903_vm11, %v924_v62, %v961_v42  ;;  %2102 = vmatpush3.bf16.msra.mxu0 %v2196_v20  ;;  %v1457_v12 = vrot.slane %v1455_v26, 1  ;;  %v1546_v19 = vor.u32 %v1545_v54, %v1541_v57 }
  0x70   : > { %v929_v4 = vpack.c.b16 %v925_v10, %v925_v10  ;;  %v966_v15 = vpack.c.b16 %v962_v14, %v962_v14  ;;  %2131 = vmatpush3.bf16.msra.mxu1 %v2196_v20  ;;  %v1553_v46 = vor.u32 %v1552_v32, %v1548_v24  ;;  %v1372_v29 = vshrl.u32 %v2733_v7, 16  ;;  %2103 = vmatprep.subr.bf16.mxu0 %v2197_v18 }
  0x71   : > { %1412 = vrot.lane.b32.xlu0 %v2021_v39, %s2215_s11  ;;  %v1376_v44 = vrot.slane %v1374_v56, 1  ;;  %v1379_v25 = vshrl.u32 %v2739_v33, 16  ;;  %v2043_v3 = vcombine.low %v1314_v30, %v1322_v55  ;;  %v2020_v39 = vcombine.low %v2755_v0, %v1299_v2  ;;  %2124 = vmatprep.subr.bf16.mxu1 %v2197_v18  ;;  %v2182_v30 = vld [vmem:[#allocation2 + $0x40] ss:$0 sps:$4 sm:$0xff]  }
  0x72   : > { %v948_v31 = vsel %vm2543_vm1, %v929_v4, %v947_v50  ;;  %976 = vst.msk [vmem:[#allocation2 + $0x48] sm:$0x3] %vm972_vm12, %v966_v15  ;;  %v1637_v11 = vsel %vm1568_vm3, %v1546_v19, 0  ;;  %v1639_v28 = vsel %vm1568_vm3, %v1553_v46, 0  ;;  %v1383_v37 = vrot.slane %v1381_v5, 1 }
  0x73   : > { %949 = vst [vmem:[#allocation2 + $0x20] sm:$0x7] %v948_v31  ;;  %v1469_v62 = vshll.u32 %v2752_v60, 16  ;;  %2104 = vmatpush3.bf16.msra.mxu0 %v2198_v21  ;;  %v2047_v38 = vcombine.low %v1637_v11, %v1639_v28  ;;  %v1458_v43 = vor.u32 %v1457_v12, %v1453_v61  ;;  %v2032_v45 = vcombine.low %v2691_v59, %v1311_v22 }
  0x74   : > { %2132 = vmatpush3.bf16.msra.mxu1 %v2198_v21  ;;  %v1460_v1 = vshrl.u32 %v2730_v51, 16  ;;  %v1464_v50 = vrot.slane %v1462_v49, 1  ;;  %v1377_v16 = vor.u32 %v1376_v44, %v1372_v29  ;;  %v1388_v35 = vshll.u32 %v2020_v39, 16 }
  0x75   : > { %1500 = vrot.lane.b32.xlu0 %v2033_v48, %s2216_s18  ;;  %1835 = vmatprep.mubr.bf16.mxu0 %v2047_v38  ;;  %v1557_v48 = vshll.u32 %v2043_v3, 16  ;;  %v1384_v10 = vor.u32 %v1383_v37, %v1379_v25  ;;  %v1467_v42 = vshrl.u32 %v2752_v60, 16  ;;  %v1471_v23 = vrot.slane %v1469_v62, 1  ;;  %v2199_v25 = vld [vmem:[#allocation2] sm:$0xf] }
  0x76   : > { %v1555_v34 = vshrl.u32 %v2043_v3, 16  ;;  %v1465_v7 = vor.u32 %v1464_v50, %v1460_v1  ;;  %v1476_v51 = vshll.u32 %v2032_v45, 16  ;;  %v1386_v14 = vshrl.u32 %v2020_v39, 16 }
  0x77   : > { %v1559_v4 = vrot.slane %v1557_v48, 1  ;;  %v1390_v15 = vrot.slane %v1388_v35, 1  ;;  %v1472_v40 = vor.u32 %v1471_v23, %v1467_v42  ;;  %v1474_v47 = vshrl.u32 %v2032_v45, 16 }
  0x78   : > { %v1478_v56 = vrot.slane %v1476_v51, 1  ;;  %vm1599_vm7 = vcmask 523264   ;;  %vm1608_vm8 = vcmask 654336   ;;  %vm1617_vm9 = vcmask 785408  }
  0x79   : > { %1416 = vrot.lane.b32.xlu0 %v2023_v13, %s2215_s11  ;;  %v1560_v31 = vor.u32 %v1559_v4, %v1555_v34  ;;  %v1391_v27 = vor.u32 %v1390_v15, %v1386_v14  ;;  %v2181_v20 = vld [vmem:[#allocation2 + $0x48] ss:$0 sps:$4 sm:$0xff]   ;;  %vm1626_vm10 = vcmask 916480   ;;  %s2069_s11 = sshll.u32 %s2864_s25, 3  ;;  %vm1852_vm11 = vcmask 257024  }
  0x7a   : > { %v1315_v36 = vld [vmem:[#allocation2 + $0x20] sm:$0xf]  ;;  %v1479_v49 = vor.u32 %v1478_v56, %v1474_v47  ;;  %s2821_s16 = scalar_lea.vmem %s2855_s5, %s2069_s11  ;;  %vm1889_vm12 = vcmask 254976   ;;  %vm1894_vm13 = vcmask 253952  }
  0x7b   : > { %v2036_v9 = vcombine.low %v1315_v36, %v1315_v36  ;;  %v2044_v41 = vcombine.low %v1315_v36, %v1323_v6  ;;  %v1641_v13 = vsel %vm1568_vm3, %v1560_v31, 0  ;;  %v2045_v56 = vld [vmem:[%s2852_s2] ss:$0 sm:$0xff] }
  0x7d   : > { %1504 = vrot.lane.b32.xlu0 %v2035_v8, %s2216_s18  ;;  %1506 = vrot.lane.b32.xlu1 %v2036_v9, %s2216_s18  ;;  %v1564_v58 = vshll.u32 %v2044_v41, 16  ;;  %v1562_v63 = vshrl.u32 %v2044_v41, 16 }
  0x7f   : > { %v1566_v59 = vrot.slane %v1564_v58, 1 }
  0x81   : > { %1480 = vrot.lane.b32.xlu0 %v1458_v43, %s2217_s10  ;;  %1394 = vrot.lane.b32.xlu1 %v1377_v16, %s2212_s13  ;;  %v1567_v33 = vor.u32 %v1566_v59, %v1562_v63 }
  0x83   : > { %v1643_v26 = vsel %vm1568_vm3, %v1567_v33, 0 }
  0x84   : > { %v2049_v53 = vcombine.low %v1641_v13, %v1643_v26 }
  0x85   : > { %1396 = vrot.lane.b32.xlu0 %v1384_v10, %s2212_s13  ;;  %1482 = vrot.lane.b32.xlu1 %v1465_v7, %s2217_s10 }
  0x86   : > { %1843 = vmatprep.mubr.bf16.mxu1 %v2049_v53 }
  0x89   : > { %1484 = vrot.lane.b32.xlu0 %v1472_v40, %s2217_s10  ;;  %1398 = vrot.lane.b32.xlu1 %v1391_v27, %s2212_s13  ;;  %v1337_v55 = vpop.permute.xlu0 %1336 }
  0x8a   : > { %v1571_v21 = vsel %vm1568_vm3, %v2199_v25, %v1337_v55 }
  0x8d   : > { %1524 = vrot.lane.b32.xlu0 %v2182_v30, %s2214_s23  ;;  %1486 = vrot.lane.b32.xlu1 %v1479_v49, %s2217_s10 }
  0x91   : > { %1526 = vrot.lane.b32.xlu1 %v2181_v20, %s2214_s23 }
  0x93   : > { %v1393_v57 = vpop.permute.xlu1 %1392 }
  0x94   : > { %v1583_v22 = vsel %vm1581_vm5, %v1571_v21, %v1393_v57 }
  0xb2   : > { %v1435_v54 = vpop.permute.xlu1 %1434 }
  0xb3   : > { %v1339_v24 = vpop.permute.xlu0 %1338 }
  0xb4   : > { %v1574_v62 = vsel %vm1568_vm3, %v2712_v17, %v1339_v24 }
  0xba   : > { %v1343_v32 = vpop.permute.xlu1 %1342 }
  0xbb   : > { %v1580_v23 = vsel %vm1568_vm3, %v2755_v0, %v1343_v32 }
  0xc1   : > { %v1433_v60 = vpop.permute.xlu0 %1432 }
  0xc8   : > { %v1523_v61 = vpop.permute.xlu1 %1522 }
  0xc9   : > { %v1341_v2 = vpop.permute.xlu0 %1340 }
  0xca   : > { %v1577_v41 = vsel %vm1568_vm3, %v2720_v52, %v1341_v2 }
  0xcd   : > { %v1521_v6 = vpop.permute.xlu0 %1520 }
  0xd4   : > { %v1439_v5 = vpop.permute.xlu1 %1438 }
  0xd8   : > { %v1415_v8 = vpop.permute.xlu1 %1414 }
  0xdc   : > { %v1503_v19 = vpop.permute.xlu1 %1502 }
  0xdf   : > { %v1437_v12 = vpop.permute.xlu0 %1436 }
  0xe0   : > { %v1419_v29 = vpop.permute.xlu1 %1418 }
  0xe3   : > { %v1413_v18 = vpop.permute.xlu0 %1412 }
  0xe4   : > { %v1592_v39 = vsel %vm1590_vm6, %v1583_v22, %v1413_v18 }
  0xe5   : > { %v1601_v28 = vsel %vm1599_vm7, %v1592_v39, %v1433_v60 }
  0xe7   : > { %v1501_v46 = vpop.permute.xlu0 %1500 }
  0xeb   : > { %v1417_v44 = vpop.permute.xlu0 %1416 }
  0xef   : > { %v1505_v3 = vpop.permute.xlu0 %1504  ;;  %v1507_v11 = vpop.permute.xlu1 %1506 }
  0xf3   : > { %v1481_v36 = vpop.permute.xlu0 %1480  ;;  %v1395_v38 = vpop.permute.xlu1 %1394 }
  0xf4   : > { %v1610_v37 = vsel %vm1608_vm8, %v1601_v28, %v1481_v36  ;;  %v1585_v9 = vsel %vm1581_vm5, %v1574_v62, %v1395_v38 }
  0xf5   : > { %v1594_v43 = vsel %vm1590_vm6, %v1585_v9, %v1415_v8  ;;  %v1619_v45 = vsel %vm1617_vm9, %v1610_v37, %v1501_v46 }
  0xf6   : > { %v1603_v50 = vsel %vm1599_vm7, %v1594_v43, %v1435_v54  ;;  %v1628_v58 = vsel %vm1626_vm10, %v1619_v45, %v1521_v6 }
  0xf7   : > { %v1397_v1 = vpop.permute.xlu0 %1396  ;;  %v1483_v35 = vpop.permute.xlu1 %1482 }
  0xf8   : > { %v1587_v16 = vsel %vm1581_vm5, %v1577_v41, %v1397_v1  ;;  %v1612_v48 = vsel %vm1608_vm8, %v1603_v50, %v1483_v35 }
  0xf9   : > { %v1596_v17 = vsel %vm1590_vm6, %v1587_v16, %v1417_v44  ;;  %v1621_v10 = vsel %vm1617_vm9, %v1612_v48, %v1503_v19 }
  0xfa   : > { %v1630_v42 = vsel %vm1626_vm10, %v1621_v10, %v1523_v61  ;;  %v1605_v63 = vsel %vm1599_vm7, %v1596_v17, %v1437_v12 }
  0xfb   : > { %v1485_v52 = vpop.permute.xlu0 %1484  ;;  %v1399_v34 = vpop.permute.xlu1 %1398  ;;  %v2046_v4 = vcombine.low %v1628_v58, %v1630_v42 }
  0xfc   : > { %v1589_v59 = vsel %vm1581_vm5, %v1580_v23, %v1399_v34  ;;  %v1614_v14 = vsel %vm1608_vm8, %v1605_v63, %v1485_v52 }
  0xfd   : > { %v1598_v7 = vsel %vm1590_vm6, %v1589_v59, %v1419_v29  ;;  %1836 = vmatmul.mubr.bf16.vlgmr.msra.gmra.mrb[0].mxu0 %v2046_v4  ;;  %v1623_v0 = vsel %vm1617_vm9, %v1614_v14, %v1505_v3 }
  0xfe   : > { %v1607_v51 = vsel %vm1599_vm7, %v1598_v7, %v1439_v5 }
  0xff   : > { %v1487_v15 = vpop.permute.xlu1 %1486  ;;  %v1525_v31 = vpop.permute.xlu0 %1524 }
 0x100   : > { %v1616_v33 = vsel %vm1608_vm8, %v1607_v51, %v1487_v15  ;;  %v1632_v40 = vsel %vm1626_vm10, %v1623_v0, %v1525_v31 }
 0x101   : > { %v1625_v13 = vsel %vm1617_vm9, %v1616_v33, %v1507_v11 }
 0x103   : > { %v1527_v26 = vpop.permute.xlu1 %1526 }
 0x104   : > { %v1634_v53 = vsel %vm1626_vm10, %v1625_v13, %v1527_v26 }
 0x105   : > { %v2048_v27 = vcombine.low %v1632_v40, %v1634_v53 }
 0x107   : > { %1844 = vmatmul.mubr.bf16.vlgmr.msra.gmra.mrb[0].mxu1 %v2048_v27 }
 0x1d0   : > { %v2105_v47 = vpop.f32.mrb[0].mxu0 }
 0x1d1   : > { %v2106_v30 = vpop.f32.mrb[1].mxu0 }
 0x1d2   : > { %v2107_v49 = vadd.f32 %v2106_v30, %v2105_v47  ;;  %v2108_v20 = vpop.f32.mrb[2].mxu0 }
 0x1d3   : > { %v2109_v55 = vpop.f32.mrb[3].mxu0 }
 0x1d4   : > { %v1838_v57 = vadd.f32 %v2107_v49, %v2045_v56  ;;  %v2110_v54 = vadd.f32 %v2109_v55, %v2108_v20 }
 0x1d6   : > { %v1867_v24 = vmul.f32 %v1838_v57, %v1838_v57  ;;  %v1885_v32 = vpack.c.bf16 %v1838_v57, %v1838_v57  ;;  %v1841_v60 = vadd.f32 %v2110_v54, %v2045_v56  ;;  %v1853_v61 = vsel %vm1852_vm11, %v1838_v57, 0.0 }
 0x1d8   : > { %1890 = vst.msk [vmem:[%s2821_s16] sm:$0x3] %vm1889_vm12, %v1885_v32  ;;  %v1854_v2 = vsel %vm1852_vm11, %v1841_v60, 0.0  ;;  %v1868_v5 = vmul.f32 %v1841_v60, %v1841_v60  ;;  %v1886_v6 = vpack.c.bf16 %v1841_v60, %v1841_v60  ;;  %v1871_v12 = vsel %vm1852_vm11, %v1867_v24, 0.0 }
 0x1d9   : > { %v1855_v8 = vadd.f32 %v1854_v2, %v1853_v61 }
 0x1da   : > { %v1872_v18 = vsel %vm1852_vm11, %v1868_v5, 0.0  ;;  %1891 = vst.msk [vmem:[%s2821_s16 + $0x2] sm:$0x3] %vm1889_vm12, %v1886_v6  ;;  %v2111_v19 = vpop.f32.mrb[0].mxu1 }
 0x1db   : > { %v1873_v46 = vadd.f32 %v1872_v18, %v1871_v12  ;;  %v2112_v29 = vpop.f32.mrb[1].mxu1 }
 0x1dc   : > { %v2113_v44 = vadd.f32 %v2112_v29, %v2111_v19  ;;  %v2114_v25 = vpop.f32.mrb[2].mxu1 }
 0x1dd   : > { %v2115_v21 = vpop.f32.mrb[3].mxu1 }
 0x1de   : > { %v1846_v22 = vadd.f32 %v2113_v44, %v2045_v56  ;;  %v2116_v3 = vadd.f32 %v2115_v21, %v2114_v25 }
 0x1e0   : > { %v1856_v39 = vsel %vm1852_vm11, %v1846_v22, 0.0  ;;  %v1869_v11 = vmul.f32 %v1846_v22, %v1846_v22  ;;  %v1887_v28 = vpack.c.bf16 %v1846_v22, %v1846_v22  ;;  %v1849_v36 = vadd.f32 %v2116_v3, %v2045_v56 }
 0x1e1   : > { %v1857_v37 = vadd.f32 %v1856_v39, %v1855_v8 }
 0x1e2   : > { %v1874_v62 = vsel %vm1852_vm11, %v1869_v11, 0.0  ;;  %1892 = vst.msk [vmem:[%s2821_s16 + $0x4] sm:$0x3] %vm1889_vm12, %v1887_v28  ;;  %v1858_v38 = vsel %vm1852_vm11, %v1849_v36, 0.0  ;;  %v1870_v9 = vmul.f32 %v1849_v36, %v1849_v36  ;;  %v1888_v41 = vpack.c.bf16 %v1849_v36, %v1849_v36 }
 0x1e3   : > { %v1875_v43 = vadd.f32 %v1874_v62, %v1873_v46  ;;  %v1859_v45 = vadd.f32 %v1858_v38, %v1857_v37 }
 0x1e4   : > { %v1876_v1 = vsel %vm1852_vm11, %v1870_v9, 0.0  ;;  %1893 = vst.msk [vmem:[%s2821_s16 + $0x6] sm:$0x3] %vm1889_vm12, %v1888_v41 }
 0x1e5   : > { %v1860_v50 = vrot.slane %v1859_v45, 4  ;;  %v1877_v16 = vadd.f32 %v1876_v1, %v1875_v43 }
 0x1e7   : > { %v1861_v35 = vadd.f32 %v1860_v50, %v1859_v45  ;;  %v1878_v48 = vrot.slane %v1877_v16, 4 }
 0x1e9   : > { %v1862_v17 = vrot.slane %v1861_v35, 2  ;;  %v1879_v58 = vadd.f32 %v1878_v48, %v1877_v16 }
 0x1eb   : > { %v1863_v10 = vadd.f32 %v1862_v17, %v1861_v35  ;;  %v1880_v52 = vrot.slane %v1879_v58, 2 }
 0x1ed   : > { %v1864_v42 = vrot.slane %v1863_v10, 1  ;;  %v1881_v23 = vadd.f32 %v1880_v52, %v1879_v58 }
 0x1ef   : > { %v1865_v34 = vadd.f32 %v1864_v42, %v1863_v10  ;;  %v1882_v4 = vrot.slane %v1881_v23, 1 }
 0x1f1   : > { %v1883_v63 = vadd.f32 %v1882_v4, %v1881_v23  ;;  %1895 = vst.msk [vmem:[%s292_s14] sm:$0x1] %vm1894_vm13, %v1865_v34 }
 0x1f3   : > { %1896 = vst.msk [vmem:[%s295_s21] sm:$0x1] %vm1894_vm13, %v1883_v63 }
 0x1f4 PF: > { %s18_s24 = sadd.s32 1, %s2206_s24  }
 0x1f5   : > { %p15_p4 = scmp.ge.s32.totalorder %s18_s24, 4  }
 0x1f7   :  { %17 = sbr.rel (!%p15_p4) target bundleno = 1 (0x1), region = 99 }

// kernel: _lambda_.5
= control target key start
LH: loop header
LB: loop body
LE: loop exit
PB: predicated region body
PF: predicated region fallthrough
CT: control target
= control target key end

     0   :  { %s4195_s18 = smov 0   ;;  %s5739_s0 = inlined_call_operand.vmem [shape: bf16[2,16,16,8], index: 0, kind: input, shape index: {}]   ;;  %s5740_s1 = inlined_call_operand.vmem [shape: bf16[128,8], index: 1, kind: input, shape index: {}]   ;;  %s5741_s2 = inlined_call_operand.vmem [shape: f32[1,8], index: 2, kind: input, shape index: {}]   ;;  %s5742_s3 = inlined_call_operand.vmem [shape: f32[1,8], index: 3, kind: input, shape index: {}]   ;;  %s5743_s4 = inlined_call_operand.vmem [shape: f32[1,8], index: 4, kind: input, shape index: {}]   ;;  %s5744_s5 = inlined_call_operand.vmem [shape: bf16[2,16,16,8], index: 5, kind: output, shape index: {}]  }
   0x1 LB: > { %s3501_s19 = sadd.s32 4294967295, %s4154_s18   ;;  %p3505_p0 = scmp.ge.s32.totalorder %s4154_s18, 1  ;;  %s4154_s18 = sphi %s4195_s18, %s15_s18  }
   0x2   : > { %p187_p1 = scmp.lt.s32.totalorder %s4154_s18, 3 }
   0x4   : > { %p188_p2 = pnand %p3505_p0, %p187_p1 }
   0x6   : > { %191 = sbr.rel (%p188_p2) target bundleno = 656 (0x290), region = 40 }
   0xd   : > { %vm384_vm0 = vcmask 60416   ;;  %vm387_vm1 = vcmask 57344   ;;  %v4156_v0 = vmov 0   ;;  %p215_p3 = scmp.lt.s32.totalorder %s3501_s19, 1  ;;  %v4267_v1 = vld [vmem:[%s5742_s3] ss:$0 sm:$0xff] }
   0xe   : > { %385 = vst.msk [vmem:[#allocation2] sm:$0xf] %vm384_vm0, %v4156_v0  ;;  %386 = vst.msk [vmem:[#allocation2 + $0x4] sm:$0xf] %vm384_vm0, %v4156_v0  ;;  %vm1282_vm2 = vsmask.f32 7424 }
   0xf   : > { %388 = vst.msk [vmem:[#allocation2 + $0x8] sm:$0x1] %vm387_vm1, %v4156_v0  ;;  %391 = vst.msk [vmem:[#allocation2 + $0x14] sm:$0x1] %vm387_vm1, %v4156_v0  ;;  %s5764_s19 = smov (!%p215_p3, %s3501_s19), 1  ;;  %vm1555_vm6 = vcmask 1046528  }
  0x10   : > { %389 = vst.msk [vmem:[#allocation2 + $0xc] sm:$0xf] %vm384_vm0, %v4156_v0  ;;  %390 = vst.msk [vmem:[#allocation2 + $0x10] sm:$0xf] %vm384_vm0, %v4156_v0  ;;  %s3747_s20 = sshll.u32 %s5764_s19, 7  ;;  %s4157_s28 = smov 16  }
  0x11   : > { %392 = vst.msk [vmem:[#allocation2 + $0x18] sm:$0xf] %vm384_vm0, %v4156_v0  ;;  %393 = vst.msk [vmem:[#allocation2 + $0x1c] sm:$0xf] %vm384_vm0, %v4156_v0  ;;  %s4274_s25 = scalar_lea.vmem %s5739_s0, %s3747_s20  ;;  %v4280_v3 = vld [vmem:[%s5743_s4] ss:$0 sm:$0xff] }
  0x12   : > { %394 = vst.msk [vmem:[#allocation2 + $0x20] sm:$0x1] %vm387_vm1, %v4156_v0  ;;  %397 = vst.msk [vmem:[#allocation2 + $0x2c] sm:$0x1] %vm387_vm1, %v4156_v0  ;;  %v3884_v2 = vld [vmem:[%s4274_s25 + $0x40] sm:$0xff]   ;;  %v3885_v5 = vld [vmem:[%s4274_s25 + $0x48] sm:$0xff]  }
  0x13   : > { %395 = vst.msk [vmem:[#allocation2 + $0x24] sm:$0xf] %vm384_vm0, %v4156_v0  ;;  %396 = vst.msk [vmem:[#allocation2 + $0x28] sm:$0xf] %vm384_vm0, %v4156_v0  ;;  %vm520_vm3 = vsmask.f32 256  ;;  %v3847_v8 = vunpack.c.l.bf16 %v3884_v2  ;;  %v3848_v9 = vunpack.c.h.bf16 %v3884_v2  ;;  %v3851_v15 = vunpack.c.l.bf16 %v3885_v5 }
  0x14   : > { %398 = vst.msk [vmem:[#allocation2 + $0x30] sm:$0xf] %vm384_vm0, %v4156_v0  ;;  %399 = vst.msk [vmem:[#allocation2 + $0x34] sm:$0xf] %vm384_vm0, %v4156_v0  ;;  %vm521_vm4 = vsmask.f32 4368  ;;  %v3852_v16 = vunpack.c.h.bf16 %v3885_v5 }
  0x15   : > { %400 = vst.msk [vmem:[#allocation2 + $0x38] sm:$0x1] %vm387_vm1, %v4156_v0  ;;  %403 = vst.msk [vmem:[#allocation2 + $0x44] sm:$0x1] %vm387_vm1, %v4156_v0  ;;  %v3814_v4 = vld [vmem:[%s4274_s25] sm:$0xff]   ;;  %v313_v18 = vmul.f32 %v3847_v8, %v4267_v1  ;;  %v314_v19 = vmul.f32 %v3848_v9, %v4267_v1  ;;  %v3877_v29 = vld [vmem:[%s4274_s25 + $0x8] sm:$0xff]   ;;  %v315_v37 = vmul.f32 %v3851_v15, %v4267_v1 }
  0x16   : > { %401 = vst.msk [vmem:[#allocation2 + $0x3c] sm:$0xf] %vm384_vm0, %v4156_v0  ;;  %402 = vst.msk [vmem:[#allocation2 + $0x40] sm:$0xf] %vm384_vm0, %v4156_v0  ;;  %v962_v6 = vld [vmem:[#allocation2 + $0x4] sm:$0xf]  ;;  %v3815_v10 = vunpack.c.l.bf16 %v3814_v4  ;;  %v3816_v11 = vunpack.c.h.bf16 %v3814_v4  ;;  %v316_v40 = vmul.f32 %v3852_v16, %v4267_v1  ;;  %v3819_v41 = vunpack.c.l.bf16 %v3877_v29 }
  0x17   : > { %404 = vst.msk [vmem:[#allocation2 + $0x48] sm:$0xf] %vm384_vm0, %v4156_v0  ;;  %405 = vst.msk [vmem:[#allocation2 + $0x4c] sm:$0xf] %vm384_vm0, %v4156_v0  ;;  %v1009_v7 = vld [vmem:[#allocation2] sm:$0xe]  ;;  %v352_v27 = vadd.f32 %v4280_v3, %v313_v18  ;;  %v353_v28 = vadd.f32 %v4280_v3, %v314_v19  ;;  %v354_v59 = vadd.f32 %v4280_v3, %v315_v37  ;;  %v3820_v2 = vunpack.c.h.bf16 %v3877_v29 }
  0x18   : > { %406 = vst.msk [vmem:[#allocation2 + $0x50] sm:$0x1] %vm387_vm1, %v4156_v0  ;;  %409 = vst.msk [vmem:[#allocation2 + $0x5c] sm:$0x1] %vm387_vm1, %v4156_v0  ;;  %vm845_vm5 = vsmask.f32 7938  ;;  %v3576_v13 = vcombine.low %v1009_v7, %v962_v6  ;;  %v297_v20 = vmul.f32 %v3815_v10, %v4267_v1  ;;  %v298_v24 = vmul.f32 %v3816_v11, %v4267_v1 }
  0x19   : > { %407 = vst.msk [vmem:[#allocation2 + $0x54] sm:$0xf] %vm384_vm0, %v4156_v0  ;;  %408 = vst.msk [vmem:[#allocation2 + $0x58] sm:$0xf] %vm384_vm0, %v4156_v0  ;;  %v961_v14 = vld [vmem:[#allocation2] sm:$0xf]  ;;  %v3765_v35 = vpack.c.bf16 %v352_v27, %v352_v27  ;;  %v3766_v36 = vpack.c.bf16 %v353_v28, %v353_v28  ;;  %v355_v60 = vadd.f32 %v4280_v3, %v316_v40 }
  0x1a   : > { %410 = vst.msk [vmem:[#allocation2 + $0x60] sm:$0xf] %vm384_vm0, %v4156_v0  ;;  %411 = vst.msk [vmem:[#allocation2 + $0x64] sm:$0xf] %vm384_vm0, %v4156_v0  ;;  %v4284_v17 = vcombine.low %v961_v14, %v962_v6  ;;  %v1556_v21 = vrot.slane %v3576_v13, 1  ;;  %v336_v32 = vadd.f32 %v4280_v3, %v297_v20  ;;  %v337_v33 = vadd.f32 %v4280_v3, %v298_v24  ;;  %s4158_s29 = smov 8  }
  0x1b   : > { %412 = vst.msk [vmem:[#allocation2 + $0x68] sm:$0x1] %vm387_vm1, %v4156_v0  ;;  %415 = vst.msk [vmem:[#allocation2 + $0x74] sm:$0x1] %vm387_vm1, %v4156_v0  ;;  %v660_v43 = vshrl.u32 %v3765_v35, 16  ;;  %v663_v44 = vshll.u32 %v3765_v35, 16  ;;  %v3767_v7 = vpack.c.bf16 %v354_v59, %v354_v59  ;;  %v3768_v11 = vpack.c.bf16 %v355_v60, %v355_v60 }
  0x1c   : > { %413 = vst.msk [vmem:[#allocation2 + $0x6c] sm:$0xf] %vm384_vm0, %v4156_v0  ;;  %414 = vst.msk [vmem:[#allocation2 + $0x70] sm:$0xf] %vm384_vm0, %v4156_v0  ;;  %v1284_v25 = vshrl.u32 %v4284_v17, 16  ;;  %v1286_v26 = vshll.u32 %v4284_v17, 16  ;;  %v3749_v38 = vpack.c.bf16 %v336_v32, %v336_v32  ;;  %v3750_v39 = vpack.c.bf16 %v337_v33, %v337_v33 }
  0x1d   : > { %416 = vst.msk [vmem:[#allocation2 + $0x78] sm:$0xf] %vm384_vm0, %v4156_v0  ;;  %417 = vst.msk [vmem:[#allocation2 + $0x7c] sm:$0xf] %vm384_vm0, %v4156_v0  ;;  %v668_v45 = vshrl.u32 %v3766_v36, 16  ;;  %v671_v46 = vshll.u32 %v3766_v36, 16  ;;  %v300_v20 = vmul.f32 %v3820_v2, %v4267_v1 }
  0x1e   : > { %418 = vst.msk [vmem:[#allocation2 + $0x80] sm:$0x1] %vm387_vm1, %v4156_v0  ;;  %421 = vst.msk [vmem:[#allocation2 + $0x8c] sm:$0x1] %vm387_vm1, %v4156_v0  ;;  %v1288_v34 = vrot.slane %v1286_v26, 1  ;;  %v524_v47 = vshrl.u32 %v3749_v38, 16 }
  0x1f   : > { %419 = vst.msk [vmem:[#allocation2 + $0x84] sm:$0xf] %vm384_vm0, %v4156_v0  ;;  %420 = vst.msk [vmem:[#allocation2 + $0x88] sm:$0xf] %vm384_vm0, %v4156_v0  ;;  %v527_v48 = vshll.u32 %v3749_v38, 16  ;;  %v532_v49 = vshrl.u32 %v3750_v39, 16  ;;  %v339_v29 = vadd.f32 %v4280_v3, %v300_v20 }
  0x20   : > { %422 = vst.msk [vmem:[#allocation2 + $0x90] sm:$0xf] %vm384_vm0, %v4156_v0  ;;  %423 = vst.msk [vmem:[#allocation2 + $0x94] sm:$0xf] %vm384_vm0, %v4156_v0  ;;  %v1289_v42 = vor.u32 %v1288_v34, %v1284_v25  ;;  %v662_v52 = vrot.slane %v660_v43, 7  ;;  %v4308_v53 = vrot.slane %v668_v45, 7 }
  0x21   : > { %424 = vst.msk [vmem:[#allocation2 + $0x98] sm:$0x1] %vm387_vm1, %v4156_v0  ;;  %427 = vst.msk [vmem:[#allocation2 + $0xa4] sm:$0x1] %vm387_vm1, %v4156_v0  ;;  %v535_v54 = vshll.u32 %v3750_v39, 16  ;;  %v526_v57 = vrot.slane %v524_v47, 7  ;;  %v3752_v39 = vpack.c.bf16 %v339_v29, %v339_v29 }
  0x22   : > { %425 = vst.msk [vmem:[#allocation2 + $0x9c] sm:$0xf] %vm384_vm0, %v4156_v0  ;;  %426 = vst.msk [vmem:[#allocation2 + $0xa0] sm:$0xf] %vm384_vm0, %v4156_v0  ;;  %v534_v58 = vrot.slane %v532_v49, 7  ;;  %v665_v61 = vor.u32 %v663_v44, %v662_v52  ;;  %v666_v62 = vrot.slane %v662_v52, 4  ;;  %v673_v63 = vor.u32 %v671_v46, %v4308_v53 }
  0x23   : > { %428 = vst.msk [vmem:[#allocation2 + $0xa8] sm:$0xf] %vm384_vm0, %v4156_v0  ;;  %429 = vst.msk [vmem:[#allocation2 + $0xac] sm:$0xf] %vm384_vm0, %v4156_v0  ;;  %v905_v56 = vld [vmem:[#allocation2 + $0x6c] sm:$0xf]  ;;  %v529_v4 = vor.u32 %v527_v48, %v526_v57 }
  0x24   : > { %430 = vst.msk [vmem:[#allocation2 + $0xb0] sm:$0x1] %vm387_vm1, %v4156_v0  ;;  %433 = vst.msk [vmem:[#allocation2 + $0xbc] sm:$0x1] %vm387_vm1, %v4156_v0  ;;  %v530_v5 = vrot.slane %v526_v57, 4  ;;  %v537_v6 = vor.u32 %v535_v54, %v534_v58  ;;  %v3883_v8 = vld [vmem:[%s4274_s25 + $0x38] sm:$0xff]  }
  0x25   : > { %431 = vst.msk [vmem:[#allocation2 + $0xb4] sm:$0xf] %vm384_vm0, %v4156_v0  ;;  %432 = vst.msk [vmem:[#allocation2 + $0xb8] sm:$0xf] %vm384_vm0, %v4156_v0  ;;  %v677_v15 = vshrl.u32 %v3767_v7, 16  ;;  %v680_v16 = vshll.u32 %v3767_v7, 16  ;;  %v3844_v24 = vunpack.c.h.bf16 %v3883_v8 }
  0x26   : > { %434 = vst.msk [vmem:[#allocation2 + $0xc0] sm:$0xf] %vm384_vm0, %v4156_v0  ;;  %435 = vst.msk [vmem:[#allocation2 + $0xc4] sm:$0xf] %vm384_vm0, %v4156_v0  ;;  %v685_v18 = vshrl.u32 %v3768_v11, 16  ;;  %v688_v19 = vshll.u32 %v3768_v11, 16 }
  0x27   : > { %436 = vst.msk [vmem:[#allocation2 + $0xc8] sm:$0x1] %vm387_vm1, %v4156_v0  ;;  %439 = vst.msk [vmem:[#allocation2 + $0xd4] sm:$0x1] %vm387_vm1, %v4156_v0  ;;  %v539_v25 = vrot.slane %v534_v58, 4  ;;  %v675_v32 = vrot.slane %v4308_v53, 4  ;;  %v312_v36 = vmul.f32 %v3844_v24, %v4267_v1 }
  0x28   : > { %437 = vst.msk [vmem:[#allocation2 + $0xcc] sm:$0xf] %vm384_vm0, %v4156_v0  ;;  %438 = vst.msk [vmem:[#allocation2 + $0xd0] sm:$0xf] %vm384_vm0, %v4156_v0  ;;  %v847_v0 = vld [vmem:[#allocation2 + $0xc] sm:$0xf] }
  0x29   : > { %v3997_v12 = vld [vmem:[#allocation2 + $0x8] ss:$0 sps:$4 sm:$0x11]   ;;  %vm4304_vm7 = vmor %vm520_vm3, %vm521_vm4  ;;  %v4340_v27 = vrot.slane %v685_v18, 7  ;;  %v912_v28 = vld [vmem:[#allocation2 + $0x78] sm:$0xf]  ;;  %v351_v43 = vadd.f32 %v4280_v3, %v312_v36 }
  0x2a   : > { %v1557_v22 = vrot.slane %v3997_v12, 1  ;;  %v1291_v23 = vshll.u32 %v3997_v12, 16  ;;  %vm4313_vm8 = vmand %vm384_vm0, %vm845_vm5  ;;  %v674_v9 = vsel %vm4304_vm7, %v666_v62, %v673_v63  ;;  %v299_v12 = vmul.f32 %v3819_v41, %v4267_v1  ;;  %v909_v37 = vld [vmem:[#allocation2 + $0x74] sm:$0x1]  ;;  %s4159_s30 = smov 24   ;;  %s4160_s6 = smov 40  }
  0x2b   : > { %v906_v10 = vsel %vm4313_vm8, %v665_v61, %v905_v56  ;;  %908 = vst.msk [vmem:[#allocation2 + $0x70] sm:$0xf] %vm384_vm0, %v674_v9  ;;  %v538_v13 = vsel %vm4304_vm7, %v530_v5, %v537_v6  ;;  %v848_v14 = vsel %vm4313_vm8, %v529_v4, %v847_v0  ;;  %vm4336_vm9 = vmand %vm387_vm1, %vm520_vm3  ;;  %v690_v38 = vor.u32 %v688_v19, %v4340_v27  ;;  %v856_v61 = vld [vmem:[#allocation2 + $0x18] sm:$0xf]  ;;  %v902_v11 = vld [vmem:[#allocation2 + $0x68] sm:$0x1] }
  0x2c   : > { %v1558_v30 = vsel %vm1555_vm6, %v1556_v21, %v1557_v22  ;;  %v1293_v31 = vrot.slane %v1291_v23, 1  ;;  %907 = vst [vmem:[#allocation2 + $0x6c] sm:$0xf] %v906_v10  ;;  %849 = vst [vmem:[#allocation2 + $0xc] sm:$0xf] %v848_v14  ;;  %v338_v21 = vadd.f32 %v4280_v3, %v299_v12  ;;  %v679_v22 = vrot.slane %v677_v15, 7 }
  0x2d   : > { %1604 = vrot.lane.b32.xlu0 %v1558_v30, %s4157_s28  ;;  %850 = vst.msk [vmem:[#allocation2 + $0x10] sm:$0xf] %vm384_vm0, %v538_v13  ;;  %v3843_v23 = vunpack.c.l.bf16 %v3883_v8  ;;  %v910_v49 = vsel %vm4336_vm9, %v675_v32, %v909_v37  ;;  %v3764_v56 = vpack.c.bf16 %v351_v43, %v351_v43  ;;  %v549_v59 = vshrl.u32 %v3752_v39, 16  ;;  %v898_v10 = vld [vmem:[#allocation2 + $0x60] sm:$0xf]  ;;  %s4161_s13 = smov 32  }
  0x2e   : > { %v1294_v50 = vsel %vm1282_vm2, %v1289_v42, %v1293_v31  ;;  %v3751_v30 = vpack.c.bf16 %v338_v21, %v338_v21  ;;  %v853_v31 = vld [vmem:[#allocation2 + $0x14] sm:$0x1]  ;;  %v682_v33 = vor.u32 %v680_v16, %v679_v22  ;;  %v683_v34 = vrot.slane %v679_v22, 4  ;;  %911 = vst [vmem:[#allocation2 + $0x74] sm:$0x1] %v910_v49  ;;  %s4162_s21 = smov 48  }
  0x2f   : > { %v311_v35 = vmul.f32 %v3843_v23, %v4267_v1  ;;  %v854_v44 = vsel %vm4336_vm9, %v539_v25, %v853_v31  ;;  %v552_v60 = vshll.u32 %v3752_v39, 16  ;;  %v551_v4 = vrot.slane %v549_v59, 7  ;;  %v3878_v16 = vld [vmem:[%s4274_s25 + $0x10] sm:$0xff]   ;;  %v860_v31 = vld [vmem:[#allocation2 + $0x20] sm:$0x1]  ;;  %s4163_s27 = smov 56  }
  0x30   : > { %v541_v40 = vshrl.u32 %v3751_v30, 16  ;;  %v913_v41 = vsel %vm4313_vm8, %v682_v33, %v912_v28  ;;  %v691_v47 = vsel %vm4304_vm7, %v683_v34, %v690_v38  ;;  %v544_v48 = vshll.u32 %v3751_v30, 16  ;;  %855 = vst [vmem:[#allocation2 + $0x14] sm:$0x1] %v854_v44  ;;  %v916_v36 = vld [vmem:[#allocation2 + $0x80] sm:$0x1] }
  0x31   : > { %1475 = vrot.lane.b32.xlu0 %v1294_v50, %s4158_s29  ;;  %v350_v42 = vadd.f32 %v4280_v3, %v311_v35  ;;  %914 = vst [vmem:[#allocation2 + $0x78] sm:$0xf] %v913_v41  ;;  %915 = vst.msk [vmem:[#allocation2 + $0x7c] sm:$0xf] %vm384_vm0, %v691_v47  ;;  %v651_v6 = vshrl.u32 %v3764_v56, 16  ;;  %v654_v7 = vshll.u32 %v3764_v56, 16  ;;  %v554_v8 = vor.u32 %v552_v60, %v551_v4 }
  0x32   : > { %v4353_v46 = vld [vmem:[#allocation2 + $0x70] sm:$0xf]  ;;  %v543_v58 = vrot.slane %v541_v40, 7  ;;  %v3823_v37 = vunpack.c.l.bf16 %v3878_v16  ;;  %v3824_v40 = vunpack.c.h.bf16 %v3878_v16  ;;  %s4164_s11 = smov 64   ;;  %vm2660_vm10 = vcmask 64512  }
  0x33   : > { %v1041_v45 = vld [vmem:[#allocation2 + $0x6c] sm:$0xf]  ;;  %v3763_v54 = vpack.c.bf16 %v350_v42, %v350_v42  ;;  %v653_v15 = vrot.slane %v651_v6, 7  ;;  %v980_v29 = vld [vmem:[#allocation2 + $0x70] sm:$0xf]  ;;  %vm2693_vm11 = vcmask 130048  }
  0x34   : > { %v4360_v50 = vcombine.low %v1041_v45, %v4353_v46  ;;  %v1025_v52 = vld [vmem:[#allocation2 + $0xc] sm:$0xf]  ;;  %v4362_v53 = vld [vmem:[#allocation2 + $0x10] sm:$0xf]  ;;  %v546_v0 = vor.u32 %v544_v48, %v543_v58  ;;  %v547_v2 = vrot.slane %v543_v58, 4  ;;  %v556_v45 = vrot.slane %v551_v4, 4 }
  0x35   : > { %v4366_v57 = vcombine.low %v1025_v52, %v4362_v53  ;;  %v643_v62 = vshrl.u32 %v3763_v54, 16  ;;  %v646_v63 = vshll.u32 %v3763_v54, 16  ;;  %v1073_v18 = vld [vmem:[#allocation2 + $0xc] sm:$0xe]  ;;  %v964_v21 = vld [vmem:[#allocation2 + $0x10] sm:$0xf]  ;;  %v656_v23 = vor.u32 %v654_v7, %v653_v15 }
  0x36   : > { %1732 = vrot.lane.b32.xlu1 %v4360_v50, %s4159_s30  ;;  %v857_v9 = vsel %vm4313_vm8, %v546_v0, %v856_v61  ;;  %v555_v20 = vsel %vm4304_vm7, %v547_v2, %v554_v8  ;;  %v658_v24 = vrot.slane %v653_v15, 4  ;;  %v1010_v25 = vld [vmem:[#allocation2 + $0xc] sm:$0xe]  ;;  %v1895_v41 = vshll.u32 %v4360_v50, 16 }
  0x37   : > { %1716 = vrot.lane.b32.xlu0 %v4366_v57, %s4159_s30  ;;  %v645_v5 = vrot.slane %v643_v62, 7  ;;  %858 = vst [vmem:[#allocation2 + $0x18] sm:$0xf] %v857_v9  ;;  %859 = vst.msk [vmem:[#allocation2 + $0x1c] sm:$0xf] %vm384_vm0, %v555_v20  ;;  %v3577_v39 = vcombine.low %v1010_v25, %v964_v21  ;;  %v3624_v42 = vcombine.low %v1073_v18, %v4362_v53  ;;  %v692_v52 = vrot.slane %v4340_v27, 4 }
  0x38   : > { %v1043_v12 = vld [vmem:[#allocation2 + $0x78] sm:$0xf]  ;;  %v4375_v19 = vld [vmem:[#allocation2 + $0x7c] sm:$0xf]  ;;  %v1018_v30 = vld [vmem:[#allocation2 + $0x6c] sm:$0xe]  ;;  %v903_v34 = vsel %vm4336_vm9, %v658_v24, %v902_v11  ;;  %v861_v53 = vsel %vm4336_vm9, %v556_v45, %v860_v31  ;;  %v301_v60 = vmul.f32 %v3823_v37, %v4267_v1  ;;  %v302_v0 = vmul.f32 %v3824_v40, %v4267_v1 }
  0x39   : > { %v648_v13 = vor.u32 %v646_v63, %v645_v5  ;;  %v649_v14 = vrot.slane %v645_v5, 4  ;;  %v4380_v22 = vcombine.low %v1043_v12, %v4375_v19  ;;  %v1081_v32 = vld [vmem:[#allocation2 + $0x6c] sm:$0xe]  ;;  %904 = vst [vmem:[#allocation2 + $0x68] sm:$0x1] %v903_v34  ;;  %v3585_v44 = vcombine.low %v1018_v30, %v980_v29 }
  0x3a   : > { %v963_v35 = vld [vmem:[#allocation2 + $0xc] sm:$0xf]  ;;  %v4392_v38 = vld [vmem:[#allocation2 + $0x14] ss:$0 sps:$4 sm:$0x11]   ;;  %v3632_v47 = vcombine.low %v1081_v32, %v4353_v46  ;;  %v1799_v54 = vshll.u32 %v4366_v57, 16  ;;  %v917_v27 = vsel %vm4336_vm9, %v692_v52, %v916_v36  ;;  %v340_v20 = vadd.f32 %v4280_v3, %v301_v60 }
  0x3b   : > { %v899_v28 = vsel %vm4313_vm8, %v648_v13, %v898_v10  ;;  %1734 = vrot.lane.b32.xlu1 %v4380_v22, %s4159_s30  ;;  %v657_v33 = vsel %vm4304_vm7, %v649_v14, %v656_v23  ;;  %v4396_v43 = vld [vmem:[#allocation2 + $0x74] ss:$0 sps:$4 sm:$0x11]   ;;  %v4401_v56 = vld [vmem:[#allocation2 + $0x78] sm:$0xe]  ;;  %v4403_v58 = vcombine.low %v963_v35, %v964_v21  ;;  %v1559_v63 = vrot.slane %v3577_v39, 1 }
  0x3c   : > { %900 = vst [vmem:[#allocation2 + $0x60] sm:$0xf] %v899_v28  ;;  %901 = vst.msk [vmem:[#allocation2 + $0x64] sm:$0xf] %vm384_vm0, %v657_v33  ;;  %v979_v59 = vld [vmem:[#allocation2 + $0x6c] sm:$0xf]  ;;  %v3633_v8 = vcombine.low %v4401_v56, %v4375_v19  ;;  %v341_v25 = vadd.f32 %v4280_v3, %v302_v0  ;;  %v3753_v45 = vpack.c.bf16 %v340_v20, %v340_v20 }
  0x3d   : > { %v4017_v49 = vld [vmem:[#allocation2 + $0x14] ss:$0 sps:$4 sm:$0x11]   ;;  %v1560_v46 = vrot.slane %v4392_v38, 1  ;;  %862 = vst [vmem:[#allocation2 + $0x20] sm:$0x1] %v861_v53  ;;  %v4418_v11 = vcombine.low %v979_v59, %v980_v29 }
  0x3e   : > { %v1027_v48 = vld [vmem:[#allocation2 + $0x18] sm:$0xf]  ;;  %v1028_v61 = vld [vmem:[#allocation2 + $0x1c] sm:$0xf]  ;;  %v1583_v4 = vrot.slane %v3585_v44, 1  ;;  %v2068_v5 = vrot.slane %v3624_v42, 1 }
  0x3f   : > { %v1074_v62 = vld [vmem:[#allocation2 + $0x18] sm:$0xe]  ;;  %v4412_v2 = vcombine.low %v1027_v48, %v1028_v61  ;;  %v4414_v6 = vld [vmem:[#allocation2 + $0x74] ss:$0 sps:$4 sm:$0x11]   ;;  %v1804_v7 = vshll.u32 %v4017_v49, 16  ;;  %v1561_v24 = vsel %vm1555_vm6, %v1559_v63, %v1560_v46  ;;  %v3754_v63 = vpack.c.bf16 %v341_v25, %v341_v25 }
  0x40   : > { %918 = vst [vmem:[#allocation2 + $0x80] sm:$0x1] %v917_v27  ;;  %v1584_v12 = vrot.slane %v4396_v43, 1  ;;  %v2069_v13 = vrot.slane %v4017_v49, 1  ;;  %v3625_v14 = vcombine.low %v1074_v62, %v1028_v61  ;;  %v1797_v16 = vshrl.u32 %v4366_v57, 16  ;;  %v4432_v32 = vld [vmem:[%s4274_s25 + $0x50] sm:$0xff]  }
  0x41   : > { %1718 = vrot.lane.b32.xlu0 %v4412_v2, %s4159_s30  ;;  %v1801_v18 = vrot.slane %v1799_v54, 1  ;;  %v4008_v21 = vld [vmem:[#allocation2 + $0x68] ss:$0 sps:$4 sm:$0x11]   ;;  %v2092_v28 = vrot.slane %v3632_v47, 1  ;;  %v2093_v29 = vrot.slane %v4414_v6, 1  ;;  %v3855_v59 = vunpack.c.l.bf16 %v4432_v32 }
  0x42   : > { %v1806_v30 = vrot.slane %v1804_v7, 1  ;;  %v1298_v31 = vshll.u32 %v4403_v58, 16  ;;  %v1581_v33 = vrot.slane %v4008_v21, 1  ;;  %v1303_v35 = vshll.u32 %v4392_v38, 16  ;;  %v1090_v36 = vld [vmem:[#allocation2 + $0x18] sm:$0xf] }
  0x43   : > { %v1017_v9 = vld [vmem:[#allocation2 + $0x60] sm:$0xe]  ;;  %v978_v15 = vld [vmem:[#allocation2 + $0x64] sm:$0xf]  ;;  %v4436_v37 = vld [vmem:[#allocation2 + $0x1c] sm:$0xf]  ;;  %v2070_v39 = vsel %vm1555_vm6, %v2068_v5, %v2069_v13  ;;  %v1802_v44 = vor.u32 %v1801_v18, %v1797_v16  ;;  %v1585_v38 = vsel %vm1555_vm6, %v1583_v4, %v1584_v12  ;;  %v2094_v53 = vsel %vm1555_vm6, %v2092_v28, %v2093_v29 }
  0x44   : > { %v977_v10 = vld [vmem:[#allocation2 + $0x60] sm:$0xf]  ;;  %v3584_v19 = vcombine.low %v1017_v9, %v978_v15  ;;  %v2071_v42 = vrot.slane %v3625_v14, 1  ;;  %v1387_v52 = vshll.u32 %v4008_v21, 16  ;;  %v1811_v54 = vshll.u32 %v4412_v2, 16  ;;  %v4084_v29 = vld [vmem:[%s5740_s1 + $0x8] sm:$0xff]  }
  0x45   : > { %v4425_v23 = vcombine.low %v977_v10, %v978_v15  ;;  %1606 = vrot.lane.b32.xlu0 %v1561_v24, %s4157_s28  ;;  %v4019_v40 = vld [vmem:[#allocation2 + $0x20] ss:$0 sps:$4 sm:$0x11]   ;;  %v2095_v61 = vrot.slane %v3633_v8, 1  ;;  %v1296_v62 = vshrl.u32 %v4403_v58, 16  ;;  %v4452_v46 = vsel %vm1282_vm2, %v1802_v44, %v1806_v30 }
  0x46   : > { %v1580_v57 = vrot.slane %v3584_v19, 1  ;;  %v2072_v56 = vrot.slane %v4019_v40, 1  ;;  %v1300_v27 = vrot.slane %v1298_v31, 1  ;;  %v4454_v0 = vrot.slane %v1303_v35, 1  ;;  %v4081_v5 = vld [vmem:[%s5740_s1] sm:$0xff]  }
  0x47   : > { %v1382_v34 = vshll.u32 %v4425_v23, 16  ;;  %v1380_v48 = vshrl.u32 %v4425_v23, 16  ;;  %v4447_v60 = vld [vmem:[#allocation2 + $0x80] ss:$0 sps:$4 sm:$0x11]   ;;  %v4457_v4 = vcombine.low %v1090_v36, %v4436_v37  ;;  %v1389_v9 = vrot.slane %v1387_v52, 1  ;;  %3916 = vmatprep.subr.bf16.mxu0 %v4081_v5  ;;  %3964 = vmatprep.subr.bf16.mxu1 %v4081_v5 }
  0x48   : > { %v1582_v47 = vsel %vm1555_vm6, %v1580_v57, %v1581_v33  ;;  %v2073_v7 = vsel %vm1555_vm6, %v2071_v42, %v2072_v56  ;;  %v1394_v10 = vshll.u32 %v4418_v11, 16  ;;  %v1809_v12 = vshrl.u32 %v4412_v2, 16  ;;  %3917 = vmatpush3.bf16.msra.mxu0 %v4081_v5  ;;  %v863_v28 = vld [vmem:[#allocation2 + $0x24] sm:$0xf]  ;;  %3972 = vmatpush3.bf16.msra.mxu1 %v4081_v5  ;;  %v4485_v52 = vld [vmem:[#allocation2 + $0x7c] sm:$0xf] }
  0x49   : > { %v1384_v49 = vrot.slane %v1382_v34, 1  ;;  %1620 = vrot.lane.b32.xlu1 %v1582_v47, %s4157_s28  ;;  %2116 = vrot.lane.b32.xlu0 %v2070_v39, %s4160_s6  ;;  %v1813_v13 = vrot.slane %v1811_v54, 1  ;;  %v1816_v14 = vshll.u32 %v4019_v40, 16  ;;  %v558_v15 = vshrl.u32 %v3753_v45, 16  ;;  %v867_v47 = vld [vmem:[#allocation2 + $0x2c] sm:$0x1] }
  0x4a   : > { %v2096_v16 = vrot.slane %v4447_v60, 1  ;;  %v561_v18 = vshll.u32 %v3753_v45, 16  ;;  %v566_v20 = vshrl.u32 %v3754_v63, 16  ;;  %v569_v21 = vshll.u32 %v3754_v63, 16  ;;  %3918 = vmatprep.subr.bf16.mxu0 %v4084_v29  ;;  %v1106_v45 = vld [vmem:[#allocation2 + $0x78] sm:$0xf]  ;;  %3965 = vmatprep.subr.bf16.mxu1 %v4084_v29 }
  0x4b   : > { %v1385_v8 = vor.u32 %v1384_v49, %v1380_v48  ;;  %v1301_v19 = vor.u32 %v1300_v27, %v1296_v62  ;;  %v1392_v24 = vshrl.u32 %v4418_v11, 16  ;;  %v560_v25 = vrot.slane %v558_v15, 7  ;;  %v4502_v27 = vld [vmem:[#allocation2 + $0x20] ss:$0 sps:$4 sm:$0x11]  }
  0x4c   : > { %v3856_v2 = vunpack.c.h.bf16 %v4432_v32  ;;  %v1396_v31 = vrot.slane %v1394_v10, 1  ;;  %v1399_v57 = vshll.u32 %v4396_v43, 16  ;;  %v568_v33 = vrot.slane %v566_v20, 7  ;;  %3919 = vmatpush3.bf16.msra.mxu0 %v4084_v29  ;;  %3973 = vmatpush3.bf16.msra.mxu1 %v4084_v29 }
  0x4d   : > { %1622 = vrot.lane.b32.xlu1 %v1585_v38, %s4157_s28  ;;  %2118 = vrot.lane.b32.xlu0 %v2073_v7, %s4160_s6  ;;  %v1390_v30 = vsel %vm1282_vm2, %v1385_v8, %v1389_v9  ;;  %v1814_v34 = vor.u32 %v1813_v13, %v1809_v12  ;;  %v563_v35 = vor.u32 %v561_v18, %v560_v25  ;;  %v564_v36 = vrot.slane %v560_v25, 4  ;;  %v4088_v38 = vld [vmem:[%s5740_s1 + $0x10] sm:$0xff]   ;;  %v1138_v9 = vld [vmem:[#allocation2 + $0x18] sm:$0xe] }
  0x4e   : > { %v317_v39 = vmul.f32 %v3855_v59, %v4267_v1  ;;  %v2097_v32 = vsel %vm1555_vm6, %v2095_v61, %v2096_v16  ;;  %v1818_v40 = vrot.slane %v1816_v14, 1  ;;  %v1893_v42 = vshrl.u32 %v4360_v50, 16  ;;  %3920 = vmatprep.subr.bf16.mxu0 %v4088_v38  ;;  %3966 = vmatprep.subr.bf16.mxu1 %v4088_v38  ;;  %v4092_v13 = vld [vmem:[%s5740_s1 + $0x18] sm:$0xff]  }
  0x4f   : > { %v571_v44 = vor.u32 %v569_v21, %v568_v33  ;;  %v1897_v43 = vrot.slane %v1895_v41, 1  ;;  %v1900_v48 = vshll.u32 %v4414_v6, 16  ;;  %v864_v49 = vsel %vm4313_vm8, %v563_v35, %v863_v28  ;;  %v965_v18 = vld [vmem:[#allocation2 + $0x18] sm:$0xf] }
  0x50   : > { %v573_v54 = vrot.slane %v568_v33, 4  ;;  %v1397_v56 = vor.u32 %v1396_v31, %v1392_v24  ;;  %v1401_v59 = vrot.slane %v1399_v57, 1  ;;  %865 = vst [vmem:[#allocation2 + $0x24] sm:$0xf] %v864_v49  ;;  %v318_v50 = vmul.f32 %v3856_v2, %v4267_v1  ;;  %3921 = vmatpush3.bf16.msra.mxu0 %v4088_v38  ;;  %3974 = vmatpush3.bf16.msra.mxu1 %v4088_v38  ;;  %v4537_v49 = vld [vmem:[#allocation2 + $0x78] sm:$0xe] }
  0x51   : > { %2132 = vrot.lane.b32.xlu1 %v2094_v53, %s4160_s6  ;;  %1491 = vrot.lane.b32.xlu0 %v1390_v30, %s4158_s29  ;;  %v572_v53 = vsel %vm4304_vm7, %v564_v36, %v571_v44  ;;  %v1907_v41 = vshll.u32 %v4380_v22, 16  ;;  %v356_v61 = vadd.f32 %v4280_v3, %v317_v39  ;;  %v1306_v62 = vsel %vm1282_vm2, %v1301_v19, %v4454_v0  ;;  %v4524_v57 = vld [vmem:[#allocation2 + $0x80] ss:$0 sps:$4 sm:$0x11]  }
  0x52   : > { %866 = vst.msk [vmem:[#allocation2 + $0x28] sm:$0xf] %vm384_vm0, %v572_v53  ;;  %v868_v6 = vsel %vm4336_vm9, %v573_v54, %v867_v47  ;;  %v2311_v63 = vshll.u32 %v4457_v4, 16  ;;  %v4505_v5 = vcombine.low %v1106_v45, %v4485_v52  ;;  %v357_v7 = vadd.f32 %v4280_v3, %v318_v50  ;;  %3922 = vmatprep.subr.bf16.mxu0 %v4092_v13  ;;  %v4539_v38 = vld [vmem:[#allocation2 + $0x20] ss:$0 sps:$4 sm:$0x11]  }
  0x53   : > { %869 = vst [vmem:[#allocation2 + $0x2c] sm:$0x1] %v868_v6  ;;  %v1819_v8 = vsel %vm1282_vm2, %v1814_v34, %v1818_v40  ;;  %v1898_v0 = vor.u32 %v1897_v43, %v1893_v42  ;;  %v1902_v10 = vrot.slane %v1900_v48, 1  ;;  %v3769_v12 = vpack.c.bf16 %v356_v61, %v356_v61  ;;  %3967 = vmatprep.subr.bf16.mxu1 %v4092_v13  ;;  %v923_v34 = vld [vmem:[#allocation2 + $0x8c] sm:$0x1] }
  0x54   : > { %v1402_v14 = vsel %vm1282_vm2, %v1397_v56, %v1401_v59  ;;  %v1905_v3 = vshrl.u32 %v4380_v22, 16  ;;  %v1912_v15 = vshll.u32 %v4447_v60, 16  ;;  %v3770_v16 = vpack.c.bf16 %v357_v7, %v357_v7  ;;  %v919_v22 = vld [vmem:[#allocation2 + $0x84] sm:$0xf]  ;;  %3923 = vmatpush3.bf16.msra.mxu0 %v4092_v13  ;;  %3975 = vmatpush3.bf16.msra.mxu1 %v4092_v13  ;;  %v4096_v61 = vld [vmem:[%s5740_s1 + $0x28] sm:$0xff]  }
  0x55   : > { %2134 = vrot.lane.b32.xlu1 %v2097_v32, %s4160_s6  ;;  %1988 = vrot.lane.b32.xlu0 %v4452_v46, %s4161_s13  ;;  %v4517_v46 = vld [vmem:[#allocation2 + $0x1c] sm:$0xf]  ;;  %v1909_v20 = vrot.slane %v1907_v41, 1  ;;  %v2309_v21 = vshrl.u32 %v4457_v4, 16  ;;  %v694_v19 = vshrl.u32 %v3769_v12, 16  ;;  %v697_v24 = vshll.u32 %v3769_v12, 16 }
  0x56   : > { %v2313_v25 = vrot.slane %v2311_v63, 1  ;;  %v2316_v28 = vshll.u32 %v4502_v27, 16  ;;  %v702_v2 = vshrl.u32 %v3770_v16, 16  ;;  %v705_v29 = vshll.u32 %v3770_v16, 16  ;;  %v4094_v59 = vld [vmem:[%s5740_s1 + $0x20] sm:$0xff]  }
  0x57   : > { %v3672_v60 = vcombine.low %v1138_v9, %v4436_v37  ;;  %v1092_v30 = vld [vmem:[#allocation2 + $0x24] sm:$0xf]  ;;  %v696_v31 = vrot.slane %v694_v19, 7  ;;  %v4527_v33 = vcombine.low %v965_v18, %v4517_v46  ;;  %v1903_v35 = vsel %vm1282_vm2, %v1898_v0, %v1902_v10  ;;  %v4557_v9 = vld [vmem:[#allocation2 + $0x7c] sm:$0xf]  ;;  %3924 = vmatprep.subr.bf16.mxu0 %v4094_v59  ;;  %3968 = vmatprep.subr.bf16.mxu1 %v4094_v59 }
  0x58   : > { %v1914_v39 = vrot.slane %v1912_v15, 1  ;;  %v2407_v32 = vshll.u32 %v4505_v5, 16  ;;  %v704_v40 = vrot.slane %v702_v2, 7  ;;  %v1910_v42 = vor.u32 %v1909_v20, %v1905_v3  ;;  %v1139_v0 = vld [vmem:[#allocation2 + $0x24] sm:$0xe]  ;;  %3925 = vmatpush3.bf16.msra.mxu0 %v4094_v59  ;;  %3976 = vmatpush3.bf16.msra.mxu1 %v4094_v59 }
  0x59   : > { %1477 = vrot.lane.b32.xlu1 %v1306_v62, %s4158_s29  ;;  %1990 = vrot.lane.b32.xlu0 %v1819_v8, %s4161_s13  ;;  %v4530_v36 = vld [vmem:[#allocation2 + $0x28] sm:$0xf]  ;;  %v699_v45 = vor.u32 %v697_v24, %v696_v31  ;;  %v700_v47 = vrot.slane %v696_v31, 4  ;;  %v2314_v43 = vor.u32 %v2313_v25, %v2309_v21  ;;  %v2318_v48 = vrot.slane %v2316_v28, 1  ;;  %v981_v8 = vld [vmem:[#allocation2 + $0x78] sm:$0xf] }
  0x5a   : > { %v3641_v37 = vcombine.low %v1092_v30, %v4530_v36  ;;  %v4535_v44 = vld [vmem:[#allocation2 + $0x2c] ss:$0 sps:$4 sm:$0x11]   ;;  %v707_v54 = vor.u32 %v705_v29, %v704_v40  ;;  %v709_v56 = vrot.slane %v704_v40, 4  ;;  %v2580_v41 = vrot.slane %v3672_v60, 1  ;;  %3926 = vmatprep.subr.bf16.mxu0 %v4096_v61  ;;  %3969 = vmatprep.subr.bf16.mxu1 %v4096_v61 }
  0x5b   : > { %v920_v50 = vsel %vm4313_vm8, %v699_v45, %v919_v22  ;;  %v1310_v6 = vshll.u32 %v4527_v33, 16  ;;  %v2328_v63 = vshll.u32 %v4535_v44, 16  ;;  %v2405_v12 = vshrl.u32 %v4505_v5, 16  ;;  %v4563_v3 = vld [vmem:[#allocation2 + $0x80] ss:$0 sps:$4 sm:$0x11]  }
  0x5c   : > { %v2323_v53 = vshll.u32 %v3641_v37, 16  ;;  %v2321_v62 = vshrl.u32 %v3641_v37, 16  ;;  %v708_v7 = vsel %vm4304_vm7, %v700_v47, %v707_v54  ;;  %921 = vst [vmem:[#allocation2 + $0x84] sm:$0xf] %v920_v50  ;;  %v2409_v13 = vrot.slane %v2407_v32, 1  ;;  %3927 = vmatpush3.bf16.msra.mxu0 %v4096_v61  ;;  %3977 = vmatpush3.bf16.msra.mxu1 %v4096_v61 }
  0x5d   : > { %1493 = vrot.lane.b32.xlu1 %v1402_v14, %s4158_s29  ;;  %2228 = vrot.lane.b32.xlu0 %v4457_v4, %s4162_s21  ;;  %v924_v4 = vsel %vm4336_vm9, %v709_v56, %v923_v34  ;;  %922 = vst.msk [vmem:[#allocation2 + $0x88] sm:$0xf] %vm384_vm0, %v708_v7  ;;  %v2412_v14 = vshll.u32 %v4524_v57, 16  ;;  %v1915_v15 = vsel %vm1282_vm2, %v1910_v42, %v1914_v39  ;;  %v2581_v16 = vrot.slane %v4502_v27, 1  ;;  %v967_v20 = vld [vmem:[#allocation2 + $0x24] sm:$0xf] }
  0x5e   : > { %v2325_v10 = vrot.slane %v2323_v53, 1  ;;  %925 = vst [vmem:[#allocation2 + $0x8c] sm:$0x1] %v924_v4  ;;  %v1315_v18 = vshll.u32 %v4539_v38, 16  ;;  %v4568_v21 = vld [vmem:[#allocation2 + $0x28] sm:$0xf]  ;;  %v3680_v19 = vcombine.low %v4537_v49, %v4485_v52  ;;  %v3673_v28 = vcombine.low %v1139_v0, %v4530_v36 }
  0x5f   : > { %v1308_v24 = vshrl.u32 %v4527_v33, 16  ;;  %v1312_v25 = vrot.slane %v1310_v6, 1  ;;  %v2319_v27 = vsel %vm1282_vm2, %v2314_v43, %v2318_v48  ;;  %v2330_v29 = vrot.slane %v2328_v63, 1  ;;  %v3879_v52 = vld [vmem:[%s4274_s25 + $0x18] sm:$0xff]   ;;  %v4099_v34 = vld [vmem:[%s5740_s1 + $0x30] sm:$0xff]  }
  0x60   : > { %v2326_v2 = vor.u32 %v2325_v10, %v2321_v62  ;;  %v2410_v22 = vor.u32 %v2409_v13, %v2405_v12  ;;  %v2414_v60 = vrot.slane %v2412_v14, 1  ;;  %v4578_v30 = vcombine.low %v967_v20, %v4568_v21  ;;  %v4588_v39 = vld [vmem:[#allocation2 + $0x2c] ss:$0 sps:$4 sm:$0x11]   ;;  %3928 = vmatprep.subr.bf16.mxu0 %v4099_v34  ;;  %3970 = vmatprep.subr.bf16.mxu1 %v4099_v34  ;;  %v1011_v62 = vld [vmem:[#allocation2 + $0x18] sm:$0xe] }
  0x61   : > { %2004 = vrot.lane.b32.xlu1 %v1903_v35, %s4161_s13  ;;  %2230 = vrot.lane.b32.xlu0 %v3641_v37, %s4162_s21  ;;  %v4581_v31 = vcombine.low %v981_v8, %v4557_v9  ;;  %v2582_v35 = vsel %vm1555_vm6, %v2580_v41, %v2581_v16  ;;  %v1317_v36 = vrot.slane %v1315_v18, 1  ;;  %v1313_v40 = vor.u32 %v1312_v25, %v1308_v24  ;;  %v4102_v41 = vld [vmem:[%s5740_s1 + $0x38] sm:$0xff]   ;;  %v1012_v10 = vld [vmem:[#allocation2 + $0x24] sm:$0xe] }
  0x62   : > { %v2604_v37 = vrot.slane %v3680_v19, 1  ;;  %v2605_v42 = vrot.slane %v4524_v57, 1  ;;  %v1411_v45 = vshll.u32 %v4563_v3, 16  ;;  %v2331_v47 = vsel %vm1282_vm2, %v2326_v2, %v2330_v29  ;;  %3929 = vmatpush3.bf16.msra.mxu0 %v4099_v34  ;;  %3978 = vmatpush3.bf16.msra.mxu1 %v4099_v34  ;;  %v4627_v19 = vld [vmem:[%s5743_s4] ss:$0 sm:$0xff] }
  0x63   : > { %v1108_v32 = vld [vmem:[#allocation2 + $0x84] sm:$0xf]  ;;  %v2583_v48 = vrot.slane %v3673_v28, 1  ;;  %v3827_v49 = vunpack.c.l.bf16 %v3879_v52  ;;  %v3828_v54 = vunpack.c.h.bf16 %v3879_v52  ;;  %v2415_v59 = vsel %vm1282_vm2, %v2410_v22, %v2414_v60  ;;  %3930 = vmatprep.subr.bf16.mxu0 %v4102_v41  ;;  %3971 = vmatprep.subr.bf16.mxu1 %v4102_v41 }
  0x64   : > { %v4594_v43 = vld [vmem:[#allocation2 + $0x88] sm:$0xf]  ;;  %v1322_v57 = vshll.u32 %v4578_v30, 16  ;;  %v1406_v50 = vshll.u32 %v4581_v31, 16  ;;  %v2584_v6 = vrot.slane %v4535_v44, 1  ;;  %v1327_v61 = vshll.u32 %v4588_v39, 16 }
  0x65   : > { %2006 = vrot.lane.b32.xlu1 %v1915_v15, %s4161_s13  ;;  %2500 = vrot.lane.b32.xlu0 %v2319_v27, %s4163_s27  ;;  %v3649_v56 = vcombine.low %v1108_v32, %v4594_v43  ;;  %v4600_v53 = vld [vmem:[#allocation2 + $0x8c] ss:$0 sps:$4 sm:$0x11]   ;;  %v304_v63 = vmul.f32 %v3828_v54, %v4267_v1  ;;  %v1404_v0 = vshrl.u32 %v4581_v31, 16  ;;  %v1318_v44 = vsel %vm1282_vm2, %v1313_v40, %v1317_v36  ;;  %v983_v14 = vld [vmem:[#allocation2 + $0x84] sm:$0xf] }
  0x66   : > { %v2424_v8 = vshll.u32 %v4600_v53, 16  ;;  %v4616_v12 = vsel %vm1555_vm6, %v2604_v37, %v2605_v42  ;;  %v1320_v13 = vshrl.u32 %v4578_v30, 16  ;;  %v4621_v15 = vld [vmem:[#allocation2 + $0x88] sm:$0xf]  ;;  %v1324_v18 = vrot.slane %v1322_v57, 1  ;;  %3931 = vmatpush3.bf16.msra.mxu0 %v4102_v41  ;;  %3979 = vmatpush3.bf16.msra.mxu1 %v4102_v41 }
  0x67   : > { %v2419_v7 = vshll.u32 %v3649_v56, 16  ;;  %v2417_v4 = vshrl.u32 %v3649_v56, 16  ;;  %v1408_v20 = vrot.slane %v1406_v50, 1  ;;  %v2585_v28 = vsel %vm1555_vm6, %v2583_v48, %v2584_v6  ;;  %v1029_v52 = vld [vmem:[#allocation2 + $0x24] sm:$0xf]  ;;  %v3887_v48 = vld [vmem:[%s4274_s25 + $0x58] sm:$0xff]  }
  0x68   : > { %v2426_v25 = vrot.slane %v2424_v8, 1  ;;  %v3578_v27 = vcombine.low %v1011_v62, %v4517_v46  ;;  %v343_v2 = vadd.f32 %v4627_v19, %v304_v63  ;;  %v3579_v22 = vcombine.low %v1012_v10, %v4568_v21  ;;  %v4640_v40 = vld [vmem:[#allocation2 + $0x28] sm:$0xf]  ;;  %v870_v63 = vld [vmem:[#allocation2 + $0x30] sm:$0xf] }
  0x69   : > { %2244 = vrot.lane.b32.xlu1 %v4505_v5, %s4162_s21  ;;  %v303_v5 = vmul.f32 %v3827_v49, %v4267_v1  ;;  %2502 = vrot.lane.b32.xlu0 %v2331_v47, %s4163_s27  ;;  %v4619_v1 = vrot.slane %v1411_v45, 1  ;;  %v2421_v16 = vrot.slane %v2419_v7, 1  ;;  %v4636_v60 = vcombine.low %v983_v14, %v4621_v15  ;;  %v1019_v45 = vld [vmem:[#allocation2 + $0x78] sm:$0xe]  ;;  %v1147_v49 = vld [vmem:[#allocation2 + $0x84] sm:$0xe] }
  0x6a   : > { %v1329_v36 = vrot.slane %v1327_v61, 1  ;;  %v1563_v32 = vrot.slane %v4539_v38, 1  ;;  %v1566_v46 = vrot.slane %v4588_v39, 1  ;;  %v3756_v37 = vpack.c.bf16 %v343_v2, %v343_v2  ;;  %v4646_v39 = vld [vmem:[#allocation2 + $0x8c] ss:$0 sps:$4 sm:$0x11]  }
  0x6b   : > { %v342_v24 = vadd.f32 %v4627_v19, %v303_v5  ;;  %v2422_v29 = vor.u32 %v2421_v16, %v2417_v4  ;;  %v1409_v42 = vor.u32 %v1408_v20, %v1404_v0  ;;  %v1565_v38 = vrot.slane %v3579_v22, 1 }
  0x6c   : > { %v583_v57 = vshrl.u32 %v3756_v37, 16  ;;  %v586_v50 = vshll.u32 %v3756_v37, 16  ;;  %v1418_v41 = vshll.u32 %v4636_v60, 16  ;;  %v3586_v61 = vcombine.low %v1019_v45, %v4557_v9  ;;  %v4660_v9 = vld [vmem:[%s5742_s3] ss:$0 sm:$0xff] }
  0x6d   : > { %2246 = vrot.lane.b32.xlu1 %v3649_v56, %s4162_s21  ;;  %2628 = vrot.lane.b32.xlu0 %v2582_v35, %s4164_s11  ;;  %v3755_v34 = vpack.c.bf16 %v342_v24, %v342_v24  ;;  %v1325_v35 = vor.u32 %v1324_v18, %v1320_v13  ;;  %v2427_v54 = vsel %vm1282_vm2, %v2422_v29, %v2426_v25  ;;  %v1562_v56 = vrot.slane %v3578_v27, 1 }
  0x6e   : > { %v1587_v62 = vrot.slane %v4563_v3, 1  ;;  %v585_v5 = vrot.slane %v583_v57, 7  ;;  %v3859_v7 = vunpack.c.l.bf16 %v3887_v48  ;;  %v3681_v4 = vcombine.low %v1147_v49, %v4594_v43  ;;  %v3888_v57 = vld [vmem:[%s4274_s25 + $0x60] sm:$0xff]  }
  0x6f   : > { %v575_v47 = vshrl.u32 %v3755_v34, 16  ;;  %v578_v21 = vshll.u32 %v3755_v34, 16  ;;  %v1330_v8 = vsel %vm1282_vm2, %v1325_v35, %v1329_v36  ;;  %v3860_v16 = vunpack.c.h.bf16 %v3887_v48  ;;  %v1075_v3 = vld [vmem:[#allocation2 + $0x24] sm:$0xe] }
  0x70   : > { %v588_v13 = vor.u32 %v586_v50, %v585_v5  ;;  %v590_v14 = vrot.slane %v585_v5, 4  ;;  %v319_v18 = vmul.f32 %v4660_v9, %v3859_v7  ;;  %v1416_v43 = vshrl.u32 %v4636_v60, 16 }
  0x71   : > { %2516 = vrot.lane.b32.xlu1 %v2415_v59, %s4163_s27  ;;  %1479 = vrot.lane.b32.xlu0 %v1318_v44, %s4158_s29  ;;  %v4650_v59 = vcombine.low %v1029_v52, %v4640_v40  ;;  %v577_v6 = vrot.slane %v575_v47, 7  ;;  %v874_v44 = vld [vmem:[#allocation2 + $0x38] sm:$0x1]  ;;  %v1420_v20 = vrot.slane %v1418_v41, 1  ;;  %v1423_v24 = vshll.u32 %v4646_v39, 16 }
  0x72   : > { %v875_v2 = vsel %vm4336_vm9, %v590_v14, %v874_v44  ;;  %v320_v29 = vmul.f32 %v4660_v9, %v3860_v16  ;;  %v358_v22 = vadd.f32 %v4627_v19, %v319_v18  ;;  %v1414_v52 = vsel %vm1282_vm2, %v1409_v42, %v4619_v1  ;;  %v1020_v47 = vld [vmem:[#allocation2 + $0x84] sm:$0xe]  ;;  %v4697_v44 = vld [vmem:[#allocation2 + $0x88] sm:$0xf] }
  0x73   : > { %v580_v0 = vor.u32 %v578_v21, %v577_v6  ;;  %v581_v10 = vrot.slane %v577_v6, 4  ;;  %v1564_v34 = vsel %vm1555_vm6, %v1562_v56, %v1563_v32  ;;  %v2607_v36 = vrot.slane %v3681_v4, 1  ;;  %876 = vst [vmem:[#allocation2 + $0x38] sm:$0x1] %v875_v2  ;;  %v926_v4 = vld [vmem:[#allocation2 + $0x90] sm:$0xf] }
  0x74   : > { %v2608_v37 = vrot.slane %v4600_v53, 1  ;;  %v1567_v35 = vsel %vm1555_vm6, %v1565_v38, %v1566_v46  ;;  %v1823_v45 = vshll.u32 %v4650_v59, 16  ;;  %v359_v21 = vadd.f32 %v4627_v19, %v320_v29  ;;  %v4690_v38 = vld [vmem:[#allocation2 + $0x2c] ss:$0 sps:$4 sm:$0x11]  }
  0x75   : > { %2518 = vrot.lane.b32.xlu1 %v2427_v54, %s4163_s27  ;;  %2630 = vrot.lane.b32.xlu0 %v2585_v28, %s4164_s11  ;;  %v871_v25 = vsel %vm4313_vm8, %v580_v0, %v870_v63  ;;  %v589_v27 = vsel %vm4304_vm7, %v581_v10, %v588_v13  ;;  %v3880_v28 = vld [vmem:[%s4274_s25 + $0x20] sm:$0xff]   ;;  %v1421_v1 = vor.u32 %v1420_v20, %v1416_v43  ;;  %v1425_v42 = vrot.slane %v1423_v24, 1  ;;  %v930_v29 = vld [vmem:[#allocation2 + $0x98] sm:$0x1] }
  0x76   : > { %872 = vst [vmem:[#allocation2 + $0x30] sm:$0xf] %v871_v25  ;;  %873 = vst.msk [vmem:[#allocation2 + $0x34] sm:$0xf] %vm384_vm0, %v589_v27  ;;  %v3831_v32 = vunpack.c.l.bf16 %v3880_v28  ;;  %v3832_v48 = vunpack.c.h.bf16 %v3880_v28  ;;  %v1586_v49 = vrot.slane %v3586_v61, 1  ;;  %v3772_v53 = vpack.c.bf16 %v359_v21, %v359_v21 }
  0x77   : > { %v2609_v46 = vsel %vm1555_vm6, %v2607_v36, %v2608_v37  ;;  %v3587_v50 = vcombine.low %v1020_v47, %v4621_v15  ;;  %v1821_v5 = vshrl.u32 %v4650_v59, 16  ;;  %v1045_v10 = vld [vmem:[#allocation2 + $0x84] sm:$0xf]  ;;  %v3863_v14 = vunpack.c.l.bf16 %v3888_v57 }
  0x78   : > { %v305_v41 = vmul.f32 %v4660_v9, %v3831_v32  ;;  %v306_v6 = vmul.f32 %v4660_v9, %v3832_v48  ;;  %v719_v61 = vshrl.u32 %v3772_v53, 16  ;;  %v722_v7 = vshll.u32 %v3772_v53, 16 }
  0x79   : > { %2644 = vrot.lane.b32.xlu1 %v4616_v12, %s4164_s11  ;;  %v3771_v12 = vpack.c.bf16 %v358_v22, %v358_v22  ;;  %1481 = vrot.lane.b32.xlu0 %v1330_v8, %s4158_s29  ;;  %v1426_v8 = vsel %vm1282_vm2, %v1421_v1, %v1425_v42  ;;  %v3864_v24 = vunpack.c.h.bf16 %v3888_v57  ;;  %v1825_v27 = vrot.slane %v1823_v45, 1 }
  0x7a   : > { %v344_v15 = vadd.f32 %v4627_v19, %v305_v41  ;;  %v345_v13 = vadd.f32 %v4627_v19, %v306_v6  ;;  %v721_v20 = vrot.slane %v719_v61, 7  ;;  %v1828_v2 = vshll.u32 %v4690_v38, 16  ;;  %v4715_v45 = vld [vmem:[#allocation2 + $0x38] ss:$0 sps:$4 sm:$0x11]  }
  0x7b   : > { %v711_v54 = vshrl.u32 %v3771_v12, 16  ;;  %v714_v56 = vshll.u32 %v3771_v12, 16  ;;  %v1588_v37 = vsel %vm1555_vm6, %v1586_v49, %v1587_v62  ;;  %v4713_v47 = vcombine.low %v1045_v10, %v4697_v44 }
  0x7c   : > { %v3757_v22 = vpack.c.bf16 %v344_v15, %v344_v15  ;;  %v724_v28 = vor.u32 %v722_v7, %v721_v20  ;;  %v3758_v36 = vpack.c.bf16 %v345_v13, %v345_v13  ;;  %v321_v21 = vmul.f32 %v4660_v9, %v3863_v14  ;;  %v881_v15 = vld [vmem:[#allocation2 + $0x44] sm:$0x1] }
  0x7d   : > { %1495 = vrot.lane.b32.xlu1 %v1414_v52, %s4158_s29  ;;  %v713_v63 = vrot.slane %v711_v54, 7  ;;  %1608 = vrot.lane.b32.xlu0 %v1564_v34, %s4157_s28  ;;  %v1031_v0 = vld [vmem:[#allocation2 + $0x30] sm:$0xf]  ;;  %v4701_v16 = vld [vmem:[#allocation2 + $0x34] sm:$0xf]  ;;  %v726_v34 = vrot.slane %v721_v20, 4  ;;  %v1826_v48 = vor.u32 %v1825_v27, %v1821_v5 }
  0x7e   : > { %v3595_v25 = vcombine.low %v1031_v0, %v4701_v16  ;;  %v1589_v62 = vrot.slane %v3587_v50, 1  ;;  %v1590_v32 = vrot.slane %v4646_v39, 1  ;;  %v592_v49 = vshrl.u32 %v3757_v22, 16  ;;  %v877_v5 = vld [vmem:[#allocation2 + $0x3c] sm:$0xf] }
  0x7f   : > { %v716_v18 = vor.u32 %v714_v56, %v713_v63  ;;  %v717_v43 = vrot.slane %v713_v63, 4  ;;  %v931_v42 = vsel %vm4336_vm9, %v726_v34, %v930_v29  ;;  %v1830_v53 = vrot.slane %v1828_v2, 1 }
  0x80   : > { %v1835_v12 = vshll.u32 %v3595_v25, 16  ;;  %932 = vst [vmem:[#allocation2 + $0x98] sm:$0x1] %v931_v42  ;;  %v595_v54 = vshll.u32 %v3757_v22, 16  ;;  %v600_v56 = vshrl.u32 %v3758_v36, 16  ;;  %v603_v57 = vshll.u32 %v3758_v36, 16 }
  0x81   : > { %2646 = vrot.lane.b32.xlu1 %v2609_v46, %s4164_s11  ;;  %v927_v52 = vsel %vm4313_vm8, %v716_v18, %v926_v4  ;;  %1610 = vrot.lane.b32.xlu0 %v1567_v35, %s4157_s28  ;;  %v725_v1 = vsel %vm4304_vm7, %v717_v43, %v724_v28  ;;  %v322_v35 = vmul.f32 %v4660_v9, %v3864_v24  ;;  %v1919_v46 = vshll.u32 %v4713_v47, 16  ;;  %v1076_v24 = vld [vmem:[#allocation2 + $0x30] sm:$0xe] }
  0x82   : > { %928 = vst [vmem:[#allocation2 + $0x90] sm:$0xf] %v927_v52  ;;  %929 = vst.msk [vmem:[#allocation2 + $0x94] sm:$0xf] %vm384_vm0, %v725_v1  ;;  %v1833_v41 = vshrl.u32 %v3595_v25, 16  ;;  %v1840_v6 = vshll.u32 %v4715_v45, 16  ;;  %v360_v61 = vadd.f32 %v4627_v19, %v321_v21  ;;  %v3626_v4 = vcombine.low %v1075_v3, %v4640_v40 }
  0x83   : > { %v594_v50 = vrot.slane %v592_v49, 7  ;;  %v1837_v63 = vrot.slane %v1835_v12, 1  ;;  %v602_v39 = vrot.slane %v600_v56, 7  ;;  %v361_v7 = vadd.f32 %v4627_v19, %v322_v35 }
  0x84   : > { %v1831_v13 = vsel %vm1282_vm2, %v1826_v48, %v1830_v53  ;;  %v3773_v20 = vpack.c.bf16 %v360_v61, %v360_v61  ;;  %v1917_v40 = vshrl.u32 %v4713_v47, 16  ;;  %v1921_v27 = vrot.slane %v1919_v46, 1  ;;  %v1094_v48 = vld [vmem:[#allocation2 + $0x30] sm:$0xf] }
  0x85   : > { %1497 = vrot.lane.b32.xlu1 %v1426_v8, %s4158_s29  ;;  %1720 = vrot.lane.b32.xlu0 %v4650_v59, %s4159_s30  ;;  %v1591_v8 = vsel %vm1555_vm6, %v1589_v62, %v1590_v32  ;;  %v4735_v59 = vld [vmem:[#allocation2 + $0x8c] ss:$0 sps:$4 sm:$0x11]   ;;  %v597_v0 = vor.u32 %v595_v54, %v594_v50  ;;  %v598_v10 = vrot.slane %v594_v50, 4  ;;  %v605_v18 = vor.u32 %v603_v57, %v602_v39  ;;  %v4758_v54 = vld [vmem:[#allocation2 + $0x34] sm:$0xf] }
  0x86   : > { %v607_v43 = vrot.slane %v602_v39, 4  ;;  %v3774_v29 = vpack.c.bf16 %v361_v7, %v361_v7  ;;  %v1838_v22 = vor.u32 %v1837_v63, %v1833_v41  ;;  %v1842_v28 = vrot.slane %v1840_v6, 1  ;;  %v933_v63 = vld [vmem:[#allocation2 + $0x9c] sm:$0xf]  ;;  %v1083_v39 = vld [vmem:[#allocation2 + $0x84] sm:$0xe] }
  0x87   : > { %v878_v2 = vsel %vm4313_vm8, %v597_v0, %v877_v5  ;;  %v606_v34 = vsel %vm4304_vm7, %v598_v10, %v605_v18  ;;  %v4751_v21 = vld [vmem:[#allocation2 + $0x98] ss:$0 sps:$4 sm:$0x11]   ;;  %v728_v12 = vshrl.u32 %v3773_v20, 16  ;;  %v731_v1 = vshll.u32 %v3773_v20, 16 }
  0x88   : > { %879 = vst [vmem:[#allocation2 + $0x3c] sm:$0xf] %v878_v2  ;;  %v882_v36 = vsel %vm4336_vm9, %v607_v43, %v881_v15  ;;  %880 = vst.msk [vmem:[#allocation2 + $0x40] sm:$0xf] %vm384_vm0, %v606_v34  ;;  %v736_v42 = vshrl.u32 %v3774_v29, 16  ;;  %v739_v35 = vshll.u32 %v3774_v29, 16  ;;  %v3627_v49 = vcombine.low %v1076_v24, %v4701_v16 }
  0x89   : > { %1624 = vrot.lane.b32.xlu1 %v1588_v37, %s4157_s28  ;;  %v1047_v14 = vld [vmem:[#allocation2 + $0x90] sm:$0xf]  ;;  %1722 = vrot.lane.b32.xlu0 %v3595_v25, %s4159_s30  ;;  %v4742_v52 = vld [vmem:[#allocation2 + $0x94] sm:$0xf]  ;;  %v1924_v37 = vshll.u32 %v4735_v59, 16  ;;  %v2074_v62 = vrot.slane %v3626_v4, 1  ;;  %v1843_v53 = vsel %vm1282_vm2, %v1838_v22, %v1842_v28  ;;  %v1922_v46 = vor.u32 %v1921_v27, %v1917_v40 }
  0x8a   : > { %v3603_v25 = vcombine.low %v1047_v14, %v4742_v52  ;;  %883 = vst [vmem:[#allocation2 + $0x44] sm:$0x1] %v882_v36  ;;  %v2075_v32 = vrot.slane %v4690_v38, 1  ;;  %v730_v56 = vrot.slane %v728_v12, 7  ;;  %v738_v57 = vrot.slane %v736_v42, 7 }
  0x8b   : > { %v1926_v41 = vrot.slane %v1924_v37, 1  ;;  %v1936_v50 = vshll.u32 %v4751_v21, 16  ;;  %v3642_v4 = vcombine.low %v1094_v48, %v4758_v54  ;;  %v4766_v0 = vld [vmem:[#allocation2 + $0x94] sm:$0xf]  ;;  %v2077_v10 = vrot.slane %v3627_v49, 1 }
  0x8c   : > { %v1931_v3 = vshll.u32 %v3603_v25, 16  ;;  %v1929_v6 = vshrl.u32 %v3603_v25, 16  ;;  %v733_v5 = vor.u32 %v731_v1, %v730_v56  ;;  %v734_v61 = vrot.slane %v730_v56, 4  ;;  %v4773_v18 = vld [vmem:[#allocation2 + $0x34] sm:$0xf] }
  0x8d   : > { %1626 = vrot.lane.b32.xlu1 %v1591_v8, %s4157_s28  ;;  %1992 = vrot.lane.b32.xlu0 %v1831_v13, %s4161_s13  ;;  %v741_v16 = vor.u32 %v739_v35, %v738_v57  ;;  %v2076_v7 = vsel %vm1555_vm6, %v2074_v62, %v2075_v32  ;;  %v1110_v8 = vld [vmem:[#allocation2 + $0x90] sm:$0xf]  ;;  %v2078_v15 = vrot.slane %v4715_v45, 1  ;;  %v3634_v43 = vcombine.low %v1083_v39, %v4697_v44  ;;  %v937_v22 = vld [vmem:[#allocation2 + $0xa4] sm:$0x1] }
  0x8e   : > { %v1933_v38 = vrot.slane %v1931_v3, 1  ;;  %v934_v14 = vsel %vm4313_vm8, %v733_v5, %v933_v63  ;;  %v1084_v40 = vld [vmem:[#allocation2 + $0x90] sm:$0xe]  ;;  %v1927_v45 = vsel %vm1282_vm2, %v1922_v46, %v1926_v41  ;;  %v1938_v2 = vrot.slane %v1936_v50, 1 }
  0x8f   : > { %v742_v13 = vsel %vm4304_vm7, %v734_v61, %v741_v16  ;;  %v1096_v20 = vld [vmem:[#allocation2 + $0x3c] sm:$0xf]  ;;  %v4777_v24 = vld [vmem:[#allocation2 + $0x40] sm:$0xf]  ;;  %935 = vst [vmem:[#allocation2 + $0x9c] sm:$0xf] %v934_v14  ;;  %v4782_v29 = vcombine.low %v1110_v8, %v4766_v0  ;;  %v2079_v36 = vsel %vm1555_vm6, %v2077_v10, %v2078_v15  ;;  %v3635_v12 = vcombine.low %v1084_v40, %v4742_v52 }
  0x90   : > { %936 = vst.msk [vmem:[#allocation2 + $0xa0] sm:$0xf] %vm384_vm0, %v742_v13  ;;  %v1934_v27 = vor.u32 %v1933_v38, %v1929_v6  ;;  %v2335_v44 = vshll.u32 %v3642_v4, 16  ;;  %v4785_v28 = vld [vmem:[#allocation2 + $0x38] ss:$0 sps:$4 sm:$0x11]  }
  0x91   : > { %1736 = vrot.lane.b32.xlu1 %v4713_v47, %s4159_s30  ;;  %1994 = vrot.lane.b32.xlu0 %v1843_v53, %s4161_s13  ;;  %v969_v47 = vld [vmem:[#allocation2 + $0x30] sm:$0xf]  ;;  %v743_v37 = vrot.slane %v738_v57, 4  ;;  %v2098_v1 = vrot.slane %v3634_v43, 1  ;;  %v2099_v42 = vrot.slane %v4735_v59, 1  ;;  %v2431_v32 = vshll.u32 %v4782_v29, 16 }
  0x92   : > { %v4788_v34 = vcombine.low %v969_v47, %v4773_v18  ;;  %v4797_v35 = vld [vmem:[#allocation2 + $0x38] ss:$0 sps:$4 sm:$0x11]   ;;  %v1939_v3 = vsel %vm1282_vm2, %v1934_v27, %v1938_v2  ;;  %v1140_v62 = vld [vmem:[#allocation2 + $0x30] sm:$0xe]  ;;  %v2333_v52 = vshrl.u32 %v3642_v4, 16 }
  0x93   : > { %v4801_v48 = vld [vmem:[#allocation2 + $0x98] ss:$0 sps:$4 sm:$0x11]   ;;  %v938_v49 = vsel %vm4336_vm9, %v743_v37, %v937_v22  ;;  %v2337_v53 = vrot.slane %v2335_v44, 1  ;;  %v2340_v56 = vshll.u32 %v4785_v28, 16  ;;  %v3674_v6 = vcombine.low %v1140_v62, %v4758_v54 }
  0x94   : > { %5755 = vst [vmem:[#allocation3_spill] sm:$0xff] %v4788_v34  ;;  %v1334_v59 = vshll.u32 %v4788_v34, 16  ;;  %939 = vst [vmem:[#allocation2 + $0xa4] sm:$0x1] %v938_v49  ;;  %v1141_v57 = vld [vmem:[#allocation2 + $0x3c] sm:$0xe]  ;;  %v2100_v50 = vsel %vm1555_vm6, %v2098_v1, %v2099_v42 }
  0x95   : > { %1738 = vrot.lane.b32.xlu1 %v3603_v25, %s4159_s30  ;;  %2120 = vrot.lane.b32.xlu0 %v2076_v7, %s4160_s6  ;;  %v4792_v25 = vcombine.low %v1096_v20, %v4777_v24  ;;  %v4063_v41 = vld [vmem:[#allocation2 + $0x44] ss:$0 sps:$4 sm:$0x11]   ;;  %v2101_v63 = vrot.slane %v3635_v12, 1  ;;  %v2102_v39 = vrot.slane %v4751_v21, 1  ;;  %v2429_v5 = vshrl.u32 %v4782_v29, 16 }
  0x96   : > { %v1148_v38 = vld [vmem:[#allocation2 + $0x90] sm:$0xe]  ;;  %v2433_v61 = vrot.slane %v2431_v32, 1  ;;  %v2436_v16 = vshll.u32 %v4801_v48, 16  ;;  %v1332_v7 = vshrl.u32 %v4788_v34, 16  ;;  %v3675_v8 = vcombine.low %v1141_v57, %v4777_v24  ;;  %v3881_v1 = vld [vmem:[%s4274_s25 + $0x28] sm:$0xff]  }
  0x97   : > { %v2347_v46 = vshll.u32 %v4792_v25, 16  ;;  %v2338_v47 = vor.u32 %v2337_v53, %v2333_v52  ;;  %v1112_v10 = vld [vmem:[#allocation2 + $0x9c] sm:$0xf]  ;;  %v4818_v54 = vld [vmem:[#allocation2 + $0xa0] sm:$0xf]  ;;  %v1336_v15 = vrot.slane %v1334_v59, 1  ;;  %v2103_v22 = vsel %vm1555_vm6, %v2101_v63, %v2102_v39 }
  0x98   : > { %v1339_v13 = vshll.u32 %v4797_v35, 16  ;;  %v2342_v21 = vrot.slane %v2340_v56, 1  ;;  %v2345_v14 = vshrl.u32 %v4792_v25, 16  ;;  %v2352_v20 = vshll.u32 %v4063_v41, 16  ;;  %v985_v40 = vld [vmem:[#allocation2 + $0x90] sm:$0xf] }
  0x99   : > { %2008 = vrot.lane.b32.xlu1 %v1927_v45, %s4161_s13  ;;  %2122 = vrot.lane.b32.xlu0 %v2079_v36, %s4160_s6  ;;  %v2349_v43 = vrot.slane %v2347_v46, 1  ;;  %v2586_v45 = vrot.slane %v3674_v6, 1  ;;  %v2587_v24 = vrot.slane %v4785_v28, 1  ;;  %v971_v27 = vld [vmem:[#allocation2 + $0x3c] sm:$0xf]  ;;  %v4829_v44 = vcombine.low %v1112_v10, %v4818_v54 }
  0x9a   : > { %v4825_v2 = vld [vmem:[#allocation2 + $0x40] sm:$0xf]  ;;  %v2434_v36 = vor.u32 %v2433_v61, %v2429_v5  ;;  %v2438_v37 = vrot.slane %v2436_v16, 1  ;;  %v4831_v12 = vld [vmem:[#allocation2 + $0x94] sm:$0xf]  ;;  %v1337_v42 = vor.u32 %v1336_v15, %v1332_v7  ;;  %v1341_v28 = vrot.slane %v1339_v13, 1 }
  0x9b   : > { %v2590_v62 = vrot.slane %v4063_v41, 1  ;;  %v2343_v32 = vsel %vm1282_vm2, %v2338_v47, %v2342_v21  ;;  %v2350_v49 = vor.u32 %v2349_v43, %v2345_v14  ;;  %v2354_v52 = vrot.slane %v2352_v20, 1  ;;  %v4842_v56 = vld [vmem:[#allocation2 + $0x44] ss:$0 sps:$4 sm:$0x11]  }
  0x9c   : > { %v4840_v53 = vcombine.low %v971_v27, %v4825_v2  ;;  %v4844_v59 = vld [vmem:[#allocation2 + $0x98] ss:$0 sps:$4 sm:$0x11]   ;;  %v1013_v57 = vld [vmem:[#allocation2 + $0x30] sm:$0xe]  ;;  %v3835_v41 = vunpack.c.l.bf16 %v3881_v1  ;;  %v2443_v6 = vshll.u32 %v4829_v44, 16  ;;  %v2439_v63 = vsel %vm1282_vm2, %v2434_v36, %v2438_v37 }
  0x9d   : > { %2010 = vrot.lane.b32.xlu1 %v1939_v3, %s4161_s13  ;;  %2232 = vrot.lane.b32.xlu0 %v3642_v4, %s4162_s21  ;;  %v3682_v4 = vcombine.low %v1148_v38, %v4766_v0  ;;  %v2589_v3 = vrot.slane %v3675_v8, 1  ;;  %v4850_v46 = vld [vmem:[#allocation2 + $0x3c] sm:$0xe]  ;;  %v4855_v39 = vld [vmem:[#allocation2 + $0xa4] ss:$0 sps:$4 sm:$0x11]   ;;  %v1342_v5 = vsel %vm1282_vm2, %v1337_v42, %v1341_v28  ;;  %v3580_v7 = vcombine.low %v1013_v57, %v4773_v18 }
  0x9e   : > { %5756 = vst [vmem:[#allocation4_spill] sm:$0xff] %v4840_v53  ;;  %v2611_v16 = vrot.slane %v4801_v48, 1  ;;  %v2355_v8 = vsel %vm1282_vm2, %v2350_v49, %v2354_v52  ;;  %v1149_v47 = vld [vmem:[#allocation2 + $0x9c] sm:$0xe]  ;;  %v1346_v10 = vshll.u32 %v4840_v53, 16  ;;  %v1351_v15 = vshll.u32 %v4842_v56, 16 }
  0x9f   : > { %v4836_v0 = vpop.permute.xlu0 %1604  ;;  %v2610_v38 = vrot.slane %v3682_v4, 1  ;;  %v4860_v61 = vsel %vm1555_vm6, %v2589_v3, %v2590_v62  ;;  %v3836_v13 = vunpack.c.h.bf16 %v3881_v1  ;;  %v2441_v14 = vshrl.u32 %v4829_v44, 16  ;;  %v3889_v42 = vld [vmem:[%s4274_s25 + $0x68] sm:$0xff]  }
  0xa0   : > { %v3581_v18 = vcombine.low %v4850_v46, %v4825_v2  ;;  %v307_v48 = vmul.f32 %v4660_v9, %v3835_v41  ;;  %v2445_v20 = vrot.slane %v2443_v6, 1  ;;  %v1435_v4 = vshll.u32 %v4844_v59, 16  ;;  %v987_v6 = vld [vmem:[#allocation2 + $0x9c] sm:$0xf] }
  0xa1   : > { %2136 = vrot.lane.b32.xlu1 %v2100_v50, %s4160_s6  ;;  %2234 = vrot.lane.b32.xlu0 %v4792_v25, %s4162_s21  ;;  %v4848_v25 = vcombine.low %v985_v40, %v4831_v12  ;;  %v2588_v50 = vsel %vm1555_vm6, %v2586_v45, %v2587_v24  ;;  %v2448_v40 = vshll.u32 %v4855_v39, 16  ;;  %v308_v45 = vmul.f32 %v4660_v9, %v3836_v13 }
  0xa2   : > { %v4882_v24 = vsel %vm1555_vm6, %v2610_v38, %v2611_v16  ;;  %v1344_v27 = vshrl.u32 %v4840_v53, 16  ;;  %v346_v2 = vadd.f32 %v4627_v19, %v307_v48  ;;  %v4886_v36 = vrot.slane %v1351_v15, 1  ;;  %v4901_v38 = vld [vmem:[#allocation2 + $0xa0] sm:$0xf]  ;;  %v1085_v53 = vld [vmem:[#allocation2 + $0x9c] sm:$0xe] }
  0xa3   : > { %5757 = vst [vmem:[#allocation5_spill] sm:$0xff] %v4848_v25  ;;  %v4869_v21 = vpop.permute.xlu0 %1475  ;;  %v1430_v43 = vshll.u32 %v4848_v25, 16  ;;  %v1428_v37 = vshrl.u32 %v4848_v25, 16  ;;  %v347_v1 = vadd.f32 %v4627_v19, %v308_v45  ;;  %v1569_v3 = vrot.slane %v4797_v35, 1  ;;  %v1033_v45 = vld [vmem:[#allocation2 + $0x3c] sm:$0xf] }
  0xa4   : > { %v3759_v62 = vpack.c.bf16 %v346_v2, %v346_v2  ;;  %v2450_v49 = vrot.slane %v2448_v40, 1  ;;  %v4894_v52 = vrot.slane %v1435_v4, 1  ;;  %v4910_v40 = vrot.slane %v3581_v18, 1  ;;  %v947_v25 = vld [vmem:[#allocation2 + $0xb4] sm:$0xf] }
  0xa5   : > { %2138 = vrot.lane.b32.xlu1 %v2103_v22, %s4160_s6  ;;  %2504 = vrot.lane.b32.xlu0 %v2343_v32, %s4163_s27  ;;  %v1348_v22 = vrot.slane %v1346_v10, 1  ;;  %v1432_v28 = vrot.slane %v1430_v43, 1  ;;  %v2446_v32 = vor.u32 %v2445_v20, %v2441_v14  ;;  %v3760_v57 = vpack.c.bf16 %v347_v1, %v347_v1  ;;  %v884_v14 = vld [vmem:[#allocation2 + $0x48] sm:$0xf] }
  0xa6   : > { %v612_v16 = vshll.u32 %v3759_v62, 16  ;;  %v4913_v4 = vcombine.low %v987_v6, %v4901_v38  ;;  %v1572_v18 = vrot.slane %v4842_v56, 1  ;;  %vm2726_vm12 = vcmask 195584  }
  0xa7   : > { %v1349_v35 = vor.u32 %v1348_v22, %v1344_v27  ;;  %v617_v10 = vshrl.u32 %v3760_v57, 16  ;;  %v620_v15 = vshll.u32 %v3760_v57, 16  ;;  %v2451_v20 = vsel %vm1282_vm2, %v2446_v32, %v2450_v49  ;;  %v888_v22 = vld [vmem:[#allocation2 + $0x50] sm:$0x1] }
  0xa8   : > { %v4897_v46 = vpop.permute.xlu1 %1732  ;;  %5758 = vst [vmem:[#allocation6_spill] sm:$0xff] %v4913_v4  ;;  %vm2759_vm13 = vcmask 261120   ;;  %vm2792_vm14 = vcmask 326656   ;;  %vm2825_vm15 = vcmask 392192   ;;  %vm2858_vm1 = vcmask 457728  }
  0xa9   : > { %2248 = vrot.lane.b32.xlu1 %v4782_v29, %s4162_s21  ;;  %2506 = vrot.lane.b32.xlu0 %v2355_v8, %s4163_s27  ;;  %v3683_v29 = vcombine.low %v1149_v47, %v4818_v54  ;;  %v1568_v54 = vrot.slane %v3580_v7, 1  ;;  %v4899_v41 = vpop.permute.xlu0 %1716  ;;  %v3867_v7 = vunpack.c.l.bf16 %v3889_v42  ;;  %v3868_v8 = vunpack.c.h.bf16 %v3889_v42 }
  0xaa   : > { %vm2891_vm3 = vcmask 523264   ;;  %vm2924_vm4 = vcmask 588800  }
  0xab   : > { %v2613_v47 = vrot.slane %v3683_v29, 1  ;;  %v4905_v13 = vsel %vm1555_vm6, %v1568_v54, %v1569_v3  ;;  %v323_v43 = vmul.f32 %v4660_v9, %v3867_v7  ;;  %v324_v48 = vmul.f32 %v4660_v9, %v3868_v8  ;;  %v4915_v29 = vld [vmem:[#allocation2 + $0x40] sm:$0xf]  ;;  %v4921_v3 = vld [vmem:[#allocation2 + $0xa4] ss:$0 sps:$4 sm:$0x11]  }
  0xac   : > { %v1433_v54 = vor.u32 %v1432_v28, %v1428_v37  ;;  %v4929_v57 = vcombine.low %v1033_v45, %v4915_v29  ;;  %v3882_v28 = vld [vmem:[%s4274_s25 + $0x30] sm:$0xff]   ;;  %v1442_v7 = vshll.u32 %v4913_v4, 16 }
  0xad   : > { %2250 = vrot.lane.b32.xlu1 %v4829_v44, %s4162_s21  ;;  %2632 = vrot.lane.b32.xlu0 %v2588_v50, %s4164_s11  ;;  %v609_v44 = vshrl.u32 %v3759_v62, 16  ;;  %v362_v1 = vadd.f32 %v4627_v19, %v323_v43  ;;  %v363_v42 = vadd.f32 %v4627_v19, %v324_v48  ;;  %v4924_v49 = vpop.permute.xlu1 %1734  ;;  %v1447_v48 = vshll.u32 %v4921_v3, 16 }
  0xae   : > { %v3840_v45 = vunpack.c.h.bf16 %v3882_v28 }
  0xaf   : > { %v611_v50 = vrot.slane %v609_v44, 7  ;;  %v3775_v44 = vpack.c.bf16 %v362_v1, %v362_v1  ;;  %v3776_v37 = vpack.c.bf16 %v363_v42, %v363_v42  ;;  %v940_v42 = vld [vmem:[#allocation2 + $0xa8] sm:$0xf] }
  0xb1   : > { %2520 = vrot.lane.b32.xlu1 %v2439_v63, %s4163_s27  ;;  %v619_v63 = vrot.slane %v617_v10, 7  ;;  %1483 = vrot.lane.b32.xlu0 %v1342_v5, %s4158_s29  ;;  %v614_v27 = vor.u32 %v612_v16, %v611_v50  ;;  %v615_v2 = vrot.slane %v611_v50, 4  ;;  %v2614_v16 = vrot.slane %v4855_v39, 1 }
  0xb2   : > { %v748_v50 = vshll.u32 %v3775_v44, 16  ;;  %v756_v43 = vshll.u32 %v3776_v37, 16  ;;  %v1354_v39 = vsel %vm1282_vm2, %v1349_v35, %v4886_v36  ;;  %v1444_v35 = vrot.slane %v1442_v7, 1 }
  0xb3   : > { %v622_v62 = vor.u32 %v620_v15, %v619_v63  ;;  %v624_v32 = vrot.slane %v619_v63, 4  ;;  %v4926_v5 = vpop.permute.xlu0 %1718  ;;  %v885_v6 = vsel %vm4313_vm8, %v614_v27, %v884_v14  ;;  %v745_v15 = vshrl.u32 %v3775_v44, 16 }
  0xb4   : > { %886 = vst [vmem:[#allocation2 + $0x48] sm:$0xf] %v885_v6  ;;  %v753_v14 = vshrl.u32 %v3776_v37, 16  ;;  %v1440_v27 = vshrl.u32 %v4913_v4, 16  ;;  %v2615_v36 = vsel %vm1555_vm6, %v2613_v47, %v2614_v16  ;;  %v310_v6 = vmul.f32 %v4660_v9, %v3840_v45 }
  0xb5   : > { %2522 = vrot.lane.b32.xlu1 %v2451_v20, %s4163_s27  ;;  %v623_v8 = vsel %vm4304_vm7, %v615_v2, %v622_v62  ;;  %v889_v10 = vsel %vm4336_vm9, %v624_v32, %v888_v22  ;;  %2634 = vrot.lane.b32.xlu0 %v4860_v61, %s4164_s11  ;;  %v3839_v20 = vunpack.c.l.bf16 %v3882_v28  ;;  %v1438_v61 = vsel %vm1282_vm2, %v1433_v54, %v4894_v52  ;;  %v1021_v2 = vld [vmem:[#allocation2 + $0x90] sm:$0xe]  ;;  %v944_v62 = vld [vmem:[#allocation2 + $0xb0] sm:$0x1] }
  0xb6   : > { %887 = vst.msk [vmem:[#allocation2 + $0x4c] sm:$0xf] %vm384_vm0, %v623_v8  ;;  %890 = vst [vmem:[#allocation2 + $0x50] sm:$0x1] %v889_v10  ;;  %v747_v22 = vrot.slane %v745_v15, 7  ;;  %v755_v1 = vrot.slane %v753_v14, 7  ;;  %v3588_v10 = vcombine.low %v1021_v2, %v4831_v12  ;;  %v349_v16 = vadd.f32 %v4627_v19, %v310_v6 }
  0xb7   : > { %v4948_v63 = vpop.permute.xlu0 %1606  ;;  %v309_v32 = vmul.f32 %v4660_v9, %v3839_v20  ;;  %v1449_v8 = vrot.slane %v1447_v48, 1  ;;  %v1445_v12 = vor.u32 %v1444_v35, %v1440_v27  ;;  %v1022_v20 = vld [vmem:[#allocation2 + $0x9c] sm:$0xe]  ;;  %v1573_v27 = vsel %vm1555_vm6, %v4910_v40, %v1572_v18 }
  0xb8   : > { %v750_v52 = vor.u32 %v748_v50, %v747_v22  ;;  %v751_v54 = vrot.slane %v747_v22, 4  ;;  %v758_v37 = vor.u32 %v756_v43, %v755_v1  ;;  %v760_v28 = vrot.slane %v755_v1, 4  ;;  %v1049_v18 = vld [vmem:[#allocation2 + $0x9c] sm:$0xf] }
  0xb9   : > { %2648 = vrot.lane.b32.xlu1 %v4882_v24, %s4164_s11  ;;  %v3890_v24 = vld [vmem:[%s4274_s25 + $0x70] sm:$0xff]   ;;  %1485 = vrot.lane.b32.xlu0 %v1354_v39, %s4158_s29  ;;  %v348_v47 = vadd.f32 %v4627_v19, %v309_v32  ;;  %v1847_v1 = vshll.u32 %v4929_v57, 16  ;;  %v1593_v35 = vrot.slane %v4844_v59, 1  ;;  %v1592_v56 = vrot.slane %v3588_v10, 1 }
  0xba   : > { %v759_v14 = vsel %vm4304_vm7, %v751_v54, %v758_v37  ;;  %v941_v50 = vsel %vm4313_vm8, %v750_v52, %v940_v42  ;;  %v945_v43 = vsel %vm4336_vm9, %v760_v28, %v944_v62  ;;  %v3871_v39 = vunpack.c.l.bf16 %v3890_v24  ;;  %v4985_v42 = vld [vmem:[#allocation2 + $0x44] ss:$0 sps:$4 sm:$0x11]   ;;  %v4995_v54 = vld [vmem:[#allocation2 + $0xa0] sm:$0xf] }
  0xbb   : > { %v4957_v44 = vpop.permute.xlu1 %1620  ;;  %v4964_v7 = vpop.permute.xlu0 %2116  ;;  %v1035_v15 = vld [vmem:[#allocation2 + $0x48] sm:$0xf]  ;;  %942 = vst [vmem:[#allocation2 + $0xa8] sm:$0xf] %v941_v50  ;;  %943 = vst.msk [vmem:[#allocation2 + $0xac] sm:$0xf] %vm384_vm0, %v759_v14  ;;  %v3761_v45 = vpack.c.bf16 %v348_v47, %v348_v47  ;;  %v3872_v2 = vunpack.c.h.bf16 %v3890_v24  ;;  %v3589_v52 = vcombine.low %v1022_v20, %v4901_v38  ;;  %v1450_v37 = vsel %vm1282_vm2, %v1445_v12, %v1449_v8 }
  0xbc   : > { %946 = vst [vmem:[#allocation2 + $0xb0] sm:$0x1] %v945_v43  ;;  %v1845_v40 = vshrl.u32 %v4929_v57, 16  ;;  %v325_v59 = vmul.f32 %v4660_v9, %v3871_v39  ;;  %v1849_v38 = vrot.slane %v1847_v1, 1  ;;  %v1852_v10 = vshll.u32 %v4985_v42, 16 }
  0xbd   : > { %1499 = vrot.lane.b32.xlu1 %v1438_v61, %s4158_s29  ;;  %v4972_v48 = vld [vmem:[#allocation2 + $0x4c] sm:$0xf]  ;;  %v3762_v61 = vpack.c.bf16 %v349_v16, %v349_v16  ;;  %1612 = vrot.lane.b32.xlu0 %v4905_v13, %s4157_s28  ;;  %v626_v32 = vshrl.u32 %v3761_v45, 16  ;;  %v629_v6 = vshll.u32 %v3761_v45, 16  ;;  %v891_v16 = vld [vmem:[#allocation2 + $0x54] sm:$0xf]  ;;  %v5010_v8 = vcombine.low %v1049_v18, %v4995_v54 }
  0xbe   : > { %v4988_v62 = vcombine.low %v1035_v15, %v4972_v48  ;;  %v5006_v14 = vld [vmem:[#allocation2 + $0x50] ss:$0 sps:$4 sm:$0x11]   ;;  %v1596_v20 = vrot.slane %v4921_v3, 1  ;;  %v1595_v1 = vrot.slane %v3589_v52, 1  ;;  %v1850_v18 = vor.u32 %v1849_v38, %v1845_v40 }
  0xbf   : > { %v4975_v22 = vpop.permute.xlu1 %1622  ;;  %v634_v24 = vshrl.u32 %v3762_v61, 16  ;;  %v4991_v13 = vpop.permute.xlu0 %2118  ;;  %v628_v28 = vrot.slane %v626_v32, 7  ;;  %v637_v50 = vshll.u32 %v3762_v61, 16  ;;  %v1594_v61 = vsel %vm1555_vm6, %v1592_v56, %v1593_v35  ;;  %v5037_v40 = vld [vmem:[#allocation2 + $0xa4] ss:$0 sps:$4 sm:$0x11]  }
  0xc0   : > { %v1859_v43 = vshll.u32 %v4988_v62, 16  ;;  %v1854_v3 = vrot.slane %v1852_v10, 1  ;;  %v1943_v35 = vshll.u32 %v5010_v8, 16  ;;  %v1857_v56 = vshrl.u32 %v4988_v62, 16 }
  0xc1   : > { %2650 = vrot.lane.b32.xlu1 %v2615_v36, %s4164_s11  ;;  %v4999_v47 = vrot.slane %v634_v24, 7  ;;  %v326_v36 = vmul.f32 %v4660_v9, %v3872_v2  ;;  %1614 = vrot.lane.b32.xlu0 %v1573_v27, %s4157_s28  ;;  %v631_v39 = vor.u32 %v629_v6, %v628_v28  ;;  %v632_v12 = vrot.slane %v628_v28, 4  ;;  %v1077_v27 = vld [vmem:[#allocation2 + $0x3c] sm:$0xe] }
  0xc2   : > { %v364_v2 = vadd.f32 %v4627_v19, %v325_v59  ;;  %v5026_v28 = vld [vmem:[#allocation2 + $0xac] sm:$0xf]  ;;  %v1861_v52 = vrot.slane %v1859_v43, 1  ;;  %v1597_v38 = vsel %vm1555_vm6, %v1595_v1, %v1596_v20 }
  0xc3   : > { %v5002_v15 = vpop.permute.xlu1 %2132  ;;  %v5013_v9 = vpop.permute.xlu0 %1491  ;;  %v639_v45 = vor.u32 %v637_v50, %v4999_v47  ;;  %v892_v32 = vsel %vm4313_vm8, %v631_v39, %v891_v16  ;;  %v365_v6 = vadd.f32 %v4627_v19, %v326_v36  ;;  %v1864_v19 = vshll.u32 %v5006_v14, 16 }
  0xc4   : > { %893 = vst [vmem:[#allocation2 + $0x54] sm:$0xf] %v892_v32  ;;  %v3777_v16 = vpack.c.bf16 %v364_v2, %v364_v2  ;;  %v3628_v36 = vcombine.low %v1077_v27, %v4915_v29  ;;  %v1855_v39 = vsel %vm1282_vm2, %v1850_v18, %v1854_v3  ;;  %v1862_v2 = vor.u32 %v1861_v52, %v1857_v56  ;;  %v1078_v27 = vld [vmem:[#allocation2 + $0x48] sm:$0xe] }
  0xc5   : > { %1501 = vrot.lane.b32.xlu1 %v1450_v37, %s4158_s29  ;;  %1724 = vrot.lane.b32.xlu0 %v4929_v57, %s4159_s30  ;;  %v1051_v37 = vld [vmem:[#allocation2 + $0xa8] sm:$0xf]  ;;  %v640_v59 = vsel %vm4304_vm7, %v632_v12, %v639_v45  ;;  %v3778_v50 = vpack.c.bf16 %v365_v6, %v365_v6  ;;  %v1941_v12 = vshrl.u32 %v5010_v8, 16  ;;  %v895_v45 = vld [vmem:[#allocation2 + $0x5c] sm:$0x1]  ;;  %v1945_v29 = vrot.slane %v1943_v35, 1 }
  0xc6   : > { %894 = vst.msk [vmem:[#allocation2 + $0x58] sm:$0xf] %vm384_vm0, %v640_v59  ;;  %v5042_v10 = vcombine.low %v1051_v37, %v5026_v28  ;;  %v641_v20 = vrot.slane %v4999_v47, 4  ;;  %v1948_v32 = vshll.u32 %v5037_v40, 16  ;;  %v762_v6 = vshrl.u32 %v3777_v16, 16 }
  0xc7   : > { %v5022_v24 = vpop.permute.xlu1 %2134  ;;  %v5035_v57 = vpop.permute.xlu0 %1988  ;;  %v2080_v3 = vrot.slane %v3628_v36, 1  ;;  %v5056_v37 = vld [vmem:[#allocation2 + $0xb0] ss:$0 sps:$4 sm:$0x11]   ;;  %v770_v35 = vshrl.u32 %v3778_v50, 16  ;;  %v2662_v47 = vsel %vm2660_vm10, %v4284_v17, %v4869_v21  ;;  %v773_v36 = vshll.u32 %v3778_v50, 16 }
  0xc8   : > { %v1955_v18 = vshll.u32 %v5042_v10, 16  ;;  %v896_v59 = vsel %vm4336_vm9, %v641_v20, %v895_v45  ;;  %v1098_v52 = vld [vmem:[#allocation2 + $0x48] sm:$0xf]  ;;  %v2081_v45 = vrot.slane %v4985_v42, 1  ;;  %v1946_v20 = vor.u32 %v1945_v29, %v1941_v12 }
  0xc9   : > { %1628 = vrot.lane.b32.xlu1 %v1594_v61, %s4157_s28  ;;  %1726 = vrot.lane.b32.xlu0 %v4988_v62, %s4159_s30  ;;  %v1866_v61 = vrot.slane %v1864_v19, 1  ;;  %v765_v62 = vshll.u32 %v3777_v16, 16  ;;  %v5066_v19 = vld [vmem:[#allocation2 + $0x4c] sm:$0xf]  ;;  %897 = vst [vmem:[#allocation2 + $0x5c] sm:$0x1] %v896_v59  ;;  %v2695_v42 = vsel %vm2693_vm11, %v2662_v47, %v4836_v0  ;;  %v3636_v29 = vcombine.low %v1085_v53, %v4995_v54 }
  0xca   : > { %v764_v16 = vrot.slane %v762_v6, 7  ;;  %v1950_v21 = vrot.slane %v1948_v32, 1  ;;  %v772_v59 = vrot.slane %v770_v35, 7  ;;  %v1953_v50 = vshrl.u32 %v5042_v10, 16  ;;  %v951_v53 = vld [vmem:[#allocation2 + $0xbc] sm:$0x1] }
  0xcb   : > { %v5044_v43 = vpop.permute.xlu1 %1477  ;;  %v5052_v1 = vpop.permute.xlu0 %1990  ;;  %v1867_v4 = vsel %vm1282_vm2, %v1862_v2, %v1866_v61  ;;  %v1957_v6 = vrot.slane %v1955_v18, 1  ;;  %v5078_v2 = vcombine.low %v1098_v52, %v5066_v19  ;;  %v5090_v18 = vld [vmem:[#allocation2 + $0x50] ss:$0 sps:$4 sm:$0x11]   ;;  %v1086_v54 = vld [vmem:[#allocation2 + $0xa8] sm:$0xe] }
  0xcc   : > { %v768_v34 = vrot.slane %v764_v16, 4 }
  0xcd   : > { %1630 = vrot.lane.b32.xlu1 %v1597_v38, %s4157_s28  ;;  %1996 = vrot.lane.b32.xlu0 %v1855_v39, %s4161_s13  ;;  %v3629_v38 = vcombine.low %v1078_v27, %v4972_v48  ;;  %v767_v39 = vor.u32 %v765_v62, %v764_v16  ;;  %v1960_v48 = vshll.u32 %v5056_v37, 16  ;;  %v2082_v27 = vsel %vm1555_vm6, %v2080_v3, %v2081_v45  ;;  %v5096_v35 = vld [vmem:[#allocation2 + $0x58] sm:$0xf] }
  0xce   : > { %v2084_v62 = vrot.slane %v5006_v14, 1  ;;  %v1951_v3 = vsel %vm1282_vm2, %v1946_v20, %v1950_v21  ;;  %v1958_v47 = vor.u32 %v1957_v6, %v1953_v50  ;;  %v2359_v52 = vshll.u32 %v5078_v2, 16  ;;  %v1114_v20 = vld [vmem:[#allocation2 + $0xa8] sm:$0xf]  ;;  %v5112_v21 = vld [vmem:[#allocation2 + $0xac] sm:$0xf] }
  0xcf   : > { %v5063_v56 = vpop.permute.xlu1 %1493  ;;  %v5073_v17 = vpop.permute.xlu0 %2228  ;;  %v948_v61 = vsel %vm4313_vm8, %v767_v39, %v947_v25  ;;  %v2083_v32 = vrot.slane %v3629_v38, 1  ;;  %v1962_v14 = vrot.slane %v1960_v48, 1  ;;  %v2104_v38 = vrot.slane %v3636_v29, 1 }
  0xd0   : > { %949 = vst [vmem:[#allocation2 + $0xb4] sm:$0xf] %v948_v61  ;;  %v3637_v39 = vcombine.low %v1086_v54, %v5026_v28  ;;  %v2364_v61 = vshll.u32 %v5090_v18, 16  ;;  %v1142_v54 = vld [vmem:[#allocation2 + $0x48] sm:$0xe] }
  0xd1   : > { %1740 = vrot.lane.b32.xlu1 %v5010_v8, %s4159_s30  ;;  %1998 = vrot.lane.b32.xlu0 %v1867_v4, %s4161_s13  ;;  %v775_v8 = vor.u32 %v773_v36, %v772_v59  ;;  %v1100_v4 = vld [vmem:[#allocation2 + $0x54] sm:$0xf]  ;;  %v2085_v36 = vsel %vm1555_vm6, %v2083_v32, %v2084_v62  ;;  %v1963_v48 = vsel %vm1282_vm2, %v1958_v47, %v1962_v14  ;;  %v5139_v32 = vld [vmem:[#allocation2 + $0x5c] ss:$0 sps:$4 sm:$0x11]   ;;  %v2108_v62 = vrot.slane %v5056_v37, 1 }
  0xd2   : > { %v5110_v45 = vcombine.low %v1100_v4, %v5096_v35  ;;  %v973_v4 = vld [vmem:[#allocation2 + $0x48] sm:$0xf]  ;;  %v2366_v47 = vrot.slane %v2364_v61, 1  ;;  %v5152_v14 = vld [vmem:[#allocation2 + $0xb0] ss:$0 sps:$4 sm:$0x11]   ;;  %v2680_v37 = vsel %vm2660_vm10, %v4418_v11, %v5063_v56 }
  0xd3   : > { %v5082_v12 = vpop.permute.xlu1 %2004  ;;  %v5094_v0 = vpop.permute.xlu0 %2230  ;;  %v776_v25 = vsel %vm4304_vm7, %v768_v34, %v775_v8  ;;  %v777_v34 = vrot.slane %v772_v59, 4  ;;  %v2105_v59 = vrot.slane %v5037_v40, 1  ;;  %v2361_v8 = vrot.slane %v2359_v52, 1  ;;  %v5347_v26 = vld [vmem:[#allocation2 + $0x5c] ss:$0 sps:$4 sm:$0x11]  }
  0xd4   : > { %950 = vst.msk [vmem:[#allocation2 + $0xb8] sm:$0xf] %vm384_vm0, %v776_v25  ;;  %v5146_v25 = vld [vmem:[#allocation2 + $0x4c] sm:$0xf]  ;;  %v2460_v61 = vshll.u32 %v5152_v14, 16 }
  0xd5   : > { %1742 = vrot.lane.b32.xlu1 %v5042_v10, %s4159_s30  ;;  %v2728_v10 = vsel %vm2726_vm12, %v2695_v42, %v4899_v41  ;;  %2124 = vrot.lane.b32.xlu0 %v2082_v27, %s4160_s6  ;;  %v2664_v41 = vsel %vm2660_vm10, %v4403_v58, %v5044_v43  ;;  %v952_v6 = vsel %vm4336_vm9, %v777_v34, %v951_v53  ;;  %v2357_v42 = vshrl.u32 %v5078_v2, 16 }
  0xd6   : > { %953 = vst [vmem:[#allocation2 + $0xbc] sm:$0x1] %v952_v6  ;;  %v2678_v58 = vsel %vm2660_vm10, %v4425_v23, %v5013_v9  ;;  %v2761_v28 = vsel %vm2759_vm13, %v2728_v10, %v5035_v57  ;;  %v5134_v43 = vcombine.low %v1114_v20, %v5112_v21  ;;  %v2697_v29 = vsel %vm2693_vm11, %v2664_v41, %v4948_v63 }
  0xd7   : > { %v5105_v16 = vpop.permute.xlu1 %2006  ;;  %v2501_v50 = vpop.permute.xlu0 %2500  ;;  %v2371_v27 = vshll.u32 %v5110_v45, 16  ;;  %v2106_v9 = vsel %vm1555_vm6, %v2104_v38, %v2105_v59  ;;  %v2107_v57 = vrot.slane %v3637_v39, 1  ;;  %v2711_v63 = vsel %vm2693_vm11, %v2678_v58, %v4957_v44  ;;  %v5196_v58 = vld [vmem:[#allocation2 + $0x50] ss:$0 sps:$4 sm:$0x11]  }
  0xd8   : > { %v2794_v53 = vsel %vm2792_vm14, %v2761_v28, %v4964_v7  ;;  %v2730_v52 = vsel %vm2726_vm12, %v2697_v29, %v4926_v5  ;;  %v2455_v44 = vshll.u32 %v5134_v43, 16  ;;  %v1116_v7 = vld [vmem:[#allocation2 + $0xb4] sm:$0xf]  ;;  %v2369_v38 = vshrl.u32 %v5110_v45, 16 }
  0xd9   : > { %2012 = vrot.lane.b32.xlu1 %v1951_v3, %s4161_s13  ;;  %2126 = vrot.lane.b32.xlu0 %v2085_v36, %s4160_s6  ;;  %v2362_v3 = vor.u32 %v2361_v8, %v2357_v42  ;;  %v2827_v10 = vsel %vm2825_vm15, %v2794_v53, %v5073_v17  ;;  %v2373_v5 = vrot.slane %v2371_v27, 1  ;;  %v2376_v20 = vshll.u32 %v5139_v32, 16  ;;  %v5184_v8 = vld [vmem:[#allocation2 + $0xa8] sm:$0xe] }
  0xda   : > { %v5171_v11 = vcombine.low %v973_v4, %v5146_v25  ;;  %v2744_v56 = vsel %vm2726_vm12, %v2711_v63, %v4897_v46  ;;  %v2860_v17 = vsel %vm2858_vm1, %v2827_v10, %v2501_v50  ;;  %v2109_v39 = vsel %vm1555_vm6, %v2107_v57, %v2108_v62  ;;  %v5200_v57 = vld [vmem:[#allocation2 + $0xac] sm:$0xf] }
  0xdb   : > { %v5130_v40 = vpop.permute.xlu1 %2244  ;;  %v5142_v23 = vpop.permute.xlu0 %2502  ;;  %v5166_v36 = vld [vmem:[#allocation2 + $0xb8] sm:$0xf]  ;;  %v2763_v59 = vsel %vm2759_vm13, %v2730_v52, %v5052_v1  ;;  %v2713_v6 = vsel %vm2693_vm11, %v2680_v37, %v4975_v22  ;;  %v2453_v1 = vshrl.u32 %v5134_v43, 16  ;;  %v2457_v22 = vrot.slane %v2455_v44, 1 }
  0xdc   : > { %v5187_v46 = vcombine.low %v1116_v7, %v5166_v36  ;;  %v2367_v28 = vsel %vm1282_vm2, %v2362_v3, %v2366_v47  ;;  %v2374_v29 = vor.u32 %v2373_v5, %v2369_v38  ;;  %v2378_v27 = vrot.slane %v2376_v20, 1  ;;  %v5210_v3 = vld [vmem:[#allocation2 + $0x58] sm:$0xf] }
  0xdd   : > { %2014 = vrot.lane.b32.xlu1 %v1963_v48, %s4161_s13  ;;  %2236 = vrot.lane.b32.xlu0 %v5078_v2, %s4162_s21  ;;  %v3676_v2 = vcombine.low %v1142_v54, %v5066_v19  ;;  %v1143_v48 = vld [vmem:[#allocation2 + $0x54] sm:$0xe]  ;;  %v2777_v19 = vsel %vm2759_vm13, %v2744_v56, %v5082_v12  ;;  %v989_v12 = vld [vmem:[#allocation2 + $0xa8] sm:$0xf]  ;;  %v3684_v63 = vcombine.low %v5184_v8, %v5112_v21  ;;  %v2462_v7 = vrot.slane %v2460_v61, 1  ;;  %v3891_v8 = vld [vmem:[%s4274_s25 + $0x78] sm:$0xff]  }
  0xde   : > { %v3677_v62 = vcombine.low %v1143_v48, %v5096_v35  ;;  %v975_v54 = vld [vmem:[#allocation2 + $0x54] sm:$0xf]  ;;  %v2746_v47 = vsel %vm2726_vm12, %v2713_v6, %v4924_v49  ;;  %v2810_v52 = vsel %vm2792_vm14, %v2777_v19, %v5002_v15  ;;  %v2593_v35 = vrot.slane %v5090_v18, 1  ;;  %v5218_v37 = vld [vmem:[#allocation2 + $0xbc] ss:$0 sps:$4 sm:$0x11]  }
  0xdf   : > { %v5161_v34 = vpop.permute.xlu1 %2246  ;;  %v2629_v41 = vpop.permute.xlu0 %2628  ;;  %v2592_v53 = vrot.slane %v3676_v2, 1  ;;  %v2458_v44 = vor.u32 %v2457_v22, %v2453_v1  ;;  %v1356_v49 = vshrl.u32 %v5171_v11, 16  ;;  %v2379_v38 = vsel %vm1282_vm2, %v2374_v29, %v2378_v27  ;;  %v5263_v29 = vld [vmem:[#allocation2 + $0xb0] ss:$0 sps:$4 sm:$0x11]  }
  0xe0   : > { %v2893_v42 = vsel %vm2891_vm3, %v2860_v17, %v2629_v41  ;;  %v1363_v5 = vshll.u32 %v5196_v58, 16  ;;  %v5229_v18 = vcombine.low %v975_v54, %v5210_v3  ;;  %v2779_v20 = vsel %vm2759_vm13, %v2746_v47, %v5105_v16  ;;  %v991_v47 = vld [vmem:[#allocation2 + $0xb4] sm:$0xf] }
  0xe1   : > { %2140 = vrot.lane.b32.xlu1 %v2106_v9, %s4160_s6  ;;  %2238 = vrot.lane.b32.xlu0 %v5110_v45, %s4162_s21  ;;  %v1358_v9 = vshll.u32 %v5171_v11, 16  ;;  %v2796_v45 = vsel %vm2792_vm14, %v2763_v59, %v4991_v13  ;;  %v2467_v13 = vshll.u32 %v5187_v46, 16  ;;  %v5240_v2 = vcombine.low %v989_v12, %v5200_v57 }
  0xe2   : > { %3932 = vmatprep.mubr.msk.bf16.mxu0 %vm2924_vm4, %v2893_v42  ;;  %v2829_v10 = vsel %vm2825_vm15, %v2796_v45, %v5094_v0  ;;  %v2843_v0 = vsel %vm2825_vm15, %v2810_v52, %v5130_v40  ;;  %v2472_v16 = vshll.u32 %v5218_v37, 16  ;;  %v2596_v48 = vrot.slane %v5139_v32, 1  ;;  %v5250_v42 = vld [vmem:[#allocation2 + $0x5c] ss:$0 sps:$4 sm:$0x11]  }
  0xe3   : > { %v2517_v50 = vpop.permute.xlu1 %2516  ;;  %v5206_v4 = vpop.permute.xlu0 %1479  ;;  %v1360_v15 = vrot.slane %v1358_v9, 1  ;;  %v2862_v56 = vsel %vm2858_vm1, %v2829_v10, %v5142_v23  ;;  %v2469_v59 = vrot.slane %v2467_v13, 1  ;;  %v2595_v23 = vrot.slane %v3677_v62, 1  ;;  %v5272_v52 = vld [vmem:[#allocation2 + $0xb8] sm:$0xf] }
  0xe4   : > { %v2876_v40 = vsel %vm2858_vm1, %v2843_v0, %v2517_v50  ;;  %v1365_v22 = vrot.slane %v1363_v5, 1  ;;  %v1370_v61 = vshll.u32 %v5229_v18, 16  ;;  %v2812_v50 = vsel %vm2792_vm14, %v2779_v20, %v5022_v24 }
  0xe5   : > { %2142 = vrot.lane.b32.xlu1 %v2109_v39, %s4160_s6  ;;  %2508 = vrot.lane.b32.xlu0 %v2367_v28, %s4163_s27  ;;  %v2465_v39 = vshrl.u32 %v5187_v46, 16  ;;  %v1361_v1 = vor.u32 %v1360_v15, %v1356_v49  ;;  %v2463_v32 = vsel %vm1282_vm2, %v2458_v44, %v2462_v7  ;;  %v1454_v27 = vshll.u32 %v5240_v2, 16  ;;  %v1015_v7 = vld [vmem:[#allocation2 + $0x48] sm:$0xe]  ;;  %v4146_v49 = vld [vmem:[%s5742_s3] ss:$0 sm:$0xff] }
  0xe6   : > { %v2474_v12 = vrot.slane %v2472_v16, 1  ;;  %v2616_v45 = vrot.slane %v3684_v63, 1  ;;  %v3875_v62 = vunpack.c.l.bf16 %v3891_v8  ;;  %v2597_v24 = vsel %vm1555_vm6, %v2595_v23, %v2596_v48 }
  0xe7   : > { %v5222_v21 = vpop.permute.xlu1 %2518  ;;  %v2631_v17 = vpop.permute.xlu0 %2630  ;;  %v2470_v9 = vor.u32 %v2469_v59, %v2465_v39  ;;  %v1375_v54 = vshll.u32 %v5250_v42, 16  ;;  %v3876_v13 = vunpack.c.h.bf16 %v3891_v8  ;;  %v1366_v10 = vsel %vm1282_vm2, %v1361_v1, %v1365_v22  ;;  %v4147_v39 = vld [vmem:[%s5743_s4] ss:$0 sm:$0xff] }
  0xe8   : > { %v2895_v41 = vsel %vm2891_vm3, %v2862_v56, %v2631_v17  ;;  %v1368_v63 = vshrl.u32 %v5229_v18, 16  ;;  %v1372_v44 = vrot.slane %v1370_v61, 1  ;;  %v1452_v15 = vshrl.u32 %v5240_v2, 16 }
  0xe9   : > { %2252 = vrot.lane.b32.xlu1 %v5134_v43, %s4162_s21  ;;  %2510 = vrot.lane.b32.xlu0 %v2379_v38, %s4163_s27  ;;  %v2594_v43 = vsel %vm1555_vm6, %v2592_v53, %v2593_v35  ;;  %v1151_v35 = vld [vmem:[#allocation2 + $0xb4] sm:$0xe]  ;;  %v327_v38 = vmul.f32 %v4146_v49, %v3875_v62  ;;  %v1456_v5 = vrot.slane %v1454_v27, 1  ;;  %v1459_v20 = vshll.u32 %v5263_v29, 16 }
  0xea   : > { %3933 = vmatmul.mubr.msk.bf16.vlgmr.msra.gmra.mrb[0].mxu0 %vm2924_vm4, %v2895_v41  ;;  %v328_v0 = vmul.f32 %v4146_v49, %v3876_v13  ;;  %v2845_v56 = vsel %vm2825_vm15, %v2812_v50, %v5161_v34  ;;  %v2475_v17 = vsel %vm1282_vm2, %v2470_v9, %v2474_v12  ;;  %v5288_v41 = vcombine.low %v991_v47, %v5272_v52 }
  0xeb   : > { %v2645_v6 = vpop.permute.xlu1 %2644  ;;  %v5260_v28 = vpop.permute.xlu0 %1481  ;;  %v366_v59 = vadd.f32 %v4147_v39, %v327_v38  ;;  %v2878_v16 = vsel %vm2858_vm1, %v2845_v56, %v5222_v21  ;;  %v3582_v34 = vcombine.low %v1015_v7, %v5146_v25  ;;  %v1373_v48 = vor.u32 %v1372_v44, %v1368_v63  ;;  %v954_v44 = vld [vmem:[#allocation2 + $0xc0] sm:$0xf]  ;;  %v5319_v38 = vld [vmem:[#allocation2 + $0x58] sm:$0xf]  ;;  %v958_v56 = vld [vmem:[#allocation2 + $0xc8] sm:$0x1] }
  0xec   : > { %v2909_v19 = vsel %vm2891_vm3, %v2876_v40, %v2645_v6  ;;  %v3685_v40 = vcombine.low %v1151_v35, %v5166_v36  ;;  %v1377_v8 = vrot.slane %v1375_v54, 1  ;;  %v1457_v21 = vor.u32 %v1456_v5, %v1452_v15  ;;  %v1016_v36 = vld [vmem:[#allocation2 + $0x54] sm:$0xe] }
  0xed   : > { %2254 = vrot.lane.b32.xlu1 %v5187_v46, %s4162_s21  ;;  %3948 = vmatprep.mubr.msk.bf16.mxu1 %vm2924_vm4, %v2909_v19  ;;  %v2617_v46 = vrot.slane %v5152_v14, 1  ;;  %v3779_v19 = vpack.c.bf16 %v366_v59, %v366_v59  ;;  %v1461_v22 = vrot.slane %v1459_v20, 1  ;;  %v1466_v25 = vshll.u32 %v5288_v41, 16  ;;  %v1023_v59 = vld [vmem:[#allocation2 + $0xa8] sm:$0xe] }
  0xee   : > { %2636 = vrot.lane.b32.xlu0 %v2594_v43, %s4164_s11  ;;  %v367_v43 = vadd.f32 %v4147_v39, %v328_v0  ;;  %v1574_v62 = vrot.slane %v3582_v34, 1  ;;  %v1575_v54 = vrot.slane %v5196_v58, 1  ;;  %v1378_v35 = vsel %vm1282_vm2, %v1373_v48, %v1377_v8  ;;  %v1039_v48 = vld [vmem:[#allocation2 + $0x60] sm:$0xf]  ;;  %v5333_v8 = vld [vmem:[#allocation2 + $0x64] sm:$0xf] }
  0xef   : > { %v5266_v53 = vpop.permute.xlu1 %1495  ;;  %v5280_v14 = vpop.permute.xlu0 %1608  ;;  %v2618_v50 = vsel %vm1555_vm6, %v2616_v45, %v2617_v46  ;;  %v779_v27 = vshrl.u32 %v3779_v19, 16  ;;  %v782_v9 = vshll.u32 %v3779_v19, 16  ;;  %v3583_v45 = vcombine.low %v1016_v36, %v5210_v3  ;;  %v1037_v46 = vld [vmem:[#allocation2 + $0x54] sm:$0xf] }
  0xf0   : > { %v3780_v61 = vpack.c.bf16 %v367_v43, %v367_v43  ;;  %v1462_v49 = vsel %vm1282_vm2, %v1457_v21, %v1461_v22  ;;  %v1464_v58 = vshrl.u32 %v5288_v41, 16  ;;  %v1468_v5 = vrot.slane %v1466_v25, 1 }
  0xf1   : > { %2524 = vrot.lane.b32.xlu1 %v2463_v32, %s4163_s27  ;;  %v5304_v32 = vld [vmem:[#allocation2 + $0xbc] ss:$0 sps:$4 sm:$0x11]   ;;  %v781_v63 = vrot.slane %v779_v27, 7  ;;  %v1576_v39 = vsel %vm1555_vm6, %v1574_v62, %v1575_v54  ;;  %v3598_v34 = vcombine.low %v1037_v46, %v5319_v38  ;;  %v3590_v55 = vcombine.low %v1023_v59, %v5200_v57 }
  0xf2   : > { %1487 = vrot.lane.b32.xlu0 %v1366_v10, %s4158_s29  ;;  %v787_v47 = vshrl.u32 %v3780_v61, 16  ;;  %v790_v13 = vshll.u32 %v3780_v61, 16  ;;  %v2619_v10 = vrot.slane %v3685_v40, 1  ;;  %v1471_v20 = vshll.u32 %v5304_v32, 16 }
  0xf3   : > { %v2647_v6 = vpop.permute.xlu1 %2646  ;;  %v5301_v1 = vpop.permute.xlu0 %1610  ;;  %v784_v3 = vor.u32 %v782_v9, %v781_v63  ;;  %v785_v0 = vrot.slane %v781_v63, 4  ;;  %v1577_v40 = vrot.slane %v3583_v45, 1  ;;  %v1469_v22 = vor.u32 %v1468_v5, %v1464_v58  ;;  %v5360_v45 = vld [vmem:[#allocation2 + $0xb8] sm:$0xf] }
  0xf4   : > { %v2911_v23 = vsel %vm2891_vm3, %v2878_v16, %v2647_v6  ;;  %v789_v15 = vrot.slane %v787_v47, 7  ;;  %v1578_v6 = vrot.slane %v5250_v42, 1  ;;  %v1473_v36 = vrot.slane %v1471_v20, 1 }
  0xf5   : > { %2526 = vrot.lane.b32.xlu1 %v2475_v17, %s4163_s27  ;;  %3949 = vmatmul.mubr.msk.bf16.vlgmr.msra.gmra.mrb[0].mxu1 %vm2924_vm4, %v2911_v23  ;;  %v955_v43 = vsel %vm4313_vm8, %v784_v3, %v954_v44  ;;  %v3599_v25 = vcombine.low %v1039_v48, %v5333_v8  ;;  %v1871_v27 = vshll.u32 %v3598_v34, 16  ;;  %v1598_v62 = vrot.slane %v3590_v55, 1 }
  0xf6   : > { %2638 = vrot.lane.b32.xlu0 %v2597_v24, %s4164_s11  ;;  %v2620_v24 = vrot.slane %v5218_v37, 1  ;;  %v792_v16 = vor.u32 %v790_v13, %v789_v15  ;;  %v794_v37 = vrot.slane %v789_v15, 4  ;;  %956 = vst [vmem:[#allocation2 + $0xc0] sm:$0xf] %v955_v43  ;;  %v1579_v51 = vsel %vm1555_vm6, %v1577_v40, %v1578_v6 }
  0xf7   : > { %v5307_v12 = vpop.permute.xlu1 %1497  ;;  %v5314_v7 = vpop.permute.xlu0 %1720  ;;  %v1474_v57 = vsel %vm1282_vm2, %v1469_v22, %v1473_v36  ;;  %v1599_v54 = vrot.slane %v5263_v29, 1  ;;  %v5355_v13 = vld [vmem:[#allocation2 + $0x68] ss:$0 sps:$4 sm:$0x11]   ;;  %v1869_v46 = vshrl.u32 %v3598_v34, 16  ;;  %v1873_v63 = vrot.slane %v1871_v27, 1 }
  0xf8   : > { %v793_v19 = vsel %vm4304_vm7, %v785_v0, %v792_v16  ;;  %v959_v21 = vsel %vm4336_vm9, %v794_v37, %v958_v56  ;;  %v2621_v42 = vsel %vm1555_vm6, %v2619_v10, %v2620_v24  ;;  %v1053_v10 = vld [vmem:[#allocation2 + $0xb4] sm:$0xf]  ;;  %v1876_v44 = vshll.u32 %v5347_v26, 16  ;;  %v5378_v40 = vld [vmem:[#allocation2 + $0xbc] ss:$0 sps:$4 sm:$0x11]  }
  0xf9   : > { %2652 = vrot.lane.b32.xlu1 %v2618_v50, %s4164_s11  ;;  %957 = vst.msk [vmem:[#allocation2 + $0xc4] sm:$0xf] %vm384_vm0, %v793_v19  ;;  %960 = vst [vmem:[#allocation2 + $0xc8] sm:$0x1] %v959_v21  ;;  %v1024_v50 = vld [vmem:[#allocation2 + $0xb4] sm:$0xe]  ;;  %v1600_v29 = vsel %vm1555_vm6, %v1598_v62, %v1599_v54  ;;  %v3606_v15 = vcombine.low %v1053_v10, %v5360_v45  ;;  %v1874_v56 = vor.u32 %v1873_v63, %v1869_v46 }
  0xfa   : > { %1489 = vrot.lane.b32.xlu0 %v1378_v35, %s4158_s29  ;;  %v3591_v47 = vcombine.low %v1024_v50, %v5272_v52  ;;  %v1602_v58 = vrot.slane %v5304_v32, 1  ;;  %v1881_v20 = vshrl.u32 %v3599_v25, 16  ;;  %v1888_v16 = vshll.u32 %v5355_v13, 16  ;;  %v1079_v32 = vld [vmem:[#allocation2 + $0x54] sm:$0xe] }
  0xfb   : > { %v5322_v17 = vpop.permute.xlu1 %1624  ;;  %v5331_v23 = vpop.permute.xlu0 %1722  ;;  %v1967_v43 = vshll.u32 %v3606_v15, 16  ;;  %v3630_v22 = vcombine.low %v1079_v32, %v5319_v38  ;;  %v1972_v55 = vshll.u32 %v5378_v40, 16  ;;  %v1080_v50 = vld [vmem:[#allocation2 + $0x60] sm:$0xe]  ;;  %v2087_v38 = vrot.slane %v5347_v26, 1 }
  0xfc   : > { %v1601_v52 = vrot.slane %v3591_v47, 1  ;;  %v3631_v10 = vcombine.low %v1080_v50, %v5333_v8  ;;  %v1102_v46 = vld [vmem:[#allocation2 + $0x60] sm:$0xf]  ;;  %v5399_v63 = vld [vmem:[#allocation2 + $0x64] sm:$0xf] }
  0xfd   : > { %1503 = vrot.lane.b32.xlu1 %v1462_v49, %s4158_s29  ;;  %v1883_v49 = vshll.u32 %v3599_v25, 16  ;;  %v1055_v3 = vld [vmem:[#allocation2 + $0xc0] sm:$0xf]  ;;  %v1969_v27 = vrot.slane %v1967_v43, 1  ;;  %v2086_v47 = vrot.slane %v3630_v22, 1  ;;  %v3646_v26 = vcombine.low %v1102_v46, %v5399_v63 }
  0xfe   : > { %1616 = vrot.lane.b32.xlu0 %v1576_v39, %s4157_s28  ;;  %v1878_v39 = vrot.slane %v1876_v44, 1  ;;  %v1603_v6 = vsel %vm1555_vm6, %v1601_v52, %v1602_v58  ;;  %v1104_v32 = vld [vmem:[#allocation2 + $0x6c] sm:$0xf]  ;;  %v1088_v22 = vld [vmem:[#allocation2 + $0xc0] sm:$0xe] }
  0xff   : > { %v5342_v61 = vpop.permute.xlu1 %1626  ;;  %v5350_v9 = vpop.permute.xlu0 %1992  ;;  %v1885_v59 = vrot.slane %v1883_v49, 1  ;;  %v1974_v49 = vrot.slane %v1972_v55, 1  ;;  %v2088_v8 = vsel %vm1555_vm6, %v2086_v47, %v2087_v38  ;;  %v2383_v55 = vshll.u32 %v3646_v26, 16  ;;  %v5421_v50 = vld [vmem:[#allocation2 + $0x68] ss:$0 sps:$4 sm:$0x11]  }
 0x100   : > { %v5372_v0 = vld [vmem:[#allocation2 + $0xc4] sm:$0xf]  ;;  %v1879_v19 = vsel %vm1282_vm2, %v1874_v56, %v1878_v39  ;;  %v2089_v39 = vrot.slane %v3631_v10, 1  ;;  %v2666_v47 = vsel %vm2660_vm10, %v4527_v33, %v5206_v4  ;;  %v2381_v10 = vshrl.u32 %v3646_v26, 16 }
 0x101   : > { %2654 = vrot.lane.b32.xlu1 %v2621_v42, %s4164_s11  ;;  %v1886_v21 = vor.u32 %v1885_v59, %v1881_v20  ;;  %v1890_v42 = vrot.slane %v1888_v16, 1  ;;  %v2090_v59 = vrot.slane %v5355_v13, 1  ;;  %v2385_v46 = vrot.slane %v2383_v55, 1  ;;  %v1144_v55 = vld [vmem:[#allocation2 + $0x60] sm:$0xe] }
 0x102   : > { %1618 = vrot.lane.b32.xlu0 %v1579_v51, %s4157_s28  ;;  %v1965_v51 = vshrl.u32 %v3606_v15, 16 }
 0x103   : > { %v5357_v35 = vpop.permute.xlu1 %1736  ;;  %v5364_v24 = vpop.permute.xlu0 %1994  ;;  %v2091_v13 = vsel %vm1555_vm6, %v2089_v39, %v2090_v59  ;;  %v1120_v59 = vld [vmem:[#allocation2 + $0xcc] sm:$0xf] }
 0x105   : > { %1505 = vrot.lane.b32.xlu1 %v1474_v57, %s4158_s29  ;;  %v5391_v57 = vld [vmem:[#allocation2 + $0xc8] ss:$0 sps:$4 sm:$0x11]  }
 0x106   : > { %1728 = vrot.lane.b32.xlu0 %v3598_v34, %s4159_s30  ;;  %v3607_v34 = vcombine.low %v1055_v3, %v5372_v0  ;;  %v1984_v20 = vshll.u32 %v5391_v57, 16  ;;  %v1087_v3 = vld [vmem:[#allocation2 + $0xb4] sm:$0xe]  ;;  %v2114_v39 = vrot.slane %v5391_v57, 1 }
 0x107   : > { %v5369_v5 = vpop.permute.xlu1 %1738  ;;  %v5376_v37 = vpop.permute.xlu0 %2120  ;;  %v3638_v16 = vcombine.low %v1087_v3, %v5360_v45 }
 0x108   : > { %v1979_v62 = vshll.u32 %v3607_v34, 16  ;;  %v1977_v52 = vshrl.u32 %v3607_v34, 16 }
 0x109   : > { %1632 = vrot.lane.b32.xlu1 %v1600_v29, %s4157_s28  ;;  %v1970_v29 = vor.u32 %v1969_v27, %v1965_v51  ;;  %v2110_v51 = vrot.slane %v3638_v16, 1  ;;  %v2111_v27 = vrot.slane %v5378_v40, 1  ;;  %v2699_v40 = vsel %vm2693_vm11, %v2666_v47, %v5280_v14  ;;  %v5448_v16 = vld [vmem:[#allocation2 + $0xd0] sm:$0xf] }
 0x10a   : > { %1730 = vrot.lane.b32.xlu0 %v3599_v25, %s4159_s30  ;;  %v1891_v25 = vsel %vm1282_vm2, %v1886_v21, %v1890_v42  ;;  %v1981_v58 = vrot.slane %v1979_v62, 1  ;;  %v1986_v21 = vrot.slane %v1984_v20, 1  ;;  %v2732_v33 = vsel %vm2726_vm12, %v2699_v40, %v5314_v7  ;;  %v1145_v40 = vld [vmem:[#allocation2 + $0x6c] sm:$0xe] }
 0x10b   : > { %v5382_v48 = vpop.permute.xlu1 %2008  ;;  %v5388_v36 = vpop.permute.xlu0 %2122  ;;  %v1975_v43 = vsel %vm1282_vm2, %v1970_v29, %v1974_v49  ;;  %v1118_v49 = vld [vmem:[#allocation2 + $0xc0] sm:$0xf]  ;;  %v5433_v29 = vld [vmem:[#allocation2 + $0xc4] sm:$0xf]  ;;  %v2112_v20 = vsel %vm1555_vm6, %v2110_v51, %v2111_v27  ;;  %v2765_v3 = vsel %vm2759_vm13, %v2732_v33, %v5350_v9  ;;  %v2682_v47 = vsel %vm2660_vm10, %v4581_v31, %v5266_v53 }
 0x10c   : > { %v3654_v14 = vcombine.low %v1118_v49, %v5433_v29 }
 0x10d   : > { %1634 = vrot.lane.b32.xlu1 %v1603_v6, %s4157_s28  ;;  %v5413_v6 = vld [vmem:[#allocation2 + $0x70] sm:$0xf] }
 0x10e   : > { %2000 = vrot.lane.b32.xlu0 %v1879_v19, %s4161_s13  ;;  %v1982_v19 = vor.u32 %v1981_v58, %v1977_v52  ;;  %v2388_v52 = vshll.u32 %v5421_v50, 16  ;;  %v5438_v58 = vld [vmem:[#allocation2 + $0x74] ss:$0 sps:$4 sm:$0x11]   ;;  %v2477_v33 = vshrl.u32 %v3654_v14, 16 }
 0x10f   : > { %v5393_v54 = vpop.permute.xlu1 %2010  ;;  %v2233_v44 = vpop.permute.xlu0 %2232  ;;  %v2400_v57 = vshll.u32 %v5438_v58, 16 }
 0x110   : > { %v1987_v62 = vsel %vm1282_vm2, %v1982_v19, %v1986_v21  ;;  %v2390_v9 = vrot.slane %v2388_v52, 1  ;;  %v2715_v52 = vsel %vm2693_vm11, %v2682_v47, %v5322_v17  ;;  %v1153_v47 = vld [vmem:[#allocation2 + $0xcc] sm:$0xe] }
 0x111   : > { %1744 = vrot.lane.b32.xlu1 %v3606_v15, %s4159_s30  ;;  %v2402_v49 = vrot.slane %v2400_v57, 1  ;;  %v2748_v17 = vsel %vm2726_vm12, %v2715_v52, %v5357_v35  ;;  %v2684_v57 = vsel %vm2660_vm10, %v4636_v60, %v5307_v12 }
 0x112   : > { %2002 = vrot.lane.b32.xlu0 %v1891_v25, %s4161_s13  ;;  %v3639_v25 = vcombine.low %v1088_v22, %v5372_v0 }
 0x113   : > { %v5403_v56 = vpop.permute.xlu1 %2136  ;;  %v5410_v15 = vpop.permute.xlu0 %2234 }
 0x115   : > { %1746 = vrot.lane.b32.xlu1 %v3607_v34, %s4159_s30  ;;  %v3647_v34 = vcombine.low %v1104_v32, %v5413_v6  ;;  %v2798_v32 = vsel %vm2792_vm14, %v2765_v3, %v5376_v37 }
 0x116   : > { %2128 = vrot.lane.b32.xlu0 %v2088_v8, %s4160_s6  ;;  %v2113_v8 = vrot.slane %v3639_v25, 1  ;;  %v2831_v21 = vsel %vm2825_vm15, %v2798_v32, %v2233_v44  ;;  %v2479_v25 = vshll.u32 %v3654_v14, 16 }
 0x117   : > { %v5416_v42 = vpop.permute.xlu1 %2138  ;;  %v2505_v45 = vpop.permute.xlu0 %2504  ;;  %v2395_v0 = vshll.u32 %v3647_v34, 16  ;;  %v2393_v19 = vshrl.u32 %v3647_v34, 16 }
 0x118   : > { %v2864_v51 = vsel %vm2858_vm1, %v2831_v21, %v2505_v45  ;;  %v2115_v44 = vsel %vm1555_vm6, %v2113_v8, %v2114_v39  ;;  %v3679_v39 = vcombine.low %v1145_v40, %v5413_v6 }
 0x119   : > { %2016 = vrot.lane.b32.xlu1 %v1975_v43, %s4161_s13  ;;  %v2386_v43 = vor.u32 %v2385_v46, %v2381_v10  ;;  %v2397_v22 = vrot.slane %v2395_v0, 1 }
 0x11a   : > { %2130 = vrot.lane.b32.xlu0 %v2091_v13, %s4160_s6  ;;  %v2668_v13 = vsel %vm2660_vm10, %v4578_v30, %v5260_v28  ;;  %v3678_v30 = vcombine.low %v1144_v55, %v5399_v63  ;;  %v2599_v63 = vrot.slane %v5421_v50, 1 }
 0x11b   : > { %v5430_v38 = vpop.permute.xlu1 %2248  ;;  %v2507_v4 = vpop.permute.xlu0 %2506  ;;  %v2701_v28 = vsel %vm2693_vm11, %v2668_v13, %v5301_v1  ;;  %v2391_v45 = vsel %vm1282_vm2, %v2386_v43, %v2390_v9  ;;  %v2398_v46 = vor.u32 %v2397_v22, %v2393_v19  ;;  %v2601_v13 = vrot.slane %v3679_v39, 1 }
 0x11c   : > { %v2734_v31 = vsel %vm2726_vm12, %v2701_v28, %v5331_v23  ;;  %v2598_v50 = vrot.slane %v3678_v30, 1 }
 0x11d   : > { %2018 = vrot.lane.b32.xlu1 %v1987_v62, %s4161_s13  ;;  %v5465_v62 = vld [vmem:[#allocation2 + $0xc8] ss:$0 sps:$4 sm:$0x11]   ;;  %v2767_v0 = vsel %vm2759_vm13, %v2734_v31, %v5364_v24  ;;  %v2403_v32 = vsel %vm1282_vm2, %v2398_v46, %v2402_v49  ;;  %s5642_s13 = scalar_lea.vmem %s5744_s5, %s3747_s20 }
 0x11e   : > { %2240 = vrot.lane.b32.xlu0 %v3646_v26, %s4162_s21  ;;  %v3655_v26 = vcombine.low %v1120_v59, %v5448_v16  ;;  %v2484_v3 = vshll.u32 %v5465_v62, 16  ;;  %v2800_v23 = vsel %vm2792_vm14, %v2767_v0, %v5388_v36  ;;  %v2781_v59 = vsel %vm2759_vm13, %v2748_v17, %v5382_v48 }
 0x11f   : > { %v5452_v7 = vpop.permute.xlu1 %2250  ;;  %v2633_v37 = vpop.permute.xlu0 %2632  ;;  %v2833_v24 = vsel %vm2825_vm15, %v2800_v23, %v5410_v15  ;;  %v2814_v35 = vsel %vm2792_vm14, %v2781_v59, %v5403_v56  ;;  %v2623_v49 = vrot.slane %v5465_v62, 1 }
 0x120   : > { %v2897_v27 = vsel %vm2891_vm3, %v2864_v51, %v2633_v37  ;;  %v2491_v1 = vshll.u32 %v3655_v26, 16  ;;  %v2489_v43 = vshrl.u32 %v3655_v26, 16  ;;  %v2866_v36 = vsel %vm2858_vm1, %v2833_v24, %v2507_v4 }
 0x121   : > { %2144 = vrot.lane.b32.xlu1 %v2112_v20, %s4160_s6  ;;  %3936 = vmatprep.mubr.msk.bf16.mxu0 %vm2924_vm4, %v2897_v27  ;;  %v2481_v20 = vrot.slane %v2479_v25, 1  ;;  %v2847_v48 = vsel %vm2825_vm15, %v2814_v35, %v5430_v38  ;;  %v2486_v22 = vrot.slane %v2484_v3, 1  ;;  %v2600_v38 = vsel %vm1555_vm6, %v2598_v50, %v2599_v63 }
 0x122   : > { %2242 = vrot.lane.b32.xlu0 %v3647_v34, %s4162_s21  ;;  %v5484_v34 = vld [vmem:[#allocation2 + $0xd4] ss:$0 sps:$4 sm:$0x11]   ;;  %v2493_v21 = vrot.slane %v2491_v1, 1  ;;  %v2602_v51 = vrot.slane %v5438_v58, 1  ;;  %v2717_v37 = vsel %vm2693_vm11, %v2684_v57, %v5342_v61 }
 0x123   : > { %v2521_v10 = vpop.permute.xlu1 %2520  ;;  %v5481_v53 = vpop.permute.xlu0 %1483  ;;  %v2496_v6 = vshll.u32 %v5484_v34, 16  ;;  %v2482_v15 = vor.u32 %v2481_v20, %v2477_v33  ;;  %v2626_v31 = vrot.slane %v5484_v34, 1 }
 0x124   : > { %v2880_v56 = vsel %vm2858_vm1, %v2847_v48, %v2521_v10  ;;  %v2494_v27 = vor.u32 %v2493_v21, %v2489_v43  ;;  %v2750_v10 = vsel %vm2726_vm12, %v2717_v37, %v5369_v5  ;;  %v2603_v58 = vsel %vm1555_vm6, %v2601_v13, %v2602_v51 }
 0x125   : > { %2146 = vrot.lane.b32.xlu1 %v2115_v44, %s4160_s6  ;;  %v2487_v12 = vsel %vm1282_vm2, %v2482_v15, %v2486_v22  ;;  %v2498_v44 = vrot.slane %v2496_v6, 1  ;;  %v2783_v61 = vsel %vm2759_vm13, %v2750_v10, %v5393_v54 }
 0x126   : > { %2512 = vrot.lane.b32.xlu0 %v2391_v45, %s4163_s27 }
 0x127   : > { %v2523_v8 = vpop.permute.xlu1 %2522  ;;  %v2635_v19 = vpop.permute.xlu0 %2634  ;;  %v2499_v5 = vsel %vm1282_vm2, %v2494_v27, %v2498_v44 }
 0x128   : > { %v2899_v9 = vsel %vm2891_vm3, %v2866_v36, %v2635_v19  ;;  %v5759_v19 = vld [vmem:[#allocation3_spill] sm:$0xff] }
 0x129   : > { %2256 = vrot.lane.b32.xlu1 %v3654_v14, %s4162_s21  ;;  %3937 = vmatmul.mubr.msk.bf16.gmra.mrb[4].mxu0 %vm2924_vm4, %v2899_v9  ;;  %v1152_v14 = vld [vmem:[#allocation2 + $0xc0] sm:$0xe]  ;;  %v2670_v21 = vsel %vm2660_vm10, %v5759_v19, %v5481_v53 }
 0x12a   : > { %2514 = vrot.lane.b32.xlu0 %v2403_v32, %s4163_s27  ;;  %v3686_v25 = vcombine.low %v1152_v14, %v5433_v29  ;;  %v3687_v29 = vcombine.low %v1153_v47, %v5448_v16  ;;  %v5760_v14 = vld [vmem:[#allocation4_spill] sm:$0xff] }
 0x12b   : > { %v2649_v4 = vpop.permute.xlu1 %2648  ;;  %v1486_v60 = vpop.permute.xlu0 %1485 }
 0x12c   : > { %v2913_v55 = vsel %vm2891_vm3, %v2880_v56, %v2649_v4  ;;  %v2622_v46 = vrot.slane %v3686_v25, 1 }
 0x12d   : > { %2258 = vrot.lane.b32.xlu1 %v3655_v26, %s4162_s21  ;;  %3952 = vmatprep.mubr.msk.bf16.mxu1 %vm2924_vm4, %v2913_v55  ;;  %v2816_v26 = vsel %vm2792_vm14, %v2783_v61, %v5416_v42  ;;  %v2672_v55 = vsel %vm2660_vm10, %v5760_v14, %v1486_v60 }
 0x12e   : > { %2640 = vrot.lane.b32.xlu0 %v2600_v38, %s4164_s11  ;;  %v2849_v45 = vsel %vm2825_vm15, %v2816_v26, %v5452_v7  ;;  %v2624_v52 = vsel %vm1555_vm6, %v2622_v46, %v2623_v49  ;;  %v2625_v7 = vrot.slane %v3687_v29, 1 }
 0x12f   : > { %v1500_v30 = vpop.permute.xlu1 %1499  ;;  %v1613_v28 = vpop.permute.xlu0 %1612  ;;  %v2882_v54 = vsel %vm2858_vm1, %v2849_v45, %v2523_v8 }
 0x130   : > { %v2627_v1 = vsel %vm1555_vm6, %v2625_v7, %v2626_v31  ;;  %v2703_v48 = vsel %vm2693_vm11, %v2670_v21, %v1613_v28 }
 0x131   : > { %2528 = vrot.lane.b32.xlu1 %v2487_v12, %s4163_s27  ;;  %v5761_v12 = vld [vmem:[#allocation5_spill] sm:$0xff] }
 0x132   : > { %2642 = vrot.lane.b32.xlu0 %v2603_v58, %s4164_s11  ;;  %v2686_v27 = vsel %vm2660_vm10, %v5761_v12, %v1500_v30 }
 0x133   : > { %v2651_v40 = vpop.permute.xlu1 %2650  ;;  %v1615_v16 = vpop.permute.xlu0 %1614 }
 0x134   : > { %v2915_v42 = vsel %vm2891_vm3, %v2882_v54, %v2651_v40  ;;  %v2705_v37 = vsel %vm2693_vm11, %v2672_v55, %v1615_v16 }
 0x135   : > { %2530 = vrot.lane.b32.xlu1 %v2499_v5, %s4163_s27  ;;  %3953 = vmatmul.mubr.msk.bf16.gmra.mrb[4].mxu1 %vm2924_vm4, %v2915_v42  ;;  %v5762_v42 = vld [vmem:[#allocation6_spill] sm:$0xff] }
 0x137   : > { %v1502_v63 = vpop.permute.xlu1 %1501  ;;  %v1725_v62 = vpop.permute.xlu0 %1724 }
 0x138   : > { %v2736_v9 = vsel %vm2726_vm12, %v2703_v48, %v1725_v62  ;;  %v2688_v16 = vsel %vm2660_vm10, %v5762_v42, %v1502_v63 }
 0x139   : > { %2656 = vrot.lane.b32.xlu1 %v2624_v52, %s4164_s11 }
 0x13b   : > { %v1629_v0 = vpop.permute.xlu1 %1628  ;;  %v1727_v33 = vpop.permute.xlu0 %1726 }
 0x13c   : > { %v2738_v44 = vsel %vm2726_vm12, %v2705_v37, %v1727_v33  ;;  %v2719_v47 = vsel %vm2693_vm11, %v2686_v27, %v1629_v0 }
 0x13d   : > { %2658 = vrot.lane.b32.xlu1 %v2627_v1, %s4164_s11 }
 0x13f   : > { %v1631_v20 = vpop.permute.xlu1 %1630  ;;  %v1997_v3 = vpop.permute.xlu0 %1996 }
 0x140   : > { %v2769_v22 = vsel %vm2759_vm13, %v2736_v9, %v1997_v3  ;;  %v2721_v7 = vsel %vm2693_vm11, %v2688_v16, %v1631_v20 }
 0x143   : > { %v1741_v17 = vpop.permute.xlu1 %1740  ;;  %v1999_v23 = vpop.permute.xlu0 %1998 }
 0x144   : > { %v2771_v60 = vsel %vm2759_vm13, %v2738_v44, %v1999_v23  ;;  %v2752_v10 = vsel %vm2726_vm12, %v2719_v47, %v1741_v17 }
 0x147   : > { %v1743_v8 = vpop.permute.xlu1 %1742  ;;  %v2125_v50 = vpop.permute.xlu0 %2124 }
 0x148   : > { %v2802_v57 = vsel %vm2792_vm14, %v2769_v22, %v2125_v50  ;;  %v2754_v31 = vsel %vm2726_vm12, %v2721_v7, %v1743_v8 }
 0x14b   : > { %v2013_v39 = vpop.permute.xlu1 %2012  ;;  %v2127_v59 = vpop.permute.xlu0 %2126 }
 0x14c   : > { %v2804_v61 = vsel %vm2792_vm14, %v2771_v60, %v2127_v59  ;;  %v2785_v26 = vsel %vm2759_vm13, %v2752_v10, %v2013_v39 }
 0x14f   : > { %v2015_v24 = vpop.permute.xlu1 %2014  ;;  %v2237_v34 = vpop.permute.xlu0 %2236 }
 0x150   : > { %v2835_v4 = vsel %vm2825_vm15, %v2802_v57, %v2237_v34  ;;  %v2787_v1 = vsel %vm2759_vm13, %v2754_v31, %v2015_v24 }
 0x153   : > { %v2141_v32 = vpop.permute.xlu1 %2140  ;;  %v2239_v43 = vpop.permute.xlu0 %2238 }
 0x154   : > { %v2837_v28 = vsel %vm2825_vm15, %v2804_v61, %v2239_v43  ;;  %v2818_v29 = vsel %vm2792_vm14, %v2785_v26, %v2141_v32 }
 0x157   : > { %v2143_v35 = vpop.permute.xlu1 %2142  ;;  %v2509_v36 = vpop.permute.xlu0 %2508 }
 0x158   : > { %v2868_v38 = vsel %vm2858_vm1, %v2835_v4, %v2509_v36  ;;  %v2820_v0 = vsel %vm2792_vm14, %v2787_v1, %v2143_v35 }
 0x15b   : > { %v2253_v6 = vpop.permute.xlu1 %2252  ;;  %v2511_v15 = vpop.permute.xlu0 %2510 }
 0x15c   : > { %v2870_v30 = vsel %vm2858_vm1, %v2837_v28, %v2511_v15  ;;  %v2851_v5 = vsel %vm2825_vm15, %v2818_v29, %v2253_v6 }
 0x15f   : > { %v2255_v56 = vpop.permute.xlu1 %2254 }
 0x160   : > { %v2637_v13 = vpop.permute.xlu0 %2636  ;;  %v2853_v3 = vsel %vm2825_vm15, %v2820_v0, %v2255_v56 }
 0x161   : > { %v2901_v53 = vsel %vm2891_vm3, %v2868_v38, %v2637_v13 }
 0x162   : > { %3940 = vmatprep.mubr.msk.bf16.mxu0 %vm2924_vm4, %v2901_v53 }
 0x163   : > { %v2525_v51 = vpop.permute.xlu1 %2524 }
 0x164   : > { %v1488_v25 = vpop.permute.xlu0 %1487  ;;  %v2884_v49 = vsel %vm2858_vm1, %v2851_v5, %v2525_v51 }
 0x165   : > { %v2674_v56 = vsel %vm2660_vm10, %v5171_v11, %v1488_v25 }
 0x167   : > { %v2527_v58 = vpop.permute.xlu1 %2526 }
 0x168   : > { %v2639_v45 = vpop.permute.xlu0 %2638  ;;  %v2886_v17 = vsel %vm2858_vm1, %v2853_v3, %v2527_v58  ;;  %v5631_v3 = vld [vmem:[%s5741_s2] ss:$0 sm:$0xff] }
 0x169   : > { %v2903_v46 = vsel %vm2891_vm3, %v2870_v30, %v2639_v45 }
 0x16a   : > { %3941 = vmatmul.mubr.msk.bf16.gmra.mrb[8].mxu0 %vm2924_vm4, %v2903_v46 }
 0x16b   : > { %v2653_v54 = vpop.permute.xlu1 %2652 }
 0x16c   : > { %v2917_v40 = vsel %vm2891_vm3, %v2884_v49, %v2653_v54  ;;  %v1490_v52 = vpop.permute.xlu0 %1489 }
 0x16d   : > { %3956 = vmatprep.mubr.msk.bf16.mxu1 %vm2924_vm4, %v2917_v40  ;;  %v2676_v55 = vsel %vm2660_vm10, %v5229_v18, %v1490_v52 }
 0x16f   : > { %v1504_v62 = vpop.permute.xlu1 %1503 }
 0x170   : > { %v1617_v33 = vpop.permute.xlu0 %1616  ;;  %v2690_v58 = vsel %vm2660_vm10, %v5240_v2, %v1504_v62 }
 0x171   : > { %v2707_v14 = vsel %vm2693_vm11, %v2674_v56, %v1617_v33 }
 0x173   : > { %v2655_v23 = vpop.permute.xlu1 %2654 }
 0x174   : > { %v2919_v63 = vsel %vm2891_vm3, %v2886_v17, %v2655_v23  ;;  %v1619_v50 = vpop.permute.xlu0 %1618 }
 0x175   : > { %3957 = vmatmul.mubr.msk.bf16.gmra.mrb[8].mxu1 %vm2924_vm4, %v2919_v63  ;;  %v2709_v12 = vsel %vm2693_vm11, %v2676_v55, %v1619_v50 }
 0x177   : > { %v1506_v39 = vpop.permute.xlu1 %1505 }
 0x178   : > { %v1729_v20 = vpop.permute.xlu0 %1728  ;;  %v2692_v49 = vsel %vm2660_vm10, %v5288_v41, %v1506_v39 }
 0x179   : > { %v2740_v38 = vsel %vm2726_vm12, %v2707_v14, %v1729_v20 }
 0x17b   : > { %v1633_v59 = vpop.permute.xlu1 %1632 }
 0x17c   : > { %v1731_v8 = vpop.permute.xlu0 %1730  ;;  %v2723_v29 = vsel %vm2693_vm11, %v2690_v58, %v1633_v59 }
 0x17d   : > { %v2742_v11 = vsel %vm2726_vm12, %v2709_v12, %v1731_v8 }
 0x17f   : > { %v1635_v34 = vpop.permute.xlu1 %1634 }
 0x180   : > { %v2001_v32 = vpop.permute.xlu0 %2000  ;;  %v2725_v2 = vsel %vm2693_vm11, %v2692_v49, %v1635_v34 }
 0x181   : > { %v2773_v53 = vsel %vm2759_vm13, %v2740_v38, %v2001_v32 }
 0x183   : > { %v1745_v24 = vpop.permute.xlu1 %1744 }
 0x184   : > { %v2003_v43 = vpop.permute.xlu0 %2002  ;;  %v2756_v45 = vsel %vm2726_vm12, %v2723_v29, %v1745_v24 }
 0x185   : > { %v2775_v47 = vsel %vm2759_vm13, %v2742_v11, %v2003_v43 }
 0x187   : > { %v1747_v35 = vpop.permute.xlu1 %1746 }
 0x188   : > { %v2129_v36 = vpop.permute.xlu0 %2128  ;;  %v2758_v42 = vsel %vm2726_vm12, %v2725_v2, %v1747_v35 }
 0x189   : > { %v2806_v51 = vsel %vm2792_vm14, %v2773_v53, %v2129_v36 }
 0x18b   : > { %v2017_v19 = vpop.permute.xlu1 %2016 }
 0x18c   : > { %v2131_v21 = vpop.permute.xlu0 %2130  ;;  %v2789_v46 = vsel %vm2759_vm13, %v2756_v45, %v2017_v19 }
 0x18d   : > { %v2808_v60 = vsel %vm2792_vm14, %v2775_v47, %v2131_v21 }
 0x18f   : > { %v2019_v6 = vpop.permute.xlu1 %2018 }
 0x190   : > { %v2241_v48 = vpop.permute.xlu0 %2240  ;;  %v2791_v7 = vsel %vm2759_vm13, %v2758_v42, %v2019_v6 }
 0x191   : > { %v2839_v27 = vsel %vm2825_vm15, %v2806_v51, %v2241_v48 }
 0x193   : > { %v2145_v9 = vpop.permute.xlu1 %2144 }
 0x194   : > { %v2243_v15 = vpop.permute.xlu0 %2242  ;;  %v2822_v54 = vsel %vm2792_vm14, %v2789_v46, %v2145_v9 }
 0x195   : > { %v2841_v61 = vsel %vm2825_vm15, %v2808_v60, %v2243_v15 }
 0x197   : > { %v2147_v22 = vpop.permute.xlu1 %2146 }
 0x198   : > { %v2513_v57 = vpop.permute.xlu0 %2512  ;;  %v2824_v62 = vsel %vm2792_vm14, %v2791_v7, %v2147_v22 }
 0x199   : > { %v2872_v44 = vsel %vm2858_vm1, %v2839_v27, %v2513_v57 }
 0x19b   : > { %v2257_v4 = vpop.permute.xlu1 %2256 }
 0x19c   : > { %v2515_v13 = vpop.permute.xlu0 %2514  ;;  %v2855_v40 = vsel %vm2825_vm15, %v2822_v54, %v2257_v4 }
 0x19d   : > { %v2874_v26 = vsel %vm2858_vm1, %v2841_v61, %v2515_v13 }
 0x19f   : > { %v2259_v37 = vpop.permute.xlu1 %2258 }
 0x1a0   : > { %v2641_v25 = vpop.permute.xlu0 %2640  ;;  %v2857_v41 = vsel %vm2825_vm15, %v2824_v62, %v2259_v37 }
 0x1a1   : > { %v2905_v18 = vsel %vm2891_vm3, %v2872_v44, %v2641_v25 }
 0x1a2   : > { %3944 = vmatprep.mubr.msk.bf16.mxu0 %vm2924_vm4, %v2905_v18 }
 0x1a3   : > { %v2529_v10 = vpop.permute.xlu1 %2528 }
 0x1a4   : > { %v2643_v28 = vpop.permute.xlu0 %2642  ;;  %v2888_v16 = vsel %vm2858_vm1, %v2855_v40, %v2529_v10 }
 0x1a5   : > { %v2907_v30 = vsel %vm2891_vm3, %v2874_v26, %v2643_v28 }
 0x1a6   : > { %3945 = vmatmul.mubr.msk.bf16.gmra.mrb[12].mxu0 %vm2924_vm4, %v2907_v30 }
 0x1a7   : > { %v2531_v5 = vpop.permute.xlu1 %2530 }
 0x1a8   : > { %v2890_v1 = vsel %vm2858_vm1, %v2857_v41, %v2531_v5 }
 0x1ab   : > { %v2657_v52 = vpop.permute.xlu1 %2656 }
 0x1ac   : > { %v2921_v31 = vsel %vm2891_vm3, %v2888_v16, %v2657_v52 }
 0x1ad   : > { %3960 = vmatprep.mubr.msk.bf16.mxu1 %vm2924_vm4, %v2921_v31 }
 0x1af   : > { %v2659_v0 = vpop.permute.xlu1 %2658 }
 0x1b0   : > { %v2923_v33 = vsel %vm2891_vm3, %v2890_v1, %v2659_v0 }
 0x1b1   : > { %3961 = vmatmul.mubr.msk.bf16.gmra.mrb[12].mxu1 %vm2924_vm4, %v2923_v33 }
 0x1bd   : > { %v3934_v17 = vpop.f32.mrb[0].mxu0 }
 0x1be   : > { %v3072_v23 = vadd.f32 %v3934_v17, %v5631_v3  ;;  %v3063_v63 = vpop.f32.mrb[1].mxu0 }
 0x1bf   : > { %v3064_v50 = vadd.f32 %v5631_v3, %v3063_v63  ;;  %v3935_v39 = vpop.f32.mrb[2].mxu0 }
 0x1c0   : > { %vm3192_vm2 = vcmp.ge.f32.partialorder %v3072_v23, 0.0  ;;  %v3224_v20 = vmul.f32 0.2, %v3072_v23  ;;  %v3075_v59 = vadd.f32 %v3935_v39, %v5631_v3  ;;  %v3066_v8 = vpop.f32.mrb[3].mxu0 }
 0x1c1   : > { %vm3190_vm5 = vcmp.ge.f32.partialorder %v3064_v50, 0.0  ;;  %v3222_v34 = vmul.f32 0.2, %v3064_v50  ;;  %v3067_v32 = vadd.f32 %v5631_v3, %v3066_v8 }
 0x1c2   : > { %v3256_v24 = vsel %vm3192_vm2, %v3072_v23, %v3224_v20  ;;  %vm3193_vm6 = vcmp.ge.f32.partialorder %v3075_v59, 0.0  ;;  %v3225_v43 = vmul.f32 0.2, %v3075_v59 }
 0x1c3   : > { %v3783_v35 = vpack.c.bf16 %v3256_v24, %v3256_v24  ;;  %v3254_v36 = vsel %vm3190_vm5, %v3064_v50, %v3222_v34  ;;  %vm3191_vm7 = vcmp.ge.f32.partialorder %v3067_v32, 0.0  ;;  %v3223_v19 = vmul.f32 0.2, %v3067_v32 }
 0x1c4   : > { %v3781_v21 = vpack.c.bf16 %v3254_v36, %v3254_v36  ;;  %v3257_v6 = vsel %vm3193_vm6, %v3075_v59, %v3225_v43 }
 0x1c5   : > { %3416 = vst.msk [vmem:[%s5642_s13 + $0x8] sm:$0xf] %vm384_vm0, %v3783_v35  ;;  %v3784_v48 = vpack.c.bf16 %v3257_v6, %v3257_v6  ;;  %v3255_v9 = vsel %vm3191_vm7, %v3067_v32, %v3223_v19 }
 0x1c6   : > { %3414 = vst.msk [vmem:[%s5642_s13] sm:$0xf] %vm384_vm0, %v3781_v21  ;;  %v3782_v15 = vpack.c.bf16 %v3255_v9, %v3255_v9 }
 0x1c7   : > { %3417 = vst.msk [vmem:[%s5642_s13 + $0xc] sm:$0xf] %vm384_vm0, %v3784_v48 }
 0x1c8   : > { %v3950_v22 = vpop.f32.mrb[0].mxu1  ;;  %3415 = vst.msk [vmem:[%s5642_s13 + $0x4] sm:$0xf] %vm384_vm0, %v3782_v15 }
 0x1c9   : > { %v3136_v57 = vadd.f32 %v3950_v22, %v5631_v3  ;;  %v3127_v56 = vpop.f32.mrb[1].mxu1 }
 0x1ca   : > { %v3128_v4 = vadd.f32 %v5631_v3, %v3127_v56  ;;  %v3951_v14 = vpop.f32.mrb[2].mxu1 }
 0x1cb   : > { %vm3208_vm8 = vcmp.ge.f32.partialorder %v3136_v57, 0.0  ;;  %v3240_v55 = vmul.f32 0.2, %v3136_v57  ;;  %v3139_v38 = vadd.f32 %v3951_v14, %v5631_v3  ;;  %v3130_v13 = vpop.f32.mrb[3].mxu1 }
 0x1cc   : > { %vm3206_vm9 = vcmp.ge.f32.partialorder %v3128_v4, 0.0  ;;  %v3238_v53 = vmul.f32 0.2, %v3128_v4  ;;  %v3131_v51 = vadd.f32 %v5631_v3, %v3130_v13 }
 0x1cd   : > { %v3272_v37 = vsel %vm3208_vm8, %v3136_v57, %v3240_v55  ;;  %vm3209_vm10 = vcmp.ge.f32.partialorder %v3139_v38, 0.0  ;;  %v3241_v12 = vmul.f32 0.2, %v3139_v38 }
 0x1ce   : > { %v3799_v27 = vpack.c.bf16 %v3272_v37, %v3272_v37  ;;  %v3270_v11 = vsel %vm3206_vm9, %v3128_v4, %v3238_v53  ;;  %vm3207_vm11 = vcmp.ge.f32.partialorder %v3131_v51, 0.0  ;;  %v3239_v44 = vmul.f32 0.2, %v3131_v51 }
 0x1cf   : > { %v3797_v25 = vpack.c.bf16 %v3270_v11, %v3270_v11  ;;  %v3273_v47 = vsel %vm3209_vm10, %v3139_v38, %v3241_v12 }
 0x1d0   : > { %3432 = vst.msk [vmem:[%s5642_s13 + $0x48] sm:$0xf] %vm384_vm0, %v3799_v27  ;;  %v3800_v18 = vpack.c.bf16 %v3273_v47, %v3273_v47  ;;  %v3271_v60 = vsel %vm3207_vm11, %v3131_v51, %v3239_v44 }
 0x1d1   : > { %3430 = vst.msk [vmem:[%s5642_s13 + $0x40] sm:$0xf] %vm384_vm0, %v3797_v25  ;;  %v3798_v10 = vpack.c.bf16 %v3271_v60, %v3271_v60 }
 0x1d2   : > { %3433 = vst.msk [vmem:[%s5642_s13 + $0x4c] sm:$0xf] %vm384_vm0, %v3800_v18 }
 0x1d3   : > { %3431 = vst.msk [vmem:[%s5642_s13 + $0x44] sm:$0xf] %vm384_vm0, %v3798_v10 }
 0x1fc   : > { %v3938_v61 = vpop.f32.mrb[4].mxu0 }
 0x1fd   : > { %v3088_v58 = vadd.f32 %v3938_v61, %v5631_v3  ;;  %v3079_v26 = vpop.f32.mrb[5].mxu0 }
 0x1fe   : > { %v3080_v28 = vadd.f32 %v5631_v3, %v3079_v26  ;;  %v3939_v29 = vpop.f32.mrb[6].mxu0 }
 0x1ff   : > { %vm3196_vm12 = vcmp.ge.f32.partialorder %v3088_v58, 0.0  ;;  %v3228_v30 = vmul.f32 0.2, %v3088_v58  ;;  %v3091_v45 = vadd.f32 %v3939_v29, %v5631_v3  ;;  %v3082_v5 = vpop.f32.mrb[7].mxu0 }
 0x200   : > { %vm3194_vm13 = vcmp.ge.f32.partialorder %v3080_v28, 0.0  ;;  %v3226_v46 = vmul.f32 0.2, %v3080_v28  ;;  %v3083_v49 = vadd.f32 %v5631_v3, %v3082_v5 }
 0x201   : > { %v3260_v54 = vsel %vm3196_vm12, %v3088_v58, %v3228_v30  ;;  %vm3197_vm14 = vcmp.ge.f32.partialorder %v3091_v45, 0.0  ;;  %v3229_v2 = vmul.f32 0.2, %v3091_v45 }
 0x202   : > { %v3787_v40 = vpack.c.bf16 %v3260_v54, %v3260_v54  ;;  %v3258_v42 = vsel %vm3194_vm13, %v3080_v28, %v3226_v46  ;;  %vm3195_vm15 = vcmp.ge.f32.partialorder %v3083_v49, 0.0  ;;  %v3227_v16 = vmul.f32 0.2, %v3083_v49 }
 0x203   : > { %v3785_v52 = vpack.c.bf16 %v3258_v42, %v3258_v42  ;;  %v3261_v7 = vsel %vm3197_vm14, %v3091_v45, %v3229_v2 }
 0x204   : > { %3420 = vst.msk [vmem:[%s5642_s13 + $0x18] sm:$0xf] %vm384_vm0, %v3787_v40  ;;  %v3788_v31 = vpack.c.bf16 %v3261_v7, %v3261_v7  ;;  %v3259_v62 = vsel %vm3195_vm15, %v3083_v49, %v3227_v16 }
 0x205   : > { %3418 = vst.msk [vmem:[%s5642_s13 + $0x10] sm:$0xf] %vm384_vm0, %v3785_v52  ;;  %v3786_v41 = vpack.c.bf16 %v3259_v62, %v3259_v62 }
 0x206   : > { %3421 = vst.msk [vmem:[%s5642_s13 + $0x1c] sm:$0xf] %vm384_vm0, %v3788_v31 }
 0x207   : > { %3419 = vst.msk [vmem:[%s5642_s13 + $0x14] sm:$0xf] %vm384_vm0, %v3786_v41 }
 0x208   : > { %v3954_v1 = vpop.f32.mrb[4].mxu1 }
 0x209   : > { %v3152_v0 = vadd.f32 %v3954_v1, %v5631_v3  ;;  %v3143_v33 = vpop.f32.mrb[5].mxu1 }
 0x20a   : > { %v3144_v17 = vadd.f32 %v5631_v3, %v3143_v33  ;;  %v3955_v23 = vpop.f32.mrb[6].mxu1 }
 0x20b   : > { %vm3212_vm1 = vcmp.ge.f32.partialorder %v3152_v0, 0.0  ;;  %v3244_v63 = vmul.f32 0.2, %v3152_v0  ;;  %v3155_v50 = vadd.f32 %v3955_v23, %v5631_v3  ;;  %v3146_v39 = vpop.f32.mrb[7].mxu1 }
 0x20c   : > { %vm3210_vm3 = vcmp.ge.f32.partialorder %v3144_v17, 0.0  ;;  %v3242_v20 = vmul.f32 0.2, %v3144_v17  ;;  %v3147_v59 = vadd.f32 %v5631_v3, %v3146_v39 }
 0x20d   : > { %v3276_v8 = vsel %vm3212_vm1, %v3152_v0, %v3244_v63  ;;  %vm3213_vm4 = vcmp.ge.f32.partialorder %v3155_v50, 0.0  ;;  %v3245_v34 = vmul.f32 0.2, %v3155_v50 }
 0x20e   : > { %v3803_v32 = vpack.c.bf16 %v3276_v8, %v3276_v8  ;;  %v3274_v24 = vsel %vm3210_vm3, %v3144_v17, %v3242_v20  ;;  %vm3211_vm2 = vcmp.ge.f32.partialorder %v3147_v59, 0.0  ;;  %v3243_v43 = vmul.f32 0.2, %v3147_v59 }
 0x20f   : > { %v3801_v35 = vpack.c.bf16 %v3274_v24, %v3274_v24  ;;  %v3277_v36 = vsel %vm3213_vm4, %v3155_v50, %v3245_v34 }
 0x210   : > { %3436 = vst.msk [vmem:[%s5642_s13 + $0x58] sm:$0xf] %vm384_vm0, %v3803_v32  ;;  %v3804_v19 = vpack.c.bf16 %v3277_v36, %v3277_v36  ;;  %v3275_v21 = vsel %vm3211_vm2, %v3147_v59, %v3243_v43 }
 0x211   : > { %3434 = vst.msk [vmem:[%s5642_s13 + $0x50] sm:$0xf] %vm384_vm0, %v3801_v35  ;;  %v3802_v6 = vpack.c.bf16 %v3275_v21, %v3275_v21 }
 0x212   : > { %3437 = vst.msk [vmem:[%s5642_s13 + $0x5c] sm:$0xf] %vm384_vm0, %v3804_v19 }
 0x213   : > { %3435 = vst.msk [vmem:[%s5642_s13 + $0x54] sm:$0xf] %vm384_vm0, %v3802_v6 }
 0x23d   : > { %v3942_v48 = vpop.f32.mrb[8].mxu0 }
 0x23e   : > { %v3104_v9 = vadd.f32 %v3942_v48, %v5631_v3  ;;  %v3095_v15 = vpop.f32.mrb[9].mxu0 }
 0x23f   : > { %v3096_v22 = vadd.f32 %v5631_v3, %v3095_v15  ;;  %v3943_v57 = vpop.f32.mrb[10].mxu0 }
 0x240   : > { %vm3200_vm5 = vcmp.ge.f32.partialorder %v3104_v9, 0.0  ;;  %v3232_v56 = vmul.f32 0.2, %v3104_v9  ;;  %v3107_v4 = vadd.f32 %v3943_v57, %v5631_v3  ;;  %v3098_v14 = vpop.f32.mrb[11].mxu0 }
 0x241   : > { %vm3198_vm6 = vcmp.ge.f32.partialorder %v3096_v22, 0.0  ;;  %v3230_v55 = vmul.f32 0.2, %v3096_v22  ;;  %v3099_v38 = vadd.f32 %v5631_v3, %v3098_v14 }
 0x242   : > { %v3264_v13 = vsel %vm3200_vm5, %v3104_v9, %v3232_v56  ;;  %vm3201_vm7 = vcmp.ge.f32.partialorder %v3107_v4, 0.0  ;;  %v3233_v53 = vmul.f32 0.2, %v3107_v4 }
 0x243   : > { %v3791_v51 = vpack.c.bf16 %v3264_v13, %v3264_v13  ;;  %v3262_v37 = vsel %vm3198_vm6, %v3096_v22, %v3230_v55  ;;  %vm3199_vm8 = vcmp.ge.f32.partialorder %v3099_v38, 0.0  ;;  %v3231_v12 = vmul.f32 0.2, %v3099_v38 }
 0x244   : > { %v3789_v27 = vpack.c.bf16 %v3262_v37, %v3262_v37  ;;  %v3265_v11 = vsel %vm3201_vm7, %v3107_v4, %v3233_v53 }
 0x245   : > { %3424 = vst.msk [vmem:[%s5642_s13 + $0x28] sm:$0xf] %vm384_vm0, %v3791_v51  ;;  %v3792_v44 = vpack.c.bf16 %v3265_v11, %v3265_v11  ;;  %v3263_v25 = vsel %vm3199_vm8, %v3099_v38, %v3231_v12 }
 0x246   : > { %3422 = vst.msk [vmem:[%s5642_s13 + $0x20] sm:$0xf] %vm384_vm0, %v3789_v27  ;;  %v3790_v47 = vpack.c.bf16 %v3263_v25, %v3263_v25 }
 0x247   : > { %3425 = vst.msk [vmem:[%s5642_s13 + $0x2c] sm:$0xf] %vm384_vm0, %v3792_v44 }
 0x248   : > { %v3958_v18 = vpop.f32.mrb[8].mxu1  ;;  %3423 = vst.msk [vmem:[%s5642_s13 + $0x24] sm:$0xf] %vm384_vm0, %v3790_v47 }
 0x249   : > { %v3168_v60 = vadd.f32 %v3958_v18, %v5631_v3  ;;  %v3159_v10 = vpop.f32.mrb[9].mxu1 }
 0x24a   : > { %v3160_v61 = vadd.f32 %v5631_v3, %v3159_v10  ;;  %v3959_v58 = vpop.f32.mrb[10].mxu1 }
 0x24b   : > { %vm3216_vm9 = vcmp.ge.f32.partialorder %v3168_v60, 0.0  ;;  %v3248_v26 = vmul.f32 0.2, %v3168_v60  ;;  %v3171_v28 = vadd.f32 %v3959_v58, %v5631_v3  ;;  %v3162_v29 = vpop.f32.mrb[11].mxu1 }
 0x24c   : > { %vm3214_vm10 = vcmp.ge.f32.partialorder %v3160_v61, 0.0  ;;  %v3246_v30 = vmul.f32 0.2, %v3160_v61  ;;  %v3163_v45 = vadd.f32 %v5631_v3, %v3162_v29 }
 0x24d   : > { %v3280_v5 = vsel %vm3216_vm9, %v3168_v60, %v3248_v26  ;;  %vm3217_vm11 = vcmp.ge.f32.partialorder %v3171_v28, 0.0  ;;  %v3249_v46 = vmul.f32 0.2, %v3171_v28 }
 0x24e   : > { %v3807_v49 = vpack.c.bf16 %v3280_v5, %v3280_v5  ;;  %v3278_v54 = vsel %vm3214_vm10, %v3160_v61, %v3246_v30  ;;  %vm3215_vm12 = vcmp.ge.f32.partialorder %v3163_v45, 0.0  ;;  %v3247_v2 = vmul.f32 0.2, %v3163_v45 }
 0x24f   : > { %v3805_v40 = vpack.c.bf16 %v3278_v54, %v3278_v54  ;;  %v3281_v42 = vsel %vm3217_vm11, %v3171_v28, %v3249_v46 }
 0x250   : > { %3440 = vst.msk [vmem:[%s5642_s13 + $0x68] sm:$0xf] %vm384_vm0, %v3807_v49  ;;  %v3808_v16 = vpack.c.bf16 %v3281_v42, %v3281_v42  ;;  %v3279_v52 = vsel %vm3215_vm12, %v3163_v45, %v3247_v2 }
 0x251   : > { %3438 = vst.msk [vmem:[%s5642_s13 + $0x60] sm:$0xf] %vm384_vm0, %v3805_v40  ;;  %v3806_v7 = vpack.c.bf16 %v3279_v52, %v3279_v52 }
 0x252   : > { %3441 = vst.msk [vmem:[%s5642_s13 + $0x6c] sm:$0xf] %vm384_vm0, %v3808_v16 }
 0x253   : > { %3439 = vst.msk [vmem:[%s5642_s13 + $0x64] sm:$0xf] %vm384_vm0, %v3806_v7 }
 0x279   : > { %v3946_v31 = vpop.f32.mrb[12].mxu0 }
 0x27a   : > { %v3120_v62 = vadd.f32 %v3946_v31, %v5631_v3  ;;  %v3111_v41 = vpop.f32.mrb[13].mxu0 }
 0x27b   : > { %v3112_v1 = vadd.f32 %v5631_v3, %v3111_v41  ;;  %v3947_v0 = vpop.f32.mrb[14].mxu0 }
 0x27c   : > { %vm3204_vm13 = vcmp.ge.f32.partialorder %v3120_v62, 0.0  ;;  %v3236_v33 = vmul.f32 0.2, %v3120_v62  ;;  %v3123_v17 = vadd.f32 %v3947_v0, %v5631_v3  ;;  %v3114_v23 = vpop.f32.mrb[15].mxu0 }
 0x27d   : > { %vm3202_vm14 = vcmp.ge.f32.partialorder %v3112_v1, 0.0  ;;  %v3234_v63 = vmul.f32 0.2, %v3112_v1  ;;  %v3115_v50 = vadd.f32 %v5631_v3, %v3114_v23 }
 0x27e   : > { %v3268_v39 = vsel %vm3204_vm13, %v3120_v62, %v3236_v33  ;;  %vm3205_vm15 = vcmp.ge.f32.partialorder %v3123_v17, 0.0  ;;  %v3237_v20 = vmul.f32 0.2, %v3123_v17 }
 0x27f   : > { %v3795_v59 = vpack.c.bf16 %v3268_v39, %v3268_v39  ;;  %v3266_v8 = vsel %vm3202_vm14, %v3112_v1, %v3234_v63  ;;  %vm3203_vm1 = vcmp.ge.f32.partialorder %v3115_v50, 0.0  ;;  %v3235_v34 = vmul.f32 0.2, %v3115_v50 }
 0x280   : > { %v3793_v32 = vpack.c.bf16 %v3266_v8, %v3266_v8  ;;  %v3269_v24 = vsel %vm3205_vm15, %v3123_v17, %v3237_v20 }
 0x281   : > { %3428 = vst.msk [vmem:[%s5642_s13 + $0x38] sm:$0xf] %vm384_vm0, %v3795_v59  ;;  %v3796_v43 = vpack.c.bf16 %v3269_v24, %v3269_v24  ;;  %v3267_v35 = vsel %vm3203_vm1, %v3115_v50, %v3235_v34 }
 0x282   : > { %3426 = vst.msk [vmem:[%s5642_s13 + $0x30] sm:$0xf] %vm384_vm0, %v3793_v32  ;;  %v3794_v36 = vpack.c.bf16 %v3267_v35, %v3267_v35 }
 0x283   : > { %3429 = vst.msk [vmem:[%s5642_s13 + $0x3c] sm:$0xf] %vm384_vm0, %v3796_v43 }
 0x284   : > { %v3962_v19 = vpop.f32.mrb[12].mxu1  ;;  %3427 = vst.msk [vmem:[%s5642_s13 + $0x34] sm:$0xf] %vm384_vm0, %v3794_v36 }
 0x285   : > { %v3184_v21 = vadd.f32 %v3962_v19, %v5631_v3  ;;  %v3175_v6 = vpop.f32.mrb[13].mxu1 }
 0x286   : > { %v3176_v48 = vadd.f32 %v5631_v3, %v3175_v6  ;;  %v3963_v9 = vpop.f32.mrb[14].mxu1 }
 0x287   : > { %vm3220_vm3 = vcmp.ge.f32.partialorder %v3184_v21, 0.0  ;;  %v3252_v15 = vmul.f32 0.2, %v3184_v21  ;;  %v3187_v22 = vadd.f32 %v3963_v9, %v5631_v3  ;;  %v3178_v57 = vpop.f32.mrb[15].mxu1 }
 0x288   : > { %vm3218_vm4 = vcmp.ge.f32.partialorder %v3176_v48, 0.0  ;;  %v3250_v56 = vmul.f32 0.2, %v3176_v48  ;;  %v3179_v4 = vadd.f32 %v5631_v3, %v3178_v57 }
 0x289   : > { %v3284_v14 = vsel %vm3220_vm3, %v3184_v21, %v3252_v15  ;;  %vm3221_vm2 = vcmp.ge.f32.partialorder %v3187_v22, 0.0  ;;  %v3253_v55 = vmul.f32 0.2, %v3187_v22 }
 0x28a   : > { %v3811_v38 = vpack.c.bf16 %v3284_v14, %v3284_v14  ;;  %v3282_v13 = vsel %vm3218_vm4, %v3176_v48, %v3250_v56  ;;  %vm3219_vm5 = vcmp.ge.f32.partialorder %v3179_v4, 0.0  ;;  %v3251_v53 = vmul.f32 0.2, %v3179_v4 }
 0x28b   : > { %v3809_v51 = vpack.c.bf16 %v3282_v13, %v3282_v13  ;;  %v3285_v37 = vsel %vm3221_vm2, %v3187_v22, %v3253_v55 }
 0x28c   : > { %3444 = vst.msk [vmem:[%s5642_s13 + $0x78] sm:$0xf] %vm384_vm0, %v3811_v38  ;;  %v3812_v12 = vpack.c.bf16 %v3285_v37, %v3285_v37  ;;  %v3283_v27 = vsel %vm3219_vm5, %v3179_v4, %v3251_v53 }
 0x28d   : > { %3442 = vst.msk [vmem:[%s5642_s13 + $0x70] sm:$0xf] %vm384_vm0, %v3809_v51  ;;  %v3810_v11 = vpack.c.bf16 %v3283_v27, %v3283_v27 }
 0x28e   : > { %3445 = vst.msk [vmem:[%s5642_s13 + $0x7c] sm:$0xf] %vm384_vm0, %v3812_v12 }
 0x28f   : > { %3443 = vst.msk [vmem:[%s5642_s13 + $0x74] sm:$0xf] %vm384_vm0, %v3810_v11 }
 0x290 PF: > { %s15_s18 = sadd.s32 1, %s4154_s18  }
 0x291   : > { %p12_p4 = scmp.ge.s32.totalorder %s15_s18, 4  }
 0x293   :  { %14 = sbr.rel (!%p12_p4) target bundleno = 1 (0x1), region = 72 }

// kernel: _lambda_.6
= control target key start
LH: loop header
LB: loop body
LE: loop exit
PB: predicated region body
PF: predicated region fallthrough
CT: control target
= control target key end

     0   :  { %s5334_s24 = smov 0   ;;  %s7183_s0 = inlined_call_operand.vmem [shape: bf16[2,16,16,8], index: 0, kind: input, shape index: {}]   ;;  %s7184_s1 = inlined_call_operand.vmem [shape: bf16[128,16], index: 1, kind: input, shape index: {}]   ;;  %s7185_s2 = inlined_call_operand.vmem [shape: f32[1,16], index: 2, kind: input, shape index: {}]   ;;  %s7186_s3 = inlined_call_operand.vmem [shape: f32[1,8], index: 3, kind: input, shape index: {}]   ;;  %s7187_s4 = inlined_call_operand.vmem [shape: f32[1,8], index: 4, kind: input, shape index: {}]   ;;  %s7188_s5 = inlined_call_operand.vmem [shape: bf16[2,8,8,16], index: 5, kind: output, shape index: {0}]   ;;  %s7189_s6 = inlined_call_operand.vmem [shape: f32[2,1,16], index: 6, kind: output, shape index: {1}]   ;;  %s7190_s7 = inlined_call_operand.vmem [shape: f32[2,1,16], index: 7, kind: output, shape index: {2}]  }
   0x1 LB: > { %s4933_s25 = sadd.s32 4294967295, %s5281_s24   ;;  %p4937_p0 = scmp.ge.s32.totalorder %s5281_s24, 1  ;;  %s5281_s24 = sphi %s5334_s24, %s18_s24  }
   0x2   : > { %p242_p1 = scmp.lt.s32.totalorder %s5281_s24, 3 }
   0x4   : > { %p243_p2 = pnand %p4937_p0, %p242_p1 }
   0x6   : > { %246 = sbr.rel (%p243_p2) target bundleno = 739 (0x2e3), region = 40 }
   0xd   : > { %vm455_vm0 = vcmask 60416   ;;  %vm457_vm1 = vcmask 57344   ;;  %vm458_vm2 = vsmask.f32 256  ;;  %v5283_v0 = vmov 0   ;;  %p280_p3 = scmp.lt.s32.totalorder %s4933_s25, 1 }
   0xe   : > { %495 = vst.msk [vmem:[#allocation2 + $0x48] sm:$0xf] %vm455_vm0, %v5283_v0  ;;  %456 = vst.msk [vmem:[#allocation2] sm:$0xf] %vm455_vm0, %v5283_v0  ;;  %v460_v2 = vld [vmem:[#allocation2 + $0x4] sm:$0x1]  ;;  %v615_v3 = vlaneseq }
   0xf   : > { %463 = vst.msk [vmem:[#allocation2 + $0x8] sm:$0xf] %vm455_vm0, %v5283_v0  ;;  %467 = vst.msk [vmem:[#allocation2 + $0x10] sm:$0xf] %vm455_vm0, %v5283_v0  ;;  %s7260_s25 = smov (!%p280_p3, %s4933_s25), 1  ;;  %s5286_s11 = smov 8  }
  0x10   : > { %471 = vst.msk [vmem:[#allocation2 + $0x18] sm:$0xf] %vm455_vm0, %v5283_v0  ;;  %475 = vst.msk [vmem:[#allocation2 + $0x20] sm:$0xf] %vm455_vm0, %v5283_v0  ;;  %v5284_v5 = vmov 1966171168   ;;  %s292_s10 = scalar_lea.vmem %s7189_s6, %s7260_s25  ;;  %s295_s16 = scalar_lea.vmem %s7190_s7, %s7260_s25 }
  0x11   : > { %479 = vst.msk [vmem:[#allocation2 + $0x28] sm:$0xf] %vm455_vm0, %v5283_v0  ;;  %483 = vst.msk [vmem:[#allocation2 + $0x30] sm:$0xf] %vm455_vm0, %v5283_v0  ;;  %v613_v6 = vunpack.c.l.s4 %v5284_v5  ;;  %v616_v7 = vshrl.u32 %v615_v3, 7  ;;  %s5039_s26 = sshll.u32 %s7260_s25, 7 }
  0x12   : > { %487 = vst.msk [vmem:[#allocation2 + $0x38] sm:$0xf] %vm455_vm0, %v5283_v0  ;;  %491 = vst.msk [vmem:[#allocation2 + $0x40] sm:$0xf] %vm455_vm0, %v5283_v0  ;;  %v5285_v8 = vmov 1935823168   ;;  %s5396_s29 = scalar_lea.vmem %s7183_s0, %s5039_s26 }
  0x13   : > { %499 = vst.msk [vmem:[#allocation2 + $0x50] sm:$0xf] %vm455_vm0, %v5283_v0  ;;  %503 = vst.msk [vmem:[#allocation2 + $0x58] sm:$0xf] %vm455_vm0, %v5283_v0  ;;  %v1404_v9 = vunpack.c.l.s4 %v5285_v8  ;;  %v532_v10 = vld [vmem:[#allocation2 + $0x94] sm:$0x1]  ;;  %v614_v11 = vunpack.c.0.s8 %v613_v6 }
  0x14   : > { %507 = vst.msk [vmem:[#allocation2 + $0x60] sm:$0xf] %vm455_vm0, %v5283_v0  ;;  %511 = vst.msk [vmem:[#allocation2 + $0x68] sm:$0xf] %vm455_vm0, %v5283_v0  ;;  %v536_v13 = vld [vmem:[#allocation2 + $0x9c] sm:$0x1] }
  0x15   : > { %515 = vst.msk [vmem:[#allocation2 + $0x70] sm:$0xf] %vm455_vm0, %v5283_v0  ;;  %519 = vst.msk [vmem:[#allocation2 + $0x78] sm:$0xf] %vm455_vm0, %v5283_v0  ;;  %v5401_v14 = vld [vmem:[%s7186_s3] ss:$0 sm:$0xff]  ;;  %v1405_v15 = vunpack.c.0.s8 %v1404_v9  ;;  %v5410_v26 = vsub.s32 %v614_v11, %v616_v7 }
  0x16   : > { %523 = vst.msk [vmem:[#allocation2 + $0x80] sm:$0xf] %vm455_vm0, %v5283_v0  ;;  %527 = vst.msk [vmem:[#allocation2 + $0x88] sm:$0xf] %vm455_vm0, %v5283_v0  ;;  %v540_v17 = vld [vmem:[#allocation2 + $0xa4] sm:$0x1] }
  0x17   : > { %531 = vst.msk [vmem:[#allocation2 + $0x90] sm:$0xf] %vm455_vm0, %v5283_v0  ;;  %535 = vst.msk [vmem:[#allocation2 + $0x98] sm:$0xf] %vm455_vm0, %v5283_v0  ;;  %v5107_v18 = vld [vmem:[%s5396_s29 + $0x18] sm:$0xff]   ;;  %v5105_v19 = vld [vmem:[%s5396_s29 + $0x8] sm:$0xff]   ;;  %v5417_v29 = vsub.s32 %v1405_v15, %v616_v7 }
  0x18   : > { %539 = vst.msk [vmem:[#allocation2 + $0xa0] sm:$0xf] %vm455_vm0, %v5283_v0  ;;  %543 = vst.msk [vmem:[#allocation2 + $0xa8] sm:$0xf] %vm455_vm0, %v5283_v0  ;;  %v5109_v20 = vld [vmem:[%s5396_s29 + $0x28] sm:$0xff]   ;;  %v5055_v24 = vunpack.c.l.bf16 %v5107_v18  ;;  %v5056_v25 = vunpack.c.h.bf16 %v5107_v18  ;;  %v5047_v27 = vunpack.c.l.bf16 %v5105_v19  ;;  %v5048_v30 = vunpack.c.h.bf16 %v5105_v19  ;;  %v5042_v33 = vld [vmem:[%s5396_s29] sm:$0xff]  }
  0x19   : > { %547 = vst.msk [vmem:[#allocation2 + $0xb0] sm:$0xf] %vm455_vm0, %v5283_v0  ;;  %551 = vst.msk [vmem:[#allocation2 + $0xb8] sm:$0xf] %vm455_vm0, %v5283_v0  ;;  %v5191_v22 = vld [vmem:[#allocation2 + $0x48] ss:$0 sps:$4 sm:$0xff]   ;;  %v5063_v31 = vunpack.c.l.bf16 %v5109_v20  ;;  %v5064_v32 = vunpack.c.h.bf16 %v5109_v20  ;;  %v5043_v38 = vunpack.c.l.bf16 %v5042_v33  ;;  %v5044_v46 = vunpack.c.h.bf16 %v5042_v33 }
  0x1a   : > { %555 = vst.msk [vmem:[#allocation2 + $0xc0] sm:$0xf] %vm455_vm0, %v5283_v0  ;;  %559 = vst.msk [vmem:[#allocation2 + $0xc8] sm:$0xf] %vm455_vm0, %v5283_v0  ;;  %v3865_v23 = vld [vmem:[#allocation2] sm:$0xf]  ;;  %3962 = vrot.lane.b32.xlu0 %v5191_v22, %s5286_s11  ;;  %v374_v35 = vmul.f32 %v5055_v24, %v5401_v14  ;;  %v375_v36 = vmul.f32 %v5056_v25, %v5401_v14  ;;  %v370_v37 = vmul.f32 %v5047_v27, %v5401_v14 }
  0x1b   : > { %567 = vst.msk [vmem:[#allocation2 + $0xd8] sm:$0xf] %vm455_vm0, %v5283_v0  ;;  %571 = vst.msk [vmem:[#allocation2 + $0xe0] sm:$0xf] %vm455_vm0, %v5283_v0  ;;  %v5415_v28 = vld [vmem:[%s7187_s4] ss:$0 sm:$0xff]  ;;  %v371_v40 = vmul.f32 %v5048_v30, %v5401_v14  ;;  %v378_v41 = vmul.f32 %v5063_v31, %v5401_v14  ;;  %v379_v42 = vmul.f32 %v5064_v32, %v5401_v14 }
  0x1c   : > { %575 = vst.msk [vmem:[#allocation2 + $0xe8] sm:$0xf] %vm455_vm0, %v5283_v0  ;;  %579 = vst.msk [vmem:[#allocation2 + $0xf0] sm:$0xf] %vm455_vm0, %v5283_v0  ;;  %v413_v43 = vadd.f32 %v5415_v28, %v374_v35  ;;  %v414_v44 = vadd.f32 %v5415_v28, %v375_v36  ;;  %v409_v45 = vadd.f32 %v5415_v28, %v370_v37  ;;  %s5287_s12 = smov 16   ;;  %vm2557_vm4 = vcmask 1041409  }
  0x1d   : > { %583 = vst.msk [vmem:[#allocation2 + $0xf8] sm:$0xf] %vm455_vm0, %v5283_v0  ;;  %587 = vst.msk [vmem:[#allocation2 + $0x100] sm:$0xf] %vm455_vm0, %v5283_v0  ;;  %v410_v49 = vadd.f32 %v5415_v28, %v371_v40  ;;  %v5432_v50 = vadd.f32 %v5415_v28, %v378_v41  ;;  %v5435_v53 = vadd.f32 %v5415_v28, %v379_v42  ;;  %vm2364_vm5 = vcmask 1042434   ;;  %s5288_s13 = smov 24  }
  0x1e   : > { %591 = vst.msk [vmem:[#allocation2 + $0x108] sm:$0xf] %vm455_vm0, %v5283_v0  ;;  %595 = vst.msk [vmem:[#allocation2 + $0x110] sm:$0xf] %vm455_vm0, %v5283_v0  ;;  %v442_v51 = vpack.c.bf16 %v414_v44, %v413_v43  ;;  %v4953_v52 = vpack.c.bf16 %v414_v44, %v414_v44  ;;  %v368_v54 = vmul.f32 %v5043_v38, %v5401_v14  ;;  %vm2367_vm6 = vcmask 1043459   ;;  %s5289_s14 = smov 32  }
  0x1f   : > { %vm5378_vm3 = vmand %vm457_vm1, %vm458_vm2  ;;  %v440_v56 = vpack.c.bf16 %v410_v49, %v409_v45  ;;  %v4952_v57 = vpack.c.bf16 %v410_v49, %v410_v49  ;;  %v5439_v58 = vmul.f32 %v5044_v46, %v5401_v14  ;;  %v444_v61 = vpack.c.bf16 %v5435_v53, %v5432_v50  ;;  %s5290_s19 = smov 48   ;;  %s5291_s20 = smov 56  }
  0x20   : > { %v461_v4 = vsel %vm5378_vm3, 0, %v460_v2  ;;  %v533_v12 = vsel %vm5378_vm3, 0, %v532_v10  ;;  %v537_v16 = vsel %vm5378_vm3, 0, %v536_v13  ;;  %v541_v21 = vsel %vm5378_vm3, 0, %v540_v17  ;;  %s5292_s21 = smov 40   ;;  %s5293_s22 = smov 64  }
  0x21   : > { %462 = vst [vmem:[#allocation2 + $0x4] sm:$0x1] %v461_v4  ;;  %534 = vst [vmem:[#allocation2 + $0x94] sm:$0x1] %v533_v12  ;;  %v1067_v59 = vrot.slane %v442_v51, %v5410_v26  ;;  %v1074_v60 = vrot.slane %v4953_v52, %v5410_v26  ;;  %v4954_v62 = vpack.c.bf16 %v5435_v53, %v5435_v53  ;;  %vm2370_vm7 = vcmask 1044484  }
  0x22   : > { %538 = vst [vmem:[#allocation2 + $0x9c] sm:$0x1] %v537_v16  ;;  %542 = vst [vmem:[#allocation2 + $0xa4] sm:$0x1] %v541_v21  ;;  %v1018_v0 = vrot.slane %v440_v56, %v5410_v26  ;;  %v1025_v2 = vrot.slane %v4952_v57, %v5410_v26  ;;  %v5450_v3 = vadd.f32 %v5415_v28, %v368_v54  ;;  %vm2373_vm8 = vcmask 1045509  }
  0x23   : > { %v1075_v4 = vcombine.high %v1067_v59, %v1067_v59  ;;  %v1076_v5 = vcombine.high %v1074_v60, %v1074_v60  ;;  %v1083_v6 = vrot.slane %v1067_v59, %v5410_v26  ;;  %v1090_v7 = vrot.slane %v1074_v60, %v5410_v26 }
  0x24   : > { %v1026_v8 = vcombine.high %v1018_v0, %v1018_v0  ;;  %v1027_v9 = vcombine.high %v1025_v2, %v1025_v2  ;;  %v1034_v10 = vrot.slane %v1018_v0, %v5410_v26  ;;  %v5457_v11 = vrot.slane %v1025_v2, %v5410_v26 }
  0x25   : > { %v1097_v12 = vrot.slane %v1075_v4, %v5410_v26  ;;  %v1104_v13 = vrot.slane %v1076_v5, %v5410_v26  ;;  %v1105_v15 = vcombine.high %v1083_v6, %v1083_v6  ;;  %v1106_v16 = vcombine.high %v1090_v7, %v1090_v7 }
  0x26   : > { %v1521_v17 = vrot.slane %v1083_v6, %v5417_v29  ;;  %v1577_v18 = vrot.slane %v1090_v7, %v5417_v29  ;;  %v1048_v19 = vrot.slane %v1026_v8, %v5410_v26  ;;  %v5465_v20 = vrot.slane %v1027_v9, %v5410_v26 }
  0x27   : > { %v1107_v21 = vcombine.high %v1097_v12, %v1097_v12  ;;  %v1108_v22 = vcombine.high %v1104_v13, %v1104_v13  ;;  %v1549_v24 = vrot.slane %v1105_v15, %v5417_v29  ;;  %v1591_v30 = vrot.slane %v1104_v13, %v5417_v29 }
  0x28   : > { %v3882_v34 = vld [vmem:[#allocation2 + $0x4] sm:$0x1]  ;;  %v5470_v25 = vrot.slane %v1521_v17, %v5417_v29  ;;  %v1584_v27 = vrot.slane %v1577_v18, %v5417_v29  ;;  %v1605_v31 = vrot.slane %v1106_v16, %v5417_v29  ;;  %vm2376_vm9 = vcmask 1046534  }
  0x29   : > { %v4968_v39 = vcombine.low %v3865_v23, %v3882_v34  ;;  %v1535_v23 = vrot.slane %v1097_v12, %v5417_v29  ;;  %v1556_v33 = vrot.slane %v1549_v24, %v5417_v29  ;;  %v1563_v34 = vrot.slane %v1107_v21, %v5417_v29 }
  0x2a   : > { %v1619_v35 = vrot.slane %v1108_v22, %v5417_v29  ;;  %v1598_v36 = vrot.slane %v1591_v30, %v5417_v29  ;;  %v1612_v37 = vrot.slane %v1605_v31, %v5417_v29  ;;  %v7199_v38 = vunpack.c.l.b16 %v5470_v25 }
  0x2b   : > { %v4019_v47 = vshrl.u32 %v4968_v39, 16  ;;  %v4021_v48 = vshll.u32 %v4968_v39, 16  ;;  %v1542_v32 = vrot.slane %v1535_v23, %v5417_v29  ;;  %v2311_v39 = vunpack.c.l.b16 %v1584_v27 }
  0x2c   : > { %vm2379_vm10 = vcmask 1047559   ;;  %v1570_v40 = vrot.slane %v1563_v34, %v5417_v29  ;;  %v1626_v41 = vrot.slane %v1619_v35, %v5417_v29  ;;  %v5484_v43 = vunpack.c.l.b16 %v1556_v33 }
  0x2d   : > { %v4023_v55 = vrot.slane %v4021_v48, 1  ;;  %v2308_v42 = vunpack.c.l.b16 %v1542_v32  ;;  %v2312_v44 = vunpack.c.l.b16 %v1598_v36  ;;  %v5486_v45 = vunpack.c.l.b16 %v1612_v37 }
  0x2e   : > { %v5488_v46 = vrot.slane %v2311_v39, 4  ;;  %v5490_v48 = vunpack.c.l.b16 %v1570_v40  ;;  %v2314_v49 = vunpack.c.l.b16 %v1626_v41  ;;  %v7197_v52 = vrot.slane %v5484_v43, 6 }
  0x2f   : > { %v4024_v63 = vor.u32 %v4023_v55, %v4019_v47  ;;  %7220 = vst [vmem:[#allocation3_spill] sm:$0xff] %v5486_v45  ;;  %v1056_v47 = vcombine.high %v1034_v10, %v1034_v10  ;;  %v5492_v51 = vrot.slane %v2308_v42, 7  ;;  %v5495_v54 = vrot.slane %v2312_v44, 3 }
  0x30   : > { %v7192_v55 = vrot.slane %v5486_v45, 2  ;;  %v1057_v56 = vcombine.high %v5457_v11, %v5457_v11  ;;  %v1058_v57 = vcombine.high %v1048_v19, %v1048_v19  ;;  %v7196_v59 = vrot.slane %v5490_v48, 5  ;;  %v544_v45 = vld [vmem:[#allocation2 + $0xac] sm:$0x1] }
  0x31   : > { %4074 = vrot.lane.b32.xlu0 %v4024_v63, %s5287_s12  ;;  %v5501_v60 = vrot.slane %v2314_v49, 1  ;;  %v2565_v63 = vsel %vm2557_vm4, %v5492_v51, %v7199_v38  ;;  %v1059_v0 = vcombine.high %v5465_v20, %v5465_v20  ;;  %v1409_v4 = vrot.slane %v1034_v10, %v5417_v29 }
  0x32   : > { %v2566_v2 = vsel %vm2364_vm5, %v7197_v52, %v2565_v63  ;;  %v1423_v5 = vrot.slane %v1048_v19, %v5417_v29  ;;  %v1437_v6 = vrot.slane %v1056_v47, %v5417_v29  ;;  %v1451_v9 = vrot.slane %v1058_v57, %v5417_v29 }
  0x33   : > { %7221 = vst [vmem:[#allocation4_spill] sm:$0xff] %v5501_v60  ;;  %v2567_v8 = vsel %vm2367_vm6, %v7196_v59, %v2566_v2  ;;  %v1465_v12 = vrot.slane %v5457_v11, %v5417_v29  ;;  %v5526_v10 = vrot.slane %v1409_v4, %v5417_v29  ;;  %v1479_v11 = vrot.slane %v5465_v20, %v5417_v29 }
  0x34   : > { %v2568_v13 = vsel %vm2370_vm7, %v5488_v46, %v2567_v8  ;;  %v1430_v15 = vrot.slane %v1423_v5, %v5417_v29  ;;  %v1444_v16 = vrot.slane %v1437_v6, %v5417_v29  ;;  %v1458_v18 = vrot.slane %v1451_v9, %v5417_v29 }
  0x35   : > { %v2569_v17 = vsel %vm2373_vm8, %v5495_v54, %v2568_v13  ;;  %v1472_v19 = vrot.slane %v1465_v12, %v5417_v29  ;;  %v1493_v22 = vrot.slane %v1057_v56, %v5417_v29  ;;  %v1507_v23 = vrot.slane %v1059_v0, %v5417_v29  ;;  %v5575_v0 = vld [vmem:[%s5396_s29 + $0x10] sm:$0xff]  }
  0x36   : > { %v2570_v21 = vsel %vm2376_vm9, %v7192_v55, %v2569_v17  ;;  %v7202_v24 = vunpack.c.l.b16 %v5526_v10  ;;  %v1486_v30 = vrot.slane %v1479_v11, %v5417_v29  ;;  %v2300_v31 = vunpack.c.l.b16 %v1430_v15 }
  0x37   : > { %v2571_v27 = vsel %vm2379_vm10, %v5501_v60, %v2570_v21  ;;  %v5545_v32 = vunpack.c.l.b16 %v1444_v16  ;;  %v1500_v20 = vrot.slane %v1493_v22, %v5417_v29  ;;  %v1514_v34 = vrot.slane %v1507_v23, %v5417_v29 }
  0x38   : > { %v2615_v33 = vpack.c.b16 %v2571_v27, %v2571_v27  ;;  %v5549_v35 = vunpack.c.l.b16 %v1458_v18  ;;  %v2303_v36 = vunpack.c.l.b16 %v1472_v19  ;;  %v2304_v37 = vunpack.c.l.b16 %v1486_v30 }
  0x39   : > { %v5551_v39 = vrot.slane %v2300_v31, 7  ;;  %v7201_v40 = vrot.slane %v5545_v32, 6  ;;  %v5555_v41 = vunpack.c.l.b16 %v1500_v20  ;;  %v2306_v42 = vunpack.c.l.b16 %v1514_v34 }
  0x3a   : > { %2632 = vst.msk [vmem:[#allocation2 + $0x58] sm:$0xf] %vm455_vm0, %v2615_v33  ;;  %v7200_v44 = vrot.slane %v5549_v35, 5  ;;  %v1116_v47 = vrot.slane %v444_v61, %v5410_v26  ;;  %v5562_v49 = vrot.slane %v2303_v36, 4  ;;  %v5564_v56 = vrot.slane %v2304_v37, 3 }
  0x3b   : > { %v2558_v57 = vsel %vm2557_vm4, %v5551_v39, %v7202_v24  ;;  %v1123_v63 = vrot.slane %v4954_v62, %v5410_v26  ;;  %v7198_v2 = vrot.slane %v5555_v41, 2  ;;  %v5578_v50 = vrot.slane %v2306_v42, 1 }
  0x3c   : > { %v2559_v61 = vsel %vm2364_vm5, %v7201_v40, %v2558_v57  ;;  %v1124_v4 = vcombine.high %v1116_v47, %v1116_v47  ;;  %v1132_v8 = vrot.slane %v1116_v47, %v5410_v26  ;;  %v408_v12 = vadd.f32 %v5415_v28, %v5439_v58 }
  0x3d   : > { %v2560_v5 = vsel %vm2367_vm6, %v7200_v44, %v2559_v61  ;;  %v1125_v6 = vcombine.high %v1123_v63, %v1123_v63  ;;  %v1139_v53 = vrot.slane %v1123_v63, %v5410_v26  ;;  %v5051_v13 = vunpack.c.l.bf16 %v5575_v0 }
  0x3e   : > { %v2561_v62 = vsel %vm2370_vm7, %v5562_v49, %v2560_v5  ;;  %v1146_v9 = vrot.slane %v1124_v4, %v5410_v26  ;;  %v1154_v17 = vcombine.high %v1132_v8, %v1132_v8  ;;  %v1633_v21 = vrot.slane %v1132_v8, %v5417_v29 }
  0x3f   : > { %v2562_v15 = vsel %vm2373_vm8, %v5564_v56, %v2561_v62  ;;  %v1153_v16 = vrot.slane %v1125_v6, %v5410_v26  ;;  %v1155_v18 = vcombine.high %v1139_v53, %v1139_v53  ;;  %v1689_v31 = vrot.slane %v1139_v53, %v5417_v29 }
  0x40   : > { %v2563_v19 = vsel %vm2376_vm9, %v7198_v2, %v2562_v15  ;;  %v1156_v11 = vcombine.high %v1146_v9, %v1146_v9  ;;  %v1647_v22 = vrot.slane %v1146_v9, %v5417_v29  ;;  %v1661_v30 = vrot.slane %v1154_v17, %v5417_v29 }
  0x41   : > { %v5193_v23 = vld [vmem:[#allocation2 + $0x58] ss:$0 sps:$4 sm:$0xff]   ;;  %v2564_v58 = vsel %vm2379_vm10, %v5578_v50, %v2563_v19  ;;  %v1157_v27 = vcombine.high %v1153_v16, %v1153_v16  ;;  %v5607_v20 = vrot.slane %v1633_v21, %v5417_v29  ;;  %v1696_v42 = vrot.slane %v1689_v31, %v5417_v29 }
  0x42   : > { %v2614_v33 = vpack.c.b16 %v2564_v58, %v2564_v58  ;;  %v1654_v34 = vrot.slane %v1647_v22, %v5417_v29  ;;  %v1675_v36 = vrot.slane %v1156_v11, %v5417_v29  ;;  %3966 = vrot.lane.b32.xlu1 %v5193_v23, %s5286_s11  ;;  %v1668_v37 = vrot.slane %v1661_v30, %v5417_v29 }
  0x43   : > { %v1703_v47 = vrot.slane %v1153_v16, %v5417_v29  ;;  %v1717_v57 = vrot.slane %v1155_v18, %v5417_v29  ;;  %v1731_v61 = vrot.slane %v1157_v27, %v5417_v29  ;;  %v7195_v4 = vunpack.c.l.b16 %v5607_v20 }
  0x44   : > { %2631 = vst.msk [vmem:[#allocation2 + $0x50] sm:$0xf] %vm455_vm0, %v2614_v33  ;;  %v1682_v63 = vrot.slane %v1675_v36, %v5417_v29  ;;  %v2316_v5 = vunpack.c.l.b16 %v1654_v34  ;;  %v5622_v53 = vunpack.c.l.b16 %v1668_v37  ;;  %v2319_v62 = vunpack.c.l.b16 %v1696_v42 }
  0x45   : > { %v1710_v6 = vrot.slane %v1703_v47, %v5417_v29  ;;  %v1724_v8 = vrot.slane %v1717_v57, %v5417_v29  ;;  %v1738_v9 = vrot.slane %v1731_v61, %v5417_v29  ;;  %v439_v17 = vpack.c.bf16 %v408_v12, %v5450_v3 }
  0x46   : > { %v5625_v15 = vunpack.c.l.b16 %v1682_v63  ;;  %v5627_v16 = vrot.slane %v2316_v5, 7  ;;  %v7194_v11 = vrot.slane %v5622_v53, 6  ;;  %v5633_v21 = vrot.slane %v2319_v62, 4 }
  0x47   : > { %v2320_v18 = vunpack.c.l.b16 %v1710_v6  ;;  %v5630_v19 = vunpack.c.l.b16 %v1724_v8  ;;  %v2322_v22 = vunpack.c.l.b16 %v1738_v9  ;;  %v4944_v27 = vpack.c.bf16 %v408_v12, %v408_v12 }
  0x48   : > { %7222 = vst [vmem:[#allocation5_spill] sm:$0xff] %v5625_v15  ;;  %7224 = vst [vmem:[#allocation7_spill] sm:$0xff] %v5633_v21  ;;  %v7193_v23 = vrot.slane %v5625_v15, 5  ;;  %v2572_v58 = vsel %vm2557_vm4, %v5627_v16, %v7195_v4  ;;  %v618_v33 = vrot.slane %v439_v17, %v5410_v26  ;;  %v5052_v12 = vunpack.c.h.bf16 %v5575_v0 }
  0x49   : > { %7223 = vst [vmem:[#allocation6_spill] sm:$0xff] %v5630_v19  ;;  %v5640_v30 = vrot.slane %v2320_v18, 3  ;;  %v7191_v3 = vrot.slane %v5630_v19, 2  ;;  %v2573_v31 = vsel %vm2364_vm5, %v7194_v11, %v2572_v58  ;;  %v5647_v34 = vrot.slane %v2322_v22, 1 }
  0x4a   : > { %v2574_v36 = vsel %vm2367_vm6, %v7193_v23, %v2573_v31  ;;  %v625_v37 = vrot.slane %v4944_v27, %v5410_v26  ;;  %v626_v57 = vcombine.high %v618_v33, %v618_v33  ;;  %v634_v63 = vrot.slane %v618_v33, %v5410_v26  ;;  %v3739_v23 = vld [vmem:[#allocation2 + $0x94] sm:$0x1] }
  0x4b   : > { %7225 = vst [vmem:[#allocation8_spill] sm:$0xff] %v5640_v30  ;;  %v5194_v42 = vld [vmem:[#allocation2 + $0x50] ss:$0 sps:$4 sm:$0xff]   ;;  %v2575_v47 = vsel %vm2370_vm7, %v5633_v21, %v2574_v36  ;;  %v372_v61 = vmul.f32 %v5051_v13, %v5401_v14  ;;  %v373_v62 = vmul.f32 %v5052_v12, %v5401_v14  ;;  %vm2507_vm11 = vsmask.f32 7938 }
  0x4c   : > { %v2576_v5 = vsel %vm2373_vm8, %v5640_v30, %v2575_v47  ;;  %v627_v6 = vcombine.high %v625_v37, %v625_v37  ;;  %v641_v8 = vrot.slane %v625_v37, %v5410_v26  ;;  %3964 = vrot.lane.b32.xlu0 %v5194_v42, %s5286_s11  ;;  %v648_v9 = vrot.slane %v626_v57, %v5410_v26  ;;  %vm5739_vm12 = vmand %vm455_vm0, %vm2507_vm11 }
  0x4d   : > { %v2577_v0 = vsel %vm2376_vm9, %v7191_v3, %v2576_v5  ;;  %v656_v17 = vcombine.high %v634_v63, %v634_v63  ;;  %v2645_v18 = vrot.slane %v634_v63, %v5417_v29  ;;  %vm4442_vm13 = vcmask 64512  }
  0x4e   : > { %v2578_v13 = vsel %vm2379_vm10, %v5647_v34, %v2577_v0  ;;  %v655_v22 = vrot.slane %v627_v6, %v5410_v26  ;;  %v657_v58 = vcombine.high %v641_v8, %v641_v8  ;;  %v2701_v27 = vrot.slane %v641_v8, %v5417_v29 }
  0x4f   : > { %v2616_v31 = vpack.c.b16 %v2578_v13, %v2578_v13  ;;  %v658_v33 = vcombine.high %v648_v9, %v648_v9  ;;  %v5673_v36 = vrot.slane %v2645_v18, %v5417_v29  ;;  %v2659_v37 = vrot.slane %v648_v9, %v5417_v29 }
  0x50   : > { %v659_v12 = vcombine.high %v655_v22, %v655_v22  ;;  %v2673_v42 = vrot.slane %v656_v17, %v5417_v29  ;;  %v2708_v47 = vrot.slane %v2701_v27, %v5417_v29  ;;  %v2715_v57 = vrot.slane %v655_v22, %v5417_v29 }
  0x51   : > { %2633 = vst.msk [vmem:[#allocation2 + $0x60] sm:$0xf] %vm455_vm0, %v2616_v31  ;;  %v2666_v63 = vrot.slane %v2659_v37, %v5417_v29  ;;  %v2687_v5 = vrot.slane %v658_v33, %v5417_v29  ;;  %v2729_v6 = vrot.slane %v657_v58, %v5417_v29  ;;  %v7206_v8 = vunpack.c.l.b16 %v5673_v36  ;;  %v5108_v33 = vld [vmem:[%s5396_s29 + $0x20] sm:$0xff]  }
  0x52   : > { %v2680_v0 = vrot.slane %v2673_v42, %v5417_v29  ;;  %v2722_v9 = vrot.slane %v2715_v57, %v5417_v29  ;;  %v2743_v17 = vrot.slane %v659_v12, %v5417_v29  ;;  %v3539_v18 = vunpack.c.l.b16 %v2708_v47 }
  0x53   : > { %v2694_v13 = vrot.slane %v2687_v5, %v5417_v29  ;;  %v2736_v22 = vrot.slane %v2729_v6, %v5417_v29  ;;  %v3536_v27 = vunpack.c.l.b16 %v2666_v63  ;;  %v411_v31 = vadd.f32 %v5415_v28, %v372_v61 }
  0x54   : > { %v2750_v58 = vrot.slane %v2743_v17, %v5417_v29  ;;  %v5692_v37 = vunpack.c.l.b16 %v2680_v0  ;;  %v3540_v7 = vunpack.c.l.b16 %v2722_v9  ;;  %v5694_v42 = vrot.slane %v3539_v18, 4  ;;  %v5707_v17 = vld [vmem:[%s5396_s29 + $0x30] sm:$0xff]  }
  0x55   : > { %v5696_v57 = vunpack.c.l.b16 %v2694_v13  ;;  %v5698_v12 = vunpack.c.l.b16 %v2736_v22  ;;  %v5700_v47 = vrot.slane %v3536_v27, 7  ;;  %v412_v5 = vadd.f32 %v5415_v28, %v373_v62 }
  0x56   : > { %v3542_v6 = vunpack.c.l.b16 %v2750_v58  ;;  %v7205_v63 = vrot.slane %v5692_v37, 6  ;;  %v5704_v61 = vrot.slane %v3540_v7, 3  ;;  %v5059_v3 = vunpack.c.l.bf16 %v5108_v33 }
  0x57   : > { %v3600_v0 = vsel %vm2364_vm5, %v5700_v47, %v7206_v8  ;;  %v7204_v9 = vrot.slane %v5696_v57, 5  ;;  %v7203_v18 = vrot.slane %v5698_v12, 2  ;;  %v441_v13 = vpack.c.bf16 %v412_v5, %v411_v31 }
  0x58   : > { %v5195_v22 = vld [vmem:[#allocation2 + $0x60] ss:$0 sps:$4 sm:$0xff]   ;;  %v3602_v62 = vsel %vm2367_vm6, %v7205_v63, %v3600_v0  ;;  %v5718_v7 = vrot.slane %v3542_v6, 1  ;;  %v4945_v27 = vpack.c.bf16 %v412_v5, %v412_v5  ;;  %v5060_v58 = vunpack.c.h.bf16 %v5108_v33 }
  0x59   : > { %v3604_v55 = vsel %vm2370_vm7, %v7204_v9, %v3602_v62  ;;  %v667_v11 = vrot.slane %v441_v13, %v5410_v26  ;;  %v376_v4 = vmul.f32 %v5059_v3, %v5401_v14  ;;  %3968 = vrot.lane.b32.xlu1 %v5195_v22, %s5286_s11  ;;  %vm4467_vm14 = vcmask 130048  }
  0x5a   : > { %v3606_v0 = vsel %vm2373_vm8, %v5694_v42, %v3604_v55  ;;  %v3704_v5 = vpack.c.b16 %v5718_v7, %v5718_v7  ;;  %v674_v33 = vrot.slane %v4945_v27, %v5410_v26  ;;  %v377_v6 = vmul.f32 %v5060_v58, %v5401_v14  ;;  %v3736_v27 = vld [vmem:[#allocation2 + $0x90] sm:$0xf] }
  0x5b   : > { %v3608_v62 = vsel %vm2376_vm9, %v5704_v61, %v3606_v0  ;;  %v675_v13 = vcombine.high %v667_v11, %v667_v11  ;;  %v683_v3 = vrot.slane %v667_v11, %v5410_v26  ;;  %v415_v59 = vadd.f32 %v5415_v28, %v376_v4 }
  0x5c   : > { %v3610_v55 = vsel %vm2379_vm10, %v7203_v18, %v3608_v62  ;;  %v3740_v58 = vsel %vm5378_vm3, %v3704_v5, %v3739_v23  ;;  %v676_v0 = vcombine.high %v674_v33, %v674_v33  ;;  %v690_v52 = vrot.slane %v674_v33, %v5410_v26 }
  0x5d   : > { %v3703_v11 = vpack.c.b16 %v3610_v55, %v3610_v55  ;;  %3741 = vst [vmem:[#allocation2 + $0x94] sm:$0x1] %v3740_v58  ;;  %v697_v4 = vrot.slane %v675_v13, %v5410_v26  ;;  %v705_v2 = vcombine.high %v683_v3, %v683_v3  ;;  %v2757_v38 = vrot.slane %v683_v3, %v5417_v29 }
  0x5e   : > { %v704_v44 = vrot.slane %v676_v0, %v5410_v26  ;;  %v706_v40 = vcombine.high %v690_v52, %v690_v52  ;;  %v2813_v24 = vrot.slane %v690_v52, %v5417_v29  ;;  %v416_v62 = vadd.f32 %v5415_v28, %v377_v6 }
  0x5f   : > { %v3737_v23 = vsel %vm5739_vm12, %v3703_v11, %v3736_v27  ;;  %v707_v5 = vcombine.high %v697_v4, %v697_v4  ;;  %v5757_v33 = vrot.slane %v2757_v38, %v5417_v29  ;;  %v2771_v55 = vrot.slane %v697_v4, %v5417_v29 }
  0x60   : > { %3738 = vst [vmem:[#allocation2 + $0x90] sm:$0xf] %v3737_v23  ;;  %v708_v13 = vcombine.high %v704_v44, %v704_v44  ;;  %v2785_v3 = vrot.slane %v705_v2, %v5417_v29  ;;  %v2820_v58 = vrot.slane %v2813_v24, %v5417_v29  ;;  %v2827_v0 = vrot.slane %v704_v44, %v5417_v29 }
  0x61   : > { %v2778_v52 = vrot.slane %v2771_v55, %v5417_v29  ;;  %v2799_v6 = vrot.slane %v707_v5, %v5417_v29  ;;  %v2841_v27 = vrot.slane %v706_v40, %v5417_v29  ;;  %v7207_v11 = vunpack.c.l.b16 %v5757_v33 }
  0x62   : > { %v2792_v38 = vrot.slane %v2785_v3, %v5417_v29  ;;  %v2834_v4 = vrot.slane %v2827_v0, %v5417_v29  ;;  %v2855_v23 = vrot.slane %v708_v13, %v5417_v29  ;;  %v3547_v18 = vunpack.c.l.b16 %v2820_v58 }
  0x63   : > { %v2806_v2 = vrot.slane %v2799_v6, %v5417_v29  ;;  %v2848_v24 = vrot.slane %v2841_v27, %v5417_v29  ;;  %v3544_v44 = vunpack.c.l.b16 %v2778_v52  ;;  %v443_v9 = vpack.c.bf16 %v416_v62, %v415_v59 }
  0x64   : > { %v2862_v55 = vrot.slane %v2855_v23, %v5417_v29  ;;  %v5773_v5 = vunpack.c.l.b16 %v2792_v38  ;;  %v3548_v40 = vunpack.c.l.b16 %v2834_v4  ;;  %v5775_v63 = vrot.slane %v3547_v18, 4  ;;  %v3906_v8 = vld [vmem:[#allocation2 + $0x94] sm:$0x1] }
  0x65   : > { %v5777_v3 = vunpack.c.l.b16 %v2806_v2  ;;  %v5779_v0 = vunpack.c.l.b16 %v2848_v24  ;;  %v5781_v13 = vrot.slane %v3544_v44, 7  ;;  %v4946_v58 = vpack.c.bf16 %v416_v62, %v416_v62 }
  0x66   : > { %v3550_v6 = vunpack.c.l.b16 %v2862_v55  ;;  %v7209_v27 = vrot.slane %v5773_v5, 6  ;;  %v5784_v52 = vrot.slane %v3548_v40, 3  ;;  %v716_v59 = vrot.slane %v443_v9, %v5410_v26  ;;  %v3745_v40 = vld [vmem:[#allocation2 + $0x9c] sm:$0x1] }
  0x67   : > { %v3890_v38 = vld [vmem:[#allocation2 + $0x90] sm:$0xf]  ;;  %v3613_v18 = vsel %vm2364_vm5, %v5781_v13, %v7207_v11  ;;  %v7208_v4 = vrot.slane %v5777_v3, 5  ;;  %v723_v2 = vrot.slane %v4946_v58, %v5410_v26  ;;  %vm4484_vm15 = vcmask 195584  }
  0x68   : > { %v4976_v62 = vcombine.low %v3890_v38, %v3890_v38  ;;  %v5794_v24 = vcombine.low %v3890_v38, %v3906_v8  ;;  %v3615_v44 = vsel %vm2367_vm6, %v7209_v27, %v3613_v18  ;;  %v5799_v9 = vrot.slane %v3550_v6, 1 }
  0x69   : > { %v3617_v55 = vsel %vm2370_vm7, %v7208_v4, %v3615_v44  ;;  %v724_v11 = vcombine.high %v716_v59, %v716_v59  ;;  %v725_v31 = vcombine.high %v723_v2, %v723_v2  ;;  %v732_v23 = vrot.slane %v716_v59, %v5410_v26 }
  0x6a   : > { %7228 = vst [vmem:[#allocation9_spill] sm:$0xff] %v5794_v24  ;;  %4114 = vrot.lane.b32.xlu0 %v4976_v62, %s5288_s13  ;;  %v3619_v8 = vsel %vm2373_vm8, %v5775_v63, %v3617_v55  ;;  %v3706_v58 = vpack.c.b16 %v5799_v9, %v5799_v9  ;;  %v739_v6 = vrot.slane %v723_v2, %v5410_v26  ;;  %v5068_v38 = vunpack.c.h.bf16 %v5707_v17  ;;  %v3742_v55 = vld [vmem:[#allocation2 + $0x98] sm:$0xf] }
  0x6b   : > { %v3621_v18 = vsel %vm2376_vm9, %v5784_v52, %v3619_v8  ;;  %v746_v44 = vrot.slane %v724_v11, %v5410_v26  ;;  %v753_v59 = vrot.slane %v725_v31, %v5410_v26  ;;  %v754_v4 = vcombine.high %v732_v23, %v732_v23 }
  0x6c   : > { %v7229_v62 = vrot.slane %v5779_v0, 2  ;;  %v3746_v60 = vsel %vm5378_vm3, %v3706_v58, %v3745_v40  ;;  %v755_v19 = vcombine.high %v739_v6, %v739_v6  ;;  %v2869_v2 = vrot.slane %v732_v23, %v5417_v29 }
  0x6d   : > { %3747 = vst [vmem:[#allocation2 + $0x9c] sm:$0x1] %v3746_v60  ;;  %v756_v30 = vcombine.high %v746_v44, %v746_v44  ;;  %v757_v8 = vcombine.high %v753_v59, %v753_v59  ;;  %v2883_v11 = vrot.slane %v746_v44, %v5417_v29  ;;  %v2897_v21 = vrot.slane %v754_v4, %v5417_v29 }
  0x6e   : > { %v3623_v27 = vsel %vm2379_vm10, %v7229_v62, %v3621_v18  ;;  %v5824_v31 = vrot.slane %v2869_v2, %v5417_v29  ;;  %v2925_v18 = vrot.slane %v739_v6, %v5417_v29  ;;  %v2939_v62 = vrot.slane %v753_v59, %v5417_v29 }
  0x6f   : > { %v3705_v24 = vpack.c.b16 %v3623_v27, %v3623_v27  ;;  %v2890_v23 = vrot.slane %v2883_v11, %v5417_v29  ;;  %v2911_v60 = vrot.slane %v756_v30, %v5417_v29  ;;  %v2953_v27 = vrot.slane %v755_v19, %v5417_v29 }
  0x70   : > { %v2904_v58 = vrot.slane %v2897_v21, %v5417_v29  ;;  %v2932_v44 = vrot.slane %v2925_v18, %v5417_v29  ;;  %v2946_v4 = vrot.slane %v2939_v62, %v5417_v29  ;;  %v2967_v6 = vrot.slane %v757_v8, %v5417_v29 }
  0x71   : > { %v3743_v40 = vsel %vm5739_vm12, %v3705_v24, %v3742_v55  ;;  %v2918_v59 = vrot.slane %v2911_v60, %v5417_v29  ;;  %v2960_v2 = vrot.slane %v2953_v27, %v5417_v29  ;;  %v3551_v24 = vunpack.c.l.b16 %v5824_v31 }
  0x72   : > { %3744 = vst [vmem:[#allocation2 + $0x98] sm:$0xf] %v3743_v40  ;;  %v3552_v55 = vunpack.c.l.b16 %v2890_v23  ;;  %v2974_v30 = vrot.slane %v2967_v6, %v5417_v29  ;;  %v5842_v11 = vunpack.c.l.b16 %v2904_v58  ;;  %v3555_v19 = vunpack.c.l.b16 %v2932_v44 }
  0x73   : > { %v3556_v40 = vunpack.c.l.b16 %v2946_v4  ;;  %v5844_v21 = vunpack.c.l.b16 %v2918_v59  ;;  %v5846_v18 = vunpack.c.l.b16 %v2960_v2  ;;  %v7230_v8 = vunpack.c.l.bf16 %v5707_v17 }
  0x74   : > { %v3625_v62 = vrot.slane %v3552_v55, 7  ;;  %v3558_v27 = vunpack.c.l.b16 %v2974_v30  ;;  %v3627_v31 = vrot.slane %v5842_v11, 6  ;;  %v5852_v23 = vrot.slane %v3555_v19, 4  ;;  %v3907_v58 = vld [vmem:[#allocation2 + $0x9c] sm:$0x1] }
  0x75   : > { %v380_v60 = vmul.f32 %v7230_v8, %v5401_v14  ;;  %v5854_v6 = vrot.slane %v3556_v40, 3  ;;  %v3629_v4 = vrot.slane %v5844_v21, 5  ;;  %v3635_v59 = vrot.slane %v5846_v18, 2  ;;  %v3751_v8 = vld [vmem:[#allocation2 + $0xa4] sm:$0x1] }
  0x76   : > { %v3626_v44 = vsel %vm2364_vm5, %v3625_v62, %v3551_v24  ;;  %v381_v2 = vmul.f32 %v5068_v38, %v5401_v14  ;;  %v5861_v55 = vrot.slane %v3558_v27, 1  ;;  %v545_v11 = vsel %vm5378_vm3, 0, %v544_v45 }
  0x77   : > { %v3628_v17 = vsel %vm2367_vm6, %v3627_v31, %v3626_v44  ;;  %v419_v30 = vadd.f32 %v5415_v28, %v380_v60  ;;  %546 = vst [vmem:[#allocation2 + $0xac] sm:$0x1] %v545_v11  ;;  %v7231_v14 = vunpack.c.l.b16 %v5673_v36  ;;  %v7232_v27 = vunpack.c.l.b16 %v5757_v33 }
  0x78   : > { %v3630_v40 = vsel %vm2370_vm7, %v3629_v4, %v3628_v17  ;;  %v420_v15 = vadd.f32 %v5415_v28, %v381_v2  ;;  %v3708_v28 = vpack.c.b16 %v5861_v55, %v5861_v55  ;;  %v7239_v21 = vunpack.c.l.b16 %v5526_v10  ;;  %v3754_v10 = vld [vmem:[#allocation2 + $0xa8] sm:$0xf] }
  0x79   : > { %v3891_v19 = vld [vmem:[#allocation2 + $0x98] sm:$0xf]  ;;  %v3784_v38 = vsel %vm2557_vm4, %v5700_v47, %v7231_v14  ;;  %v3791_v60 = vsel %vm2557_vm4, %v5781_v13, %v7232_v27  ;;  %v3632_v17 = vsel %vm2373_vm8, %v5852_v23, %v3630_v40  ;;  %v7233_v47 = vrot.slane %v5692_v37, 6  ;;  %v464_v14 = vld [vmem:[#allocation2 + $0xc] sm:$0x1] }
  0x7a   : > { %v4977_v45 = vcombine.low %v3891_v19, %v3891_v19  ;;  %v5878_v44 = vcombine.low %v3891_v19, %v3907_v58  ;;  %v3634_v36 = vsel %vm2376_vm9, %v5854_v6, %v3632_v17  ;;  %v445_v2 = vpack.c.bf16 %v420_v15, %v419_v30  ;;  %v3748_v58 = vld [vmem:[#allocation2 + $0xa0] sm:$0xf] }
  0x7b   : > { %v4947_v11 = vpack.c.bf16 %v420_v15, %v420_v15  ;;  %v3785_v33 = vsel %vm2364_vm5, %v7233_v47, %v3784_v38  ;;  %v3636_v13 = vsel %vm2379_vm10, %v3635_v59, %v3634_v36  ;;  %v3752_v19 = vsel %vm5378_vm3, %v3708_v28, %v3751_v8 }
  0x7c   : > { %4116 = vrot.lane.b32.xlu1 %v4977_v45, %s5288_s13  ;;  %v7234_v40 = vrot.slane %v5696_v57, 5  ;;  %v7235_v15 = vrot.slane %v5773_v5, 6  ;;  %v3707_v38 = vpack.c.b16 %v3636_v13, %v3636_v13  ;;  %3753 = vst [vmem:[#allocation2 + $0xa4] sm:$0x1] %v3752_v19  ;;  %v765_v27 = vrot.slane %v445_v2, %v5410_v26 }
  0x7d   : > { %v772_v45 = vrot.slane %v4947_v11, %v5410_v26  ;;  %v7236_v57 = vrot.slane %v5777_v3, 5  ;;  %v3798_v5 = vsel %vm2557_vm4, %v3625_v62, %v3551_v24  ;;  %vm4501_vm1 = vcmask 261120  }
  0x7e   : > { %v3786_v30 = vsel %vm2367_vm6, %v7234_v40, %v3785_v33  ;;  %v3792_v37 = vsel %vm2364_vm5, %v7235_v15, %v3791_v60  ;;  %v465_v60 = vsel %vm5378_vm3, 0, %v464_v14  ;;  %v3749_v36 = vsel %vm5739_vm12, %v3707_v38, %v3748_v58 }
  0x7f   : > { %v3787_v17 = vsel %vm2370_vm7, %v5694_v42, %v3786_v30  ;;  %v3793_v28 = vsel %vm2367_vm6, %v7236_v57, %v3792_v37  ;;  %v773_v2 = vcombine.high %v765_v27, %v765_v27  ;;  %v774_v11 = vcombine.high %v772_v45, %v772_v45  ;;  %466 = vst [vmem:[#allocation2 + $0xc] sm:$0x1] %v465_v60 }
  0x80   : > { %v3788_v8 = vsel %vm2373_vm8, %v5704_v61, %v3787_v17  ;;  %v781_v47 = vrot.slane %v765_v27, %v5410_v26  ;;  %3750 = vst [vmem:[#allocation2 + $0xa0] sm:$0xf] %v3749_v36  ;;  %v788_v42 = vrot.slane %v772_v45, %v5410_v26  ;;  %v7237_v61 = vrot.slane %v5698_v12, 2 }
  0x81   : > { %v3794_v24 = vsel %vm2370_vm7, %v5775_v63, %v3793_v28  ;;  %v3799_v62 = vsel %vm2364_vm5, %v3627_v31, %v3798_v5  ;;  %v795_v33 = vrot.slane %v773_v2, %v5410_v26  ;;  %v802_v14 = vrot.slane %v774_v11, %v5410_v26 }
  0x82   : > { %v3789_v3 = vsel %vm2376_vm9, %v7237_v61, %v3788_v8  ;;  %v803_v13 = vcombine.high %v781_v47, %v781_v47  ;;  %v2981_v58 = vrot.slane %v781_v47, %v5417_v29  ;;  %v804_v19 = vcombine.high %v788_v42, %v788_v42 }
  0x83   : > { %v3037_v40 = vrot.slane %v788_v42, %v5417_v29  ;;  %v3790_v12 = vsel %vm2379_vm10, %v5718_v7, %v3789_v3  ;;  %v3795_v30 = vsel %vm2373_vm8, %v5784_v52, %v3794_v24  ;;  %v805_v15 = vcombine.high %v795_v33, %v795_v33  ;;  %v3908_v8 = vld [vmem:[#allocation2 + $0xa4] sm:$0x1] }
  0x84   : > { %v806_v63 = vcombine.high %v802_v14, %v802_v14  ;;  %v2988_v31 = vrot.slane %v2981_v58, %v5417_v29  ;;  %v2995_v37 = vrot.slane %v795_v33, %v5417_v29  ;;  %v3009_v38 = vrot.slane %v803_v13, %v5417_v29 }
  0x85   : > { %v3044_v27 = vrot.slane %v3037_v40, %v5417_v29  ;;  %v3051_v45 = vrot.slane %v802_v14, %v5417_v29  ;;  %v3065_v17 = vrot.slane %v804_v19, %v5417_v29  ;;  %v3023_v57 = vrot.slane %v805_v15, %v5417_v29 }
  0x86   : > { %v3002_v7 = vrot.slane %v2995_v37, %v5417_v29  ;;  %v3079_v52 = vrot.slane %v806_v63, %v5417_v29  ;;  %v3559_v28 = vunpack.c.l.b16 %v2988_v31  ;;  %v3016_v5 = vrot.slane %v3009_v38, %v5417_v29 }
  0x87   : > { %v3058_v60 = vrot.slane %v3051_v45, %v5417_v29  ;;  %v3072_v36 = vrot.slane %v3065_v17, %v5417_v29  ;;  %v3563_v2 = vunpack.c.l.b16 %v3044_v27  ;;  %v3892_v11 = vld [vmem:[#allocation2 + $0xa0] sm:$0xf]  ;;  %v3030_v47 = vrot.slane %v3023_v57, %v5417_v29  ;;  %v3757_v57 = vld [vmem:[#allocation2 + $0xac] sm:$0x1] }
  0x88   : > { %v3086_v42 = vrot.slane %v3079_v52, %v5417_v29  ;;  %v3560_v61 = vunpack.c.l.b16 %v3002_v7  ;;  %v3840_v3 = vpack.c.b16 %v3790_v12, %v3790_v12  ;;  %v4978_v24 = vcombine.low %v3892_v11, %v3892_v11 }
  0x89   : > { %v5945_v33 = vcombine.low %v3892_v11, %v3908_v8  ;;  %v3561_v14 = vunpack.c.l.b16 %v3016_v5  ;;  %v3564_v13 = vunpack.c.l.b16 %v3058_v60  ;;  %v3562_v58 = vunpack.c.l.b16 %v3030_v47 }
  0x8a   : > { %v3565_v19 = vunpack.c.l.b16 %v3072_v36  ;;  %v3566_v40 = vunpack.c.l.b16 %v3086_v42  ;;  %v3638_v15 = vrot.slane %v3560_v61, 7  ;;  %3857 = vst.msk [vmem:[#allocation2 + $0xd8] sm:$0xf] %vm455_vm0, %v3840_v3  ;;  %4118 = vrot.lane.b32.xlu0 %v4978_v24, %s5288_s13  ;;  %v3644_v31 = vrot.slane %v3563_v2, 4  ;;  %v468_v42 = vld [vmem:[#allocation2 + $0x14] sm:$0x1] }
  0x8b   : > { %v3640_v63 = vrot.slane %v3561_v14, 6  ;;  %v3646_v37 = vrot.slane %v3564_v13, 3  ;;  %v7238_v38 = vrot.slane %v5779_v0, 2  ;;  %v3642_v45 = vrot.slane %v3562_v58, 5 }
  0x8c   : > { %v3639_v27 = vsel %vm2364_vm5, %v3638_v15, %v3559_v28  ;;  %v3648_v17 = vrot.slane %v3565_v19, 2  ;;  %v3650_v8 = vrot.slane %v3566_v40, 1  ;;  %v3800_v5 = vsel %vm2367_vm6, %v3629_v4, %v3799_v62 }
  0x8d   : > { %v3796_v12 = vsel %vm2376_vm9, %v7238_v38, %v3795_v30  ;;  %v3641_v7 = vsel %vm2367_vm6, %v3640_v63, %v3639_v27  ;;  %v3805_v60 = vsel %vm2557_vm4, %v3638_v15, %v3559_v28  ;;  %v3801_v2 = vsel %vm2370_vm7, %v5852_v23, %v3800_v5  ;;  %v2512_v15 = vld [vmem:[#allocation2 + $0xc] sm:$0x1]  ;;  %v5111_v27 = vld [vmem:[%s5396_s29 + $0x38] sm:$0xff]  }
  0x8e   : > { %v3797_v52 = vsel %vm2379_vm10, %v5799_v9, %v3796_v12  ;;  %v3643_v0 = vsel %vm2370_vm7, %v3642_v45, %v3641_v7  ;;  %v3710_v30 = vpack.c.b16 %v3650_v8, %v3650_v8  ;;  %v3802_v47 = vsel %vm2373_vm8, %v5854_v6, %v3801_v2 }
  0x8f   : > { %v3841_v36 = vpack.c.b16 %v3797_v52, %v3797_v52  ;;  %v3645_v11 = vsel %vm2373_vm8, %v3644_v31, %v3643_v0  ;;  %v3806_v9 = vsel %vm2364_vm5, %v3640_v63, %v3805_v60  ;;  %v2365_v4 = vsel %vm2364_vm5, %v5551_v39, %v7239_v21 }
  0x90   : > { %v3647_v62 = vsel %vm2376_vm9, %v3646_v37, %v3645_v11  ;;  %v3758_v28 = vsel %vm5378_vm3, %v3710_v30, %v3757_v57  ;;  %v3803_v23 = vsel %vm2376_vm9, %v3635_v59, %v3802_v47  ;;  %v3807_v6 = vsel %vm2367_vm6, %v3642_v45, %v3806_v9  ;;  %v2509_v57 = vld [vmem:[#allocation2 + $0x8] sm:$0xf]  ;;  %v476_v30 = vld [vmem:[#allocation2 + $0x24] sm:$0x1]  ;;  %v7248_v47 = vld [vmem:[#allocation5_spill] sm:$0xff] }
  0x91   : > { %3858 = vst.msk [vmem:[#allocation2 + $0xe0] sm:$0xf] %vm455_vm0, %v3841_v36  ;;  %v3649_v61 = vsel %vm2379_vm10, %v3648_v17, %v3647_v62  ;;  %3759 = vst [vmem:[#allocation2 + $0xac] sm:$0x1] %v3758_v28  ;;  %v5204_v3 = vld [vmem:[#allocation2 + $0xd8] ss:$0 sps:$4 sm:$0xff]   ;;  %v3804_v39 = vsel %vm2379_vm10, %v5861_v55, %v3803_v23  ;;  %v3808_v24 = vsel %vm2370_vm7, %v3644_v31, %v3807_v6  ;;  %v7246_v60 = vunpack.c.l.b16 %v5607_v20 }
  0x92   : > { %v7240_v14 = vrot.slane %v5545_v32, 6  ;;  %v3709_v18 = vpack.c.b16 %v3649_v61, %v3649_v61  ;;  %v3842_v58 = vpack.c.b16 %v3804_v39, %v3804_v39  ;;  %v3809_v59 = vsel %vm2373_vm8, %v3646_v37, %v3808_v24  ;;  %4154 = vrot.lane.b32.xlu0 %v5204_v3, %s5289_s14  ;;  %v472_v37 = vld [vmem:[#allocation2 + $0x1c] sm:$0x1]  ;;  %v7252_v23 = vld [vmem:[#allocation7_spill] sm:$0xff]  ;;  %v7253_v39 = vld [vmem:[#allocation8_spill] sm:$0xff] }
  0x93   : > { %v7241_v19 = vrot.slane %v5549_v35, 5  ;;  %v3810_v55 = vsel %vm2376_vm9, %v3648_v17, %v3809_v59  ;;  %v2474_v63 = vpack.c.b16 %v5578_v50, %v5578_v50  ;;  %v469_v31 = vsel %vm5378_vm3, 0, %v468_v42 }
  0x94   : > { %v2368_v13 = vsel %vm2367_vm6, %v7240_v14, %v2365_v4  ;;  %v3755_v35 = vsel %vm5739_vm12, %v3709_v18, %v3754_v10  ;;  %3859 = vst.msk [vmem:[#allocation2 + $0xe8] sm:$0xf] %vm455_vm0, %v3842_v58  ;;  %v3811_v38 = vsel %vm2379_vm10, %v3650_v8, %v3810_v55  ;;  %470 = vst [vmem:[#allocation2 + $0x14] sm:$0x1] %v469_v31  ;;  %v7243_v17 = vrot.slane %v5555_v41, 2  ;;  %v6042_v4 = vld [vmem:[%s5396_s29 + $0x48] sm:$0xff]  }
  0x95   : > { %v2371_v40 = vsel %vm2370_vm7, %v7241_v19, %v2368_v13  ;;  %3756 = vst [vmem:[#allocation2 + $0xa8] sm:$0xf] %v3755_v35  ;;  %v3843_v45 = vpack.c.b16 %v3811_v38, %v3811_v38  ;;  %v2513_v8 = vsel %vm5378_vm3, %v2474_v63, %v2512_v15  ;;  %v7244_v52 = vrot.slane %v5484_v43, 6  ;;  %v2521_v14 = vld [vmem:[#allocation2 + $0x18] sm:$0xf]  ;;  %v7254_v18 = vld [vmem:[#allocation9_spill] sm:$0xff] }
  0x96   : > { %v2374_v32 = vsel %vm2373_vm8, %v5562_v49, %v2371_v40  ;;  %v7242_v49 = vunpack.c.l.b16 %v5470_v25  ;;  %2514 = vst [vmem:[#allocation2 + $0xc] sm:$0x1] %v2513_v8  ;;  %v7245_v25 = vrot.slane %v5490_v48, 5  ;;  %v473_v41 = vsel %vm5378_vm3, 0, %v472_v37  ;;  %v7255_v40 = vld [vmem:[#allocation6_spill] sm:$0xff] }
  0x97   : > { %v2377_v12 = vsel %vm2376_vm9, %v5564_v56, %v2374_v32  ;;  %v2396_v0 = vsel %vm2364_vm5, %v5627_v16, %v7246_v60  ;;  %3860 = vst.msk [vmem:[#allocation2 + $0xf0] sm:$0xf] %vm455_vm0, %v3843_v45  ;;  %474 = vst [vmem:[#allocation2 + $0x1c] sm:$0x1] %v473_v41  ;;  %v7247_v36 = vrot.slane %v5622_v53, 6  ;;  %v2478_v2 = vpack.c.b16 %v5647_v34, %v5647_v34  ;;  %v7250_v53 = vld [vmem:[#allocation3_spill] sm:$0xff] }
  0x98   : > { %v2383_v50 = vsel %vm2364_vm5, %v5492_v51, %v7242_v49  ;;  %v2380_v7 = vsel %vm2379_vm10, %v7243_v17, %v2377_v12  ;;  %v5071_v11 = vunpack.c.l.bf16 %v5111_v27  ;;  %v7249_v9 = vrot.slane %v7248_v47, 5  ;;  %v2515_v34 = vld [vmem:[#allocation2 + $0x10] sm:$0xf]  ;;  %v3909_v10 = vld [vmem:[#allocation2 + $0xac] sm:$0x1] }
  0x99   : > { %v2385_v56 = vsel %vm2367_vm6, %v7244_v52, %v2383_v50  ;;  %v2473_v5 = vpack.c.b16 %v2380_v7, %v2380_v7  ;;  %v2398_v48 = vsel %vm2367_vm6, %v7247_v36, %v2396_v0  ;;  %v7251_v62 = vrot.slane %v7250_v53, 2  ;;  %v6067_v32 = vld [vmem:[%s7187_s4] ss:$0 sm:$0xff]  ;;  %v7257_v12 = vld [vmem:[#allocation4_spill] sm:$0xff] }
  0x9a   : > { %v2387_v51 = vsel %vm2370_vm7, %v7245_v25, %v2385_v56  ;;  %v2400_v21 = vsel %vm2370_vm7, %v7249_v9, %v2398_v48  ;;  %v477_v61 = vsel %vm5378_vm3, 0, %v476_v30  ;;  %v4195_v58 = vshrl.u32 %v7254_v18, 16  ;;  %v5205_v0 = vld [vmem:[#allocation2 + $0xe0] ss:$0 sps:$4 sm:$0xff]  }
  0x9b   : > { %v2389_v43 = vsel %vm2373_vm8, %v5488_v46, %v2387_v51  ;;  %v2510_v20 = vsel %vm5739_vm12, %v2473_v5, %v2509_v57  ;;  %v5072_v46 = vunpack.c.h.bf16 %v5111_v27  ;;  %v2402_v6 = vsel %vm2373_vm8, %v7252_v23, %v2400_v21  ;;  %478 = vst [vmem:[#allocation2 + $0x24] sm:$0x1] %v477_v61  ;;  %v5206_v59 = vld [vmem:[#allocation2 + $0xe8] ss:$0 sps:$4 sm:$0xff]   ;;  %v2518_v19 = vld [vmem:[#allocation2 + $0x14] sm:$0x1] }
  0x9c   : > { %v2391_v16 = vsel %vm2376_vm9, %v5495_v54, %v2389_v43  ;;  %2511 = vst [vmem:[#allocation2 + $0x8] sm:$0xf] %v2510_v20  ;;  %v6052_v54 = vld [vmem:[%s7186_s3] ss:$0 sm:$0xff]  ;;  %v2404_v24 = vsel %vm2376_vm9, %v7253_v39, %v2402_v6  ;;  %v7256_v15 = vrot.slane %v7255_v40, 2  ;;  %v5079_v31 = vunpack.c.l.bf16 %v6042_v4  ;;  %4158 = vrot.lane.b32.xlu0 %v5206_v59, %s5289_s14 }
  0x9d   : > { %v2393_v28 = vsel %vm2379_vm10, %v7251_v62, %v2391_v16  ;;  %v382_v42 = vmul.f32 %v6052_v54, %v5071_v11  ;;  %v383_v13 = vmul.f32 %v6052_v54, %v5072_v46  ;;  %v5080_v37 = vunpack.c.h.bf16 %v6042_v4  ;;  %v3893_v35 = vld [vmem:[#allocation2 + $0xa8] sm:$0xf]  ;;  %v3930_v57 = vld [vmem:[#allocation2 + $0xc] sm:$0x1] }
  0x9e   : > { %v2475_v3 = vpack.c.b16 %v2393_v28, %v2393_v28  ;;  %v2406_v55 = vsel %vm2379_vm10, %v7256_v15, %v2404_v24  ;;  %v7258_v49 = vpack.c.b16 %v7257_v12, %v7257_v12  ;;  %v4979_v17 = vcombine.low %v3893_v35, %v3893_v35  ;;  %v2524_v5 = vld [vmem:[#allocation2 + $0x1c] sm:$0x1]  ;;  %v3883_v41 = vld [vmem:[#allocation2 + $0xc] sm:$0x1] }
  0x9f   : > { %v421_v63 = vadd.f32 %v6067_v32, %v382_v42  ;;  %v2477_v27 = vpack.c.b16 %v2406_v55, %v2406_v55  ;;  %v422_v45 = vadd.f32 %v6067_v32, %v383_v13  ;;  %v6080_v7 = vcombine.low %v3893_v35, %v3909_v10  ;;  %v5207_v42 = vld [vmem:[#allocation2 + $0xf0] ss:$0 sps:$4 sm:$0xff]  }
  0xa0   : > { %v2516_v38 = vsel %vm5739_vm12, %v2475_v3, %v2515_v34  ;;  %v2519_v50 = vsel %vm5378_vm3, %v7258_v49, %v2518_v19  ;;  %v4197_v8 = vshll.u32 %v7254_v18, 16  ;;  %v4209_v52 = vshrl.u32 %v5945_v33, 16  ;;  %4120 = vrot.lane.b32.xlu1 %v4979_v17, %s5288_s13 }
  0xa1   : > { %2517 = vst [vmem:[#allocation2 + $0x10] sm:$0xf] %v2516_v38  ;;  %2520 = vst [vmem:[#allocation2 + $0x14] sm:$0x1] %v2519_v50  ;;  %v2522_v56 = vsel %vm5739_vm12, %v2477_v27, %v2521_v14  ;;  %v446_v25 = vpack.c.bf16 %v422_v45, %v421_v63  ;;  %v4955_v51 = vpack.c.bf16 %v422_v45, %v422_v45  ;;  %v4211_v36 = vshll.u32 %v5945_v33, 16 }
  0xa2   : > { %v6088_v60 = vmul.f32 %v6052_v54, %v5079_v31  ;;  %2523 = vst [vmem:[#allocation2 + $0x18] sm:$0xf] %v2522_v56  ;;  %v2525_v30 = vsel %vm5378_vm3, %v2478_v2, %v2524_v5  ;;  %v4199_v43 = vrot.slane %v4197_v8, 1  ;;  %v4202_v48 = vshrl.u32 %v5878_v44, 16 }
  0xa3   : > { %v3914_v11 = vld [vmem:[#allocation2 + $0x8] sm:$0xf]  ;;  %2526 = vst [vmem:[#allocation2 + $0x1c] sm:$0x1] %v2525_v30  ;;  %v1165_v20 = vrot.slane %v446_v25, %v5410_v26  ;;  %v1172_v16 = vrot.slane %v4955_v51, %v5410_v26  ;;  %v4204_v9 = vshll.u32 %v5878_v44, 16  ;;  %v4216_v21 = vshrl.u32 %v6080_v7, 16 }
  0xa4   : > { %v3866_v47 = vld [vmem:[#allocation2 + $0x8] sm:$0xf]  ;;  %v5000_v46 = vcombine.low %v3914_v11, %v3914_v11  ;;  %v6099_v53 = vcombine.low %v3914_v11, %v3930_v57  ;;  %v6103_v62 = vor.u32 %v4199_v43, %v4195_v58  ;;  %4156 = vrot.lane.b32.xlu1 %v5205_v0, %s5289_s14  ;;  %v6111_v3 = vrot.slane %v4211_v36, 1  ;;  %v5216_v36 = vld [vmem:[#allocation2 + $0x50] ss:$0 sps:$4 sm:$0xff]  }
  0xa5   : > { %v6101_v2 = vcombine.low %v3866_v47, %v3883_v41  ;;  %v1173_v28 = vcombine.high %v1165_v20, %v1165_v20  ;;  %v1174_v34 = vcombine.high %v1172_v16, %v1172_v16  ;;  %v1181_v23 = vrot.slane %v1165_v20, %v5410_v26 }
  0xa6   : > { %v1188_v6 = vrot.slane %v1172_v16, %v5410_v26  ;;  %4290 = vrot.lane.b32.xlu0 %v5000_v46, %s5290_s19  ;;  %v6113_v39 = vrot.slane %v4204_v9, 1  ;;  %v4218_v33 = vshll.u32 %v6080_v7, 16  ;;  %vm4518_vm2 = vcmask 326656  }
  0xa7   : > { %v4026_v61 = vshrl.u32 %v6101_v2, 16  ;;  %v4028_v10 = vshll.u32 %v6101_v2, 16  ;;  %v1195_v13 = vrot.slane %v1173_v28, %v5410_v26  ;;  %v1202_v18 = vrot.slane %v1174_v34, %v5410_v26 }
  0xa8   : > { %v3915_v24 = vld [vmem:[#allocation2 + $0x10] sm:$0xf]  ;;  %v3931_v14 = vld [vmem:[#allocation2 + $0x14] sm:$0x1]  ;;  %v1203_v58 = vcombine.high %v1181_v23, %v1181_v23  ;;  %v1204_v59 = vcombine.high %v1188_v6, %v1188_v6  ;;  %v1745_v15 = vrot.slane %v1181_v23, %v5417_v29  ;;  %v1801_v55 = vrot.slane %v1188_v6, %v5417_v29  ;;  %4160 = vrot.lane.b32.xlu1 %v5207_v42, %s5289_s14 }
  0xa9   : > { %v5001_v19 = vcombine.low %v3915_v24, %v3915_v24  ;;  %v6117_v40 = vcombine.low %v3915_v24, %v3931_v14  ;;  %v3916_v63 = vld [vmem:[#allocation2 + $0x18] sm:$0xf]  ;;  %v1205_v31 = vcombine.high %v1195_v13, %v1195_v13  ;;  %v1206_v35 = vcombine.high %v1202_v18, %v1202_v18  ;;  %v3867_v25 = vld [vmem:[#allocation2 + $0x10] sm:$0xf]  ;;  %v3884_v51 = vld [vmem:[#allocation2 + $0x14] sm:$0x1] }
  0xaa   : > { %v1759_v38 = vrot.slane %v1195_v13, %v5417_v29  ;;  %v1773_v12 = vrot.slane %v1203_v58, %v5417_v29  ;;  %v3932_v49 = vld [vmem:[#allocation2 + $0x1c] sm:$0x1]  ;;  %v5002_v50 = vcombine.low %v3916_v63, %v3916_v63  ;;  %v1752_v27 = vrot.slane %v1745_v15, %v5417_v29  ;;  %v5218_v58 = vld [vmem:[#allocation2 + $0x60] ss:$0 sps:$4 sm:$0xff]  }
  0xab   : > { %v1808_v45 = vrot.slane %v1801_v55, %v5417_v29  ;;  %v1815_v17 = vrot.slane %v1202_v18, %v5417_v29  ;;  %v6127_v57 = vcombine.low %v3916_v63, %v3932_v49  ;;  %v1787_v5 = vrot.slane %v1205_v31, %v5417_v29  ;;  %v3868_v31 = vld [vmem:[#allocation2 + $0x18] sm:$0xf] }
  0xac   : > { %v1766_v8 = vrot.slane %v1759_v38, %v5417_v29  ;;  %v1780_v56 = vrot.slane %v1773_v12, %v5417_v29  ;;  %4294 = vrot.lane.b32.xlu0 %v5002_v50, %s5290_s19  ;;  %v1829_v0 = vrot.slane %v1204_v59, %v5417_v29  ;;  %v1843_v30 = vrot.slane %v1206_v35, %v5417_v29  ;;  %v3885_v35 = vld [vmem:[#allocation2 + $0x1c] sm:$0x1] }
  0xad   : > { %v1822_v41 = vrot.slane %v1815_v17, %v5417_v29  ;;  %v2323_v43 = vunpack.c.l.b16 %v1752_v27  ;;  %v1794_v11 = vrot.slane %v1787_v5, %v5417_v29  ;;  %v2327_v47 = vunpack.c.l.b16 %v1808_v45  ;;  %4292 = vrot.lane.b32.xlu1 %v5001_v19, %s5290_s19  ;;  %v2530_v45 = vld [vmem:[#allocation2 + $0x24] sm:$0x1] }
  0xae   : > { %v2324_v20 = vunpack.c.l.b16 %v1766_v8  ;;  %v2325_v16 = vunpack.c.l.b16 %v1780_v56  ;;  %v1836_v9 = vrot.slane %v1829_v0, %v5417_v29  ;;  %v1850_v46 = vrot.slane %v1843_v30, %v5417_v29 }
  0xaf   : > { %v2328_v28 = vunpack.c.l.b16 %v1822_v41  ;;  %v4970_v34 = vcombine.low %v3867_v25, %v3884_v51  ;;  %v2326_v23 = vunpack.c.l.b16 %v1794_v11  ;;  %v2414_v24 = vrot.slane %v2327_v47, 4 }
  0xb0   : > { %v2408_v6 = vrot.slane %v2324_v20, 7  ;;  %v2410_v42 = vrot.slane %v2325_v16, 6  ;;  %v2329_v14 = vunpack.c.l.b16 %v1836_v9  ;;  %v2330_v13 = vunpack.c.l.b16 %v1850_v46  ;;  %4330 = vrot.lane.b32.xlu0 %v5216_v36, %s5291_s20 }
  0xb1   : > { %v2416_v18 = vrot.slane %v2328_v28, 3  ;;  %v4033_v59 = vshrl.u32 %v4970_v34, 16  ;;  %v2412_v15 = vrot.slane %v2326_v23, 5  ;;  %v4035_v63 = vshll.u32 %v4970_v34, 16 }
  0xb2   : > { %v2409_v19 = vsel %vm2364_vm5, %v2408_v6, %v2323_v43  ;;  %v2579_v55 = vsel %vm2557_vm4, %v2408_v6, %v2323_v43  ;;  %v2418_v12 = vrot.slane %v2329_v14, 2  ;;  %v2420_v49 = vrot.slane %v2330_v13, 1 }
  0xb3   : > { %v2411_v38 = vsel %vm2367_vm6, %v2410_v42, %v2409_v19  ;;  %v2580_v50 = vsel %vm2364_vm5, %v2410_v42, %v2579_v55  ;;  %v4037_v8 = vrot.slane %v4035_v63, 1  ;;  %v4030_v56 = vrot.slane %v4028_v10, 1  ;;  %v2527_v10 = vld [vmem:[#allocation2 + $0x20] sm:$0xf] }
  0xb4   : > { %v2413_v27 = vsel %vm2370_vm7, %v2412_v15, %v2411_v38  ;;  %v2581_v17 = vsel %vm2367_vm6, %v2412_v15, %v2580_v50  ;;  %v2480_v25 = vpack.c.b16 %v2420_v49, %v2420_v49  ;;  %4334 = vrot.lane.b32.xlu0 %v5218_v58, %s5291_s20  ;;  %v4971_v41 = vcombine.low %v3868_v31, %v3885_v35  ;;  %v484_v31 = vld [vmem:[#allocation2 + $0x34] sm:$0x1]  ;;  %v480_v35 = vld [vmem:[#allocation2 + $0x2c] sm:$0x1] }
  0xb5   : > { %v2415_v5 = vsel %vm2373_vm8, %v2414_v24, %v2413_v27  ;;  %v2582_v51 = vsel %vm2370_vm7, %v2414_v24, %v2581_v17  ;;  %v4038_v43 = vor.u32 %v4037_v8, %v4033_v59  ;;  %v6156_v36 = vor.u32 %v4030_v56, %v4026_v61 }
  0xb6   : > { %v2417_v0 = vsel %vm2376_vm9, %v2416_v18, %v2415_v5  ;;  %v2583_v30 = vsel %vm2373_vm8, %v2416_v18, %v2582_v51  ;;  %v2531_v20 = vsel %vm5378_vm3, %v2480_v25, %v2530_v45  ;;  %v4040_v47 = vshrl.u32 %v4971_v41, 16  ;;  %v6206_v45 = vld [vmem:[%s5396_s29 + $0x40] sm:$0xff]  }
  0xb7   : > { %v2419_v11 = vsel %vm2379_vm10, %v2418_v12, %v2417_v0  ;;  %v2584_v16 = vsel %vm2376_vm9, %v2418_v12, %v2583_v30  ;;  %2532 = vst [vmem:[#allocation2 + $0x24] sm:$0x1] %v2531_v20  ;;  %v4042_v28 = vshll.u32 %v4971_v41, 16  ;;  %v4214_v2 = vor.u32 %v6111_v3, %v4209_v52  ;;  %v5115_v3 = vld [vmem:[%s5396_s29 + $0x58] sm:$0xff]  }
  0xb8   : > { %v2479_v9 = vpack.c.b16 %v2419_v11, %v2419_v11  ;;  %v2585_v46 = vsel %vm2379_vm10, %v2420_v49, %v2584_v16  ;;  %4078 = vrot.lane.b32.xlu0 %v4038_v43, %s5287_s12  ;;  %v6170_v34 = vor.u32 %v6113_v39, %v4202_v48  ;;  %v4371_v23 = vshrl.u32 %v6099_v53, 16 }
  0xb9   : > { %v2617_v61 = vpack.c.b16 %v2585_v46, %v2585_v46  ;;  %v4373_v6 = vshll.u32 %v6099_v53, 16  ;;  %v4044_v24 = vrot.slane %v4042_v28, 1  ;;  %v4378_v52 = vshrl.u32 %v6117_v40, 16  ;;  %v5117_v53 = vld [vmem:[%s5396_s29 + $0x68] sm:$0xff]   ;;  %v5217_v28 = vld [vmem:[#allocation2 + $0x58] ss:$0 sps:$4 sm:$0xff]  }
  0xba   : > { %v2528_v42 = vsel %vm5739_vm12, %v2479_v9, %v2527_v10  ;;  %v4380_v48 = vshll.u32 %v6117_v40, 16  ;;  %v4385_v39 = vshrl.u32 %v6127_v57, 16  ;;  %v4387_v14 = vshll.u32 %v6127_v57, 16 }
  0xbb   : > { %2529 = vst [vmem:[#allocation2 + $0x20] sm:$0xf] %v2528_v42  ;;  %2634 = vst.msk [vmem:[#allocation2 + $0x68] sm:$0xf] %vm455_vm0, %v2617_v61  ;;  %v4375_v44 = vrot.slane %v4373_v6, 1  ;;  %v6184_v13 = vor.u32 %v4044_v24, %v4040_v47  ;;  %v4220_v18 = vrot.slane %v4218_v33, 1  ;;  %v387_v58 = vmul.f32 %v6052_v54, %v5080_v37 }
  0xbc   : > { %v425_v59 = vadd.f32 %v6067_v32, %v6088_v60  ;;  %4250 = vrot.lane.b32.xlu0 %v6103_v62, %s5292_s21  ;;  %v4382_v19 = vrot.slane %v4380_v48, 1  ;;  %v4389_v15 = vrot.slane %v4387_v14, 1  ;;  %v5087_v55 = vunpack.c.l.bf16 %v5115_v3 }
  0xbd   : > { %v4376_v40 = vor.u32 %v4375_v44, %v4371_v23  ;;  %v6195_v57 = vor.u32 %v4220_v18, %v4216_v21  ;;  %v426_v4 = vadd.f32 %v6067_v32, %v387_v58  ;;  %v5088_v63 = vunpack.c.h.bf16 %v5115_v3 }
  0xbe   : > { %v5095_v37 = vunpack.c.l.bf16 %v5117_v53  ;;  %v6198_v60 = vor.u32 %v4382_v19, %v4378_v52  ;;  %v6200_v38 = vor.u32 %v4389_v15, %v4385_v39  ;;  %v390_v62 = vmul.f32 %v6052_v54, %v5087_v55  ;;  %v3933_v49 = vld [vmem:[#allocation2 + $0x24] sm:$0x1] }
  0xbf   : > { %v5096_v12 = vunpack.c.h.bf16 %v5117_v53  ;;  %v448_v50 = vpack.c.bf16 %v426_v4, %v425_v59  ;;  %v4956_v27 = vpack.c.bf16 %v426_v4, %v426_v4  ;;  %v391_v7 = vmul.f32 %v6052_v54, %v5088_v63 }
  0xc0   : > { %v394_v21 = vmul.f32 %v6052_v54, %v5095_v37  ;;  %4254 = vrot.lane.b32.xlu0 %v4214_v2, %s5292_s21  ;;  %v429_v17 = vadd.f32 %v6067_v32, %v390_v62  ;;  %v485_v56 = vsel %vm5378_vm3, 0, %v484_v31  ;;  %v481_v5 = vsel %vm5378_vm3, 0, %v480_v35 }
  0xc1   : > { %v395_v8 = vmul.f32 %v6052_v54, %v5096_v12  ;;  %v1214_v51 = vrot.slane %v448_v50, %v5410_v26  ;;  %v1221_v41 = vrot.slane %v4956_v27, %v5410_v26  ;;  %v430_v0 = vadd.f32 %v6067_v32, %v391_v7  ;;  %486 = vst [vmem:[#allocation2 + $0x34] sm:$0x1] %v485_v56 }
  0xc2   : > { %v3917_v25 = vld [vmem:[#allocation2 + $0x20] sm:$0xf]  ;;  %v6219_v30 = vadd.f32 %v6067_v32, %v394_v21  ;;  %482 = vst [vmem:[#allocation2 + $0x2c] sm:$0x1] %v481_v5  ;;  %v5075_v20 = vunpack.c.l.bf16 %v6206_v45  ;;  %v5223_v2 = vld [vmem:[#allocation2 + $0x68] ss:$0 sps:$4 sm:$0xff]  }
  0xc3   : > { %v5003_v43 = vcombine.low %v3917_v25, %v3917_v25  ;;  %v6221_v11 = vcombine.low %v3917_v25, %v3933_v49  ;;  %v6224_v10 = vadd.f32 %v6067_v32, %v395_v8  ;;  %v1222_v16 = vcombine.high %v1214_v51, %v1214_v51 }
  0xc4   : > { %v1223_v47 = vcombine.high %v1221_v41, %v1221_v41  ;;  %v1230_v9 = vrot.slane %v1214_v51, %v5410_v26  ;;  %v1237_v46 = vrot.slane %v1221_v41, %v5410_v26  ;;  %4426 = vrot.lane.b32.xlu0 %v4376_v40, %s5293_s22  ;;  %v450_v61 = vpack.c.bf16 %v430_v0, %v429_v17  ;;  %v5219_v40 = vld [vmem:[#allocation2 + $0x68] ss:$0 sps:$4 sm:$0xff]  }
  0xc5   : > { %4296 = vrot.lane.b32.xlu1 %v5003_v43, %s5290_s19  ;;  %v4957_v23 = vpack.c.bf16 %v430_v0, %v430_v0  ;;  %v4392_v6 = vshrl.u32 %v6221_v11, 16  ;;  %v4394_v42 = vshll.u32 %v6221_v11, 16  ;;  %v1244_v24 = vrot.slane %v1222_v16, %v5410_v26 }
  0xc6   : > { %v1251_v33 = vrot.slane %v1223_v47, %v5410_v26  ;;  %v1252_v52 = vcombine.high %v1230_v9, %v1230_v9  ;;  %v1253_v3 = vcombine.high %v1237_v46, %v1237_v46  ;;  %v1857_v44 = vrot.slane %v1230_v9, %v5417_v29 }
  0xc7   : > { %v1913_v48 = vrot.slane %v1237_v46, %v5417_v29  ;;  %v1263_v39 = vrot.slane %v450_v61, %v5410_v26  ;;  %v1270_v14 = vrot.slane %v4957_v23, %v5410_v26  ;;  %v1254_v53 = vcombine.high %v1244_v24, %v1244_v24 }
  0xc8   : > { %v1255_v18 = vcombine.high %v1251_v33, %v1251_v33  ;;  %v1871_v58 = vrot.slane %v1244_v24, %v5417_v29  ;;  %v1885_v59 = vrot.slane %v1252_v52, %v5417_v29  ;;  %3970 = vrot.lane.b32.xlu0 %v5223_v2, %s5286_s11  ;;  %v6244_v19 = vrot.slane %v1857_v44, %v5417_v29 }
  0xc9   : > { %4332 = vrot.lane.b32.xlu1 %v5217_v28, %s5291_s20  ;;  %v1920_v15 = vrot.slane %v1913_v48, %v5417_v29  ;;  %v1927_v55 = vrot.slane %v1251_v33, %v5417_v29  ;;  %v6248_v4 = vrot.slane %v4394_v42, 1  ;;  %v1899_v31 = vrot.slane %v1254_v53, %v5417_v29 }
  0xca   : > { %v1878_v63 = vrot.slane %v1871_v58, %v5417_v29  ;;  %v1892_v37 = vrot.slane %v1885_v59, %v5417_v29  ;;  %v1941_v35 = vrot.slane %v1253_v3, %v5417_v29  ;;  %v1955_v12 = vrot.slane %v1255_v18, %v5417_v29 }
  0xcb   : > { %v1934_v62 = vrot.slane %v1927_v55, %v5417_v29  ;;  %v2331_v49 = vunpack.c.l.b16 %v6244_v19  ;;  %v2335_v50 = vunpack.c.l.b16 %v1920_v15  ;;  %v1906_v27 = vrot.slane %v1899_v31, %v5417_v29 }
  0xcc   : > { %v1948_v7 = vrot.slane %v1941_v35, %v5417_v29  ;;  %v2332_v21 = vunpack.c.l.b16 %v1878_v63  ;;  %v6259_v17 = vunpack.c.l.b16 %v1892_v37  ;;  %4430 = vrot.lane.b32.xlu0 %v6200_v38, %s5293_s22  ;;  %v1962_v8 = vrot.slane %v1955_v12, %v5417_v29 }
  0xcd   : > { %4336 = vrot.lane.b32.xlu1 %v5219_v40, %s5291_s20  ;;  %v2336_v56 = vunpack.c.l.b16 %v1934_v62  ;;  %v6265_v5 = vrot.slane %v2335_v50, 4  ;;  %v1271_v25 = vcombine.high %v1263_v39, %v1263_v39  ;;  %v6267_v51 = vunpack.c.l.b16 %v1906_v27 }
  0xce   : > { %v6269_v41 = vunpack.c.l.b16 %v1948_v7  ;;  %v6271_v0 = vrot.slane %v2332_v21, 7  ;;  %v2423_v43 = vrot.slane %v6259_v17, 6  ;;  %v2338_v16 = vunpack.c.l.b16 %v1962_v8 }
  0xcf   : > { %v6274_v47 = vrot.slane %v2336_v56, 3  ;;  %v1272_v9 = vcombine.high %v1270_v14, %v1270_v14  ;;  %v1279_v38 = vrot.slane %v1263_v39, %v5410_v26  ;;  %v2425_v46 = vrot.slane %v6267_v51, 5 }
  0xd0   : > { %v2431_v28 = vrot.slane %v6269_v41, 2  ;;  %v2586_v2 = vsel %vm2557_vm4, %v6271_v0, %v2331_v49  ;;  %v1286_v61 = vrot.slane %v1270_v14, %v5410_v26  ;;  %v6286_v23 = vrot.slane %v2338_v16, 1 }
  0xd1   : > { %4076 = vrot.lane.b32.xlu1 %v6156_v36, %s5287_s12  ;;  %v2587_v42 = vsel %vm2364_vm5, %v2423_v43, %v2586_v2  ;;  %v1293_v24 = vrot.slane %v1271_v25, %v5410_v26  ;;  %v1300_v33 = vrot.slane %v1272_v9, %v5410_v26  ;;  %v1301_v3 = vcombine.high %v1279_v38, %v1279_v38 }
  0xd2   : > { %v2588_v52 = vsel %vm2367_vm6, %v2425_v46, %v2587_v42  ;;  %v1302_v44 = vcombine.high %v1286_v61, %v1286_v61  ;;  %v1969_v48 = vrot.slane %v1279_v38, %v5417_v29  ;;  %v2482_v36 = vpack.c.b16 %v6286_v23, %v6286_v23  ;;  %v3886_v42 = vld [vmem:[#allocation2 + $0x24] sm:$0x1] }
  0xd3   : > { %v2589_v39 = vsel %vm2370_vm7, %v6265_v5, %v2588_v52  ;;  %v1303_v14 = vcombine.high %v1293_v24, %v1293_v24  ;;  %v1304_v53 = vcombine.high %v1300_v33, %v1300_v33  ;;  %v1983_v59 = vrot.slane %v1293_v24, %v5417_v29 }
  0xd4   : > { %v2590_v18 = vsel %vm2373_vm8, %v6274_v47, %v2589_v39  ;;  %v1976_v58 = vrot.slane %v1969_v48, %v5417_v29  ;;  %v1997_v40 = vrot.slane %v1301_v3, %v5417_v29  ;;  %v2025_v63 = vrot.slane %v1286_v61, %v5417_v29  ;;  %v3869_v61 = vld [vmem:[#allocation2 + $0x20] sm:$0xf] }
  0xd5   : > { %4080 = vrot.lane.b32.xlu1 %v6184_v13, %s5287_s12  ;;  %v2591_v15 = vsel %vm2376_vm9, %v2431_v28, %v2590_v18  ;;  %v2011_v55 = vrot.slane %v1303_v14, %v5417_v29  ;;  %v2039_v37 = vrot.slane %v1300_v33, %v5417_v29  ;;  %v1990_v35 = vrot.slane %v1983_v59, %v5417_v29 }
  0xd6   : > { %v2592_v31 = vsel %vm2379_vm10, %v6286_v23, %v2591_v15  ;;  %v2004_v62 = vrot.slane %v1997_v40, %v5417_v29  ;;  %v2053_v12 = vrot.slane %v1302_v44, %v5417_v29  ;;  %v2032_v27 = vrot.slane %v2025_v63, %v5417_v29 }
  0xd7   : > { %v2618_v13 = vpack.c.b16 %v2592_v31, %v2592_v31  ;;  %v2018_v50 = vrot.slane %v2011_v55, %v5417_v29  ;;  %v2046_v7 = vrot.slane %v2039_v37, %v5417_v29  ;;  %v2067_v8 = vrot.slane %v1304_v53, %v5417_v29 }
  0xd8   : > { %v2060_v21 = vrot.slane %v2053_v12, %v5417_v29  ;;  %v2339_v56 = vunpack.c.l.b16 %v1976_v58  ;;  %v2340_v25 = vunpack.c.l.b16 %v1990_v35  ;;  %v2341_v16 = vunpack.c.l.b16 %v2004_v62 }
  0xd9   : > { %4252 = vrot.lane.b32.xlu1 %v6170_v34, %s5292_s21  ;;  %2635 = vst.msk [vmem:[#allocation2 + $0x70] sm:$0xf] %vm455_vm0, %v2618_v13  ;;  %v2342_v9 = vunpack.c.l.b16 %v2018_v50  ;;  %v2343_v38 = vunpack.c.l.b16 %v2032_v27  ;;  %v2344_v2 = vunpack.c.l.b16 %v2046_v7  ;;  %v2074_v24 = vrot.slane %v2067_v8, %v5417_v29 }
  0xda   : > { %v6328_v33 = vunpack.c.l.b16 %v2060_v21  ;;  %v2434_v52 = vrot.slane %v2340_v25, 7  ;;  %v4397_v3 = vor.u32 %v6248_v4, %v4392_v6  ;;  %v2436_v44 = vrot.slane %v2341_v16, 6 }
  0xdb   : > { %v2438_v48 = vrot.slane %v2342_v9, 5  ;;  %v2440_v34 = vrot.slane %v2343_v38, 4  ;;  %v2442_v39 = vrot.slane %v2344_v2, 3  ;;  %v2346_v14 = vunpack.c.l.b16 %v2074_v24 }
  0xdc   : > { %v2444_v53 = vrot.slane %v6328_v33, 2  ;;  %v2593_v18 = vsel %vm2557_vm4, %v2434_v52, %v2339_v56  ;;  %v4972_v58 = vcombine.low %v3869_v61, %v3886_v42  ;;  %v452_v11 = vpack.c.bf16 %v6224_v10, %v6219_v30 }
  0xdd   : > { %4256 = vrot.lane.b32.xlu1 %v6195_v57, %s5292_s21  ;;  %v2594_v59 = vsel %vm2364_vm5, %v2436_v44, %v2593_v18  ;;  %v4958_v6 = vpack.c.bf16 %v6224_v10, %v6224_v10  ;;  %v2435_v4 = vsel %vm2364_vm5, %v2434_v52, %v2339_v56  ;;  %v6343_v40 = vrot.slane %v2346_v14, 1 }
  0xde   : > { %v2595_v15 = vsel %vm2367_vm6, %v2438_v48, %v2594_v59  ;;  %v4047_v55 = vshrl.u32 %v4972_v58, 16  ;;  %v4049_v63 = vshll.u32 %v4972_v58, 16  ;;  %v1312_v57 = vrot.slane %v452_v11, %v5410_v26 }
  0xdf   : > { %v2596_v37 = vsel %vm2370_vm7, %v2440_v34, %v2595_v15  ;;  %v1319_v31 = vrot.slane %v4958_v6, %v5410_v26  ;;  %v2437_v35 = vsel %vm2367_vm6, %v2436_v44, %v2435_v4  ;;  %v2484_v30 = vpack.c.b16 %v6343_v40, %v6343_v40 }
  0xe0   : > { %v2597_v10 = vsel %vm2373_vm8, %v2442_v39, %v2596_v37  ;;  %v4051_v62 = vrot.slane %v4049_v63, 1  ;;  %v2439_v12 = vsel %vm2370_vm7, %v2438_v48, %v2437_v35  ;;  %v5224_v13 = vld [vmem:[#allocation2 + $0x70] ss:$0 sps:$4 sm:$0xff]   ;;  %v1320_v27 = vcombine.high %v1312_v57, %v1312_v57 }
  0xe1   : > { %4428 = vrot.lane.b32.xlu1 %v6198_v60, %s5293_s22  ;;  %v2598_v50 = vsel %vm2376_vm9, %v2444_v53, %v2597_v10  ;;  %v1321_v7 = vcombine.high %v1319_v31, %v1319_v31  ;;  %v1328_v21 = vrot.slane %v1312_v57, %v5410_v26  ;;  %v1335_v25 = vrot.slane %v1319_v31, %v5410_v26 }
  0xe2   : > { %v2599_v8 = vsel %vm2379_vm10, %v6343_v40, %v2598_v50  ;;  %v6362_v56 = vor.u32 %v4051_v62, %v4047_v55  ;;  %v2441_v16 = vsel %vm2373_vm8, %v2440_v34, %v2439_v12  ;;  %v1342_v60 = vrot.slane %v1320_v27, %v5410_v26  ;;  %v2542_v62 = vld [vmem:[#allocation2 + $0x34] sm:$0x1] }
  0xe3   : > { %v2619_v9 = vpack.c.b16 %v2599_v8, %v2599_v8  ;;  %v1349_v38 = vrot.slane %v1321_v7, %v5410_v26  ;;  %v1350_v2 = vcombine.high %v1328_v21, %v1328_v21  ;;  %v1351_v61 = vcombine.high %v1335_v25, %v1335_v25 }
  0xe4   : > { %v2081_v42 = vrot.slane %v1328_v21, %v5417_v29  ;;  %v2137_v24 = vrot.slane %v1335_v25, %v5417_v29  ;;  %v2443_v52 = vsel %vm2376_vm9, %v2442_v39, %v2441_v16  ;;  %v1352_v44 = vcombine.high %v1342_v60, %v1342_v60  ;;  %v2536_v16 = vld [vmem:[#allocation2 + $0x2c] sm:$0x1] }
  0xe5   : > { %3972 = vrot.lane.b32.xlu1 %v5224_v13, %s5286_s11  ;;  %2636 = vst.msk [vmem:[#allocation2 + $0x78] sm:$0xf] %vm455_vm0, %v2619_v9  ;;  %v1353_v48 = vcombine.high %v1349_v38, %v1349_v38  ;;  %v2095_v34 = vrot.slane %v1342_v60, %v5417_v29  ;;  %v2109_v14 = vrot.slane %v1350_v2, %v5417_v29 }
  0xe6   : > { %v6376_v18 = vrot.slane %v2081_v42, %v5417_v29  ;;  %v2144_v58 = vrot.slane %v2137_v24, %v5417_v29  ;;  %v2151_v59 = vrot.slane %v1349_v38, %v5417_v29  ;;  %v2165_v11 = vrot.slane %v1351_v61, %v5417_v29 }
  0xe7   : > { %v2102_v39 = vrot.slane %v2095_v34, %v5417_v29  ;;  %v2116_v6 = vrot.slane %v2109_v14, %v5417_v29  ;;  %v2123_v4 = vrot.slane %v1352_v44, %v5417_v29  ;;  %v2179_v40 = vrot.slane %v1353_v48, %v5417_v29  ;;  %v488_v34 = vld [vmem:[#allocation2 + $0x3c] sm:$0x1] }
  0xe8   : > { %v2158_v15 = vrot.slane %v2151_v59, %v5417_v29  ;;  %v2172_v55 = vrot.slane %v2165_v11, %v5417_v29  ;;  %v2347_v63 = vunpack.c.l.b16 %v6376_v18  ;;  %v2351_v37 = vunpack.c.l.b16 %v2144_v58  ;;  %v5116_v11 = vld [vmem:[%s5396_s29 + $0x60] sm:$0xff]  }
  0xe9   : > { %4432 = vrot.lane.b32.xlu1 %v4397_v3, %s5293_s22  ;;  %v2130_v57 = vrot.slane %v2123_v4, %v5417_v29  ;;  %v2186_v31 = vrot.slane %v2179_v40, %v5417_v29  ;;  %v2348_v35 = vunpack.c.l.b16 %v2102_v39  ;;  %v2349_v10 = vunpack.c.l.b16 %v2116_v6  ;;  %v2539_v3 = vld [vmem:[#allocation2 + $0x30] sm:$0xf] }
  0xea   : > { %v2352_v12 = vunpack.c.l.b16 %v2158_v15  ;;  %v6391_v13 = vunpack.c.l.b16 %v2172_v55  ;;  %v2453_v50 = vrot.slane %v2351_v37, 4  ;;  %v2445_v27 = vsel %vm2379_vm10, %v2444_v53, %v2443_v52  ;;  %v548_v52 = vld [vmem:[#allocation2 + $0xb4] sm:$0x1]  ;;  %v556_v15 = vld [vmem:[#allocation2 + $0xc4] sm:$0x1] }
  0xeb   : > { %v2350_v7 = vunpack.c.l.b16 %v2130_v57  ;;  %v2354_v21 = vunpack.c.l.b16 %v2186_v31  ;;  %v2447_v8 = vrot.slane %v2348_v35, 7  ;;  %v2449_v25 = vrot.slane %v2349_v10, 6 }
  0xec   : > { %v5225_v9 = vld [vmem:[#allocation2 + $0x78] ss:$0 sps:$4 sm:$0xff]   ;;  %v2455_v60 = vrot.slane %v2352_v12, 3  ;;  %v2457_v38 = vrot.slane %v6391_v13, 2  ;;  %v2483_v2 = vpack.c.b16 %v2445_v27, %v2445_v27  ;;  %v2543_v61 = vsel %vm5378_vm3, %v2484_v30, %v2542_v62  ;;  %v6459_v62 = vld [vmem:[%s5396_s29 + $0x50] sm:$0xff]  }
  0xed   : > { %v2451_v42 = vrot.slane %v2350_v7, 5  ;;  %v6399_v24 = vrot.slane %v2354_v21, 1  ;;  %v2600_v33 = vsel %vm2557_vm4, %v2447_v8, %v2347_v63  ;;  %2544 = vst [vmem:[#allocation2 + $0x34] sm:$0x1] %v2543_v61  ;;  %v2422_v53 = vsel %vm2364_vm5, %v6271_v0, %v2331_v49  ;;  %3974 = vrot.lane.b32.xlu0 %v5225_v9, %s5286_s11  ;;  %v2545_v9 = vld [vmem:[#allocation2 + $0x38] sm:$0xf] }
  0xee   : > { %v2601_v44 = vsel %vm2364_vm5, %v2449_v25, %v2600_v33  ;;  %v2540_v48 = vsel %vm5739_vm12, %v2483_v2, %v2539_v3  ;;  %v2424_v30 = vsel %vm2367_vm6, %v2423_v43, %v2422_v53  ;;  %v2537_v19 = vsel %vm5378_vm3, %v2482_v36, %v2536_v16 }
  0xef   : > { %v2486_v49 = vpack.c.b16 %v6399_v24, %v6399_v24  ;;  %v2602_v0 = vsel %vm2367_vm6, %v2451_v42, %v2601_v44  ;;  %2541 = vst [vmem:[#allocation2 + $0x30] sm:$0xf] %v2540_v48  ;;  %v2426_v17 = vsel %vm2370_vm7, %v2425_v46, %v2424_v30  ;;  %2538 = vst [vmem:[#allocation2 + $0x2c] sm:$0x1] %v2537_v19  ;;  %v5076_v43 = vunpack.c.h.bf16 %v6206_v45 }
  0xf0   : > { %v2603_v23 = vsel %vm2370_vm7, %v2453_v50, %v2602_v0  ;;  %v2428_v36 = vsel %vm2373_vm8, %v6265_v5, %v2426_v17  ;;  %v384_v14 = vmul.f32 %v6052_v54, %v5075_v20  ;;  %v549_v18 = vsel %vm5378_vm3, 0, %v548_v52  ;;  %v2533_v5 = vld [vmem:[#allocation2 + $0x28] sm:$0xf] }
  0xf1   : > { %v2604_v58 = vsel %vm2373_vm8, %v2455_v60, %v2603_v23  ;;  %v2430_v51 = vsel %vm2376_vm9, %v6274_v47, %v2428_v36  ;;  %v385_v46 = vmul.f32 %v6052_v54, %v5076_v43  ;;  %550 = vst [vmem:[#allocation2 + $0xb4] sm:$0x1] %v549_v18  ;;  %v489_v59 = vsel %vm5378_vm3, 0, %v488_v34  ;;  %4082 = vrot.lane.b32.xlu0 %v6362_v56, %s5287_s12 }
  0xf2   : > { %v2605_v45 = vsel %vm2376_vm9, %v2457_v38, %v2604_v58  ;;  %v2432_v20 = vsel %vm2379_vm10, %v2431_v28, %v2430_v51  ;;  %v423_v47 = vadd.f32 %v6067_v32, %v384_v14  ;;  %490 = vst [vmem:[#allocation2 + $0x3c] sm:$0x1] %v489_v59  ;;  %v2448_v39 = vsel %vm2364_vm5, %v2447_v8, %v2347_v63 }
  0xf3   : > { %v2606_v6 = vsel %vm2379_vm10, %v6399_v24, %v2605_v45  ;;  %v2481_v4 = vpack.c.b16 %v2432_v20, %v2432_v20  ;;  %v424_v56 = vadd.f32 %v6067_v32, %v385_v46  ;;  %v2450_v40 = vsel %vm2367_vm6, %v2449_v25, %v2448_v39 }
  0xf4   : > { %v2620_v55 = vpack.c.b16 %v2606_v6, %v2606_v6  ;;  %v3888_v41 = vld [vmem:[#allocation2 + $0x34] sm:$0x1]  ;;  %v2452_v28 = vsel %vm2370_vm7, %v2451_v42, %v2450_v40  ;;  %v5091_v37 = vunpack.c.l.bf16 %v5116_v11  ;;  %v5092_v57 = vunpack.c.h.bf16 %v5116_v11 }
  0xf5   : > { %v2534_v31 = vsel %vm5739_vm12, %v2481_v4, %v2533_v5  ;;  %v447_v35 = vpack.c.bf16 %v424_v56, %v423_v47  ;;  %v4948_v63 = vpack.c.bf16 %v424_v56, %v424_v56  ;;  %v2454_v10 = vsel %vm2373_vm8, %v2453_v50, %v2452_v28 }
  0xf6   : > { %2637 = vst.msk [vmem:[#allocation2 + $0x80] sm:$0xf] %vm455_vm0, %v2620_v55  ;;  %v3871_v12 = vld [vmem:[#allocation2 + $0x30] sm:$0xf]  ;;  %2535 = vst [vmem:[#allocation2 + $0x28] sm:$0xf] %v2534_v31  ;;  %v2456_v27 = vsel %vm2376_vm9, %v2455_v60, %v2454_v10  ;;  %v392_v7 = vmul.f32 %v6052_v54, %v5091_v37  ;;  %v393_v21 = vmul.f32 %v6052_v54, %v5092_v57  ;;  %v5083_v61 = vunpack.c.l.bf16 %v6459_v62 }
  0xf7   : > { %v557_v8 = vsel %vm5378_vm3, 0, %v556_v15  ;;  %v4974_v25 = vcombine.low %v3871_v12, %v3888_v41  ;;  %v814_v3 = vrot.slane %v447_v35, %v5410_v26  ;;  %v821_v50 = vrot.slane %v4948_v63, %v5410_v26  ;;  %v3887_v19 = vld [vmem:[#allocation2 + $0x2c] sm:$0x1]  ;;  %v5255_v10 = vld [vmem:[%s7184_s1] sm:$0xff]  }
  0xf8   : > { %v2458_v16 = vsel %vm2379_vm10, %v2457_v38, %v2456_v27  ;;  %558 = vst [vmem:[#allocation2 + $0xc4] sm:$0x1] %v557_v8  ;;  %v6473_v60 = vadd.f32 %v6067_v32, %v392_v7  ;;  %v6476_v54 = vadd.f32 %v6067_v32, %v393_v21  ;;  %v5084_v6 = vunpack.c.h.bf16 %v6459_v62  ;;  %5132 = vmatprep.subr.bf16.mxu0 %v5255_v10 }
  0xf9   : > { %v2485_v2 = vpack.c.b16 %v2458_v16, %v2458_v16  ;;  %v4061_v42 = vshrl.u32 %v4974_v25, 16  ;;  %v4063_v33 = vshll.u32 %v4974_v25, 16  ;;  %v822_v53 = vcombine.high %v814_v3, %v814_v3  ;;  %v2548_v44 = vld [vmem:[#allocation2 + $0x3c] sm:$0x1]  ;;  %5156 = vmatprep.subr.bf16.mxu1 %v5255_v10  ;;  %5133 = vmatpush3.bf16.msra.mxu0 %v5255_v10 }
  0xfa   : > { %v823_v52 = vcombine.high %v821_v50, %v821_v50  ;;  %v830_v13 = vrot.slane %v814_v3, %v5410_v26  ;;  %v837_v38 = vrot.slane %v821_v50, %v5410_v26  ;;  %v2549_v32 = vsel %vm5378_vm3, %v2486_v49, %v2548_v44  ;;  %5164 = vmatpush3.bf16.msra.mxu1 %v5255_v10  ;;  %v6590_v10 = vpop.permute.xlu1 %3966 }
  0xfb   : > { %v2546_v48 = vsel %vm5739_vm12, %v2485_v2, %v2545_v9  ;;  %v4065_v30 = vrot.slane %v4063_v33, 1  ;;  %v844_v34 = vrot.slane %v822_v53, %v5410_v26  ;;  %2550 = vst [vmem:[#allocation2 + $0x3c] sm:$0x1] %v2549_v32  ;;  %v451_v17 = vpack.c.bf16 %v6476_v54, %v6473_v60  ;;  %v5256_v53 = vld [vmem:[%s7184_s1 + $0x8] sm:$0xff]   ;;  %v5257_v32 = vld [vmem:[%s7184_s1 + $0x10] sm:$0xff]  }
  0xfc   : > { %v851_v0 = vrot.slane %v823_v52, %v5410_v26  ;;  %2547 = vst [vmem:[#allocation2 + $0x38] sm:$0xf] %v2546_v48  ;;  %v852_v43 = vcombine.high %v830_v13, %v830_v13  ;;  %v853_v23 = vcombine.high %v837_v38, %v837_v38  ;;  %v3093_v36 = vrot.slane %v830_v13, %v5417_v29  ;;  %v6542_v48 = vpop.permute.xlu0 %3962 }
  0xfd   : > { %v3149_v24 = vrot.slane %v837_v38, %v5417_v29  ;;  %v5227_v14 = vld [vmem:[#allocation2 + $0x80] ss:$0 sps:$4 sm:$0xff]   ;;  %v4066_v18 = vor.u32 %v4065_v30, %v4061_v42  ;;  %v3870_v49 = vld [vmem:[#allocation2 + $0x28] sm:$0xf]  ;;  %v854_v58 = vcombine.high %v844_v34, %v844_v34  ;;  %v3107_v46 = vrot.slane %v844_v34, %v5417_v29  ;;  %5134 = vmatprep.subr.bf16.mxu0 %v5256_v53 }
  0xfe   : > { %v855_v51 = vcombine.high %v851_v0, %v851_v0  ;;  %v4973_v59 = vcombine.low %v3870_v49, %v3887_v19  ;;  %v6496_v11 = vrot.slane %v3093_v36, %v5417_v29  ;;  %v3121_v45 = vrot.slane %v852_v43, %v5417_v29  ;;  %3976 = vrot.lane.b32.xlu1 %v5227_v14, %s5286_s11 }
  0xff   : > { %v3156_v20 = vrot.slane %v3149_v24, %v5417_v29  ;;  %4086 = vrot.lane.b32.xlu0 %v4066_v18, %s5287_s12  ;;  %v3114_v5 = vrot.slane %v3107_v46, %v5417_v29  ;;  %v3135_v47 = vrot.slane %v854_v58, %v5417_v29  ;;  %v3163_v39 = vrot.slane %v851_v0, %v5417_v29  ;;  %v6556_v0 = vld [vmem:[%s7186_s3] ss:$0 sm:$0xff] }
 0x100   : > { %v4054_v4 = vshrl.u32 %v4973_v59, 16  ;;  %v4056_v56 = vshll.u32 %v4973_v59, 16  ;;  %v3128_v40 = vrot.slane %v3121_v45, %v5417_v29  ;;  %v3177_v15 = vrot.slane %v853_v23, %v5417_v29  ;;  %5157 = vmatprep.subr.bf16.mxu1 %v5256_v53  ;;  %v3763_v23 = vld [vmem:[#allocation2 + $0xb4] sm:$0x1]  ;;  %5135 = vmatpush3.bf16.msra.mxu0 %v5256_v53 }
 0x101   : > { %v3142_v55 = vrot.slane %v3135_v47, %v5417_v29  ;;  %v3170_v41 = vrot.slane %v3163_v39, %v5417_v29  ;;  %v3191_v28 = vrot.slane %v855_v51, %v5417_v29  ;;  %v3567_v37 = vunpack.c.l.b16 %v6496_v11  ;;  %5136 = vmatprep.subr.bf16.mxu0 %v5257_v32  ;;  %5165 = vmatpush3.bf16.msra.mxu1 %v5256_v53 }
 0x102   : > { %v4058_v57 = vrot.slane %v4056_v56, 1  ;;  %v3184_v31 = vrot.slane %v3177_v15, %v5417_v29  ;;  %v3568_v35 = vunpack.c.l.b16 %v3114_v5  ;;  %v6513_v63 = vunpack.c.l.b16 %v3128_v40  ;;  %v3889_v25 = vld [vmem:[#allocation2 + $0x3c] sm:$0x1]  ;;  %5158 = vmatprep.subr.bf16.mxu1 %v5257_v32 }
 0x103   : > { %v3198_v12 = vrot.slane %v3191_v28, %v5417_v29  ;;  %v6519_v27 = vunpack.c.l.b16 %v3142_v55  ;;  %v3571_v7 = vunpack.c.l.b16 %v3156_v20  ;;  %v3572_v21 = vunpack.c.l.b16 %v3170_v41  ;;  %v3872_v8 = vld [vmem:[#allocation2 + $0x38] sm:$0xf]  ;;  %v3760_v20 = vld [vmem:[#allocation2 + $0xb0] sm:$0xf]  ;;  %v6585_v41 = vpop.permute.xlu0 %4074 }
 0x104   : > { %v4059_v3 = vor.u32 %v4058_v57, %v4054_v4  ;;  %v6521_v50 = vunpack.c.l.b16 %v3184_v31  ;;  %v6523_v16 = vrot.slane %v3568_v35, 7  ;;  %v3653_v9 = vrot.slane %v6513_v63, 6  ;;  %v5258_v4 = vld [vmem:[%s7184_s1 + $0x18] sm:$0xff]   ;;  %5137 = vmatpush3.bf16.msra.mxu0 %v5257_v32 }
 0x105   : > { %v3574_v2 = vunpack.c.l.b16 %v3198_v12  ;;  %v3655_v60 = vrot.slane %v6519_v27, 5  ;;  %v6527_v42 = vrot.slane %v3571_v7, 4  ;;  %v6529_v33 = vrot.slane %v3572_v21, 3  ;;  %5138 = vmatprep.subr.bf16.mxu0 %v5258_v4  ;;  %5166 = vmatpush3.bf16.msra.mxu1 %v5257_v32  ;;  %v6621_v32 = vld [vmem:[%s7184_s1 + $0x28] sm:$0xff]  }
 0x106   : > { %4084 = vrot.lane.b32.xlu1 %v4059_v3, %s5287_s12  ;;  %v3652_v52 = vsel %vm2364_vm5, %v6523_v16, %v3567_v37  ;;  %v3661_v44 = vrot.slane %v6521_v50, 2  ;;  %v4975_v13 = vcombine.low %v3872_v8, %v3889_v25  ;;  %v4950_v38 = vpack.c.bf16 %v6476_v54, %v6476_v54  ;;  %v5259_v25 = vld [vmem:[%s7184_s1 + $0x20] sm:$0xff]   ;;  %5159 = vmatprep.subr.bf16.mxu1 %v5258_v4 }
 0x107   : > { %v3654_v30 = vsel %vm2367_vm6, %v3653_v9, %v3652_v52  ;;  %v6550_v19 = vrot.slane %v3574_v2, 1  ;;  %v912_v34 = vrot.slane %v451_v17, %v5410_v26  ;;  %v6561_v54 = vmul.f32 %v6556_v0, %v5083_v61 }
 0x108   : > { %v3656_v43 = vsel %vm2370_vm7, %v3655_v60, %v3654_v30  ;;  %v4068_v36 = vshrl.u32 %v4975_v13, 16  ;;  %v4070_v24 = vshll.u32 %v4975_v13, 16  ;;  %v919_v17 = vrot.slane %v4950_v38, %v5410_v26  ;;  %5139 = vmatpush3.bf16.msra.mxu0 %v5258_v4 }
 0x109   : > { %v3658_v14 = vsel %vm2373_vm8, %v6527_v42, %v3656_v43  ;;  %v3712_v18 = vpack.c.b16 %v6550_v19, %v6550_v19  ;;  %v920_v49 = vcombine.high %v912_v34, %v912_v34  ;;  %v928_v61 = vrot.slane %v912_v34, %v5410_v26  ;;  %5140 = vmatprep.subr.bf16.mxu0 %v5259_v25 }
 0x10a   : > { %v3660_v58 = vsel %vm2376_vm9, %v6529_v33, %v3658_v14  ;;  %v4072_v51 = vrot.slane %v4070_v24, 1  ;;  %v921_v46 = vcombine.high %v919_v17, %v919_v17  ;;  %v935_v59 = vrot.slane %v919_v17, %v5410_v26  ;;  %5167 = vmatpush3.bf16.msra.mxu1 %v5258_v4 }
 0x10b   : > { %v3662_v45 = vsel %vm2379_vm10, %v3661_v44, %v3660_v58  ;;  %v3764_v5 = vsel %vm5378_vm3, %v3712_v18, %v3763_v23  ;;  %v942_v47 = vrot.slane %v920_v49, %v5410_v26  ;;  %v950_v39 = vcombine.high %v928_v61, %v928_v61  ;;  %5160 = vmatprep.subr.bf16.mxu1 %v5259_v25 }
 0x10c   : > { %v3711_v56 = vpack.c.b16 %v3662_v45, %v3662_v45  ;;  %3765 = vst [vmem:[#allocation2 + $0xb4] sm:$0x1] %v3764_v5  ;;  %v4073_v40 = vor.u32 %v4072_v51, %v4068_v36  ;;  %v949_v15 = vrot.slane %v921_v46, %v5410_v26  ;;  %v951_v55 = vcombine.high %v935_v59, %v935_v59  ;;  %v552_v45 = vld [vmem:[#allocation2 + $0xbc] sm:$0x1] }
 0x10d   : > { %v952_v28 = vcombine.high %v942_v47, %v942_v47  ;;  %v3317_v57 = vrot.slane %v928_v61, %v5417_v29  ;;  %v3331_v31 = vrot.slane %v942_v47, %v5417_v29  ;;  %v3345_v35 = vrot.slane %v950_v39, %v5417_v29  ;;  %v6616_v61 = vpop.permute.xlu0 %3964  ;;  %5141 = vmatpush3.bf16.msra.mxu0 %v5259_v25 }
 0x10e   : > { %v3761_v12 = vsel %vm5739_vm12, %v3711_v56, %v3760_v20  ;;  %4088 = vrot.lane.b32.xlu1 %v4073_v40, %s5287_s12  ;;  %v953_v7 = vcombine.high %v949_v15, %v949_v15  ;;  %v3373_v21 = vrot.slane %v935_v59, %v5417_v29  ;;  %v3387_v8 = vrot.slane %v949_v15, %v5417_v29  ;;  %v6631_v20 = vpop.permute.xlu1 %3968 }
 0x10f   : > { %3762 = vst [vmem:[#allocation2 + $0xb0] sm:$0xf] %v3761_v12  ;;  %v6601_v3 = vrot.slane %v3317_v57, %v5417_v29  ;;  %v3338_v2 = vrot.slane %v3331_v31, %v5417_v29  ;;  %v3352_v53 = vrot.slane %v3345_v35, %v5417_v29  ;;  %v3359_v52 = vrot.slane %v952_v28, %v5417_v29 }
 0x110   : > { %v3380_v13 = vrot.slane %v3373_v21, %v5417_v29  ;;  %v3394_v38 = vrot.slane %v3387_v8, %v5417_v29  ;;  %v3401_v30 = vrot.slane %v951_v55, %v5417_v29  ;;  %v3415_v34 = vrot.slane %v953_v7, %v5417_v29  ;;  %5142 = vmatprep.subr.bf16.mxu0 %v6621_v32 }
 0x111   : > { %v3366_v43 = vrot.slane %v3359_v52, %v5417_v29  ;;  %v3583_v23 = vunpack.c.l.b16 %v6601_v3  ;;  %v3584_v36 = vunpack.c.l.b16 %v3338_v2  ;;  %v6612_v24 = vunpack.c.l.b16 %v3352_v53  ;;  %v3775_v2 = vld [vmem:[#allocation2 + $0xc4] sm:$0x1]  ;;  %5168 = vmatpush3.bf16.msra.mxu1 %v5259_v25  ;;  %5143 = vmatpush3.bf16.msra.mxu0 %v6621_v32 }
 0x112   : > { %v3408_v17 = vrot.slane %v3401_v30, %v5417_v29  ;;  %v3422_v14 = vrot.slane %v3415_v34, %v5417_v29  ;;  %v3587_v18 = vunpack.c.l.b16 %v3380_v13  ;;  %v3588_v49 = vunpack.c.l.b16 %v3394_v38  ;;  %v6677_v34 = vpop.permute.xlu0 %4114  ;;  %v6689_v11 = vpop.permute.xlu1 %4116  ;;  %5161 = vmatprep.subr.bf16.mxu1 %v6621_v32 }
 0x113   : > { %v6623_v58 = vunpack.c.l.b16 %v3366_v43  ;;  %v6625_v51 = vrot.slane %v3584_v36, 7  ;;  %v3679_v46 = vrot.slane %v6612_v24, 6  ;;  %v389_v59 = vmul.f32 %v6556_v0, %v5084_v6  ;;  %v3910_v5 = vld [vmem:[#allocation2 + $0xb4] sm:$0x1]  ;;  %v6647_v6 = vld [vmem:[%s7187_s4] ss:$0 sm:$0xff] }
 0x114   : > { %v6633_v47 = vunpack.c.l.b16 %v3408_v17  ;;  %v3590_v39 = vunpack.c.l.b16 %v3422_v14  ;;  %v6635_v56 = vrot.slane %v3587_v18, 4  ;;  %v6637_v40 = vrot.slane %v3588_v49, 3  ;;  %v6687_v14 = vld [vmem:[%s5396_s29 + $0x70] sm:$0xff]  }
 0x115   : > { %v3678_v15 = vsel %vm2364_vm5, %v6625_v51, %v3583_v23  ;;  %v3681_v62 = vrot.slane %v6623_v58, 5  ;;  %v427_v55 = vadd.f32 %v6647_v6, %v6561_v54  ;;  %v428_v28 = vadd.f32 %v6647_v6, %v389_v59  ;;  %v5261_v54 = vld [vmem:[%s7184_s1 + $0x30] sm:$0xff]   ;;  %5169 = vmatpush3.bf16.msra.mxu1 %v6621_v32 }
 0x116   : > { %v3894_v4 = vld [vmem:[#allocation2 + $0xb0] sm:$0xf]  ;;  %v3680_v57 = vsel %vm2367_vm6, %v3679_v46, %v3678_v15  ;;  %v3687_v31 = vrot.slane %v6633_v47, 2  ;;  %v6656_v35 = vrot.slane %v3590_v39, 1  ;;  %v553_v12 = vsel %vm5378_vm3, 0, %v552_v45  ;;  %5144 = vmatprep.subr.bf16.mxu0 %v5261_v54  ;;  %v6722_v32 = vpop.permute.xlu0 %4118  ;;  %5162 = vmatprep.subr.bf16.mxu1 %v5261_v54 }
 0x117   : > { %v4980_v7 = vcombine.low %v3894_v4, %v3894_v4  ;;  %v6664_v21 = vcombine.low %v3894_v4, %v3910_v5  ;;  %v3682_v8 = vsel %vm2370_vm7, %v3681_v62, %v3680_v57  ;;  %v449_v53 = vpack.c.bf16 %v428_v28, %v427_v55  ;;  %554 = vst [vmem:[#allocation2 + $0xbc] sm:$0x1] %v553_v12 }
 0x118   : > { %v3684_v52 = vsel %vm2373_vm8, %v6635_v56, %v3682_v8  ;;  %v3716_v13 = vpack.c.b16 %v6656_v35, %v6656_v35  ;;  %v4949_v38 = vpack.c.bf16 %v428_v28, %v428_v28  ;;  %v3812_v30 = vsel %vm2557_vm4, %v6523_v16, %v3567_v37  ;;  %v3772_v16 = vld [vmem:[#allocation2 + $0xc0] sm:$0xf]  ;;  %5145 = vmatpush3.bf16.msra.mxu0 %v5261_v54 }
 0x119   : > { %4122 = vrot.lane.b32.xlu0 %v4980_v7, %s5288_s13  ;;  %v3686_v43 = vsel %vm2376_vm9, %v6637_v40, %v3684_v52  ;;  %v863_v36 = vrot.slane %v449_v53, %v5410_v26  ;;  %v3813_v17 = vsel %vm2364_vm5, %v3653_v9, %v3812_v30  ;;  %v5262_v9 = vld [vmem:[%s7184_s1 + $0x38] sm:$0xff]   ;;  %v5099_v15 = vunpack.c.l.bf16 %v6687_v14  ;;  %5170 = vmatpush3.bf16.msra.mxu1 %v5261_v54 }
 0x11a   : > { %v3688_v37 = vsel %vm2379_vm10, %v3687_v31, %v3686_v43  ;;  %v3776_v25 = vsel %vm5378_vm3, %v3716_v13, %v3775_v2  ;;  %v870_v18 = vrot.slane %v4949_v38, %v5410_v26  ;;  %v3814_v63 = vsel %vm2367_vm6, %v3655_v60, %v3813_v17  ;;  %5146 = vmatprep.subr.bf16.mxu0 %v5262_v9  ;;  %v6727_v13 = vpop.permute.xlu1 %4120 }
 0x11b   : > { %v3715_v49 = vpack.c.b16 %v3688_v37, %v3688_v37  ;;  %3777 = vst [vmem:[#allocation2 + $0xc4] sm:$0x1] %v3776_v25  ;;  %v871_v59 = vcombine.high %v863_v36, %v863_v36  ;;  %v879_v45 = vrot.slane %v863_v36, %v5410_v26  ;;  %v3815_v5 = vsel %vm2370_vm7, %v6527_v42, %v3814_v63 }
 0x11c   : > { %v872_v39 = vcombine.high %v870_v18, %v870_v18  ;;  %v886_v27 = vrot.slane %v870_v18, %v5410_v26  ;;  %v3816_v60 = vsel %vm2373_vm8, %v6529_v33, %v3815_v5  ;;  %5147 = vmatpush3.bf16.msra.mxu0 %v5262_v9  ;;  %5163 = vmatprep.subr.bf16.mxu1 %v5262_v9 }
 0x11d   : > { %v3773_v55 = vsel %vm5739_vm12, %v3715_v49, %v3772_v16  ;;  %v893_v28 = vrot.slane %v871_v59, %v5410_v26  ;;  %v901_v4 = vcombine.high %v879_v45, %v879_v45  ;;  %v3205_v42 = vrot.slane %v879_v45, %v5417_v29  ;;  %5171 = vmatpush3.bf16.msra.mxu1 %v5262_v9 }
 0x11e   : > { %3774 = vst [vmem:[#allocation2 + $0xc0] sm:$0xf] %v3773_v55  ;;  %v900_v57 = vrot.slane %v872_v39, %v5410_v26  ;;  %v902_v12 = vcombine.high %v886_v27, %v886_v27  ;;  %v3261_v7 = vrot.slane %v886_v27, %v5417_v29  ;;  %v3817_v33 = vsel %vm2376_vm9, %v3661_v44, %v3816_v60  ;;  %v6745_v55 = vpop.permute.xlu0 %4154 }
 0x11f   : > { %v903_v8 = vcombine.high %v893_v28, %v893_v28  ;;  %v3212_v2 = vrot.slane %v3205_v42, %v5417_v29  ;;  %v3219_v53 = vrot.slane %v893_v28, %v5417_v29  ;;  %v3233_v52 = vrot.slane %v901_v4, %v5417_v29 }
 0x120   : > { %v904_v38 = vcombine.high %v900_v57, %v900_v57  ;;  %v3268_v30 = vrot.slane %v3261_v7, %v5417_v29  ;;  %v3275_v50 = vrot.slane %v900_v57, %v5417_v29  ;;  %v3289_v44 = vrot.slane %v902_v12, %v5417_v29  ;;  %v560_v7 = vld [vmem:[#allocation2 + $0xcc] sm:$0x1] }
 0x121   : > { %v3226_v43 = vrot.slane %v3219_v53, %v5417_v29  ;;  %v3240_v36 = vrot.slane %v3233_v52, %v5417_v29  ;;  %v3247_v17 = vrot.slane %v903_v8, %v5417_v29  ;;  %v3575_v37 = vunpack.c.l.b16 %v3212_v2  ;;  %v6747_v8 = vpop.permute.xlu1 %4156 }
 0x122   : > { %v3282_v16 = vrot.slane %v3275_v50, %v5417_v29  ;;  %v3296_v25 = vrot.slane %v3289_v44, %v5417_v29  ;;  %v3303_v18 = vrot.slane %v904_v38, %v5417_v29  ;;  %v3579_v63 = vunpack.c.l.b16 %v3268_v30 }
 0x123   : > { %v3254_v49 = vrot.slane %v3247_v17, %v5417_v29  ;;  %v3576_v59 = vunpack.c.l.b16 %v3226_v43  ;;  %v3577_v54 = vunpack.c.l.b16 %v3240_v36  ;;  %v3818_v45 = vsel %vm2379_vm10, %v6550_v19, %v3817_v33  ;;  %v3769_v17 = vld [vmem:[#allocation2 + $0xbc] sm:$0x1] }
 0x124   : > { %v3310_v5 = vrot.slane %v3303_v18, %v5417_v29  ;;  %v3580_v39 = vunpack.c.l.b16 %v3282_v16  ;;  %v6742_v27 = vunpack.c.l.b16 %v3296_v25  ;;  %v5100_v60 = vunpack.c.h.bf16 %v6687_v14 }
 0x125   : > { %v3896_v28 = vld [vmem:[#allocation2 + $0xc0] sm:$0xf]  ;;  %v3578_v4 = vunpack.c.l.b16 %v3254_v49  ;;  %v3664_v42 = vrot.slane %v3576_v59, 7  ;;  %v3666_v57 = vrot.slane %v3577_v54, 6  ;;  %v3844_v12 = vpack.c.b16 %v3818_v45, %v3818_v45  ;;  %v6774_v54 = vpop.permute.xlu0 %4158  ;;  %v3912_v45 = vld [vmem:[#allocation2 + $0xc4] sm:$0x1] }
 0x126   : > { %v4982_v2 = vcombine.low %v3896_v28, %v3896_v28  ;;  %v3582_v19 = vunpack.c.l.b16 %v3310_v5  ;;  %v3670_v33 = vrot.slane %v3579_v63, 4  ;;  %v3672_v53 = vrot.slane %v3580_v39, 3  ;;  %v3766_v39 = vld [vmem:[#allocation2 + $0xb8] sm:$0xf] }
 0x127   : > { %v3665_v52 = vsel %vm2364_vm5, %v3664_v42, %v3575_v37  ;;  %v3668_v38 = vrot.slane %v3578_v4, 5  ;;  %v3674_v14 = vrot.slane %v6742_v27, 2  ;;  %3861 = vst.msk [vmem:[#allocation2 + $0xf8] sm:$0xf] %vm455_vm0, %v3844_v12  ;;  %v396_v9 = vmul.f32 %v6556_v0, %v5099_v15 }
 0x128   : > { %4126 = vrot.lane.b32.xlu0 %v4982_v2, %s5288_s13  ;;  %v3667_v30 = vsel %vm2367_vm6, %v3666_v57, %v3665_v52  ;;  %v6755_v50 = vrot.slane %v3582_v19, 1  ;;  %v397_v44 = vmul.f32 %v6556_v0, %v5100_v60  ;;  %v561_v43 = vsel %vm5378_vm3, 0, %v560_v7 }
 0x129   : > { %v3669_v36 = vsel %vm2370_vm7, %v3668_v38, %v3667_v30  ;;  %v435_v16 = vadd.f32 %v6647_v6, %v396_v9  ;;  %562 = vst [vmem:[#allocation2 + $0xcc] sm:$0x1] %v561_v43  ;;  %v3826_v15 = vsel %vm2557_vm4, %v6625_v51, %v3583_v23  ;;  %v3819_v25 = vsel %vm2557_vm4, %v3664_v42, %v3575_v37  ;;  %v6781_v37 = vpop.permute.xlu1 %4160 }
 0x12a   : > { %v3671_v18 = vsel %vm2373_vm8, %v3670_v33, %v3669_v36  ;;  %v3714_v63 = vpack.c.b16 %v6755_v50, %v6755_v50  ;;  %v436_v49 = vadd.f32 %v6647_v6, %v397_v44  ;;  %v3827_v59 = vsel %vm2364_vm5, %v3679_v46, %v3826_v15 }
 0x12b   : > { %v3673_v3 = vsel %vm2376_vm9, %v3672_v53, %v3671_v18  ;;  %v3828_v23 = vsel %vm2367_vm6, %v3681_v62, %v3827_v59  ;;  %v3820_v51 = vsel %vm2364_vm5, %v3666_v57, %v3819_v25  ;;  %v4225_v4 = vshll.u32 %v6664_v21, 16 }
 0x12c   : > { %v3675_v5 = vsel %vm2379_vm10, %v3674_v14, %v3673_v3  ;;  %v3770_v24 = vsel %vm5378_vm3, %v3714_v63, %v3769_v17  ;;  %v453_v46 = vpack.c.bf16 %v436_v49, %v435_v16  ;;  %v4951_v27 = vpack.c.bf16 %v436_v49, %v436_v49 }
 0x12d   : > { %v3713_v60 = vpack.c.b16 %v3675_v5, %v3675_v5  ;;  %3771 = vst [vmem:[#allocation2 + $0xbc] sm:$0x1] %v3770_v24  ;;  %v3829_v58 = vsel %vm2370_vm7, %v6635_v56, %v3828_v23  ;;  %v3821_v62 = vsel %vm2367_vm6, %v3668_v38, %v3820_v51  ;;  %v6795_v19 = vcombine.low %v3896_v28, %v3912_v45  ;;  %v6806_v28 = vpop.permute.xlu0 %4290 }
 0x12e   : > { %v5237_v42 = vld [vmem:[#allocation2 + $0xf8] ss:$0 sps:$4 sm:$0xff]   ;;  %v961_v57 = vrot.slane %v453_v46, %v5410_v26  ;;  %v968_v12 = vrot.slane %v4951_v27, %v5410_v26  ;;  %v3830_v7 = vsel %vm2373_vm8, %v6637_v40, %v3829_v58  ;;  %v3822_v2 = vsel %vm2370_vm7, %v3670_v33, %v3821_v62 }
 0x12f   : > { %v3767_v52 = vsel %vm5739_vm12, %v3713_v60, %v3766_v39  ;;  %v3831_v56 = vsel %vm2376_vm9, %v3687_v31, %v3830_v7  ;;  %v3823_v38 = vsel %vm2373_vm8, %v3672_v53, %v3822_v2  ;;  %4162 = vrot.lane.b32.xlu0 %v5237_v42, %s5289_s14  ;;  %v4223_v31 = vshrl.u32 %v6664_v21, 16  ;;  %v6812_v53 = vpop.permute.xlu1 %4292 }
 0x130   : > { %3768 = vst [vmem:[#allocation2 + $0xb8] sm:$0xf] %v3767_v52  ;;  %v969_v9 = vcombine.high %v961_v57, %v961_v57  ;;  %v970_v30 = vcombine.high %v968_v12, %v968_v12  ;;  %v977_v40 = vrot.slane %v961_v57, %v5410_v26  ;;  %v984_v33 = vrot.slane %v968_v12, %v5410_v26 }
 0x131   : > { %v3832_v44 = vsel %vm2379_vm10, %v6656_v35, %v3831_v56  ;;  %v3824_v47 = vsel %vm2376_vm9, %v3674_v14, %v3823_v38  ;;  %v4227_v43 = vrot.slane %v4225_v4, 1  ;;  %v4237_v35 = vshrl.u32 %v6795_v19, 16  ;;  %v6830_v27 = vpop.permute.xlu0 %4294 }
 0x132   : > { %v991_v36 = vrot.slane %v969_v9, %v5410_v26  ;;  %v998_v17 = vrot.slane %v970_v30, %v5410_v26  ;;  %v999_v16 = vcombine.high %v977_v40, %v977_v40  ;;  %v1000_v15 = vcombine.high %v984_v33, %v984_v33 }
 0x133   : > { %v3429_v25 = vrot.slane %v977_v40, %v5417_v29  ;;  %v3485_v18 = vrot.slane %v984_v33, %v5417_v29  ;;  %v3846_v63 = vpack.c.b16 %v3832_v44, %v3832_v44  ;;  %v3825_v57 = vsel %vm2379_vm10, %v6755_v50, %v3824_v47 }
 0x134   : > { %v1001_v49 = vcombine.high %v991_v36, %v991_v36  ;;  %v1002_v14 = vcombine.high %v998_v17, %v998_v17  ;;  %v3443_v21 = vrot.slane %v991_v36, %v5417_v29  ;;  %v3457_v59 = vrot.slane %v999_v16, %v5417_v29  ;;  %v3911_v58 = vld [vmem:[#allocation2 + $0xbc] sm:$0x1] }
 0x135   : > { %v3436_v3 = vrot.slane %v3429_v25, %v5417_v29  ;;  %v3492_v23 = vrot.slane %v3485_v18, %v5417_v29  ;;  %v3499_v51 = vrot.slane %v998_v17, %v5417_v29  ;;  %v3513_v45 = vrot.slane %v1000_v15, %v5417_v29  ;;  %3863 = vst.msk [vmem:[#allocation2 + $0x108] sm:$0xf] %vm455_vm0, %v3846_v63 }
 0x136   : > { %v3450_v5 = vrot.slane %v3443_v21, %v5417_v29  ;;  %v3464_v39 = vrot.slane %v3457_v59, %v5417_v29  ;;  %v3471_v24 = vrot.slane %v1001_v49, %v5417_v29  ;;  %v3527_v46 = vrot.slane %v1002_v14, %v5417_v29  ;;  %v6846_v21 = vpop.permute.xlu0 %4330 }
 0x137   : > { %v3895_v60 = vld [vmem:[#allocation2 + $0xb8] sm:$0xf]  ;;  %v3506_v62 = vrot.slane %v3499_v51, %v5417_v29  ;;  %v3520_v4 = vrot.slane %v3513_v45, %v5417_v29  ;;  %v3595_v42 = vunpack.c.l.b16 %v3492_v23  ;;  %v6836_v12 = vpop.permute.xlu1 %4296  ;;  %v3591_v56 = vunpack.c.l.b16 %v3436_v3  ;;  %v3781_v23 = vld [vmem:[#allocation2 + $0xcc] sm:$0x1] }
 0x138   : > { %v4981_v7 = vcombine.low %v3895_v60, %v3895_v60  ;;  %v3478_v2 = vrot.slane %v3471_v24, %v5417_v29  ;;  %v3534_v52 = vrot.slane %v3527_v46, %v5417_v29  ;;  %v3592_v38 = vunpack.c.l.b16 %v3450_v5 }
 0x139   : > { %v3593_v9 = vunpack.c.l.b16 %v3464_v39  ;;  %v3596_v30 = vunpack.c.l.b16 %v3506_v62  ;;  %v3597_v40 = vunpack.c.l.b16 %v3520_v4  ;;  %v6840_v33 = vcombine.low %v3895_v60, %v3911_v58 }
 0x13a   : > { %4124 = vrot.lane.b32.xlu1 %v4981_v7, %s5288_s13  ;;  %v3594_v44 = vunpack.c.l.b16 %v3478_v2  ;;  %v3598_v36 = vunpack.c.l.b16 %v3534_v52  ;;  %v3845_v17 = vpack.c.b16 %v3825_v57, %v3825_v57  ;;  %v3690_v50 = vrot.slane %v3592_v38, 7  ;;  %v3918_v7 = vld [vmem:[#allocation2 + $0x28] sm:$0xf]  ;;  %v3936_v2 = vld [vmem:[#allocation2 + $0x3c] sm:$0x1] }
 0x13b   : > { %v3692_v47 = vrot.slane %v3593_v9, 6  ;;  %v3696_v16 = vrot.slane %v3595_v42, 4  ;;  %v3698_v15 = vrot.slane %v3596_v30, 3  ;;  %v6843_v25 = vpop.permute.xlu1 %4332  ;;  %v4228_v14 = vor.u32 %v4227_v43, %v4223_v31  ;;  %v3934_v31 = vld [vmem:[#allocation2 + $0x2c] sm:$0x1] }
 0x13c   : > { %v3694_v18 = vrot.slane %v3594_v44, 5  ;;  %v3702_v63 = vrot.slane %v3598_v36, 1  ;;  %v5240_v49 = vld [vmem:[#allocation2 + $0x108] ss:$0 sps:$4 sm:$0xff]   ;;  %3862 = vst.msk [vmem:[#allocation2 + $0x100] sm:$0xf] %vm455_vm0, %v3845_v17  ;;  %v3691_v59 = vsel %vm2364_vm5, %v3690_v50, %v3591_v56  ;;  %v3833_v51 = vsel %vm2557_vm4, %v3690_v50, %v3591_v56 }
 0x13d   : > { %v3700_v3 = vrot.slane %v3597_v40, 2  ;;  %v4239_v45 = vshll.u32 %v6795_v19, 16  ;;  %v3693_v5 = vsel %vm2367_vm6, %v3692_v47, %v3691_v59  ;;  %4166 = vrot.lane.b32.xlu0 %v5240_v49, %s5289_s14  ;;  %v3834_v24 = vsel %vm2364_vm5, %v3692_v47, %v3833_v51  ;;  %v3778_v56 = vld [vmem:[#allocation2 + $0xc8] sm:$0xf]  ;;  %v5119_v40 = vld [vmem:[%s5396_s29 + $0x78] sm:$0xff]  }
 0x13e   : > { %v3718_v39 = vpack.c.b16 %v3702_v63, %v3702_v63  ;;  %v4232_v46 = vshll.u32 %v6840_v33, 16  ;;  %v3695_v43 = vsel %vm2370_vm7, %v3694_v18, %v3693_v5  ;;  %v3835_v60 = vsel %vm2367_vm6, %v3694_v18, %v3834_v24  ;;  %v6872_v47 = vld [vmem:[#allocation2 + $0x38] sm:$0xf]  ;;  %v6874_v18 = vpop.permute.xlu0 %4334  ;;  %v5267_v5 = vld [vmem:[#allocation2] sm:$0xf] }
 0x13f   : > { %v4241_v58 = vrot.slane %v4239_v45, 1  ;;  %v6857_v62 = vpop.permute.xlu1 %4336  ;;  %v3697_v4 = vsel %vm2373_vm8, %v3696_v16, %v3695_v43  ;;  %v3836_v57 = vsel %vm2370_vm7, %v3696_v16, %v3835_v60  ;;  %v4230_v9 = vshrl.u32 %v6840_v33, 16  ;;  %v492_v16 = vld [vmem:[#allocation2 + $0x44] sm:$0x1] }
 0x140   : > { %v3782_v42 = vsel %vm5378_vm3, %v3718_v39, %v3781_v23  ;;  %v3699_v52 = vsel %vm2376_vm9, %v3698_v15, %v3697_v4  ;;  %v3837_v38 = vsel %vm2373_vm8, %v3698_v15, %v3836_v57  ;;  %v5020_v30 = vcombine.low %v3918_v7, %v3934_v31 }
 0x141   : > { %3783 = vst [vmem:[#allocation2 + $0xcc] sm:$0x1] %v3782_v42  ;;  %v3701_v44 = vsel %vm2379_vm10, %v3700_v3, %v3699_v52  ;;  %4258 = vrot.lane.b32.xlu0 %v4228_v14, %s5292_s21  ;;  %v3838_v36 = vsel %vm2376_vm9, %v3700_v3, %v3837_v38  ;;  %v4242_v17 = vor.u32 %v4241_v58, %v4237_v35  ;;  %v4234_v50 = vrot.slane %v4232_v46, 1  ;;  %v6878_v14 = vld [vmem:[#allocation2 + $0x30] sm:$0xf] }
 0x142   : > { %v3717_v15 = vpack.c.b16 %v3701_v44, %v3701_v44  ;;  %v3839_v33 = vsel %vm2379_vm10, %v3702_v63, %v3838_v36  ;;  %v5022_v49 = vcombine.low %v6872_v47, %v3936_v2  ;;  %v5004_v23 = vcombine.low %v3918_v7, %v3918_v7  ;;  %v4079_v2 = vpop.permute.xlu0 %4078  ;;  %v5268_v52 = vld [vmem:[#allocation2 + $0x10] sm:$0xf]  ;;  %v5270_v44 = vld [vmem:[#allocation2 + $0x18] sm:$0xf] }
 0x143   : > { %v3847_v59 = vpack.c.b16 %v3839_v33, %v3839_v33  ;;  %v5103_v3 = vunpack.c.l.bf16 %v5119_v40  ;;  %v5104_v51 = vunpack.c.h.bf16 %v5119_v40  ;;  %v4077_v19 = vpop.permute.xlu1 %4076  ;;  %v5006_v45 = vcombine.low %v6872_v47, %v6872_v47  ;;  %v5269_v40 = vld [vmem:[#allocation2 + $0x8] sm:$0xf] }
 0x144   : > { %v3779_v35 = vsel %vm5739_vm12, %v3717_v15, %v3778_v56  ;;  %v4445_v63 = vsel %vm4442_vm13, %v5267_v5, %v6542_v48  ;;  %v493_v39 = vsel %vm5378_vm3, 0, %v492_v16  ;;  %v4401_v31 = vshll.u32 %v5020_v30, 16 }
 0x145   : > { %3780 = vst [vmem:[#allocation2 + $0xc8] sm:$0xf] %v3779_v35  ;;  %3864 = vst.msk [vmem:[#allocation2 + $0x110] sm:$0xf] %vm455_vm0, %v3847_v59  ;;  %4262 = vrot.lane.b32.xlu0 %v4242_v17, %s5292_s21  ;;  %v398_v24 = vmul.f32 %v6556_v0, %v5103_v3  ;;  %v399_v46 = vmul.f32 %v6556_v0, %v5104_v51  ;;  %v6892_v43 = vor.u32 %v4234_v50, %v4230_v9 }
 0x146   : > { %494 = vst [vmem:[#allocation2 + $0x44] sm:$0x1] %v493_v39  ;;  %v5005_v48 = vcombine.low %v6878_v14, %v6878_v14  ;;  %v4399_v60 = vshrl.u32 %v5020_v30, 16  ;;  %v4415_v58 = vshll.u32 %v5022_v49, 16  ;;  %v4403_v57 = vrot.slane %v4401_v31, 1 }
 0x147   : > { %v437_v4 = vadd.f32 %v6647_v6, %v398_v24  ;;  %v438_v42 = vadd.f32 %v6647_v6, %v399_v46  ;;  %v4413_v7 = vshrl.u32 %v5022_v49, 16  ;;  %v4469_v0 = vsel %vm4467_vm14, %v4445_v63, %v6585_v41  ;;  %v4081_v17 = vpop.permute.xlu1 %4080  ;;  %v500_v49 = vld [vmem:[#allocation2 + $0x54] sm:$0x1]  ;;  %v6933_v24 = vpop.permute.xlu0 %4250  ;;  %v5241_v31 = vld [vmem:[#allocation2 + $0x100] ss:$0 sps:$4 sm:$0xff]  }
 0x148   : > { %v4451_v56 = vsel %vm4442_vm13, %v5268_v52, %v6590_v10  ;;  %v4417_v38 = vrot.slane %v4415_v58, 1  ;;  %v4448_v6 = vsel %vm4442_vm13, %v5269_v40, %v6616_v61  ;;  %v4454_v36 = vsel %vm4442_vm13, %v5270_v44, %v6631_v20  ;;  %v3913_v41 = vld [vmem:[#allocation2 + $0xcc] sm:$0x1] }
 0x149   : > { %4298 = vrot.lane.b32.xlu0 %v5004_v23, %s5290_s19  ;;  %v454_v9 = vpack.c.bf16 %v438_v42, %v437_v4  ;;  %v4959_v30 = vpack.c.bf16 %v438_v42, %v438_v42  ;;  %v6907_v50 = vor.u32 %v4403_v57, %v4399_v60  ;;  %v4486_v10 = vsel %vm4484_vm15, %v4469_v0, %v6677_v34  ;;  %v496_v20 = vld [vmem:[#allocation2 + $0x4c] sm:$0x1] }
 0x14a   : > { %v4473_v47 = vsel %vm4467_vm14, %v4451_v56, %v4079_v2  ;;  %v6914_v33 = vor.u32 %v4417_v38, %v4413_v7  ;;  %v6920_v23 = vsel %vm4501_vm1, %v4486_v10, %v6745_v55  ;;  %v6923_v34 = vsel %vm4467_vm14, %v4448_v6, %v4077_v19 }
 0x14b   : > { %v1361_v16 = vrot.slane %v454_v9, %v5410_v26  ;;  %v1368_v15 = vrot.slane %v4959_v30, %v5410_v26  ;;  %v4490_v61 = vsel %vm4484_vm15, %v4473_v47, %v6722_v32  ;;  %v6926_v3 = vsel %vm4467_vm14, %v4454_v36, %v4081_v17  ;;  %v5249_v32 = vld [vmem:[#allocation2 + $0x70] ss:$0 sps:$4 sm:$0xff]   ;;  %v6944_v42 = vpop.permute.xlu1 %4252  ;;  %v5252_v30 = vld [vmem:[#allocation2 + $0x80] ss:$0 sps:$4 sm:$0xff]  }
 0x14c   : > { %v3897_v59 = vld [vmem:[#allocation2 + $0xc8] sm:$0xf]  ;;  %v6930_v51 = vsel %vm4501_vm1, %v4490_v61, %v6774_v54  ;;  %v497_v46 = vsel %vm5378_vm3, 0, %v496_v20  ;;  %v501_v54 = vsel %vm5378_vm3, 0, %v500_v49  ;;  %v5242_v36 = vld [vmem:[#allocation2 + $0x110] ss:$0 sps:$4 sm:$0xff]   ;;  %v4488_v22 = vsel %vm4484_vm15, %v6923_v34, %v6689_v11 }
 0x14d   : > { %v4983_v35 = vcombine.low %v3897_v59, %v3897_v59  ;;  %v4999_v5 = vcombine.low %v3897_v59, %v3913_v41  ;;  %4302 = vrot.lane.b32.xlu0 %v5006_v45, %s5290_s19  ;;  %v1369_v63 = vcombine.high %v1361_v16, %v1361_v16  ;;  %v1370_v39 = vcombine.high %v1368_v15, %v1368_v15 }
 0x14e   : > { %v1377_v55 = vrot.slane %v1361_v16, %v5410_v26  ;;  %v1384_v19 = vrot.slane %v1368_v15, %v5410_v26  ;;  %498 = vst [vmem:[#allocation2 + $0x4c] sm:$0x1] %v497_v46  ;;  %502 = vst [vmem:[#allocation2 + $0x54] sm:$0x1] %v501_v54  ;;  %v504_v16 = vld [vmem:[#allocation2 + $0x5c] sm:$0x1]  ;;  %v6960_v15 = vpop.permute.xlu0 %4254  ;;  %v4520_v1 = vsel %vm4518_vm2, %v6920_v23, %v6933_v24 }
 0x14f   : > { %4128 = vrot.lane.b32.xlu1 %v4983_v35, %s5288_s13  ;;  %v4244_v60 = vshrl.u32 %v4999_v5, 16  ;;  %v4246_v45 = vshll.u32 %v4999_v5, 16  ;;  %v1391_v58 = vrot.slane %v1369_v63, %v5410_v26  ;;  %v1398_v4 = vrot.slane %v1370_v39, %v5410_v26  ;;  %v508_v39 = vld [vmem:[#allocation2 + $0x64] sm:$0x1]  ;;  %v5271_v24 = vld [vmem:[#allocation2 + $0x20] sm:$0xf] }
 0x150   : > { %v1399_v57 = vcombine.high %v1377_v55, %v1377_v55  ;;  %v1400_v7 = vcombine.high %v1384_v19, %v1384_v19  ;;  %v2193_v2 = vrot.slane %v1377_v55, %v5417_v29  ;;  %v2249_v0 = vrot.slane %v1384_v19, %v5417_v29  ;;  %v6968_v55 = vpop.permute.xlu1 %4256 }
 0x151   : > { %v4248_v52 = vrot.slane %v4246_v45, 1  ;;  %4338 = vrot.lane.b32.xlu0 %v5249_v32, %s5291_s20  ;;  %v1401_v56 = vcombine.high %v1391_v58, %v1391_v58  ;;  %v1402_v38 = vcombine.high %v1398_v4, %v1398_v4  ;;  %v2207_v9 = vrot.slane %v1391_v58, %v5417_v29 }
 0x152   : > { %v2200_v26 = vrot.slane %v2193_v2, %v5417_v29  ;;  %v2221_v40 = vrot.slane %v1399_v57, %v5417_v29  ;;  %v2256_v6 = vrot.slane %v2249_v0, %v5417_v29  ;;  %v2263_v44 = vrot.slane %v1398_v4, %v5417_v29  ;;  %v520_v2 = vld [vmem:[#allocation2 + $0x7c] sm:$0x1] }
 0x153   : > { %4164 = vrot.lane.b32.xlu1 %v5241_v31, %s5289_s14  ;;  %v6955_v17 = vor.u32 %v4248_v52, %v4244_v60  ;;  %v2214_v41 = vrot.slane %v2207_v9, %v5417_v29  ;;  %v2235_v10 = vrot.slane %v1401_v56, %v5417_v29  ;;  %v2277_v47 = vrot.slane %v1400_v7, %v5417_v29  ;;  %v512_v60 = vld [vmem:[#allocation2 + $0x6c] sm:$0x1]  ;;  %v516_v7 = vld [vmem:[#allocation2 + $0x74] sm:$0x1] }
 0x154   : > { %v2228_v61 = vrot.slane %v2221_v40, %v5417_v29  ;;  %v2270_v20 = vrot.slane %v2263_v44, %v5417_v29  ;;  %v2291_v49 = vrot.slane %v1402_v38, %v5417_v29  ;;  %v2355_v59 = vunpack.c.l.b16 %v2200_v26  ;;  %v524_v38 = vld [vmem:[#allocation2 + $0x84] sm:$0x1]  ;;  %v564_v44 = vld [vmem:[#allocation2 + $0xd4] sm:$0x1] }
 0x155   : > { %v2242_v35 = vrot.slane %v2235_v10, %v5417_v29  ;;  %v2284_v5 = vrot.slane %v2277_v47, %v5417_v29  ;;  %v2356_v32 = vunpack.c.l.b16 %v2214_v41  ;;  %v2359_v63 = vunpack.c.l.b16 %v2256_v6  ;;  %4342 = vrot.lane.b32.xlu0 %v5252_v30, %s5291_s20  ;;  %v528_v6 = vld [vmem:[#allocation2 + $0x8c] sm:$0x1] }
 0x156   : > { %v2298_v19 = vrot.slane %v2291_v49, %v5417_v29  ;;  %v2357_v46 = vunpack.c.l.b16 %v2228_v61  ;;  %v2360_v54 = vunpack.c.l.b16 %v2270_v20  ;;  %v505_v31 = vsel %vm5378_vm3, 0, %v504_v16  ;;  %v568_v61 = vld [vmem:[#allocation2 + $0xdc] sm:$0x1]  ;;  %v572_v20 = vld [vmem:[#allocation2 + $0xe4] sm:$0x1] }
 0x157   : > { %4168 = vrot.lane.b32.xlu1 %v5242_v36, %s5289_s14  ;;  %v2358_v45 = vunpack.c.l.b16 %v2242_v35  ;;  %v2361_v58 = vunpack.c.l.b16 %v2284_v5  ;;  %v2460_v4 = vrot.slane %v2356_v32, 7  ;;  %v2466_v57 = vrot.slane %v2359_v63, 4  ;;  %506 = vst [vmem:[#allocation2 + $0x5c] sm:$0x1] %v505_v31  ;;  %v6980_v36 = vpop.permute.xlu0 %4426  ;;  %v2554_v49 = vld [vmem:[#allocation2 + $0x44] sm:$0x1]  ;;  %v6994_v63 = vpop.permute.xlu1 %4428 }
 0x158   : > { %v2362_v0 = vunpack.c.l.b16 %v2298_v19  ;;  %v2462_v52 = vrot.slane %v2357_v46, 6  ;;  %v2468_v56 = vrot.slane %v2360_v54, 3  ;;  %v509_v29 = vsel %vm5378_vm3, 0, %v508_v39  ;;  %v576_v32 = vld [vmem:[#allocation2 + $0xec] sm:$0x1]  ;;  %s5040_s14 = sshll.u32 %s7260_s25, 5 }
 0x159   : > { %v2461_v9 = vsel %vm2364_vm5, %v2460_v4, %v2355_v59  ;;  %v2464_v30 = vrot.slane %v2358_v45, 5  ;;  %v2470_v26 = vrot.slane %v2361_v58, 2  ;;  %4434 = vrot.lane.b32.xlu0 %v6907_v50, %s5293_s22  ;;  %v2607_v40 = vsel %vm2557_vm4, %v2460_v4, %v2355_v59  ;;  %510 = vst [vmem:[#allocation2 + $0x64] sm:$0x1] %v509_v29  ;;  %v2551_v46 = vld [vmem:[#allocation2 + $0x40] sm:$0xf] }
 0x15a   : > { %v2463_v41 = vsel %vm2367_vm6, %v2462_v52, %v2461_v9  ;;  %v2472_v10 = vrot.slane %v2362_v0, 1  ;;  %v2608_v47 = vsel %vm2364_vm5, %v2462_v52, %v2607_v40  ;;  %v513_v16 = vsel %vm5378_vm3, 0, %v512_v60  ;;  %v580_v31 = vld [vmem:[#allocation2 + $0xf4] sm:$0x1]  ;;  %v584_v60 = vld [vmem:[#allocation2 + $0xfc] sm:$0x1] }
 0x15b   : > { %4260 = vrot.lane.b32.xlu1 %v6892_v43, %s5292_s21  ;;  %v2465_v50 = vsel %vm2370_vm7, %v2464_v30, %v2463_v41  ;;  %v2609_v59 = vsel %vm2367_vm6, %v2464_v30, %v2608_v47  ;;  %514 = vst [vmem:[#allocation2 + $0x6c] sm:$0x1] %v513_v16  ;;  %v517_v35 = vsel %vm5378_vm3, 0, %v516_v7  ;;  %v521_v5 = vsel %vm5378_vm3, 0, %v520_v2  ;;  %v588_v7 = vld [vmem:[#allocation2 + $0x104] sm:$0x1] }
 0x15c   : > { %v2467_v39 = vsel %vm2373_vm8, %v2466_v57, %v2465_v50  ;;  %v2488_v19 = vpack.c.b16 %v2472_v10, %v2472_v10  ;;  %v2610_v43 = vsel %vm2370_vm7, %v2466_v57, %v2609_v59  ;;  %518 = vst [vmem:[#allocation2 + $0x74] sm:$0x1] %v517_v35  ;;  %522 = vst [vmem:[#allocation2 + $0x7c] sm:$0x1] %v521_v5  ;;  %v525_v54 = vsel %vm5378_vm3, 0, %v524_v38  ;;  %v3973_v50 = vpop.permute.xlu1 %3972 }
 0x15d   : > { %v2469_v45 = vsel %vm2376_vm9, %v2468_v56, %v2467_v39  ;;  %v2611_v58 = vsel %vm2373_vm8, %v2468_v56, %v2610_v43  ;;  %4438 = vrot.lane.b32.xlu0 %v6914_v33, %s5293_s22  ;;  %526 = vst [vmem:[#allocation2 + $0x84] sm:$0x1] %v525_v54  ;;  %v529_v4 = vsel %vm5378_vm3, 0, %v528_v6  ;;  %v565_v57 = vsel %vm5378_vm3, 0, %v564_v44  ;;  %v592_v2 = vld [vmem:[#allocation2 + $0x10c] sm:$0x1]  ;;  %v3971_v6 = vpop.permute.xlu0 %3970 }
 0x15e   : > { %v2471_v0 = vsel %vm2379_vm10, %v2470_v26, %v2469_v45  ;;  %v2555_v52 = vsel %vm5378_vm3, %v2488_v19, %v2554_v49  ;;  %v2612_v29 = vsel %vm2376_vm9, %v2470_v26, %v2611_v58  ;;  %530 = vst [vmem:[#allocation2 + $0x8c] sm:$0x1] %v529_v4  ;;  %566 = vst [vmem:[#allocation2 + $0xd4] sm:$0x1] %v565_v57  ;;  %v569_v33 = vsel %vm5378_vm3, 0, %v568_v61 }
 0x15f   : > { %v596_v56 = vld [vmem:[#allocation2 + $0x114] sm:$0x1]  ;;  %v600_v38 = vld [vmem:[#allocation2 + $0x11c] sm:$0x1]  ;;  %4264 = vrot.lane.b32.xlu1 %v6955_v17, %s5292_s21  ;;  %v2487_v9 = vpack.c.b16 %v2471_v0, %v2471_v0  ;;  %2556 = vst [vmem:[#allocation2 + $0x44] sm:$0x1] %v2555_v52  ;;  %v2613_v30 = vsel %vm2379_vm10, %v2472_v10, %v2612_v29  ;;  %v4492_v49 = vsel %vm4484_vm15, %v6926_v3, %v6727_v13  ;;  %s7138_s21 = scalar_lea.vmem %s7188_s5, %s5040_s14 }
 0x160   : > { %570 = vst [vmem:[#allocation2 + $0xdc] sm:$0x1] %v569_v33  ;;  %v573_v40 = vsel %vm5378_vm3, 0, %v572_v20  ;;  %v577_v26 = vsel %vm5378_vm3, 0, %v576_v32  ;;  %v2621_v44 = vpack.c.b16 %v2613_v30, %v2613_v30  ;;  %v581_v41 = vsel %vm5378_vm3, 0, %v580_v31  ;;  %v4433_v5 = vpop.permute.xlu1 %4432 }
 0x161   : > { %574 = vst [vmem:[#allocation2 + $0xe4] sm:$0x1] %v573_v40  ;;  %578 = vst [vmem:[#allocation2 + $0xec] sm:$0x1] %v577_v26  ;;  %v585_v17 = vsel %vm5378_vm3, 0, %v584_v60  ;;  %v589_v10 = vsel %vm5378_vm3, 0, %v588_v7  ;;  %v2552_v47 = vsel %vm5739_vm12, %v2487_v9, %v2551_v46  ;;  %v4524_v59 = vsel %vm4518_vm2, %v6930_v51, %v6960_v15  ;;  %v4431_v15 = vpop.permute.xlu0 %4430 }
 0x162   : > { %582 = vst [vmem:[#allocation2 + $0xf4] sm:$0x1] %v581_v41  ;;  %586 = vst [vmem:[#allocation2 + $0xfc] sm:$0x1] %v585_v17  ;;  %v593_v16 = vsel %vm5378_vm3, 0, %v592_v2  ;;  %v597_v61 = vsel %vm5378_vm3, 0, %v596_v56  ;;  %v4505_v11 = vsel %vm4501_vm1, %v4488_v22, %v6747_v8  ;;  %v4509_v8 = vsel %vm4501_vm1, %v4492_v49, %v6781_v37 }
 0x163   : > { %590 = vst [vmem:[#allocation2 + $0x104] sm:$0x1] %v589_v10  ;;  %v601_v20 = vsel %vm5378_vm3, 0, %v600_v38  ;;  %2553 = vst [vmem:[#allocation2 + $0x40] sm:$0xf] %v2552_v47  ;;  %vm4535_vm4 = vcmask 392192   ;;  %4300 = vrot.lane.b32.xlu1 %v5005_v48, %s5290_s19  ;;  %v4522_v48 = vsel %vm4518_vm2, %v4505_v11, %v6944_v42  ;;  %v4526_v42 = vsel %vm4518_vm2, %v4509_v8, %v6968_v55 }
 0x164   : > { %2638 = vst.msk [vmem:[#allocation2 + $0x88] sm:$0xf] %vm455_vm0, %v2621_v44  ;;  %594 = vst [vmem:[#allocation2 + $0x10c] sm:$0x1] %v593_v16  ;;  %vm4552_vm0 = vcmask 457728   ;;  %v4537_v13 = vsel %vm4535_vm4, %v4520_v1, %v6806_v28  ;;  %v4541_v34 = vsel %vm4535_vm4, %v4524_v59, %v6830_v27  ;;  %vm4569_vm3 = vcmask 523264  }
 0x165   : > { %598 = vst [vmem:[#allocation2 + $0x114] sm:$0x1] %v597_v61  ;;  %602 = vst [vmem:[#allocation2 + $0x11c] sm:$0x1] %v601_v20  ;;  %v3935_v3 = vld [vmem:[#allocation2 + $0x34] sm:$0x1]  ;;  %v4539_v23 = vsel %vm4535_vm4, %v4522_v48, %v6812_v53  ;;  %v4554_v51 = vsel %vm4552_vm0, %v4537_v13, %v6846_v21  ;;  %v7067_v28 = vsel %vm4442_vm13, %v5271_v24, %v3971_v6  ;;  %v3975_v56 = vpop.permute.xlu0 %3974 }
 0x166   : > { %v4571_v27 = vsel %vm4569_vm3, %v4554_v51, %v6980_v36  ;;  %v4556_v53 = vsel %vm4552_vm0, %v4539_v23, %v6843_v25  ;;  %v4543_v21 = vsel %vm4535_vm4, %v4526_v42, %v6836_v12  ;;  %v4558_v35 = vsel %vm4552_vm0, %v4541_v34, %v6874_v18  ;;  %v5272_v39 = vld [vmem:[#allocation2 + $0x28] sm:$0xf]  ;;  %v3937_v25 = vld [vmem:[#allocation2 + $0x44] sm:$0x1]  ;;  %v5253_v45 = vld [vmem:[#allocation2 + $0x78] ss:$0 sps:$4 sm:$0xff]  }
 0x167   : > { %v4573_v37 = vsel %vm4569_vm3, %v4556_v53, %v6994_v63  ;;  %vm4586_vm5 = vcmask 588800   ;;  %v5021_v32 = vcombine.low %v6878_v14, %v3935_v3  ;;  %v4575_v36 = vsel %vm4569_vm3, %v4558_v35, %v4431_v15  ;;  %v5273_v51 = vld [vmem:[#allocation2 + $0x30] sm:$0xf] }
 0x168   : > { %v4460_v55 = vsel %vm4442_vm13, %v5272_v39, %v3973_v50  ;;  %v4560_v12 = vsel %vm4552_vm0, %v4543_v21, %v6857_v62  ;;  %v4588_v63 = vsel %vm4586_vm5, %v4571_v27, 0  ;;  %v4589_v43 = vsel %vm4586_vm5, %v4573_v37, 0 }
 0x169   : > { %v4577_v18 = vsel %vm4569_vm3, %v4560_v12, %v4433_v5  ;;  %v4590_v54 = vsel %vm4586_vm5, %v4575_v36, 0  ;;  %v5025_v14 = vcombine.low %v4588_v63, %v4589_v43  ;;  %v4408_v58 = vshll.u32 %v5021_v32, 16  ;;  %v4083_v38 = vpop.permute.xlu0 %4082 }
 0x16a   : > { %v3921_v19 = vld [vmem:[#allocation2 + $0x40] sm:$0xf]  ;;  %v4591_v31 = vsel %vm4586_vm5, %v4577_v18, 0  ;;  %v4406_v57 = vshrl.u32 %v5021_v32, 16  ;;  %v4477_v23 = vsel %vm4467_vm14, %v7067_v28, %v4083_v38  ;;  %v4463_v8 = vsel %vm4442_vm13, %v5273_v51, %v3975_v56  ;;  %v5274_v32 = vld [vmem:[#allocation2 + $0x38] sm:$0xf] }
 0x16b   : > { %v5007_v46 = vcombine.low %v3921_v19, %v3921_v19  ;;  %v5023_v60 = vcombine.low %v3921_v19, %v3937_v25  ;;  %v5026_v4 = vcombine.low %v4590_v54, %v4591_v31  ;;  %5148 = vmatprep.mubr.bf16.mxu0 %v5025_v14  ;;  %v5254_v62 = vld [vmem:[#allocation2 + $0x88] ss:$0 sps:$4 sm:$0xff]   ;;  %v4410_v7 = vrot.slane %v4408_v58, 1 }
 0x16c   : > { %vm4816_vm6 = vcmask 125952   ;;  %vm4825_vm7 = vcmask 122880  }
 0x16d   : > { %4304 = vrot.lane.b32.xlu1 %v5007_v46, %s5290_s19  ;;  %5149 = vmatmul.mubr.bf16.vlgmr.msra.gmra.mrb[0].mxu0 %v5026_v4  ;;  %v4422_v2 = vshll.u32 %v5023_v60, 16  ;;  %v4411_v0 = vor.u32 %v4410_v7, %v4406_v57  ;;  %v4420_v52 = vshrl.u32 %v5023_v60, 16 }
 0x16f   : > { %v4424_v29 = vrot.slane %v4422_v2, 1 }
 0x170   : > { %v3977_v40 = vpop.permute.xlu1 %3976 }
 0x171   : > { %4340 = vrot.lane.b32.xlu1 %v5253_v45, %s5291_s20  ;;  %v4425_v33 = vor.u32 %v4424_v29, %v4420_v52  ;;  %v4087_v9 = vpop.permute.xlu0 %4086  ;;  %v4466_v36 = vsel %vm4442_vm13, %v5274_v32, %v3977_v40  ;;  %v5024_v40 = vld [vmem:[%s7185_s2] ss:$0 sm:$0xff] }
 0x172   : > { %v4481_v35 = vsel %vm4467_vm14, %v4463_v8, %v4087_v9 }
 0x175   : > { %4344 = vrot.lane.b32.xlu1 %v5254_v62, %s5291_s20 }
 0x178   : > { %v4085_v6 = vpop.permute.xlu1 %4084 }
 0x179   : > { %4436 = vrot.lane.b32.xlu1 %v4411_v0, %s5293_s22  ;;  %v4479_v27 = vsel %vm4467_vm14, %v4460_v55, %v4085_v6 }
 0x17d   : > { %4440 = vrot.lane.b32.xlu1 %v4425_v33, %s5293_s22 }
 0x180   : > { %v4089_v41 = vpop.permute.xlu1 %4088 }
 0x181   : > { %v4483_v25 = vsel %vm4467_vm14, %v4466_v36, %v4089_v41 }
 0x18b   : > { %v4123_v30 = vpop.permute.xlu0 %4122 }
 0x18c   : > { %v4494_v24 = vsel %vm4484_vm15, %v4477_v23, %v4123_v30 }
 0x19a   : > { %v4127_v26 = vpop.permute.xlu0 %4126 }
 0x19b   : > { %v4498_v39 = vsel %vm4484_vm15, %v4481_v35, %v4127_v26 }
 0x1a1   : > { %v4163_v44 = vpop.permute.xlu0 %4162 }
 0x1a2   : > { %v4511_v42 = vsel %vm4501_vm1, %v4494_v24, %v4163_v44 }
 0x1ac   : > { %v4125_v10 = vpop.permute.xlu1 %4124 }
 0x1ad   : > { %v4496_v53 = vsel %vm4484_vm15, %v4479_v27, %v4125_v10 }
 0x1af   : > { %v4167_v17 = vpop.permute.xlu0 %4166 }
 0x1b0   : > { %v4515_v12 = vsel %vm4501_vm1, %v4498_v39, %v4167_v17 }
 0x1b3   : > { %v4259_v47 = vpop.permute.xlu0 %4258 }
 0x1b4   : > { %v4528_v21 = vsel %vm4518_vm2, %v4511_v42, %v4259_v47 }
 0x1b7   : > { %v4263_v20 = vpop.permute.xlu0 %4262 }
 0x1b8   : > { %v4532_v18 = vsel %vm4518_vm2, %v4515_v12, %v4263_v20 }
 0x1bb   : > { %v4299_v22 = vpop.permute.xlu0 %4298 }
 0x1bc   : > { %v4545_v28 = vsel %vm4535_vm4, %v4528_v21, %v4299_v22 }
 0x1bf   : > { %v4303_v59 = vpop.permute.xlu0 %4302 }
 0x1c0   : > { %v4549_v45 = vsel %vm4535_vm4, %v4532_v18, %v4303_v59 }
 0x1c1   : > { %v4129_v16 = vpop.permute.xlu1 %4128 }
 0x1c2   : > { %v4500_v43 = vsel %vm4484_vm15, %v4483_v25, %v4129_v16 }
 0x1c3   : > { %v4339_v13 = vpop.permute.xlu0 %4338 }
 0x1c4   : > { %v4562_v19 = vsel %vm4552_vm0, %v4545_v28, %v4339_v13 }
 0x1c5   : > { %v4165_v61 = vpop.permute.xlu1 %4164 }
 0x1c6   : > { %v4513_v5 = vsel %vm4501_vm1, %v4496_v53, %v4165_v61 }
 0x1c7   : > { %v4343_v48 = vpop.permute.xlu0 %4342 }
 0x1c8   : > { %v4566_v62 = vsel %vm4552_vm0, %v4549_v45, %v4343_v48 }
 0x1c9   : > { %v4169_v50 = vpop.permute.xlu1 %4168 }
 0x1ca   : > { %v4517_v60 = vsel %vm4501_vm1, %v4500_v43, %v4169_v50 }
 0x1cb   : > { %v4435_v15 = vpop.permute.xlu0 %4434 }
 0x1cc   : > { %v4579_v63 = vsel %vm4569_vm3, %v4562_v19, %v4435_v15 }
 0x1cd   : > { %v4261_v49 = vpop.permute.xlu1 %4260  ;;  %v4592_v57 = vsel %vm4586_vm5, %v4579_v63, 0 }
 0x1ce   : > { %v4530_v55 = vsel %vm4518_vm2, %v4513_v5, %v4261_v49 }
 0x1cf   : > { %v4439_v14 = vpop.permute.xlu0 %4438 }
 0x1d0   : > { %v4583_v0 = vsel %vm4569_vm3, %v4566_v62, %v4439_v14 }
 0x1d1   : > { %v4265_v1 = vpop.permute.xlu1 %4264  ;;  %v4594_v38 = vsel %vm4586_vm5, %v4583_v0, 0 }
 0x1d2   : > { %v4534_v4 = vsel %vm4518_vm2, %v4517_v60, %v4265_v1 }
 0x1d5   : > { %v4301_v11 = vpop.permute.xlu1 %4300 }
 0x1d6   : > { %v4547_v46 = vsel %vm4535_vm4, %v4530_v55, %v4301_v11 }
 0x1df   : > { %v4305_v34 = vpop.permute.xlu1 %4304 }
 0x1e0   : > { %v4551_v2 = vsel %vm4535_vm4, %v4534_v4, %v4305_v34 }
 0x1e3   : > { %v4341_v3 = vpop.permute.xlu1 %4340 }
 0x1e4   : > { %v4564_v54 = vsel %vm4552_vm0, %v4547_v46, %v4341_v3 }
 0x1e7   : > { %v4345_v37 = vpop.permute.xlu1 %4344 }
 0x1e8   : > { %v4568_v29 = vsel %vm4552_vm0, %v4551_v2, %v4345_v37 }
 0x1eb   : > { %v4437_v31 = vpop.permute.xlu1 %4436 }
 0x1ec   : > { %v4581_v58 = vsel %vm4569_vm3, %v4564_v54, %v4437_v31 }
 0x1ed   : > { %v4593_v7 = vsel %vm4586_vm5, %v4581_v58, 0 }
 0x1ee   : > { %v5027_v52 = vcombine.low %v4592_v57, %v4593_v7 }
 0x1ef   : > { %v4441_v33 = vpop.permute.xlu1 %4440 }
 0x1f0   : > { %v4585_v56 = vsel %vm4569_vm3, %v4568_v29, %v4441_v33  ;;  %5152 = vmatprep.mubr.bf16.mxu1 %v5027_v52 }
 0x1f1   : > { %v4595_v9 = vsel %vm4586_vm5, %v4585_v56, 0 }
 0x1f2   : > { %v5028_v30 = vcombine.low %v4594_v38, %v4595_v9 }
 0x1f4   : > { %5153 = vmatmul.mubr.bf16.vlgmr.msra.gmra.mrb[0].mxu1 %v5028_v30 }
 0x240   : > { %v5150_v26 = vpop.f32.mrb[0].mxu0 }
 0x241   : > { %v4734_v6 = vadd.f32 %v5150_v26, %v5024_v40  ;;  %v4725_v44 = vpop.f32.mrb[1].mxu0 }
 0x242   : > { %v4726_v41 = vadd.f32 %v5024_v40, %v4725_v44  ;;  %v5151_v17 = vpop.f32.mrb[2].mxu0 }
 0x243   : > { %v4810_v10 = vpack.c.bf16 %v4734_v6, %v4734_v6  ;;  %v4737_v47 = vadd.f32 %v5151_v17, %v5024_v40  ;;  %v4728_v16 = vpop.f32.mrb[3].mxu0  ;;  %v4780_v22 = vmul.f32 %v4734_v6, %v4734_v6  ;;  %v4759_v48 = vsel %vm4467_vm14, %v4734_v6, 0.0 }
 0x244   : > { %v4778_v61 = vmul.f32 %v4726_v41, %v4726_v41  ;;  %v4808_v20 = vpack.c.bf16 %v4726_v41, %v4726_v41  ;;  %v4729_v50 = vadd.f32 %v5024_v40, %v4728_v16  ;;  %v4756_v1 = vsel %vm4467_vm14, %v4726_v41, 0.0 }
 0x245   : > { %4819 = vst.msk [vmem:[%s7138_s21 + $0x8] sm:$0xf] %vm4816_vm6, %v4810_v10  ;;  %v4811_v49 = vpack.c.bf16 %v4737_v47, %v4737_v47  ;;  %v4781_v23 = vmul.f32 %v4737_v47, %v4737_v47  ;;  %v4789_v15 = vsel %vm4467_vm14, %v4780_v22, 0.0  ;;  %v4761_v27 = vsel %vm4467_vm14, %v4737_v47, 0.0 }
 0x246   : > { %4817 = vst.msk [vmem:[%s7138_s21] sm:$0xf] %vm4816_vm6, %v4808_v20  ;;  %v4757_v59 = vsel %vm4467_vm14, %v4729_v50, 0.0  ;;  %v4779_v11 = vmul.f32 %v4729_v50, %v4729_v50  ;;  %v4809_v13 = vpack.c.bf16 %v4729_v50, %v4729_v50  ;;  %v4786_v3 = vsel %vm4467_vm14, %v4778_v61, 0.0 }
 0x247   : > { %4820 = vst.msk [vmem:[%s7138_s21 + $0xc] sm:$0xf] %vm4816_vm6, %v4811_v49  ;;  %v4758_v34 = vadd.f32 %v4757_v59, %v4756_v1  ;;  %v4791_v21 = vsel %vm4467_vm14, %v4781_v23, 0.0 }
 0x248   : > { %v4787_v51 = vsel %vm4467_vm14, %v4779_v11, 0.0  ;;  %4818 = vst.msk [vmem:[%s7138_s21 + $0x4] sm:$0xf] %vm4816_vm6, %v4809_v13 }
 0x249   : > { %v4760_v8 = vadd.f32 %v4759_v48, %v4758_v34  ;;  %v4788_v24 = vadd.f32 %v4787_v51, %v4786_v3 }
 0x24b   : > { %v4790_v42 = vadd.f32 %v4789_v15, %v4788_v24  ;;  %v4762_v53 = vadd.f32 %v4761_v27, %v4760_v8 }
 0x24d   : > { %v4792_v37 = vadd.f32 %v4791_v21, %v4790_v42 }
 0x2c7   : > { %v5154_v35 = vpop.f32.mrb[0].mxu1 }
 0x2c8   : > { %v4750_v5 = vadd.f32 %v5154_v35, %v5024_v40  ;;  %v4741_v28 = vpop.f32.mrb[1].mxu1 }
 0x2c9   : > { %v4742_v32 = vadd.f32 %v5024_v40, %v4741_v28  ;;  %v5155_v36 = vpop.f32.mrb[2].mxu1 }
 0x2ca   : > { %v4814_v39 = vpack.c.bf16 %v4750_v5, %v4750_v5  ;;  %v4753_v55 = vadd.f32 %v5155_v36, %v5024_v40  ;;  %v4744_v19 = vpop.f32.mrb[3].mxu1  ;;  %v4784_v43 = vmul.f32 %v4750_v5, %v4750_v5  ;;  %v4767_v62 = vsel %vm4467_vm14, %v4750_v5, 0.0 }
 0x2cb   : > { %v4763_v25 = vsel %vm4467_vm14, %v4742_v32, 0.0  ;;  %v4782_v12 = vmul.f32 %v4742_v32, %v4742_v32  ;;  %v4812_v46 = vpack.c.bf16 %v4742_v32, %v4742_v32  ;;  %v4745_v63 = vadd.f32 %v5024_v40, %v4744_v19 }
 0x2cc   : > { %4823 = vst.msk [vmem:[%s7138_s21 + $0x18] sm:$0xf] %vm4816_vm6, %v4814_v39  ;;  %v4764_v18 = vadd.f32 %v4763_v25, %v4762_v53  ;;  %v4815_v14 = vpack.c.bf16 %v4753_v55, %v4753_v55  ;;  %v4785_v57 = vmul.f32 %v4753_v55, %v4753_v55  ;;  %v4797_v52 = vsel %vm4467_vm14, %v4784_v43, 0.0 }
 0x2cd   : > { %v4793_v54 = vsel %vm4467_vm14, %v4782_v12, 0.0  ;;  %4821 = vst.msk [vmem:[%s7138_s21 + $0x10] sm:$0xf] %vm4816_vm6, %v4812_v46  ;;  %v4765_v31 = vsel %vm4467_vm14, %v4745_v63, 0.0  ;;  %v4783_v60 = vmul.f32 %v4745_v63, %v4745_v63  ;;  %v4813_v4 = vpack.c.bf16 %v4745_v63, %v4745_v63 }
 0x2ce   : > { %v4794_v45 = vadd.f32 %v4793_v54, %v4792_v37  ;;  %v4766_v58 = vadd.f32 %v4765_v31, %v4764_v18  ;;  %4824 = vst.msk [vmem:[%s7138_s21 + $0x1c] sm:$0xf] %vm4816_vm6, %v4815_v14  ;;  %v4769_v29 = vsel %vm4467_vm14, %v4753_v55, 0.0  ;;  %v4799_v38 = vsel %vm4467_vm14, %v4785_v57, 0.0 }
 0x2cf   : > { %v4795_v7 = vsel %vm4467_vm14, %v4783_v60, 0.0  ;;  %4822 = vst.msk [vmem:[%s7138_s21 + $0x14] sm:$0xf] %vm4816_vm6, %v4813_v4 }
 0x2d0   : > { %v4768_v2 = vadd.f32 %v4767_v62, %v4766_v58  ;;  %v4796_v0 = vadd.f32 %v4795_v7, %v4794_v45 }
 0x2d2   : > { %v4770_v33 = vadd.f32 %v4769_v29, %v4768_v2  ;;  %v4798_v56 = vadd.f32 %v4797_v52, %v4796_v0 }
 0x2d4   : > { %v4771_v9 = vrot.slane %v4770_v33, 4  ;;  %v4800_v30 = vadd.f32 %v4799_v38, %v4798_v56 }
 0x2d6   : > { %v4772_v40 = vadd.f32 %v4771_v9, %v4770_v33  ;;  %v4801_v26 = vrot.slane %v4800_v30, 4 }
 0x2d8   : > { %v4773_v6 = vrot.slane %v4772_v40, 2  ;;  %v4802_v44 = vadd.f32 %v4801_v26, %v4800_v30 }
 0x2da   : > { %v4774_v41 = vadd.f32 %v4773_v6, %v4772_v40  ;;  %v4803_v17 = vrot.slane %v4802_v44, 2 }
 0x2dc   : > { %v4775_v10 = vrot.slane %v4774_v41, 1  ;;  %v4804_v47 = vadd.f32 %v4803_v17, %v4802_v44 }
 0x2de   : > { %v4776_v16 = vadd.f32 %v4775_v10, %v4774_v41  ;;  %v4805_v61 = vrot.slane %v4804_v47, 1 }
 0x2e0   : > { %v4806_v20 = vadd.f32 %v4805_v61, %v4804_v47  ;;  %4826 = vst.msk [vmem:[%s292_s10] sm:$0x1] %vm4825_vm7, %v4776_v16 }
 0x2e2   : > { %4827 = vst.msk [vmem:[%s295_s16] sm:$0x1] %vm4825_vm7, %v4806_v20 }
 0x2e3 PF: > { %s18_s24 = sadd.s32 1, %s5281_s24  }
 0x2e4   : > { %p15_p4 = scmp.ge.s32.totalorder %s18_s24, 4  }
 0x2e6   :  { %17 = sbr.rel (!%p15_p4) target bundleno = 1 (0x1), region = 99 }

// kernel: _lambda_.9
= control target key start
LH: loop header
LB: loop body
LE: loop exit
PB: predicated region body
PF: predicated region fallthrough
CT: control target
= control target key end

     0   :  { %s1213_s18 = smov 0   ;;  %s1433_s0 = inlined_call_operand.vmem [shape: bf16[2,4,4,16], index: 0, kind: input, shape index: {}]   ;;  %s1434_s1 = inlined_call_operand.vmem [shape: bf16[256,8], index: 1, kind: input, shape index: {}]   ;;  %s1435_s2 = inlined_call_operand.vmem [shape: f32[1,8], index: 2, kind: input, shape index: {}]   ;;  %s1436_s3 = inlined_call_operand.vmem [shape: f32[1,16], index: 3, kind: input, shape index: {}]   ;;  %s1437_s4 = inlined_call_operand.vmem [shape: f32[1,16], index: 4, kind: input, shape index: {}]   ;;  %s1438_s5 = inlined_call_operand.vmem [shape: f32[2,4,4,8], index: 5, kind: output, shape index: {}]  }
   0x1 LB: > { %s983_s19 = sadd.s32 4294967295, %s1173_s18   ;;  %p987_p0 = scmp.ge.s32.totalorder %s1173_s18, 1  ;;  %s1173_s18 = sphi %s1213_s18, %s15_s18  }
   0x2   : > { %p187_p1 = scmp.lt.s32.totalorder %s1173_s18, 3 }
   0x4   : > { %p188_p2 = pnand %p987_p0, %p187_p1 }
   0x5   : > { %vm272_vm0 = vcmask (!%p188_p2), 125952   ;;  %vm274_vm1 = vcmask (!%p188_p2), 122880   ;;  %v1175_v0 = vmov (!%p188_p2), 0   ;;  %p215_p3 = scmp.lt.s32.totalorder (!%p188_p2), %s983_s19, 1  ;;  %v992_v1 = vld [vmem:[%s1436_s3] ss:$0 sm:$0xff] (!%p188_p2) }
   0x6   : > { %191 = sbr.rel (%p188_p2) target bundleno = 435 (0x1b3), region = 40  ;;  %273 = vst.msk [vmem:[#allocation2] sm:$0xf] (!%p188_p2), %vm272_vm0, %v1175_v0  ;;  %276 = vst.msk [vmem:[#allocation2 + $0x8] sm:$0xf] (!%p188_p2), %vm272_vm0, %v1175_v0  ;;  %s1176_s28 = smov (!%p188_p2), 32  }
   0x7   : > { %275 = vst.msk [vmem:[#allocation2 + $0x4] sm:$0x1] (!%p188_p2), %vm274_vm1, %v1175_v0  ;;  %277 = vst.msk [vmem:[#allocation2 + $0xc] sm:$0x1] (!%p188_p2), %vm274_vm1, %v1175_v0  ;;  %v993_v13 = vld [vmem:[%s1437_s4] ss:$0 sm:$0xff] (!%p188_p2) }
   0x8   : > { %278 = vst.msk [vmem:[#allocation2 + $0x10] sm:$0xf] (!%p188_p2), %vm272_vm0, %v1175_v0  ;;  %280 = vst.msk [vmem:[#allocation2 + $0x18] sm:$0xf] (!%p188_p2), %vm272_vm0, %v1175_v0  ;;  %vm331_vm5 = vcmask (!%p188_p2), 124928   ;;  %s1177_s29 = smov (!%p188_p2), 16  }
   0x9   : > { %279 = vst.msk [vmem:[#allocation2 + $0x14] sm:$0x1] (!%p188_p2), %vm274_vm1, %v1175_v0  ;;  %281 = vst.msk [vmem:[#allocation2 + $0x1c] sm:$0x1] (!%p188_p2), %vm274_vm1, %v1175_v0  ;;  %vm332_vm6 = vsmask.f32 (!%p188_p2), 2306 }
   0xa   : > { %282 = vst.msk [vmem:[#allocation2 + $0x20] sm:$0xf] (!%p188_p2), %vm272_vm0, %v1175_v0  ;;  %284 = vst.msk [vmem:[#allocation2 + $0x28] sm:$0xf] (!%p188_p2), %vm272_vm0, %v1175_v0  ;;  %s1178_s30 = smov (!%p188_p2), 48   ;;  %s1179_s12 = smov (!%p188_p2), 96  }
   0xb   : > { %283 = vst.msk [vmem:[#allocation2 + $0x24] sm:$0x1] (!%p188_p2), %vm274_vm1, %v1175_v0  ;;  %285 = vst.msk [vmem:[#allocation2 + $0x2c] sm:$0x1] (!%p188_p2), %vm274_vm1, %v1175_v0  ;;  %v1152_v51 = vld [vmem:[%s1434_s1 + $0x10] sm:$0xff] (!%p188_p2)   ;;  %s1180_s21 = smov (!%p188_p2), 80  }
   0xc   : > { %vm1240_vm8 = vmand (!%p188_p2), %vm331_vm5, %vm332_vm6  ;;  %s1181_s13 = smov (!%p188_p2), 64   ;;  %vm639_vm9 = vcmask (!%p188_p2), 130048   ;;  %vm652_vm10 = vcmask (!%p188_p2), 261120   ;;  %vm661_vm11 = vcmask (!%p188_p2), 392192   ;;  %vm670_vm12 = vcmask (!%p188_p2), 523264  }
   0xd   : > { %s1442_s19 = smov (!%p215_p3, %s983_s19), 1  ;;  %v354_v6 = vld [vmem:[#allocation2] sm:$0xe]  ;;  %v334_v49 = vld [vmem:[#allocation2 + $0x8] sm:$0x7]  ;;  %vm679_vm13 = vcmask 654336  }
   0xe   : > { %s1053_s20 = sshll.u32 %s1442_s19, 3  ;;  %v350_v5 = vld [vmem:[#allocation2 + $0x4] sm:$0x1]  ;;  %v1230_v7 = vld [vmem:[#allocation2] sm:$0xf]  ;;  %vm688_vm14 = vcmask 785408  }
   0xf   : > { %s219_s25 = scalar_lea.vmem %s1433_s0, %s1053_s20  ;;  %v1002_v11 = vcombine.low %v354_v6, %v350_v5  ;;  %v998_v12 = vcombine.low %v1230_v7, %v350_v5  ;;  %v337_v43 = vld [vmem:[#allocation2 + $0x10] sm:$0x7]  ;;  %v340_v59 = vld [vmem:[#allocation2 + $0x18] sm:$0x7]  ;;  %vm697_vm15 = vcmask 916480   ;;  %vm923_vm0 = vcmask 60416  }
  0x10   : > { %v227_v2 = vld [vmem:[%s219_s25 + $0x2] sm:$0x3]  ;;  %v226_v3 = vld [vmem:[%s219_s25] sm:$0x3]  ;;  %v229_v4 = vld [vmem:[%s219_s25 + $0x6] sm:$0x3] }
  0x11   : > { %v231_v8 = vunpack.c.l.bf16 %v227_v2  ;;  %v230_v9 = vunpack.c.l.bf16 %v226_v3  ;;  %v233_v10 = vunpack.c.l.bf16 %v229_v4  ;;  %v228_v17 = vld [vmem:[%s219_s25 + $0x4] sm:$0x3]  ;;  %v451_v18 = vrot.slane %v1002_v11, 1  ;;  %v343_v53 = vld [vmem:[#allocation2 + $0x20] sm:$0x7] }
  0x12   : > { %v406_v19 = vshll.u32 %v998_v12, 16  ;;  %v404_v20 = vshrl.u32 %v998_v12, 16  ;;  %v232_v21 = vunpack.c.l.bf16 %v228_v17  ;;  %v351_v12 = vld [vmem:[#allocation2 + $0xc] sm:$0x1]  ;;  %v1147_v17 = vld [vmem:[%s1434_s1 + $0x40] sm:$0xff]  }
  0x13   : > { %v242_v14 = vmul.f32 %v992_v1, %v231_v8  ;;  %v241_v15 = vmul.f32 %v992_v1, %v230_v9  ;;  %v244_v16 = vmul.f32 %v992_v1, %v233_v10  ;;  %455 = vrot.lane.b32.xlu0 %v451_v18, %s1176_s28  ;;  %v352_v8 = vld [vmem:[#allocation2 + $0x14] sm:$0x1]  ;;  %1059 = vmatprep.subr.bf16.mxu0 %v1147_v17 }
  0x14   : > { %v408_v25 = vrot.slane %v406_v19, 1  ;;  %v243_v26 = vmul.f32 %v992_v1, %v232_v21  ;;  %1087 = vmatprep.subr.bf16.mxu1 %v1147_v17 }
  0x15   : > { %v253_v22 = vadd.f32 %v993_v13, %v242_v14  ;;  %v252_v23 = vadd.f32 %v993_v13, %v241_v15  ;;  %v255_v24 = vadd.f32 %v993_v13, %v244_v16 }
  0x16   : > { %v409_v29 = vor.u32 %v408_v25, %v404_v20  ;;  %v254_v31 = vadd.f32 %v993_v13, %v243_v26 }
  0x17   : > { %vm257_vm2 = vcmp.ge.f32.partialorder %v253_v22, 0.0  ;;  %v261_v27 = vmul.f32 0.2, %v253_v22  ;;  %vm256_vm3 = vcmp.ge.f32.partialorder %v252_v23, 0.0  ;;  %v260_v28 = vmul.f32 0.2, %v252_v23 }
  0x18   : > { %vm259_vm4 = vcmp.ge.f32.partialorder %v255_v24, 0.0  ;;  %v263_v30 = vmul.f32 0.2, %v255_v24  ;;  %431 = vrot.lane.b32.xlu0 %v409_v29, %s1177_s29  ;;  %vm258_vm7 = vcmp.ge.f32.partialorder %v254_v31, 0.0  ;;  %v262_v38 = vmul.f32 0.2, %v254_v31 }
  0x19   : > { %v265_v32 = vsel %vm257_vm2, %v253_v22, %v261_v27  ;;  %v264_v33 = vsel %vm256_vm3, %v252_v23, %v260_v28  ;;  %v362_v23 = vld [vmem:[#allocation2 + $0xc] sm:$0x1]  ;;  %v1148_v27 = vld [vmem:[%s1434_s1] sm:$0xff]   ;;  %v363_v29 = vld [vmem:[#allocation2 + $0x14] sm:$0x1] }
  0x1a   : > { %v1056_v34 = vpack.c.bf16 %v265_v32, %v265_v32  ;;  %v1055_v35 = vpack.c.bf16 %v264_v33, %v264_v33  ;;  %v267_v36 = vsel %vm259_vm4, %v255_v24, %v263_v30  ;;  %v266_v46 = vsel %vm258_vm7, %v254_v31, %v262_v38  ;;  %v353_v24 = vld [vmem:[#allocation2 + $0x1c] sm:$0x1]  ;;  %v1149_v28 = vld [vmem:[%s1434_s1 + $0x48] sm:$0xff]   ;;  %1060 = vmatpush3.bf16.msra.mxu0 %v1148_v27 }
  0x1b   : > { %v1058_v37 = vpack.c.bf16 %v267_v36, %v267_v36  ;;  %v1057_v50 = vpack.c.bf16 %v266_v46, %v266_v46  ;;  %1095 = vmatpush3.bf16.msra.mxu1 %v1148_v27  ;;  %1061 = vmatprep.subr.bf16.mxu0 %v1149_v28 }
  0x1c   : > { %v306_v39 = vshrl.u32 %v1056_v34, 16  ;;  %v309_v40 = vshll.u32 %v1056_v34, 16  ;;  %v299_v41 = vshrl.u32 %v1055_v35, 16  ;;  %v302_v42 = vshll.u32 %v1055_v35, 16  ;;  %1088 = vmatprep.subr.bf16.mxu1 %v1149_v28 }
  0x1d   : > { %v320_v44 = vshrl.u32 %v1058_v37, 16  ;;  %v323_v45 = vshll.u32 %v1058_v37, 16  ;;  %v313_v56 = vshrl.u32 %v1057_v50, 16  ;;  %v316_v57 = vshll.u32 %v1057_v50, 16  ;;  %v364_v37 = vld [vmem:[#allocation2 + $0x1c] sm:$0x1] }
  0x1e   : > { %v308_v47 = vrot.slane %v306_v39, 7  ;;  %v301_v48 = vrot.slane %v299_v41, 7  ;;  %v1150_v39 = vld [vmem:[%s1434_s1 + $0x8] sm:$0xff]   ;;  %v1151_v50 = vld [vmem:[%s1434_s1 + $0x50] sm:$0xff]  }
  0x1f   : > { %v322_v52 = vrot.slane %v320_v44, 7  ;;  %v315_v62 = vrot.slane %v313_v56, 7  ;;  %v365_v44 = vld [vmem:[#allocation2 + $0x24] sm:$0x1]  ;;  %1062 = vmatpush3.bf16.msra.mxu0 %v1150_v39  ;;  %1096 = vmatpush3.bf16.msra.mxu1 %v1150_v39 }
  0x20   : > { %v311_v54 = vor.u32 %v309_v40, %v308_v47  ;;  %v304_v55 = vor.u32 %v302_v42, %v301_v48  ;;  %1063 = vmatprep.subr.bf16.mxu0 %v1151_v50  ;;  %1089 = vmatprep.subr.bf16.mxu1 %v1151_v50  ;;  %v1161_v50 = vld [vmem:[%s1434_s1 + $0x78] sm:$0xff]  }
  0x21   : > { %v325_v58 = vor.u32 %v323_v45, %v322_v52  ;;  %v318_v0 = vor.u32 %v316_v57, %v315_v62  ;;  %v1154_v62 = vld [vmem:[%s1434_s1 + $0x18] sm:$0xff]  }
  0x22   : > { %v338_v60 = vsel %vm1240_vm8, %v311_v54, %v337_v43  ;;  %v335_v61 = vsel %vm1240_vm8, %v304_v55, %v334_v49 }
  0x23   : > { %339 = vst [vmem:[#allocation2 + $0x10] sm:$0x7] %v338_v60  ;;  %336 = vst [vmem:[#allocation2 + $0x8] sm:$0x7] %v335_v61  ;;  %v344_v63 = vsel %vm1240_vm8, %v325_v58, %v343_v53  ;;  %v341_v1 = vsel %vm1240_vm8, %v318_v0, %v340_v59  ;;  %1064 = vmatpush3.bf16.msra.mxu0 %v1152_v51  ;;  %1097 = vmatpush3.bf16.msra.mxu1 %v1152_v51  ;;  %v1153_v61 = vld [vmem:[%s1434_s1 + $0x58] sm:$0xff]  }
  0x24   : > { %345 = vst [vmem:[#allocation2 + $0x20] sm:$0x7] %v344_v63  ;;  %342 = vst [vmem:[#allocation2 + $0x18] sm:$0x7] %v341_v1  ;;  %1065 = vmatprep.subr.bf16.mxu0 %v1153_v61  ;;  %1090 = vmatprep.subr.bf16.mxu1 %v1153_v61  ;;  %v1324_v0 = vld [vmem:[#allocation2 + $0x14] sm:$0x1] }
  0x25   : > { %v374_v51 = vld [vmem:[#allocation2 + $0x28] sm:$0xf] }
  0x27   : > { %1066 = vmatpush3.bf16.msra.mxu0 %v1154_v62  ;;  %1098 = vmatpush3.bf16.msra.mxu1 %v1154_v62 }
  0x2a   : > { %v1252_v2 = vld [vmem:[#allocation2 + $0x10] sm:$0xf]  ;;  %v358_v3 = vld [vmem:[#allocation2 + $0x8] sm:$0xf] }
  0x2b   : > { %v1007_v4 = vcombine.low %v1252_v2, %v1252_v2  ;;  %v1006_v5 = vcombine.low %v358_v3, %v358_v3  ;;  %v1256_v6 = vld [vmem:[#allocation2 + $0x20] sm:$0xf]  ;;  %v1260_v10 = vld [vmem:[#allocation2 + $0x10] sm:$0xf]  ;;  %v360_v13 = vld [vmem:[#allocation2 + $0x18] sm:$0xf]  ;;  %v1292_v41 = vcombine.low %v358_v3, %v362_v23  ;;  %v1322_v63 = vcombine.low %v1252_v2, %v363_v29 }
  0x2c   : > { %v1009_v9 = vcombine.low %v1256_v6, %v1256_v6  ;;  %v356_v11 = vld [vmem:[#allocation2 + $0x10] sm:$0xe]  ;;  %v1262_v14 = vld [vmem:[#allocation2 + $0x18] sm:$0xf]  ;;  %v355_v15 = vld [vmem:[#allocation2 + $0x8] sm:$0xe]  ;;  %v1008_v16 = vcombine.low %v360_v13, %v360_v13  ;;  %v1018_v18 = vcombine.low %v1260_v10, %v1260_v10  ;;  %v1308_v53 = vcombine.low %v360_v13, %v364_v37 }
  0x2d   : > { %477 = vrot.lane.b32.xlu1 %v1007_v4, %s1178_s30  ;;  %475 = vrot.lane.b32.xlu0 %v1006_v5, %s1178_s30  ;;  %v1019_v19 = vcombine.low %v1262_v14, %v1262_v14  ;;  %v1004_v20 = vcombine.low %v356_v11, %v352_v8  ;;  %v1003_v21 = vcombine.low %v355_v15, %v351_v12  ;;  %v1271_v22 = vld [vmem:[#allocation2 + $0x8] sm:$0xf]  ;;  %v357_v26 = vld [vmem:[#allocation2 + $0x18] sm:$0xe]  ;;  %v1284_v31 = vld [vmem:[#allocation2 + $0x10] sm:$0xf] }
  0x2e   : > { %v366_v25 = vld [vmem:[#allocation2 + $0x8] sm:$0xe]  ;;  %v1280_v30 = vcombine.low %v1271_v22, %v351_v12  ;;  %v1005_v35 = vcombine.low %v357_v26, %v353_v24  ;;  %v367_v36 = vld [vmem:[#allocation2 + $0x10] sm:$0xe]  ;;  %v368_v38 = vld [vmem:[#allocation2 + $0x18] sm:$0xe]  ;;  %v1290_v40 = vcombine.low %v1284_v31, %v352_v8  ;;  %v1340_v15 = vcombine.low %v1260_v10, %v1324_v0 }
  0x2f   : > { %v453_v32 = vrot.slane %v1004_v20, 1  ;;  %v452_v33 = vrot.slane %v1003_v21, 1  ;;  %v1014_v34 = vcombine.low %v366_v25, %v362_v23  ;;  %v1294_v42 = vld [vmem:[#allocation2 + $0x18] sm:$0xf]  ;;  %v1015_v43 = vcombine.low %v367_v36, %v363_v29  ;;  %v369_v48 = vld [vmem:[#allocation2 + $0x20] sm:$0xe] }
  0x30   : > { %v454_v46 = vrot.slane %v1005_v35, 1  ;;  %v1016_v47 = vcombine.low %v368_v38, %v364_v37  ;;  %v413_v49 = vshll.u32 %v1280_v30, 16  ;;  %v1306_v52 = vcombine.low %v1294_v42, %v353_v24  ;;  %v1155_v12 = vld [vmem:[%s1434_s1 + $0x60] sm:$0xff]   ;;  %v1157_v24 = vld [vmem:[%s1434_s1 + $0x68] sm:$0xff]   ;;  %v376_v26 = vld [vmem:[#allocation2 + $0x1c] sm:$0x1] }
  0x31   : > { %481 = vrot.lane.b32.xlu1 %v1009_v9, %s1178_s30  ;;  %479 = vrot.lane.b32.xlu0 %v1008_v16, %s1178_s30  ;;  %v543_v45 = vrot.slane %v1014_v34, 1  ;;  %v544_v54 = vrot.slane %v1015_v43, 1  ;;  %v1017_v55 = vcombine.low %v369_v48, %v365_v44  ;;  %v411_v56 = vshrl.u32 %v1280_v30, 16  ;;  %v1156_v13 = vld [vmem:[%s1434_s1 + $0x20] sm:$0xff]   ;;  %v1158_v25 = vld [vmem:[%s1434_s1 + $0x28] sm:$0xff]  }
  0x32   : > { %v545_v57 = vrot.slane %v1016_v47, 1  ;;  %v415_v58 = vrot.slane %v413_v49, 1  ;;  %v420_v59 = vshll.u32 %v1290_v40, 16  ;;  %v498_v60 = vshll.u32 %v1292_v41, 16  ;;  %1067 = vmatprep.subr.bf16.mxu0 %v1155_v12  ;;  %1091 = vmatprep.subr.bf16.mxu1 %v1155_v12  ;;  %v373_v29 = vld [vmem:[#allocation2 + $0x20] sm:$0xf] }
  0x33   : > { %v546_v1 = vrot.slane %v1017_v55, 1  ;;  %v418_v3 = vshrl.u32 %v1290_v40, 16  ;;  %v496_v4 = vshrl.u32 %v1292_v41, 16  ;;  %v427_v5 = vshll.u32 %v1306_v52, 16  ;;  %1068 = vmatpush3.bf16.msra.mxu0 %v1156_v13  ;;  %1099 = vmatpush3.bf16.msra.mxu1 %v1156_v13  ;;  %v1160_v37 = vld [vmem:[%s1434_s1 + $0x30] sm:$0xff]  }
  0x34   : > { %v416_v8 = vor.u32 %v415_v58, %v411_v56  ;;  %v422_v2 = vrot.slane %v420_v59, 1  ;;  %v500_v9 = vrot.slane %v498_v60, 1  ;;  %v512_v11 = vshll.u32 %v1308_v53, 16  ;;  %1069 = vmatprep.subr.bf16.mxu0 %v1157_v24  ;;  %1092 = vmatprep.subr.bf16.mxu1 %v1157_v24  ;;  %v379_v38 = vld [vmem:[#allocation2 + $0x10] sm:$0xe]  ;;  %v1162_v56 = vld [vmem:[%s1434_s1 + $0x38] sm:$0xff]  }
  0x35   : > { %569 = vrot.lane.b32.xlu1 %v1019_v19, %s1179_s12  ;;  %567 = vrot.lane.b32.xlu0 %v1018_v18, %s1179_s12  ;;  %v505_v16 = vshll.u32 %v1322_v63, 16  ;;  %v1344_v17 = vcombine.low %v1256_v6, %v365_v44  ;;  %v425_v18 = vshrl.u32 %v1306_v52, 16  ;;  %v510_v19 = vshrl.u32 %v1308_v53, 16  ;;  %v1353_v6 = vld [vmem:[#allocation2 + $0x24] sm:$0x1] }
  0x36   : > { %v423_v20 = vor.u32 %v422_v2, %v418_v3  ;;  %v501_v10 = vor.u32 %v500_v9, %v496_v4  ;;  %v429_v21 = vrot.slane %v427_v5, 1  ;;  %v514_v23 = vrot.slane %v512_v11, 1  ;;  %v380_v39 = vld [vmem:[#allocation2 + $0x18] sm:$0xe]  ;;  %v378_v43 = vld [vmem:[#allocation2 + $0x2c] sm:$0x1] }
  0x37   : > { %v503_v27 = vshrl.u32 %v1322_v63, 16  ;;  %v507_v28 = vrot.slane %v505_v16, 1  ;;  %v519_v30 = vshll.u32 %v1344_v17, 16  ;;  %1070 = vmatpush3.bf16.msra.mxu0 %v1158_v25  ;;  %1100 = vmatpush3.bf16.msra.mxu1 %v1158_v25  ;;  %v1024_v35 = vcombine.low %v373_v29, %v1353_v6  ;;  %v382_v58 = vld [vmem:[#allocation2 + $0x28] sm:$0xe] }
  0x38   : > { %v515_v34 = vor.u32 %v514_v23, %v510_v19  ;;  %v590_v36 = vshll.u32 %v1340_v15, 16  ;;  %v1023_v40 = vcombine.low %v1262_v14, %v376_v26  ;;  %v1020_v41 = vcombine.low %v373_v29, %v373_v29 }
  0x39   : > { %459 = vrot.lane.b32.xlu0 %v453_v32, %s1176_s28  ;;  %457 = vrot.lane.b32.xlu1 %v452_v33, %s1176_s28  ;;  %v1159_v32 = vld [vmem:[%s1434_s1 + $0x70] sm:$0xff]   ;;  %v430_v33 = vor.u32 %v429_v21, %v425_v18  ;;  %v1026_v44 = vcombine.low %v379_v38, %v1324_v0  ;;  %v517_v47 = vshrl.u32 %v1344_v17, 16  ;;  %v521_v48 = vrot.slane %v519_v30, 1 }
  0x3a   : > { %1071 = vmatprep.subr.bf16.mxu0 %v1159_v32  ;;  %1093 = vmatprep.subr.bf16.mxu1 %v1159_v32  ;;  %v588_v49 = vshrl.u32 %v1340_v15, 16  ;;  %v592_v14 = vrot.slane %v590_v36, 1  ;;  %v604_v52 = vshll.u32 %v1024_v35, 16  ;;  %v1025_v55 = vcombine.low %v374_v51, %v378_v43 }
  0x3b   : > { %1072 = vmatpush3.bf16.msra.mxu0 %v1160_v37  ;;  %1101 = vmatpush3.bf16.msra.mxu1 %v1160_v37  ;;  %v635_v53 = vrot.slane %v1026_v44, 1  ;;  %v1029_v62 = vcombine.low %v382_v58, %v378_v43  ;;  %v522_v63 = vor.u32 %v521_v48, %v517_v47  ;;  %v602_v0 = vshrl.u32 %v1024_v35, 16 }
  0x3c   : > { %1073 = vmatprep.subr.bf16.mxu0 %v1161_v50  ;;  %1094 = vmatprep.subr.bf16.mxu1 %v1161_v50  ;;  %v593_v4 = vor.u32 %v592_v14, %v588_v49  ;;  %v606_v5 = vrot.slane %v604_v52, 1  ;;  %v1021_v12 = vcombine.low %v374_v51, %v374_v51  ;;  %v595_v16 = vshrl.u32 %v1023_v40, 16 }
  0x3d   : > { %547 = vrot.lane.b32.xlu0 %v543_v45, %s1180_s21  ;;  %461 = vrot.lane.b32.xlu1 %v454_v46, %s1176_s28  ;;  %v1027_v45 = vcombine.low %v380_v39, %v376_v26  ;;  %v508_v46 = vor.u32 %v507_v28, %v503_v27  ;;  %v708_v59 = vsel %vm639_vm9, %v635_v53, 0  ;;  %v638_v2 = vrot.slane %v1029_v62, 1 }
  0x3e   : > { %v607_v15 = vor.u32 %v606_v5, %v602_v0  ;;  %v611_v18 = vshll.u32 %v1025_v55, 16 }
  0x3f   : > { %1074 = vmatpush3.bf16.msra.mxu0 %v1162_v56  ;;  %1102 = vmatpush3.bf16.msra.mxu1 %v1162_v56  ;;  %v714_v11 = vsel %vm639_vm9, %v638_v2, 0 }
  0x41   : > { %551 = vrot.lane.b32.xlu0 %v545_v57, %s1180_s21  ;;  %549 = vrot.lane.b32.xlu1 %v544_v54, %s1180_s21  ;;  %v636_v54 = vrot.slane %v1027_v45, 1  ;;  %v381_v57 = vld [vmem:[#allocation2 + $0x20] sm:$0xe] }
  0x42   : > { %v1028_v61 = vcombine.low %v381_v57, %v1353_v6 }
  0x43   : > { %v710_v60 = vsel %vm639_vm9, %v636_v54, 0 }
  0x44   : > { %v1032_v3 = vcombine.low %v708_v59, %v710_v60 }
  0x45   : > { %553 = vrot.lane.b32.xlu1 %v546_v1, %s1180_s21  ;;  %433 = vrot.lane.b32.xlu0 %v416_v8, %s1177_s29  ;;  %v597_v1 = vshll.u32 %v1023_v40, 16  ;;  %v637_v8 = vrot.slane %v1028_v61, 1 }
  0x46   : > { %906 = vmatprep.mubr.bf16.mxu0 %v1032_v3 }
  0x47   : > { %v712_v9 = vsel %vm639_vm9, %v637_v8, 0  ;;  %v599_v17 = vrot.slane %v597_v1, 1 }
  0x48   : > { %v1034_v13 = vcombine.low %v712_v9, %v714_v11 }
  0x49   : > { %435 = vrot.lane.b32.xlu1 %v423_v20, %s1177_s29  ;;  %523 = vrot.lane.b32.xlu0 %v501_v10, %s1181_s13  ;;  %v600_v19 = vor.u32 %v599_v17, %v595_v16  ;;  %v609_v20 = vshrl.u32 %v1025_v55, 16  ;;  %v613_v10 = vrot.slane %v611_v18, 1  ;;  %v1030_v18 = vld [vmem:[%s1435_s2] ss:$0 sm:$0xff] }
  0x4a   : > { %914 = vmatprep.mubr.bf16.mxu1 %v1034_v13 }
  0x4b   : > { %v614_v21 = vor.u32 %v613_v10, %v609_v20 }
  0x4d   : > { %437 = vrot.lane.b32.xlu1 %v430_v33, %s1177_s29  ;;  %527 = vrot.lane.b32.xlu0 %v515_v34, %s1181_s13  ;;  %s1182_s29 = smov 112  }
  0x51   : > { %525 = vrot.lane.b32.xlu1 %v508_v46, %s1181_s13  ;;  %571 = vrot.lane.b32.xlu0 %v1020_v41, %s1179_s12 }
  0x55   : > { %529 = vrot.lane.b32.xlu1 %v522_v63, %s1181_s13  ;;  %615 = vrot.lane.b32.xlu0 %v593_v4, %s1182_s29 }
  0x59   : > { %573 = vrot.lane.b32.xlu1 %v1021_v12, %s1179_s12  ;;  %619 = vrot.lane.b32.xlu0 %v607_v15, %s1182_s29  ;;  %s1054_s12 = sshll.u32 %s1442_s19, 4 }
  0x5a   : > { %s224_s26 = scalar_lea.vmem %s1438_s5, %s1054_s12 }
  0x5d   : > { %617 = vrot.lane.b32.xlu1 %v600_v19, %s1182_s29 }
  0x61   : > { %621 = vrot.lane.b32.xlu1 %v614_v21, %s1182_s29 }
  0x85   : > { %v456_v23 = vpop.permute.xlu0 %455 }
  0x8a   : > { %v432_v24 = vpop.permute.xlu0 %431 }
  0x8b   : > { %v642_v44 = vsel %vm639_vm9, %v1230_v7, %v432_v24 }
  0x8c   : > { %v654_v47 = vsel %vm652_vm10, %v642_v44, %v456_v23 }
  0x9f   : > { %v478_v6 = vpop.permute.xlu1 %477  ;;  %v476_v25 = vpop.permute.xlu0 %475 }
  0xa0   : > { %v663_v51 = vsel %vm661_vm11, %v654_v47, %v476_v25 }
  0xa3   : > { %v482_v26 = vpop.permute.xlu1 %481  ;;  %v480_v27 = vpop.permute.xlu0 %479 }
  0xa7   : > { %v570_v28 = vpop.permute.xlu1 %569  ;;  %v568_v29 = vpop.permute.xlu0 %567 }
  0xab   : > { %v460_v30 = vpop.permute.xlu0 %459  ;;  %v458_v32 = vpop.permute.xlu1 %457 }
  0xaf   : > { %v548_v33 = vpop.permute.xlu0 %547  ;;  %v462_v34 = vpop.permute.xlu1 %461 }
  0xb3   : > { %v552_v35 = vpop.permute.xlu0 %551  ;;  %v550_v36 = vpop.permute.xlu1 %549 }
  0xb7   : > { %v554_v37 = vpop.permute.xlu1 %553  ;;  %v434_v38 = vpop.permute.xlu0 %433 }
  0xb8   : > { %v645_v45 = vsel %vm639_vm9, %v1271_v22, %v434_v38 }
  0xb9   : > { %v656_v48 = vsel %vm652_vm10, %v645_v45, %v458_v32 }
  0xba   : > { %v665_v52 = vsel %vm661_vm11, %v656_v48, %v478_v6 }
  0xbb   : > { %v436_v39 = vpop.permute.xlu1 %435  ;;  %v524_v40 = vpop.permute.xlu0 %523 }
  0xbc   : > { %v648_v50 = vsel %vm639_vm9, %v1284_v31, %v436_v39  ;;  %v672_v53 = vsel %vm670_vm12, %v663_v51, %v524_v40 }
  0xbd   : > { %v658_v22 = vsel %vm652_vm10, %v648_v50, %v460_v30  ;;  %v681_v57 = vsel %vm679_vm13, %v672_v53, %v548_v33 }
  0xbe   : > { %v667_v58 = vsel %vm661_vm11, %v658_v22, %v480_v27  ;;  %v690_v62 = vsel %vm688_vm14, %v681_v57, %v568_v29 }
  0xbf   : > { %v438_v41 = vpop.permute.xlu1 %437  ;;  %v528_v43 = vpop.permute.xlu0 %527 }
  0xc0   : > { %v651_v7 = vsel %vm639_vm9, %v1294_v42, %v438_v41  ;;  %v676_v60 = vsel %vm670_vm12, %v667_v58, %v528_v43 }
  0xc1   : > { %v660_v55 = vsel %vm652_vm10, %v651_v7, %v462_v34  ;;  %v685_v8 = vsel %vm679_vm13, %v676_v60, %v552_v35 }
  0xc2   : > { %v669_v42 = vsel %vm661_vm11, %v660_v55, %v482_v26 }
  0xc3   : > { %v526_v46 = vpop.permute.xlu1 %525  ;;  %v572_v49 = vpop.permute.xlu0 %571 }
  0xc4   : > { %v674_v54 = vsel %vm670_vm12, %v665_v52, %v526_v46  ;;  %v694_v9 = vsel %vm688_vm14, %v685_v8, %v572_v49 }
  0xc5   : > { %v683_v59 = vsel %vm679_vm13, %v674_v54, %v550_v36 }
  0xc6   : > { %v692_v0 = vsel %vm688_vm14, %v683_v59, %v570_v28 }
  0xc7   : > { %v530_v14 = vpop.permute.xlu1 %529  ;;  %v616_v56 = vpop.permute.xlu0 %615 }
  0xc8   : > { %v678_v61 = vsel %vm670_vm12, %v669_v42, %v530_v14  ;;  %v699_v1 = vsel %vm697_vm15, %v690_v62, %v616_v56 }
  0xc9   : > { %v687_v2 = vsel %vm679_vm13, %v678_v61, %v554_v37 }
  0xcb   : > { %v574_v31 = vpop.permute.xlu1 %573  ;;  %v620_v4 = vpop.permute.xlu0 %619 }
  0xcc   : > { %v696_v11 = vsel %vm688_vm14, %v687_v2, %v574_v31  ;;  %v703_v13 = vsel %vm697_vm15, %v694_v9, %v620_v4 }
  0xcf   : > { %v618_v63 = vpop.permute.xlu1 %617 }
  0xd0   : > { %v701_v3 = vsel %vm697_vm15, %v692_v0, %v618_v63 }
  0xd1   : > { %v1031_v5 = vcombine.low %v699_v1, %v701_v3 }
  0xd3   : > { %v622_v12 = vpop.permute.xlu1 %621  ;;  %907 = vmatmul.mubr.bf16.vlgmr.msra.gmra.mrb[0].mxu0 %v1031_v5 }
  0xd4   : > { %v705_v15 = vsel %vm697_vm15, %v696_v11, %v622_v12 }
  0xd5   : > { %v1033_v16 = vcombine.low %v703_v13, %v705_v15 }
  0xd7   : > { %915 = vmatmul.mubr.bf16.vlgmr.msra.gmra.mrb[0].mxu1 %v1033_v16 }
 0x1a6   : > { %v1075_v17 = vpop.f32.mrb[0].mxu0 }
 0x1a7   : > { %v1076_v19 = vpop.f32.mrb[1].mxu0 }
 0x1a8   : > { %v1077_v20 = vadd.f32 %v1076_v19, %v1075_v17  ;;  %v1078_v10 = vpop.f32.mrb[2].mxu0 }
 0x1a9   : > { %v1079_v21 = vpop.f32.mrb[3].mxu0 }
 0x1aa   : > { %v909_v23 = vadd.f32 %v1077_v20, %v1030_v18  ;;  %v1080_v24 = vadd.f32 %v1079_v21, %v1078_v10  ;;  %v1081_v6 = vpop.f32.mrb[0].mxu1 }
 0x1ab   : > { %v1082_v25 = vpop.f32.mrb[1].mxu1 }
 0x1ac   : > { %924 = vst.msk [vmem:[%s224_s26] sm:$0xf] %vm923_vm0, %v909_v23  ;;  %v912_v26 = vadd.f32 %v1080_v24, %v1030_v18  ;;  %v1083_v27 = vadd.f32 %v1082_v25, %v1081_v6  ;;  %v1084_v28 = vpop.f32.mrb[2].mxu1 }
 0x1ad   : > { %v1085_v29 = vpop.f32.mrb[3].mxu1 }
 0x1ae   : > { %925 = vst.msk [vmem:[%s224_s26 + $0x4] sm:$0xf] %vm923_vm0, %v912_v26  ;;  %v917_v30 = vadd.f32 %v1083_v27, %v1030_v18  ;;  %v1086_v32 = vadd.f32 %v1085_v29, %v1084_v28 }
 0x1b0   : > { %926 = vst.msk [vmem:[%s224_s26 + $0x8] sm:$0xf] %vm923_vm0, %v917_v30  ;;  %v920_v33 = vadd.f32 %v1086_v32, %v1030_v18 }
 0x1b2   : > { %927 = vst.msk [vmem:[%s224_s26 + $0xc] sm:$0xf] %vm923_vm0, %v920_v33 }
 0x1b3 PF: > { %s15_s18 = sadd.s32 1, %s1173_s18  }
 0x1b4   : > { %p12_p4 = scmp.ge.s32.totalorder %s15_s18, 4  }
 0x1b6   :  { %14 = sbr.rel (!%p12_p4) target bundleno = 1 (0x1), region = 72 }

</bundles_post_ra>
